<compile_context>
chip_gen: v6e
topology: v6e:2x2x1
jax: 0.10.0
libtpu: 0.0.40
codegen_flags: <defaults>
</compile_context>

<pallas_src>
import jax
import jax.numpy as jnp
from jax.experimental import pallas as pl
from jax.experimental.pallas import tpu as pltpu


# ---------------------------------------------------------------------------
# Chip detection / per-generation configuration
# ---------------------------------------------------------------------------
def _tpu_generation():
    """Best-effort TPU generation from device_kind; None if unknown."""
    try:
        kind = jax.devices()[0].device_kind.lower()
    except Exception:
        return None
    if "7" in kind:
        return "v7x"
    if "v6" in kind or "6e" in kind:
        return "v6e"
    if "v5" in kind or "5e" in kind or "5p" in kind:
        return "v5e"
    if "v4" in kind:
        return "v4"
    return None


def _chip_config():
    gen = _tpu_generation()
    mib = 1024 * 1024
    if gen == "v7x":
        # 64 MiB physical VMEM per TC, 2 TCs -> keep blocks modest, allow
        # megacore splits, bf16 conv4 activations.
        return dict(max_rows=2048, vmem=48 * mib, split_mega=True, h4_bf16=True)
    if gen == "v6e":
        return dict(max_rows=4096, vmem=100 * mib, split_mega=False, h4_bf16=True)
    if gen in ("v5e", "v4"):
        # 128 MiB VMEM but no native bf16 VPU on v5e -> keep f32 activations.
        return dict(max_rows=4096, vmem=100 * mib, split_mega=False, h4_bf16=False)
    # Unknown chip: conservative defaults, leave the scoped VMEM limit alone.
    return dict(max_rows=2048, vmem=None, split_mega=False, h4_bf16=False)


def _pick_block_batch(B, N, max_rows, split_mega):
    """Largest divisor BB of B with BB*N <= max_rows.

    Prefers BB that is a multiple of 8 (or == B) so the (BB, 1024) gm output
    block never needs masked sub-8-sublane stores.  Only splits into >= 2 grid
    steps on v7x (megacore), and only when an aligned smaller divisor exists.
    """
    cands = [c for c in range(1, B + 1) if B % c == 0 and c * N <= max_rows]
    if not cands:
        return 1
    aligned = [c for c in cands if c == B or c % 8 == 0]
    bb = max(aligned) if aligned else max(cands)
    if split_mega and bb == B and B > 1:
        smaller = [c for c in cands if c < B and c % 8 == 0]
        if smaller:
            bb = max(smaller)
    return bb


def _full_spec(arr, single_buffer):
    """Constant-index (whole-array) BlockSpec; optionally single-buffered."""
    nd = arr.ndim
    idx = lambda *args, _nd=nd: (0,) * _nd
    if single_buffer:
        return pl.BlockSpec(arr.shape, idx, pipeline_mode=pl.Buffered(1))
    return pl.BlockSpec(arr.shape, idx)


# ---------------------------------------------------------------------------
# Encoder kernel: (BB, N, 4) padded xyz -> per-cloud global feature (BB, 1024)
# ---------------------------------------------------------------------------
def _make_encoder_kernel(h4_bf16):
    def kernel(xyz_ref, w1, b1, w2, b2, w3a, w3b, b3, w4, b4, gm_ref):
        BB, N, _ = xyz_ref.shape
        R = BB * N
        x = xyz_ref[...].reshape(R, 4)                        # (R, 4) f32

        # conv1: 3 -> 64.  K=3 contraction as rank-1 VPU multiply-adds.
        w1f = w1[...]                                         # (3, 64) f32
        h1 = (x[:, 0:1] * w1f[0:1, :]
              + x[:, 1:2] * w1f[1:2, :]
              + x[:, 2:3] * w1f[2:3, :]
              + b1[...])
        h1 = jnp.maximum(h1, 0.0)                             # (R, 64)

        # conv2: 64 -> 128 (bf16 MXU, f32 acc)
        h2 = jnp.maximum(
            jnp.dot(h1.astype(jnp.bfloat16), w2[...],
                    preferred_element_type=jnp.float32) + b2[...], 0.0)

        # adaptive_max_pool1d over points, per cloud
        g = jnp.max(h2.reshape(BB, N, 128), axis=1)           # (BB, 128)

        # conv3 on concat([h2, g.repeat(N)]): fused via row-split of W3.
        a = jnp.dot(h2.astype(jnp.bfloat16), w3a[...],
                    preferred_element_type=jnp.float32)       # (R, 256)
        gb = jnp.dot(g.astype(jnp.bfloat16), w3b[...],
                     preferred_element_type=jnp.float32)      # (BB, 256)
        h3 = jnp.maximum(
            a.reshape(BB, N, 256) + gb[:, None, :] + b3[...], 0.0)

        # conv4: 256 -> 1024
        h4 = jnp.dot(h3.reshape(R, 256).astype(jnp.bfloat16), w4[...],
                     preferred_element_type=jnp.float32) + b4[...]
        h4 = jnp.maximum(h4, 0.0)
        if h4_bf16:
            # v6e/v7x: halve the largest live intermediate; gm is bf16 anyway.
            h4 = h4.astype(jnp.bfloat16)

        # per-cloud global max pool -> (BB, 1024); fc runs later at M = B.
        gm_ref[...] = jnp.max(h4.reshape(BB, N, 1024), axis=1).astype(jnp.bfloat16)

    return kernel


def encode_gm(xyz, params, cfg=None):
    """xyz: (B, N, 3) f32 -> gm: (B, 1024) bf16 (pre-fc global feature)."""
    cfg = cfg or _chip_config()
    B, N, C = xyz.shape
    assert C == 3
    # Pad xyz rows 3 -> 4 floats for 16-byte-aligned DMA rows.
    xyz4 = jnp.pad(xyz, ((0, 0), (0, 0), (0, 1)))

    bb = _pick_block_batch(B, N, cfg["max_rows"], cfg["split_mega"])
    nb = B // bb
    weights = (params["enc_w1"], params["enc_b1"], params["enc_w2"],
               params["enc_b2"], params["enc_w3a"], params["enc_w3b"],
               params["enc_b3"], params["enc_w4"], params["enc_b4"])

    def call(single_buffer):
        return pl.pallas_call(
            _make_encoder_kernel(cfg["h4_bf16"]),
            out_shape=jax.ShapeDtypeStruct((B, 1024), jnp.bfloat16),
            grid=(nb,),
            in_specs=[pl.BlockSpec((bb, N, 4), lambda b: (b, 0, 0))]
                     + [_full_spec(w, single_buffer) for w in weights],
            out_specs=pl.BlockSpec((bb, 1024), lambda b: (b, 0)),
            compiler_params=pltpu.CompilerParams(
                dimension_semantics=("parallel",),
                vmem_limit_bytes=cfg["vmem"]),
        )(xyz4, *weights)

    try:
        return call(single_buffer=True)
    except Exception:
        # Fallback if this JAX build rejects pipeline_mode=pl.Buffered(1).
        return call(single_buffer=False)


# ---------------------------------------------------------------------------
# Head kernels (tiny, M = B): fc (1024 -> emb) and decoder fc1/fc2.
# Emitting d2 in bf16 here lets the fc3 column kernel skip per-step casts and
# lets its grid be marked "parallel" (no resident scratch / pl.when needed).
# ---------------------------------------------------------------------------
def _head_from_gm_kernel(gm_ref, wfc, bfc, w1, b1, w2, b2, emb_ref, d2_ref):
    emb = jnp.dot(gm_ref[...], wfc[...],
                  preferred_element_type=jnp.float32) + bfc[...]
    emb_ref[...] = emb
    d1 = jnp.maximum(
        jnp.dot(emb.astype(jnp.bfloat16), w1[...],
                preferred_element_type=jnp.float32) + b1[...], 0.0)
    d2 = jnp.maximum(
        jnp.dot(d1.astype(jnp.bfloat16), w2[...],
                preferred_element_type=jnp.float32) + b2[...], 0.0)
    d2_ref[...] = d2.astype(jnp.bfloat16)


def _head_from_emb_kernel(emb_ref, w1, b1, w2, b2, d2_ref):
    d1 = jnp.maximum(
        jnp.dot(emb_ref[...].astype(jnp.bfloat16), w1[...],
                preferred_element_type=jnp.float32) + b1[...], 0.0)
    d2 = jnp.maximum(
        jnp.dot(d1.astype(jnp.bfloat16), w2[...],
                preferred_element_type=jnp.float32) + b2[...], 0.0)
    d2_ref[...] = d2.astype(jnp.bfloat16)


def _const_spec(p):
    return pl.BlockSpec(p.shape, lambda i, _nd=p.ndim: (0,) * _nd)


def head_from_gm(gm, params, cfg=None):
    """gm (B, 1024) bf16 -> (emb (B, emb_dim) f32, d2 (B, 1024) bf16)."""
    cfg = cfg or _chip_config()
    B = gm.shape[0]
    emb_dim = params["enc_bfc"].shape[-1]
    args = (gm, params["enc_wfc"], params["enc_bfc"],
            params["dec_w1"], params["dec_b1"],
            params["dec_w2"], params["dec_b2"])
    return pl.pallas_call(
        _head_from_gm_kernel,
        out_shape=(jax.ShapeDtypeStruct((B, emb_dim), jnp.float32),
                   jax.ShapeDtypeStruct((B, 1024), jnp.bfloat16)),
        grid=(1,),
        in_specs=[_const_spec(a) for a in args],
        out_specs=(pl.BlockSpec((B, emb_dim), lambda i: (0, 0)),
                   pl.BlockSpec((B, 1024), lambda i: (0, 0))),
        compiler_params=pltpu.CompilerParams(
            dimension_semantics=("arbitrary",),
            vmem_limit_bytes=cfg["vmem"]),
    )(*args)


def head_from_emb(emb, params, cfg=None):
    """emb (B, emb_dim) f32 -> d2 (B, 1024) bf16 (decoder-only path)."""
    cfg = cfg or _chip_config()
    B = emb.shape[0]
    args = (emb, params["dec_w1"], params["dec_b1"],
            params["dec_w2"], params["dec_b2"])
    return pl.pallas_call(
        _head_from_emb_kernel,
        out_shape=jax.ShapeDtypeStruct((B, 1024), jnp.bfloat16),
        grid=(1,),
        in_specs=[_const_spec(a) for a in args],
        out_specs=pl.BlockSpec((B, 1024), lambda i: (0, 0)),
        compiler_params=pltpu.CompilerParams(
            dimension_semantics=("arbitrary",),
            vmem_limit_bytes=cfg["vmem"]),
    )(*args)


# ---------------------------------------------------------------------------
# fc3 kernel: d2 (B, 1024) bf16 @ dec_w3 (1024, 3*n_pts) — column streamed,
# grid marked "parallel" so v7x's two TensorCores split the column tiles.
# ---------------------------------------------------------------------------
def _fc3_kernel(d2_ref, w3_ref, b3_ref, out_ref):
    out_ref[...] = (
        jnp.dot(d2_ref[...], w3_ref[...],
                preferred_element_type=jnp.float32) + b3_ref[...])


def _col_tile(cols_p, cap=2048):
    """Lane-dense column tile (multiple of 128 dividing cols_p), capped."""
    t = min(cols_p, cap)
    t -= t % 128
    if t <= 0:
        return cols_p
    while cols_p % t != 0:
        t -= 128
    return t


def fc3_decode(d2, params, n_pts, cfg=None, col_tile=None):
    """d2: (B, 1024) bf16 -> out_pc (B, n_pts, 3) f32."""
    cfg = cfg or _chip_config()
    B = d2.shape[0]
    cols = 3 * n_pts
    cols_p = ((cols + 127) // 128) * 128      # always take the streamed path
    w3, b3 = params["dec_w3"], params["dec_b3"]
    if cols_p != cols:
        w3 = jnp.pad(w3, ((0, 0), (0, cols_p - cols)))
        b3 = jnp.pad(b3, ((0, 0), (0, cols_p - cols)))
    tc = _col_tile(cols_p) if col_tile is None else col_tile
    assert cols_p % tc == 0
    ncols = cols_p // tc

    out = pl.pallas_call(
        _fc3_kernel,
        out_shape=jax.ShapeDtypeStruct((B, cols_p), jnp.float32),
        grid=(ncols,),
        in_specs=[pl.BlockSpec((B, 1024), lambda j: (0, 0)),      # d2 (bf16)
                  pl.BlockSpec((1024, tc), lambda j: (0, j)),     # w3 streamed
                  pl.BlockSpec((1, tc), lambda j: (0, j))],
        out_specs=pl.BlockSpec((B, tc), lambda j: (0, j)),
        compiler_params=pltpu.CompilerParams(
            dimension_semantics=("parallel",),
            vmem_limit_bytes=cfg["vmem"]),
    )(d2, w3, b3)
    return out[:, :cols].reshape(B, n_pts, 3)


# ---------------------------------------------------------------------------
# Parameters (deterministic synthetic init, pre-transposed (in, out) weights;
# matmul weights in bf16, conv1 + all biases in f32).
# ---------------------------------------------------------------------------
def init_params(key, emb_dim, n_pts):
    def dense(k, fan_in, fan_out, wdtype=jnp.bfloat16):
        kw, kb = jax.random.split(k)
        scale = 1.0 / jnp.sqrt(jnp.float32(fan_in))
        w = jax.random.normal(kw, (fan_in, fan_out), jnp.float32) * scale
        b = jax.random.normal(kb, (1, fan_out), jnp.float32) * scale
        return w.astype(wdtype), b

    keys = jax.random.split(key, 8)
    p = {}
    p["enc_w1"], p["enc_b1"] = dense(keys[0], 3, 64, jnp.float32)  # VPU path
    p["enc_w2"], p["enc_b2"] = dense(keys[1], 64, 128)
    w3, p["enc_b3"] = dense(keys[2], 256, 256)
    p["enc_w3a"], p["enc_w3b"] = w3[:128], w3[128:]   # concat fused as split
    p["enc_w4"], p["enc_b4"] = dense(keys[3], 256, 1024)
    p["enc_wfc"], p["enc_bfc"] = dense(keys[4], 1024, emb_dim)
    p["dec_w1"], p["dec_b1"] = dense(keys[5], emb_dim, 512)
    p["dec_w2"], p["dec_b2"] = dense(keys[6], 512, 1024)
    p["dec_w3"], p["dec_b3"] = dense(keys[7], 1024, 3 * n_pts)
    return p


def point_cloud_ae(in_pc, params, n_pts, emb=None, col_tile=None):
    """Mirrors PointCloudAE.forward.  in_pc: (B, N, 3)."""
    cfg = _chip_config()
    if emb is None:
        # torch permutes to (B, 3, N); our kernel layout is already (B, N, C).
        gm = encode_gm(in_pc, params, cfg)
        emb, d2 = head_from_gm(gm, params, cfg)
    else:
        d2 = head_from_emb(emb, params, cfg)
    out_pc = fc3_decode(d2, params, n_pts, cfg, col_tile=col_tile)
    return emb, out_pc


# ---------------------------------------------------------------------------
# Pure-JAX reference (mirrors the bf16-operand / f32-accumulation math)
# ---------------------------------------------------------------------------
def _reference(in_pc, params, n_pts):
    relu = jax.nn.relu

    def mm(a, w):
        return jnp.dot(a.astype(jnp.bfloat16), w,
                       preferred_element_type=jnp.float32)

    x = in_pc                                                  # (B, N, 3) f32
    h1 = relu(x @ params["enc_w1"] + params["enc_b1"])
    h2 = relu(mm(h1, params["enc_w2"]) + params["enc_b2"])
    g = jnp.max(h2, axis=1, keepdims=True)                     # (B, 1, 128)
    h3 = relu(mm(h2, params["enc_w3a"]) + mm(g, params["enc_w3b"])
              + params["enc_b3"])
    h4 = relu(mm(h3, params["enc_w4"]) + params["enc_b4"])
    gm = jnp.max(h4, axis=1)                                   # (B, 1024)
    emb = mm(gm, params["enc_wfc"]) + params["enc_bfc"]
    d1 = relu(mm(emb, params["dec_w1"]) + params["dec_b1"])
    d2 = relu(mm(d1, params["dec_w2"]) + params["dec_b2"])
    out = mm(d2, params["dec_w3"]) + params["dec_b3"]
    return emb, out.reshape(emb.shape[0], n_pts, 3)


if __name__ == "__main__":
    B, N = 4, 64                  # batch, points per cloud (N multiple of 8)
    EMB_DIM, N_PTS = 128, 128

    key = jax.random.PRNGKey(0)
    k_params, k_pc = jax.random.split(key)
    params = init_params(k_params, EMB_DIM, N_PTS)
    in_pc = jax.random.normal(k_pc, (B, N, 3), jnp.float32)

    emb, out_pc = point_cloud_ae(in_pc, params, N_PTS)
    jax.block_until_ready((emb, out_pc))

    ref_emb, ref_pc = _reference(in_pc, params, N_PTS)
    assert emb.shape == (B, EMB_DIM) and out_pc.shape == (B, N_PTS, 3)
    assert jnp.allclose(emb, ref_emb, atol=3e-2, rtol=3e-2)
    assert jnp.allclose(out_pc, ref_pc, atol=3e-2, rtol=3e-2)

    # emb-provided path (decoder-only), as in PointCloudAE.forward(emb=...)
    emb2, out_pc2 = point_cloud_ae(in_pc, params, N_PTS, emb=emb)
    jax.block_until_ready(out_pc2)
    assert jnp.allclose(out_pc2, out_pc, atol=3e-2, rtol=3e-2)

    print("KERNEL_OK")
</pallas_src>

<mosaic_0001>
module attributes {stable_mosaic.version = 11 : i64} {
  func.func @kernel(%arg0: i32, %arg1: memref<4x64x4xf32, #tpu.memory_space<vmem>>, %arg2: memref<3x64xf32, #tpu.memory_space<vmem>>, %arg3: memref<1x64xf32, #tpu.memory_space<vmem>>, %arg4: memref<64x128xbf16, #tpu.memory_space<vmem>>, %arg5: memref<1x128xf32, #tpu.memory_space<vmem>>, %arg6: memref<128x256xbf16, #tpu.memory_space<vmem>>, %arg7: memref<128x256xbf16, #tpu.memory_space<vmem>>, %arg8: memref<1x256xf32, #tpu.memory_space<vmem>>, %arg9: memref<256x1024xbf16, #tpu.memory_space<vmem>>, %arg10: memref<1x1024xf32, #tpu.memory_space<vmem>>, %arg11: memref<4x1024xbf16, #tpu.memory_space<vmem>>) attributes {dimension_semantics = [#tpu.dimension_semantics<parallel>], iteration_bounds = array<i64: 1>, scalar_prefetch = 0 : i64, scratch_operands = 0 : i64, tpu.core_type = #tpu.core_type<tc>, window_params = [{transform_indices = @transform_0, window_bounds = array<i64: 4, 64, 4>}, {pipeline_mode = #tpu.pipeline_mode<synchronous>, transform_indices = @transform_1, window_bounds = array<i64: 3, 64>}, {pipeline_mode = #tpu.pipeline_mode<synchronous>, transform_indices = @transform_2, window_bounds = array<i64: 1, 64>}, {pipeline_mode = #tpu.pipeline_mode<synchronous>, transform_indices = @transform_3, window_bounds = array<i64: 64, 128>}, {pipeline_mode = #tpu.pipeline_mode<synchronous>, transform_indices = @transform_4, window_bounds = array<i64: 1, 128>}, {pipeline_mode = #tpu.pipeline_mode<synchronous>, transform_indices = @transform_5, window_bounds = array<i64: 128, 256>}, {pipeline_mode = #tpu.pipeline_mode<synchronous>, transform_indices = @transform_6, window_bounds = array<i64: 128, 256>}, {pipeline_mode = #tpu.pipeline_mode<synchronous>, transform_indices = @transform_7, window_bounds = array<i64: 1, 256>}, {pipeline_mode = #tpu.pipeline_mode<synchronous>, transform_indices = @transform_8, window_bounds = array<i64: 256, 1024>}, {pipeline_mode = #tpu.pipeline_mode<synchronous>, transform_indices = @transform_9, window_bounds = array<i64: 1, 1024>}, {transform_indices = @transform_10, window_bounds = array<i64: 4, 1024>}]} {
    %c0 = arith.constant 0 : index
    %c0_0 = arith.constant 0 : index
    %c0_1 = arith.constant 0 : index
    %0 = vector.load %arg1[%c0, %c0_0, %c0_1] : memref<4x64x4xf32, #tpu.memory_space<vmem>>, vector<4x64x4xf32>
    %1 = vector.shape_cast %0 : vector<4x64x4xf32> to vector<256x4xf32>
    %c0_2 = arith.constant 0 : index
    %c0_3 = arith.constant 0 : index
    %2 = vector.load %arg2[%c0_2, %c0_3] : memref<3x64xf32, #tpu.memory_space<vmem>>, vector<3x64xf32>
    %3 = vector.extract_strided_slice %1 {offsets = [0, 0], sizes = [256, 1], strides = [1, 1]} : vector<256x4xf32> to vector<256x1xf32>
    %4 = vector.extract_strided_slice %2 {offsets = [0, 0], sizes = [1, 64], strides = [1, 1]} : vector<3x64xf32> to vector<1x64xf32>
    %5 = vector.broadcast %3 : vector<256x1xf32> to vector<256x64xf32>
    %6 = vector.broadcast %4 : vector<1x64xf32> to vector<256x64xf32>
    %7 = arith.mulf %5, %6 : vector<256x64xf32>
    %8 = vector.extract_strided_slice %1 {offsets = [0, 1], sizes = [256, 1], strides = [1, 1]} : vector<256x4xf32> to vector<256x1xf32>
    %9 = vector.extract_strided_slice %2 {offsets = [1, 0], sizes = [1, 64], strides = [1, 1]} : vector<3x64xf32> to vector<1x64xf32>
    %10 = vector.broadcast %8 : vector<256x1xf32> to vector<256x64xf32>
    %11 = vector.broadcast %9 : vector<1x64xf32> to vector<256x64xf32>
    %12 = arith.mulf %10, %11 : vector<256x64xf32>
    %13 = arith.addf %7, %12 : vector<256x64xf32>
    %14 = vector.extract_strided_slice %1 {offsets = [0, 2], sizes = [256, 1], strides = [1, 1]} : vector<256x4xf32> to vector<256x1xf32>
    %15 = vector.extract_strided_slice %2 {offsets = [2, 0], sizes = [1, 64], strides = [1, 1]} : vector<3x64xf32> to vector<1x64xf32>
    %16 = vector.broadcast %14 : vector<256x1xf32> to vector<256x64xf32>
    %17 = vector.broadcast %15 : vector<1x64xf32> to vector<256x64xf32>
    %18 = arith.mulf %16, %17 : vector<256x64xf32>
    %19 = arith.addf %13, %18 : vector<256x64xf32>
    %c0_4 = arith.constant 0 : index
    %c0_5 = arith.constant 0 : index
    %20 = vector.load %arg3[%c0_4, %c0_5] : memref<1x64xf32, #tpu.memory_space<vmem>>, vector<1x64xf32>
    %21 = vector.broadcast %20 : vector<1x64xf32> to vector<256x64xf32>
    %22 = arith.addf %19, %21 : vector<256x64xf32>
    %cst = arith.constant 0.000000e+00 : f32
    %23 = vector.broadcast %cst : f32 to vector<256x64xf32>
    %24 = arith.maximumf %22, %23 : vector<256x64xf32>
    %25 = arith.truncf %24 : vector<256x64xf32> to vector<256x64xbf16>
    %c0_6 = arith.constant 0 : index
    %c0_7 = arith.constant 0 : index
    %26 = vector.load %arg4[%c0_6, %c0_7] : memref<64x128xbf16, #tpu.memory_space<vmem>>, vector<64x128xbf16>
    %cst_8 = arith.constant dense<0.000000e+00> : vector<256x128xf32>
    %27 = tpu.matmul %25, %26, %cst_8 {dimension_numbers = #tpu.dot_dimension_numbers<[1], [0], [0], [1], [0, 0, 1, 1], [], []>} : vector<256x64xbf16>, vector<64x128xbf16>, vector<256x128xf32> -> vector<256x128xf32>
    %c0_9 = arith.constant 0 : index
    %c0_10 = arith.constant 0 : index
    %28 = vector.load %arg5[%c0_9, %c0_10] : memref<1x128xf32, #tpu.memory_space<vmem>>, vector<1x128xf32>
    %29 = vector.broadcast %28 : vector<1x128xf32> to vector<256x128xf32>
    %30 = arith.addf %27, %29 : vector<256x128xf32>
    %cst_11 = arith.constant 0.000000e+00 : f32
    %31 = vector.broadcast %cst_11 : f32 to vector<256x128xf32>
    %32 = arith.maximumf %30, %31 : vector<256x128xf32>
    %33 = vector.shape_cast %32 : vector<256x128xf32> to vector<4x64x128xf32>
    %cst_12 = arith.constant dense<0xFF800000> : vector<4x128xf32>
    %34 = vector.multi_reduction <maximumf>, %33, %cst_12 [1] : vector<4x64x128xf32> to vector<4x128xf32>
    %35 = arith.truncf %32 : vector<256x128xf32> to vector<256x128xbf16>
    %c0_13 = arith.constant 0 : index
    %c0_14 = arith.constant 0 : index
    %36 = vector.load %arg6[%c0_13, %c0_14] : memref<128x256xbf16, #tpu.memory_space<vmem>>, vector<128x256xbf16>
    %cst_15 = arith.constant dense<0.000000e+00> : vector<256x256xf32>
    %37 = tpu.matmul %35, %36, %cst_15 {dimension_numbers = #tpu.dot_dimension_numbers<[1], [0], [0], [1], [0, 0, 1, 1], [], []>} : vector<256x128xbf16>, vector<128x256xbf16>, vector<256x256xf32> -> vector<256x256xf32>
    %38 = arith.truncf %34 : vector<4x128xf32> to vector<4x128xbf16>
    %c0_16 = arith.constant 0 : index
    %c0_17 = arith.constant 0 : index
    %39 = vector.load %arg7[%c0_16, %c0_17] : memref<128x256xbf16, #tpu.memory_space<vmem>>, vector<128x256xbf16>
    %cst_18 = arith.constant dense<0.000000e+00> : vector<4x256xf32>
    %40 = tpu.matmul %38, %39, %cst_18 {dimension_numbers = #tpu.dot_dimension_numbers<[1], [0], [0], [1], [0, 0, 1, 1], [], []>} : vector<4x128xbf16>, vector<128x256xbf16>, vector<4x256xf32> -> vector<4x256xf32>
    %41 = vector.shape_cast %37 : vector<256x256xf32> to vector<4x64x256xf32>
    %42 = vector.shape_cast %40 : vector<4x256xf32> to vector<4x1x256xf32>
    %43 = vector.broadcast %42 : vector<4x1x256xf32> to vector<4x64x256xf32>
    %44 = arith.addf %41, %43 : vector<4x64x256xf32>
    %c0_19 = arith.constant 0 : index
    %c0_20 = arith.constant 0 : index
    %45 = vector.load %arg8[%c0_19, %c0_20] : memref<1x256xf32, #tpu.memory_space<vmem>>, vector<1x256xf32>
    %46 = vector.shape_cast %45 : vector<1x256xf32> to vector<1x1x256xf32>
    %47 = vector.broadcast %46 : vector<1x1x256xf32> to vector<4x64x256xf32>
    %48 = arith.addf %44, %47 : vector<4x64x256xf32>
    %cst_21 = arith.constant 0.000000e+00 : f32
    %49 = vector.broadcast %cst_21 : f32 to vector<4x64x256xf32>
    %50 = arith.maximumf %48, %49 : vector<4x64x256xf32>
    %51 = vector.shape_cast %50 : vector<4x64x256xf32> to vector<256x256xf32>
    %52 = arith.truncf %51 : vector<256x256xf32> to vector<256x256xbf16>
    %c0_22 = arith.constant 0 : index
    %c0_23 = arith.constant 0 : index
    %53 = vector.load %arg9[%c0_22, %c0_23] : memref<256x1024xbf16, #tpu.memory_space<vmem>>, vector<256x1024xbf16>
    %cst_24 = arith.constant dense<0.000000e+00> : vector<256x1024xf32>
    %54 = tpu.matmul %52, %53, %cst_24 {dimension_numbers = #tpu.dot_dimension_numbers<[1], [0], [0], [1], [0, 0, 1, 1], [], []>} : vector<256x256xbf16>, vector<256x1024xbf16>, vector<256x1024xf32> -> vector<256x1024xf32>
    %c0_25 = arith.constant 0 : index
    %c0_26 = arith.constant 0 : index
    %55 = vector.load %arg10[%c0_25, %c0_26] : memref<1x1024xf32, #tpu.memory_space<vmem>>, vector<1x1024xf32>
    %56 = vector.broadcast %55 : vector<1x1024xf32> to vector<256x1024xf32>
    %57 = arith.addf %54, %56 : vector<256x1024xf32>
    %cst_27 = arith.constant 0.000000e+00 : f32
    %58 = vector.broadcast %cst_27 : f32 to vector<256x1024xf32>
    %59 = arith.maximumf %57, %58 : vector<256x1024xf32>
    %60 = vector.shape_cast %59 : vector<256x1024xf32> to vector<4x64x1024xf32>
    %cst_28 = arith.constant dense<0xFF800000> : vector<4x1024xf32>
    %61 = vector.multi_reduction <maximumf>, %60, %cst_28 [1] : vector<4x64x1024xf32> to vector<4x1024xf32>
    %62 = arith.truncf %61 : vector<4x1024xf32> to vector<4x1024xbf16>
    %c0_29 = arith.constant 0 : index
    %c0_30 = arith.constant 0 : index
    %63 = vector.load %arg11[%c0_29, %c0_30] : memref<4x1024xbf16, #tpu.memory_space<vmem>>, vector<4x1024xbf16>
    tpu.vector_store %arg11[%c0_29, %c0_30], %62 {strides = array<i32>} : memref<4x1024xbf16, #tpu.memory_space<vmem>>, vector<4x1024xbf16>,
    return
  }
  func.func @transform_0(%arg0: i32) -> (i32, i32, i32) {
    %c0_i32 = arith.constant 0 : i32
    %c0_i32_0 = arith.constant 0 : i32
    %c0_i32_1 = arith.constant 0 : i32
    return %arg0, %c0_i32, %c0_i32_0 : i32, i32, i32
  }
  func.func @transform_1(%arg0: i32) -> (i32, i32) {
    %c0_i32 = arith.constant 0 : i32
    %c0_i32_0 = arith.constant 0 : i32
    %c0_i32_1 = arith.constant 0 : i32
    return %c0_i32, %c0_i32_0 : i32, i32
  }
  func.func @transform_2(%arg0: i32) -> (i32, i32) {
    %c0_i32 = arith.constant 0 : i32
    %c0_i32_0 = arith.constant 0 : i32
    %c0_i32_1 = arith.constant 0 : i32
    return %c0_i32, %c0_i32_0 : i32, i32
  }
  func.func @transform_3(%arg0: i32) -> (i32, i32) {
    %c0_i32 = arith.constant 0 : i32
    %c0_i32_0 = arith.constant 0 : i32
    %c0_i32_1 = arith.constant 0 : i32
    return %c0_i32, %c0_i32_0 : i32, i32
  }
  func.func @transform_4(%arg0: i32) -> (i32, i32) {
    %c0_i32 = arith.constant 0 : i32
    %c0_i32_0 = arith.constant 0 : i32
    %c0_i32_1 = arith.constant 0 : i32
    return %c0_i32, %c0_i32_0 : i32, i32
  }
  func.func @transform_5(%arg0: i32) -> (i32, i32) {
    %c0_i32 = arith.constant 0 : i32
    %c0_i32_0 = arith.constant 0 : i32
    %c0_i32_1 = arith.constant 0 : i32
    return %c0_i32, %c0_i32_0 : i32, i32
  }
  func.func @transform_6(%arg0: i32) -> (i32, i32) {
    %c0_i32 = arith.constant 0 : i32
    %c0_i32_0 = arith.constant 0 : i32
    %c0_i32_1 = arith.constant 0 : i32
    return %c0_i32, %c0_i32_0 : i32, i32
  }
  func.func @transform_7(%arg0: i32) -> (i32, i32) {
    %c0_i32 = arith.constant 0 : i32
    %c0_i32_0 = arith.constant 0 : i32
    %c0_i32_1 = arith.constant 0 : i32
    return %c0_i32, %c0_i32_0 : i32, i32
  }
  func.func @transform_8(%arg0: i32) -> (i32, i32) {
    %c0_i32 = arith.constant 0 : i32
    %c0_i32_0 = arith.constant 0 : i32
    %c0_i32_1 = arith.constant 0 : i32
    return %c0_i32, %c0_i32_0 : i32, i32
  }
  func.func @transform_9(%arg0: i32) -> (i32, i32) {
    %c0_i32 = arith.constant 0 : i32
    %c0_i32_0 = arith.constant 0 : i32
    %c0_i32_1 = arith.constant 0 : i32
    return %c0_i32, %c0_i32_0 : i32, i32
  }
  func.func @transform_10(%arg0: i32) -> (i32, i32) {
    %c0_i32 = arith.constant 0 : i32
    %c0_i32_0 = arith.constant 0 : i32
    return %arg0, %c0_i32 : i32, i32
  }
}

module attributes {stable_mosaic.version = 11 : i64} {
  func.func @kernel(%arg0: i32, %arg1: memref<4x64x4xf32, #tpu.memory_space<vmem>>, %arg2: memref<3x64xf32, #tpu.memory_space<vmem>>, %arg3: memref<1x64xf32, #tpu.memory_space<vmem>>, %arg4: memref<64x128xbf16, #tpu.memory_space<vmem>>, %arg5: memref<1x128xf32, #tpu.memory_space<vmem>>, %arg6: memref<128x256xbf16, #tpu.memory_space<vmem>>, %arg7: memref<128x256xbf16, #tpu.memory_space<vmem>>, %arg8: memref<1x256xf32, #tpu.memory_space<vmem>>, %arg9: memref<256x1024xbf16, #tpu.memory_space<vmem>>, %arg10: memref<1x1024xf32, #tpu.memory_space<vmem>>, %arg11: memref<4x1024xbf16, #tpu.memory_space<vmem>>) attributes {dimension_semantics = [#tpu.dimension_semantics<parallel>], iteration_bounds = array<i64: 1>, scalar_prefetch = 0 : i64, scratch_operands = 0 : i64, tpu.core_type = #tpu.core_type<tc>, window_params = [{transform_indices = @transform_0, window_bounds = array<i64: 4, 64, 4>}, {pipeline_mode = #tpu.pipeline_mode<synchronous>, transform_indices = @transform_1, window_bounds = array<i64: 3, 64>}, {pipeline_mode = #tpu.pipeline_mode<synchronous>, transform_indices = @transform_2, window_bounds = array<i64: 1, 64>}, {pipeline_mode = #tpu.pipeline_mode<synchronous>, transform_indices = @transform_3, window_bounds = array<i64: 64, 128>}, {pipeline_mode = #tpu.pipeline_mode<synchronous>, transform_indices = @transform_4, window_bounds = array<i64: 1, 128>}, {pipeline_mode = #tpu.pipeline_mode<synchronous>, transform_indices = @transform_5, window_bounds = array<i64: 128, 256>}, {pipeline_mode = #tpu.pipeline_mode<synchronous>, transform_indices = @transform_6, window_bounds = array<i64: 128, 256>}, {pipeline_mode = #tpu.pipeline_mode<synchronous>, transform_indices = @transform_7, window_bounds = array<i64: 1, 256>}, {pipeline_mode = #tpu.pipeline_mode<synchronous>, transform_indices = @transform_8, window_bounds = array<i64: 256, 1024>}, {pipeline_mode = #tpu.pipeline_mode<synchronous>, transform_indices = @transform_9, window_bounds = array<i64: 1, 1024>}, {transform_indices = @transform_10, window_bounds = array<i64: 4, 1024>}]} {
    %c0 = arith.constant 0 : index
    %c0_0 = arith.constant 0 : index
    %c0_1 = arith.constant 0 : index
    %0 = vector.load %arg1[%c0, %c0_0, %c0_1] : memref<4x64x4xf32, #tpu.memory_space<vmem>>, vector<4x64x4xf32>
    %1 = vector.shape_cast %0 : vector<4x64x4xf32> to vector<256x4xf32>
    %c0_2 = arith.constant 0 : index
    %c0_3 = arith.constant 0 : index
    %2 = vector.load %arg2[%c0_2, %c0_3] : memref<3x64xf32, #tpu.memory_space<vmem>>, vector<3x64xf32>
    %3 = vector.extract_strided_slice %1 {offsets = [0, 0], sizes = [256, 1], strides = [1, 1]} : vector<256x4xf32> to vector<256x1xf32>
    %4 = vector.extract_strided_slice %2 {offsets = [0, 0], sizes = [1, 64], strides = [1, 1]} : vector<3x64xf32> to vector<1x64xf32>
    %5 = vector.broadcast %3 : vector<256x1xf32> to vector<256x64xf32>
    %6 = vector.broadcast %4 : vector<1x64xf32> to vector<256x64xf32>
    %7 = arith.mulf %5, %6 : vector<256x64xf32>
    %8 = vector.extract_strided_slice %1 {offsets = [0, 1], sizes = [256, 1], strides = [1, 1]} : vector<256x4xf32> to vector<256x1xf32>
    %9 = vector.extract_strided_slice %2 {offsets = [1, 0], sizes = [1, 64], strides = [1, 1]} : vector<3x64xf32> to vector<1x64xf32>
    %10 = vector.broadcast %8 : vector<256x1xf32> to vector<256x64xf32>
    %11 = vector.broadcast %9 : vector<1x64xf32> to vector<256x64xf32>
    %12 = arith.mulf %10, %11 : vector<256x64xf32>
    %13 = arith.addf %7, %12 : vector<256x64xf32>
    %14 = vector.extract_strided_slice %1 {offsets = [0, 2], sizes = [256, 1], strides = [1, 1]} : vector<256x4xf32> to vector<256x1xf32>
    %15 = vector.extract_strided_slice %2 {offsets = [2, 0], sizes = [1, 64], strides = [1, 1]} : vector<3x64xf32> to vector<1x64xf32>
    %16 = vector.broadcast %14 : vector<256x1xf32> to vector<256x64xf32>
    %17 = vector.broadcast %15 : vector<1x64xf32> to vector<256x64xf32>
    %18 = arith.mulf %16, %17 : vector<256x64xf32>
    %19 = arith.addf %13, %18 : vector<256x64xf32>
    %c0_4 = arith.constant 0 : index
    %c0_5 = arith.constant 0 : index
    %20 = vector.load %arg3[%c0_4, %c0_5] : memref<1x64xf32, #tpu.memory_space<vmem>>, vector<1x64xf32>
    %21 = vector.broadcast %20 : vector<1x64xf32> to vector<256x64xf32>
    %22 = arith.addf %19, %21 : vector<256x64xf32>
    %cst = arith.constant 0.000000e+00 : f32
    %23 = vector.broadcast %cst : f32 to vector<256x64xf32>
    %24 = arith.maximumf %22, %23 : vector<256x64xf32>
    %25 = arith.truncf %24 : vector<256x64xf32> to vector<256x64xbf16>
    %c0_6 = arith.constant 0 : index
    %c0_7 = arith.constant 0 : index
    %26 = vector.load %arg4[%c0_6, %c0_7] : memref<64x128xbf16, #tpu.memory_space<vmem>>, vector<64x128xbf16>
    %cst_8 = arith.constant dense<0.000000e+00> : vector<256x128xf32>
    %27 = tpu.matmul %25, %26, %cst_8 {dimension_numbers = #tpu.dot_dimension_numbers<[1], [0], [0], [1], [0, 0, 1, 1], [], []>} : vector<256x64xbf16>, vector<64x128xbf16>, vector<256x128xf32> -> vector<256x128xf32>
    %c0_9 = arith.constant 0 : index
    %c0_10 = arith.constant 0 : index
    %28 = vector.load %arg5[%c0_9, %c0_10] : memref<1x128xf32, #tpu.memory_space<vmem>>, vector<1x128xf32>
    %29 = vector.broadcast %28 : vector<1x128xf32> to vector<256x128xf32>
    %30 = arith.addf %27, %29 : vector<256x128xf32>
    %cst_11 = arith.constant 0.000000e+00 : f32
    %31 = vector.broadcast %cst_11 : f32 to vector<256x128xf32>
    %32 = arith.maximumf %30, %31 : vector<256x128xf32>
    %33 = vector.shape_cast %32 : vector<256x128xf32> to vector<4x64x128xf32>
    %cst_12 = arith.constant dense<0xFF800000> : vector<4x128xf32>
    %34 = vector.multi_reduction <maximumf>, %33, %cst_12 [1] : vector<4x64x128xf32> to vector<4x128xf32>
    %35 = arith.truncf %32 : vector<256x128xf32> to vector<256x128xbf16>
    %c0_13 = arith.constant 0 : index
    %c0_14 = arith.constant 0 : index
    %36 = vector.load %arg6[%c0_13, %c0_14] : memref<128x256xbf16, #tpu.memory_space<vmem>>, vector<128x256xbf16>
    %cst_15 = arith.constant dense<0.000000e+00> : vector<256x256xf32>
    %37 = tpu.matmul %35, %36, %cst_15 {dimension_numbers = #tpu.dot_dimension_numbers<[1], [0], [0], [1], [0, 0, 1, 1], [], []>} : vector<256x128xbf16>, vector<128x256xbf16>, vector<256x256xf32> -> vector<256x256xf32>
    %38 = arith.truncf %34 : vector<4x128xf32> to vector<4x128xbf16>
    %c0_16 = arith.constant 0 : index
    %c0_17 = arith.constant 0 : index
    %39 = vector.load %arg7[%c0_16, %c0_17] : memref<128x256xbf16, #tpu.memory_space<vmem>>, vector<128x256xbf16>
    %cst_18 = arith.constant dense<0.000000e+00> : vector<4x256xf32>
    %40 = tpu.matmul %38, %39, %cst_18 {dimension_numbers = #tpu.dot_dimension_numbers<[1], [0], [0], [1], [0, 0, 1, 1], [], []>} : vector<4x128xbf16>, vector<128x256xbf16>, vector<4x256xf32> -> vector<4x256xf32>
    %41 = vector.shape_cast %37 : vector<256x256xf32> to vector<4x64x256xf32>
    %42 = vector.shape_cast %40 : vector<4x256xf32> to vector<4x1x256xf32>
    %43 = vector.broadcast %42 : vector<4x1x256xf32> to vector<4x64x256xf32>
    %44 = arith.addf %41, %43 : vector<4x64x256xf32>
    %c0_19 = arith.constant 0 : index
    %c0_20 = arith.constant 0 : index
    %45 = vector.load %arg8[%c0_19, %c0_20] : memref<1x256xf32, #tpu.memory_space<vmem>>, vector<1x256xf32>
    %46 = vector.shape_cast %45 : vector<1x256xf32> to vector<1x1x256xf32>
    %47 = vector.broadcast %46 : vector<1x1x256xf32> to vector<4x64x256xf32>
    %48 = arith.addf %44, %47 : vector<4x64x256xf32>
    %cst_21 = arith.constant 0.000000e+00 : f32
    %49 = vector.broadcast %cst_21 : f32 to vector<4x64x256xf32>
    %50 = arith.maximumf %48, %49 : vector<4x64x256xf32>
    %51 = vector.shape_cast %50 : vector<4x64x256xf32> to vector<256x256xf32>
    %52 = arith.truncf %51 : vector<256x256xf32> to vector<256x256xbf16>
    %c0_22 = arith.constant 0 : index
    %c0_23 = arith.constant 0 : index
    %53 = vector.load %arg9[%c0_22, %c0_23] : memref<256x1024xbf16, #tpu.memory_space<vmem>>, vector<256x1024xbf16>
    %cst_24 = arith.constant dense<0.000000e+00> : vector<256x1024xf32>
    %54 = tpu.matmul %52, %53, %cst_24 {dimension_numbers = #tpu.dot_dimension_numbers<[1], [0], [0], [1], [0, 0, 1, 1], [], []>} : vector<256x256xbf16>, vector<256x1024xbf16>, vector<256x1024xf32> -> vector<256x1024xf32>
    %c0_25 = arith.constant 0 : index
    %c0_26 = arith.constant 0 : index
    %55 = vector.load %arg10[%c0_25, %c0_26] : memref<1x1024xf32, #tpu.memory_space<vmem>>, vector<1x1024xf32>
    %56 = vector.broadcast %55 : vector<1x1024xf32> to vector<256x1024xf32>
    %57 = arith.addf %54, %56 : vector<256x1024xf32>
    %cst_27 = arith.constant 0.000000e+00 : f32
    %58 = vector.broadcast %cst_27 : f32 to vector<256x1024xf32>
    %59 = arith.maximumf %57, %58 : vector<256x1024xf32>
    %60 = vector.shape_cast %59 : vector<256x1024xf32> to vector<4x64x1024xf32>
    %cst_28 = arith.constant dense<0xFF800000> : vector<4x1024xf32>
    %61 = vector.multi_reduction <maximumf>, %60, %cst_28 [1] : vector<4x64x1024xf32> to vector<4x1024xf32>
    %62 = arith.truncf %61 : vector<4x1024xf32> to vector<4x1024xbf16>
    %c0_29 = arith.constant 0 : index
    %c0_30 = arith.constant 0 : index
    %63 = vector.load %arg11[%c0_29, %c0_30] : memref<4x1024xbf16, #tpu.memory_space<vmem>>, vector<4x1024xbf16>
    tpu.vector_store %arg11[%c0_29, %c0_30], %62 {strides = array<i32>} : memref<4x1024xbf16, #tpu.memory_space<vmem>>, vector<4x1024xbf16>,
    return
  }
  func.func @transform_0(%arg0: i32) -> (i32, i32, i32) {
    %c0_i32 = arith.constant 0 : i32
    %c0_i32_0 = arith.constant 0 : i32
    %c0_i32_1 = arith.constant 0 : i32
    return %arg0, %c0_i32, %c0_i32_0 : i32, i32, i32
  }
  func.func @transform_1(%arg0: i32) -> (i32, i32) {
    %c0_i32 = arith.constant 0 : i32
    %c0_i32_0 = arith.constant 0 : i32
    %c0_i32_1 = arith.constant 0 : i32
    return %c0_i32, %c0_i32_0 : i32, i32
  }
  func.func @transform_2(%arg0: i32) -> (i32, i32) {
    %c0_i32 = arith.constant 0 : i32
    %c0_i32_0 = arith.constant 0 : i32
    %c0_i32_1 = arith.constant 0 : i32
    return %c0_i32, %c0_i32_0 : i32, i32
  }
  func.func @transform_3(%arg0: i32) -> (i32, i32) {
    %c0_i32 = arith.constant 0 : i32
    %c0_i32_0 = arith.constant 0 : i32
    %c0_i32_1 = arith.constant 0 : i32
    return %c0_i32, %c0_i32_0 : i32, i32
  }
  func.func @transform_4(%arg0: i32) -> (i32, i32) {
    %c0_i32 = arith.constant 0 : i32
    %c0_i32_0 = arith.constant 0 : i32
    %c0_i32_1 = arith.constant 0 : i32
    return %c0_i32, %c0_i32_0 : i32, i32
  }
  func.func @transform_5(%arg0: i32) -> (i32, i32) {
    %c0_i32 = arith.constant 0 : i32
    %c0_i32_0 = arith.constant 0 : i32
    %c0_i32_1 = arith.constant 0 : i32
    return %c0_i32, %c0_i32_0 : i32, i32
  }
  func.func @transform_6(%arg0: i32) -> (i32, i32) {
    %c0_i32 = arith.constant 0 : i32
    %c0_i32_0 = arith.constant 0 : i32
    %c0_i32_1 = arith.constant 0 : i32
    return %c0_i32, %c0_i32_0 : i32, i32
  }
  func.func @transform_7(%arg0: i32) -> (i32, i32) {
    %c0_i32 = arith.constant 0 : i32
    %c0_i32_0 = arith.constant 0 : i32
    %c0_i32_1 = arith.constant 0 : i32
    return %c0_i32, %c0_i32_0 : i32, i32
  }
  func.func @transform_8(%arg0: i32) -> (i32, i32) {
    %c0_i32 = arith.constant 0 : i32
    %c0_i32_0 = arith.constant 0 : i32
    %c0_i32_1 = arith.constant 0 : i32
    return %c0_i32, %c0_i32_0 : i32, i32
  }
  func.func @transform_9(%arg0: i32) -> (i32, i32) {
    %c0_i32 = arith.constant 0 : i32
    %c0_i32_0 = arith.constant 0 : i32
    %c0_i32_1 = arith.constant 0 : i32
    return %c0_i32, %c0_i32_0 : i32, i32
  }
  func.func @transform_10(%arg0: i32) -> (i32, i32) {
    %c0_i32 = arith.constant 0 : i32
    %c0_i32_0 = arith.constant 0 : i32
    return %arg0, %c0_i32 : i32, i32
  }
}

</mosaic_0001>

<bundles_post_ra>
// kernel: tpu_custom_call.1
= control target key start
LH: loop header
LB: loop body
LE: loop exit
PB: predicated region body
PF: predicated region fallthrough
CT: control target
= control target key end

     0   :  { %15 = vsyncpa [#allocation3], 0  ;;  %s7058_s0 = inlined_call_operand.vmem [shape: f32[4,64,4], index: 0, kind: input, shape index: {}]   ;;  %s7059_s1 = inlined_call_operand.vmem [shape: f32[3,64], index: 1, kind: input, shape index: {}]   ;;  %s7060_s2 = inlined_call_operand.vmem [shape: f32[1,64], index: 2, kind: input, shape index: {}]   ;;  %s7061_s3 = inlined_call_operand.hbm [shape: bf16[64,128], index: 3, kind: input, shape index: {}]   ;;  %s7062_s4 = inlined_call_operand.vmem [shape: f32[1,128], index: 4, kind: input, shape index: {}]   ;;  %s7063_s5 = inlined_call_operand.vmem [shape: bf16[128,256], index: 5, kind: input, shape index: {}]   ;;  %s7064_s6 = inlined_call_operand.vmem [shape: bf16[128,256], index: 6, kind: input, shape index: {}]   ;;  %s7065_s7 = inlined_call_operand.vmem [shape: f32[1,256], index: 7, kind: input, shape index: {}]   ;;  %s7066_s8 = inlined_call_operand.hbm [shape: bf16[256,1024], index: 8, kind: input, shape index: {}]   ;;  %s7067_s9 = inlined_call_operand.vmem [shape: f32[1,1024], index: 9, kind: input, shape index: {}]   ;;  %s7068_s10 = inlined_call_operand.hbm [shape: bf16[4,1024], index: 10, kind: output, shape index: {}]  }
   0x1   :  { %16 = vsyncpa [#allocation6], 0 }
   0x2   :  { %17 = vsyncpa [#allocation4], 0  ;;  %s5052_s13 = smov [#allocation2]  }
   0x3   :  { %s29_s14 = sshll.u32 %s5052_s13, 4  ;;  %s30_s14 = int_to_ptr.vmem [resolvable:$true] %s29_s14 }
   0x4   :  { %s4994_s15 = scalar_lea.vmem %s30_s14, 512  ;;  %p4999_p1 = scmp.lt.s32.totalorder %s30_s14, %s30_s14 }
   0x5   :  { %p4995_p0 = scmp.ne.s32.totalorder %s30_s14, %s4994_s15  ;;  %p5000_p2 = scmp.lt.s32.totalorder %s4994_s15, %s4994_s15 }
   0x7   :  { %p5001_p3 = por %p5000_p2, %p4999_p1 }
   0x9   :  { %p5002_p4 = pnand %p5001_p3, %p4995_p0 }
   0xb   :  { %5005 = shalt.err (!%p5002_p4)
}
   0xc   :  { %s5053_s16 = smov 64   ;;  %s5054_s17 = smov 4  }
   0xd   :  { %35 = dma.hbm_to_vmem [thread:$0]  %s7061_s3, 512, %s30_s14, [#allocation3], %s5053_s16, %s5053_s16, %s5054_s17  }
   0xe   :  { %s5055_s20 = smov [#allocation5]  }
   0xf   :  { %s49_s21 = sshll.u32 %s5055_s20, 4  ;;  %s50_s21 = int_to_ptr.vmem [resolvable:$true] %s49_s21 }
  0x10   :  { %s5014_s22 = scalar_lea.vmem %s50_s21, 16384  ;;  %p5019_p6 = scmp.lt.s32.totalorder %s50_s21, %s50_s21 }
  0x11   :  { %p5015_p5 = scmp.ne.s32.totalorder %s50_s21, %s5014_s22  ;;  %p5020_p7 = scmp.lt.s32.totalorder %s5014_s22, %s5014_s22 }
  0x13   :  { %p5021_p8 = por %p5020_p7, %p5019_p6 }
  0x15   :  { %p5022_p9 = pnand %p5021_p8, %p5015_p5 }
  0x17   :  { %5025 = shalt.err (!%p5022_p9)
}
  0x18   :  { %s5056_s23 = smov 512   ;;  %s5057_s24 = smov 32  }
  0x19   :  { %55 = dma.hbm_to_vmem [thread:$0]  %s7066_s8, 16384, %s50_s21, [#allocation6], %s5056_s23, %s5056_s23, %s5057_s24  }
  0x1a   :  { %5046 = dma.done.wait [#allocation3], 512  }
  0x1b   :  { %5047 = vsyncadd [#allocation3], 4294966784 }
  0x1c   :  { %5048 = dma.done.wait [#allocation6], 16384  }
  0x1d   :  { %5049 = vsyncadd [#allocation6], 4294950912  ;;  %v5058_v0 = vmov 1   ;;  %v5059_v1 = vmov 0   ;;  %v67_v2 = vld [vmem:[%s7058_s0 + $0x10] sm:$0xff]  ;;  %v65_v3 = vld [vmem:[%s7058_s0] sm:$0xff]  ;;  %v258_v56 = vlaneseq }
  0x1e   :  { %4891 = vset.pattern.permute.xlu0 %v5058_v0  ;;  %4889 = vset.pattern.permute.xlu1 %v5058_v0  ;;  %v70_v4 = vld [vmem:[%s7058_s0 + $0x28] sm:$0xff]  ;;  %v71_v6 = vld [vmem:[%s7058_s0 + $0x30] sm:$0xff]  ;;  %v68_v7 = vld [vmem:[%s7058_s0 + $0x18] sm:$0xff]  ;;  %v5060_v8 = vmov 2   ;;  %vm812_vm0 = vcmask 523264   ;;  %vm1439_vm1 = vcmask 1041409  }
  0x1f   :  { %1250 = vmatprep.mubr.bf16.mxu1 %v5059_v1  ;;  %303 = vperm.xlu0 %4891, %v67_v2   ;;  %v66_v5 = vld [vmem:[%s7058_s0 + $0x8] sm:$0xff]  ;;  %v69_v9 = vld [vmem:[%s7058_s0 + $0x20] sm:$0xff]  ;;  %v72_v10 = vld [vmem:[%s7058_s0 + $0x38] sm:$0xff]  ;;  %v5327_v59 = vshrl.u32 %v258_v56, 7  ;;  %vm1441_vm2 = vcmask 1042434   ;;  %vm1443_vm3 = vcmask 1043459  }
  0x20   :  { %295 = vperm.xlu1 %4889, %v65_v3   ;;  %v74_v11 = vld [vmem:[%s7058_s0 + $0x48] sm:$0xff]  ;;  %v5162_v12 = vld [vmem:[%s7058_s0 + $0x60] sm:$0xff]  ;;  %v5168_v13 = vld [vmem:[%s7058_s0 + $0x78] sm:$0xff] }
  0x21   :  { %v5175_v14 = vld [vmem:[%s7058_s0 + $0x88] sm:$0xff]  ;;  %v5182_v15 = vld [vmem:[%s7058_s0 + $0xa0] sm:$0xff]  ;;  %v5189_v16 = vld [vmem:[%s7058_s0 + $0xb8] sm:$0xff]  ;;  %7105 = vst [vmem:[#allocation11_spill] sm:$0xff] %v5327_v59  ;;  %v5332_v62 = vsub.s32 1, %v5327_v59 }
  0x22   :  { %v5195_v17 = vld [vmem:[%s7058_s0 + $0xc8] sm:$0xff]  ;;  %v4933_v18 = vld [vmem:[#allocation2 + $0x18] sm:$0xff]   ;;  %v4934_v19 = vld [vmem:[#allocation2 + $0x10] sm:$0xff]  }
  0x23   :  { %315 = vperm.xlu0 %4891, %v70_v4   ;;  %4805 = vmatprep.subr.bf16.mxu0 %v4933_v18  ;;  %v4935_v20 = vld [vmem:[#allocation2 + $0x8] sm:$0xff]   ;;  %v73_v21 = vld [vmem:[%s7058_s0 + $0x40] sm:$0xff]  ;;  %v75_v23 = vld [vmem:[%s7058_s0 + $0x50] sm:$0xff] }
  0x24   :  { %299 = vperm.xlu1 %4889, %v66_v5   ;;  %4806 = vmatpush3.bf16.msra.mxu0 %v4933_v18  ;;  %v4936_v22 = vld [vmem:[#allocation2] sm:$0xff]   ;;  %v76_v24 = vld [vmem:[%s7058_s0 + $0x58] sm:$0xff]  ;;  %v5219_v25 = vld [vmem:[%s7058_s0 + $0x90] sm:$0xff] }
  0x25   :  { %4807 = vmatprep.subr.bf16.mxu0 %v4934_v19  ;;  %v5228_v26 = vld [vmem:[%s7058_s0 + $0xd0] sm:$0xff]  ;;  %v5234_v27 = vld [vmem:[%s7058_s0 + $0xe0] sm:$0xff]  ;;  %v78_v28 = vld [vmem:[%s7058_s0 + $0x68] sm:$0xff] }
  0x26   :  { %v79_v29 = vld [vmem:[%s7058_s0 + $0x70] sm:$0xff]  ;;  %v5254_v30 = vld [vmem:[%s7058_s0 + $0xa8] sm:$0xff]  ;;  %v81_v38 = vld [vmem:[%s7058_s0 + $0x80] sm:$0xff] }
  0x27   :  { %319 = vperm.xlu0 %4891, %v71_v6   ;;  %v5265_v33 = vld [vmem:[%s7058_s0 + $0xb0] sm:$0xff]  ;;  %v5282_v39 = vld [vmem:[%s7058_s0 + $0xe8] sm:$0xff]  ;;  %v84_v47 = vld [vmem:[%s7058_s0 + $0x98] sm:$0xff] }
  0x28   :  { %4890 = vset.pattern.permute.xlu1 %v5059_v1  ;;  %4808 = vmatpush3.bf16.msra.mxu0 %v4934_v19  ;;  %v5289_v41 = vld [vmem:[%s7058_s0 + $0xf0] sm:$0xff]  ;;  %v5308_v48 = vld [vmem:[%s7058_s0 + $0xf8] sm:$0xff]  ;;  %v97_v63 = vld [vmem:[%s7059_s1] sm:$0x7] }
  0x29   :  { %115 = vperm.xlu1 %4890, %v68_v7   ;;  %4809 = vmatprep.subr.bf16.mxu0 %v4935_v20 }
  0x2b   :  { %4897 = vset.pattern.permute.xlu0 %v5060_v8 }
  0x2c   :  { %495 = vperm.xlu0 %4897, %v66_v5   ;;  %4810 = vmatpush3.bf16.msra.mxu0 %v4935_v20 }
  0x2d   :  { %4892 = vset.pattern.permute.xlu1 %v5058_v0  ;;  %4811 = vmatprep.subr.bf16.mxu0 %v4936_v22 }
  0x2e   :  { %307 = vperm.xlu1 %4892, %v68_v7  }
  0x30   :  { %507 = vperm.xlu0 %4897, %v69_v9   ;;  %4812 = vmatpush3.bf16.msra.mxu0 %v4936_v22 }
  0x32   :  { %4893 = vset.pattern.permute.xlu1 %v5060_v8 }
  0x33   :  { %491 = vperm.xlu1 %4893, %v65_v3  }
  0x34   :  { %519 = vperm.xlu0 %4897, %v72_v10  }
  0x37   :  { %499 = vperm.xlu1 %4893, %v67_v2  }
  0x38   :  { %527 = vperm.xlu0 %4897, %v74_v11  }
  0x3b   :  { %503 = vperm.xlu1 %4893, %v68_v7  }
  0x3c   :  { %539 = vperm.xlu0 %4897, %v5162_v12  }
  0x3f   :  { %4894 = vset.pattern.permute.xlu1 %v5059_v1 }
  0x40   :  { %125 = vperm.xlu1 %4894, %v70_v4   ;;  %551 = vperm.xlu0 %4897, %v5168_v13  }
  0x44   :  { %4895 = vset.pattern.permute.xlu1 %v5058_v0  ;;  %559 = vperm.xlu0 %4897, %v5175_v14  }
  0x45   :  { %311 = vperm.xlu1 %4895, %v69_v9  }
  0x48   :  { %571 = vperm.xlu0 %4897, %v5182_v15  }
  0x49   :  { %4896 = vset.pattern.permute.xlu1 %v5059_v1 }
  0x4a   :  { %130 = vperm.xlu1 %4896, %v71_v6  }
  0x4c   :  { %583 = vperm.xlu0 %4897, %v5189_v16  }
  0x4e   :  { %135 = vperm.xlu1 %4896, %v72_v10  }
  0x50   :  { %591 = vperm.xlu0 %4897, %v5195_v17  }
  0x52   :  { %4898 = vset.pattern.permute.xlu1 %v5058_v0 }
  0x53   :  { %323 = vperm.xlu1 %4898, %v72_v10  }
  0x54   :  { %4925 = vset.pattern.permute.xlu0 %v5059_v1 }
  0x55   :  { %100 = vperm.xlu0 %4925, %v65_v3   ;;  %v7069_v3 = vsub.s32 2, %v5327_v59 }
  0x57   :  { %4899 = vset.pattern.permute.xlu1 %v5060_v8 }
  0x58   :  { %511 = vperm.xlu1 %4899, %v70_v4  }
  0x59   :  { %105 = vperm.xlu0 %4925, %v66_v5   ;;  %v5346_v5 = vrot.slane %v97_v63, %v5332_v62 }
  0x5c   :  { %515 = vperm.xlu1 %4899, %v71_v6  }
  0x5d   :  { %110 = vperm.xlu0 %4925, %v67_v2   ;;  %v5339_v2 = vsub.s32 0, %v5327_v59 }
  0x5f   :  { %v5349_v7 = vrot.slane %v97_v63, %v5339_v2 }
  0x60   :  { %4900 = vset.pattern.permute.xlu1 %v5059_v1 }
  0x61   :  { %140 = vperm.xlu1 %4900, %v73_v21   ;;  %120 = vperm.xlu0 %4925, %v69_v9   ;;  %v5353_v9 = vrot.slane %v97_v63, %v7069_v3 }
  0x65   :  { %4901 = vset.pattern.permute.xlu1 %v5058_v0  ;;  %145 = vperm.xlu0 %4925, %v74_v11  }
  0x66   :  { %327 = vperm.xlu1 %4901, %v73_v21  }
  0x69   :  { %150 = vperm.xlu0 %4925, %v75_v23  }
  0x6a   :  { %331 = vperm.xlu1 %4901, %v74_v11  }
  0x6d   :  { %160 = vperm.xlu0 %4925, %v5162_v12  }
  0x6e   :  { %4902 = vset.pattern.permute.xlu1 %v5059_v1 }
  0x6f   :  { %155 = vperm.xlu1 %4902, %v76_v24  }
  0x71   :  { %185 = vperm.xlu0 %4925, %v5175_v14  }
  0x73   :  { %4903 = vset.pattern.permute.xlu1 %v5058_v0 }
  0x74   :  { %339 = vperm.xlu1 %4903, %v76_v24  }
  0x75   :  { %190 = vperm.xlu0 %4925, %v5219_v25  }
  0x78   :  { %4904 = vset.pattern.permute.xlu1 %v5060_v8 }
  0x79   :  { %523 = vperm.xlu1 %4904, %v73_v21   ;;  %200 = vperm.xlu0 %4925, %v5182_v15  }
  0x7d   :  { %531 = vperm.xlu1 %4904, %v75_v23   ;;  %225 = vperm.xlu0 %4925, %v5195_v17  }
  0x81   :  { %535 = vperm.xlu1 %4904, %v76_v24   ;;  %230 = vperm.xlu0 %4925, %v5228_v26  }
  0x85   :  { %4905 = vset.pattern.permute.xlu1 %v5059_v1  ;;  %240 = vperm.xlu0 %4925, %v5234_v27  }
  0x86   :  { %165 = vperm.xlu1 %4905, %v78_v28  }
  0x89   :  { %4926 = vset.pattern.permute.xlu0 %v5058_v0 }
  0x8a   :  { %4906 = vset.pattern.permute.xlu1 %v5058_v0  ;;  %335 = vperm.xlu0 %4926, %v75_v23  }
  0x8b   :  { %343 = vperm.xlu1 %4906, %v5162_v12  }
  0x8e   :  { %347 = vperm.xlu0 %4926, %v78_v28  }
  0x8f   :  { %4907 = vset.pattern.permute.xlu1 %v5059_v1 }
  0x90   :  { %170 = vperm.xlu1 %4907, %v79_v29  }
  0x92   :  { %351 = vperm.xlu0 %4926, %v79_v29  }
  0x94   :  { %175 = vperm.xlu1 %4907, %v5168_v13  }
  0x96   :  { %367 = vperm.xlu0 %4926, %v5219_v25  }
  0x98   :  { %4908 = vset.pattern.permute.xlu1 %v5058_v0 }
  0x99   :  { %355 = vperm.xlu1 %4908, %v5168_v13  }
  0x9a   :  { %v5259_v32 = vpop.permute.xlu0 %303  ;;  %379 = vperm.xlu0 %4926, %v5254_v30  }
  0x9b   :  { %v5257_v31 = vpop.permute.xlu1 %295 }
  0x9c   :  { %v426_v11 = vmul.f32 %v5346_v5, %v5257_v31 }
  0x9d   :  { %4909 = vset.pattern.permute.xlu1 %v5060_v8 }
  0x9e   :  { %543 = vperm.xlu1 %4909, %v78_v28   ;;  %v5270_v35 = vpop.permute.xlu0 %315  ;;  %383 = vperm.xlu0 %4926, %v5265_v33  }
  0x9f   :  { %v5268_v34 = vpop.permute.xlu1 %299 }
  0xa0   :  { %v427_v22 = vmul.f32 %v5346_v5, %v5268_v34  ;;  %v428_v34 = vmul.f32 %v5346_v5, %v5259_v32 }
  0xa2   :  { %547 = vperm.xlu1 %4909, %v79_v29   ;;  %v5273_v36 = vpop.permute.xlu0 %319  ;;  %399 = vperm.xlu0 %4926, %v5228_v26   ;;  %v431_v29 = vmul.f32 %v5346_v5, %v5270_v35 }
  0xa4   :  { %v116_v37 = vpop.permute.xlu1 %115 }
  0xa5   :  { %v265_v18 = vmul.f32 %v5349_v7, %v116_v37 }
  0xa6   :  { %4910 = vset.pattern.permute.xlu1 %v5059_v1  ;;  %411 = vperm.xlu0 %4926, %v5282_v39  }
  0xa7   :  { %180 = vperm.xlu1 %4910, %v81_v38   ;;  %v496_v40 = vpop.permute.xlu0 %495 }
  0xa9   :  { %v308_v42 = vpop.permute.xlu1 %307 }
  0xaa   :  { %415 = vperm.xlu0 %4926, %v5289_v41   ;;  %v429_v12 = vmul.f32 %v5346_v5, %v308_v42 }
  0xab   :  { %4911 = vset.pattern.permute.xlu1 %v5058_v0  ;;  %v5293_v43 = vpop.permute.xlu0 %507 }
  0xac   :  { %359 = vperm.xlu1 %4911, %v81_v38   ;;  %v461_v24 = vadd.f32 %v429_v12, %v265_v18  ;;  %v626_v32 = vmul.f32 %v5353_v9, %v5293_v43 }
  0xae   :  { %v492_v44 = vpop.permute.xlu1 %491  ;;  %4931 = vset.pattern.permute.xlu0 %v5060_v8 }
  0xaf   :  { %v5297_v45 = vpop.permute.xlu0 %519  ;;  %603 = vperm.xlu0 %4931, %v5234_v27   ;;  %v622_v19 = vmul.f32 %v5353_v9, %v492_v44  ;;  %v5380_v44 = vld [vmem:[%s7060_s2] ss:$0 sm:$0xff] }
  0xb0   :  { %363 = vperm.xlu1 %4911, %v5175_v14  }
  0xb2   :  { %v5300_v46 = vpop.permute.xlu1 %499 }
  0xb3   :  { %v5311_v49 = vpop.permute.xlu0 %527  ;;  %615 = vperm.xlu0 %4931, %v5308_v48  }
  0xb4   :  { %4912 = vset.pattern.permute.xlu1 %v5059_v1 }
  0xb5   :  { %195 = vperm.xlu1 %4912, %v84_v47  }
  0xb6   :  { %v504_v50 = vpop.permute.xlu1 %503 }
  0xb7   :  { %v5314_v51 = vpop.permute.xlu0 %539  ;;  %v625_v20 = vmul.f32 %v5353_v9, %v504_v50 }
  0xb9   :  { %4913 = vset.pattern.permute.xlu1 %v5058_v0 }
  0xba   :  { %371 = vperm.xlu1 %4913, %v84_v47  }
  0xbb   :  { %v126_v52 = vpop.permute.xlu1 %125  ;;  %v5317_v53 = vpop.permute.xlu0 %551 }
  0xbc   :  { %v267_v31 = vmul.f32 %v5349_v7, %v126_v52 }
  0xbe   :  { %4914 = vset.pattern.permute.xlu1 %v5060_v8 }
  0xbf   :  { %555 = vperm.xlu1 %4914, %v81_v38   ;;  %v5322_v55 = vpop.permute.xlu0 %559  ;;  %v657_v38 = vadd.f32 %v625_v20, %v461_v24 }
  0xc0   :  { %v5320_v54 = vpop.permute.xlu1 %311 }
  0xc1   :  { %v696_v12 = vadd.f32 %v5380_v44, %v657_v38 }
  0xc3   :  { %563 = vperm.xlu1 %4914, %v5219_v25   ;;  %v5325_v57 = vpop.permute.xlu0 %571 }
  0xc5   :  { %v131_v58 = vpop.permute.xlu1 %130 }
  0xc7   :  { %567 = vperm.xlu1 %4914, %v84_v47   ;;  %v5329_v60 = vpop.permute.xlu0 %583  ;;  %v268_v47 = vmul.f32 %v5349_v7, %v131_v58  ;;  %v624_v58 = vmul.f32 %v5353_v9, %v5300_v46 }
  0xc9   :  { %v136_v61 = vpop.permute.xlu1 %135 }
  0xcb   :  { %4915 = vset.pattern.permute.xlu1 %v5059_v1  ;;  %v5343_v4 = vpop.permute.xlu0 %591 }
  0xcc   :  { %205 = vperm.xlu1 %4915, %v5254_v30  }
  0xce   :  { %v324_v6 = vpop.permute.xlu1 %323 }
  0xcf   :  { %v433_v35 = vmul.f32 %v5346_v5, %v324_v6  ;;  %v463_v6 = vadd.f32 %v431_v29, %v267_v31 }
  0xd0   :  { %4916 = vset.pattern.permute.xlu1 %v5058_v0  ;;  %v101_v10 = vpop.permute.xlu0 %100 }
  0xd1   :  { %375 = vperm.xlu1 %4916, %v5182_v15   ;;  %v262_v13 = vmul.f32 %v5349_v7, %v101_v10  ;;  %v623_v15 = vmul.f32 %v5353_v9, %v496_v40  ;;  %v432_v40 = vmul.f32 %v5346_v5, %v5273_v36  ;;  %v629_v10 = vmul.f32 %v5353_v9, %v5297_v45 }
  0xd3   :  { %v512_v14 = vpop.permute.xlu1 %511  ;;  %v458_v21 = vadd.f32 %v426_v11, %v262_v13  ;;  %v269_v11 = vmul.f32 %v5349_v7, %v136_v61  ;;  %v464_v20 = vadd.f32 %v432_v40, %v268_v47 }
  0xd4   :  { %v106_v23 = vpop.permute.xlu0 %105  ;;  %v627_v50 = vmul.f32 %v5353_v9, %v512_v14 }
  0xd5   :  { %4917 = vset.pattern.permute.xlu1 %v5059_v1  ;;  %v654_v25 = vadd.f32 %v622_v19, %v458_v21  ;;  %v263_v28 = vmul.f32 %v5349_v7, %v106_v23  ;;  %v430_v19 = vmul.f32 %v5346_v5, %v5320_v54  ;;  %v465_v21 = vadd.f32 %v433_v35, %v269_v11 }
  0xd6   :  { %210 = vperm.xlu1 %4917, %v5265_v33   ;;  %v659_v45 = vadd.f32 %v627_v50, %v463_v6  ;;  %v728_v54 = vmax.f32 %v696_v12, 0.0 }
  0xd7   :  { %v516_v37 = vpop.permute.xlu1 %515  ;;  %v459_v42 = vadd.f32 %v427_v22, %v263_v28  ;;  %v693_v36 = vadd.f32 %v5380_v44, %v654_v25 }
  0xd8   :  { %v111_v52 = vpop.permute.xlu0 %110  ;;  %v628_v43 = vmul.f32 %v5353_v9, %v516_v37  ;;  %v698_v38 = vadd.f32 %v5380_v44, %v659_v45 }
  0xd9   :  { %v655_v56 = vadd.f32 %v623_v15, %v459_v42  ;;  %v264_v63 = vmul.f32 %v5349_v7, %v111_v52  ;;  %v725_v61 = vmax.f32 %v693_v36, 0.0 }
  0xda   :  { %215 = vperm.xlu1 %4917, %v5189_v16   ;;  %v660_v24 = vadd.f32 %v628_v43, %v464_v20 }
  0xdb   :  { %v460_v13 = vadd.f32 %v428_v34, %v264_v63  ;;  %v694_v18 = vadd.f32 %v5380_v44, %v655_v56  ;;  %v661_v34 = vadd.f32 %v629_v10, %v465_v21  ;;  %v730_v63 = vmax.f32 %v698_v38, 0.0 }
  0xdc   :  { %v141_v14 = vpop.permute.xlu1 %140  ;;  %v121_v22 = vpop.permute.xlu0 %120 }
  0xdd   :  { %v656_v23 = vadd.f32 %v624_v58, %v460_v13  ;;  %v266_v46 = vmul.f32 %v5349_v7, %v121_v22  ;;  %v726_v15 = vmax.f32 %v694_v18, 0.0  ;;  %v700_v56 = vadd.f32 %v5380_v44, %v661_v34 }
  0xde   :  { %4918 = vset.pattern.permute.xlu1 %v5058_v0  ;;  %v631_v18 = vmul.f32 %v5353_v9, %v5311_v49  ;;  %v270_v22 = vmul.f32 %v5349_v7, %v141_v14 }
  0xdf   :  { %387 = vperm.xlu1 %4918, %v5189_v16   ;;  %v695_v25 = vadd.f32 %v5380_v44, %v656_v23  ;;  %v462_v28 = vadd.f32 %v430_v19, %v266_v46  ;;  %v757_v29 = vpack.c.bf16 %v726_v15, %v725_v61  ;;  %v699_v16 = vadd.f32 %v5380_v44, %v660_v24 }
  0xe0   :  { %v146_v37 = vpop.permute.xlu0 %145  ;;  %v732_v6 = vmax.f32 %v700_v56, 0.0 }
  0xe1   :  { %v328_v31 = vpop.permute.xlu1 %327  ;;  %v727_v42 = vmax.f32 %v695_v25, 0.0  ;;  %v658_v40 = vadd.f32 %v626_v32, %v462_v28  ;;  %4813 = vmatprep.mubr.msk.bf16.mxu0 %vm812_vm0, %v757_v29  ;;  %v731_v32 = vmax.f32 %v699_v16, 0.0  ;;  %v271_v12 = vmul.f32 %v5349_v7, %v146_v37  ;;  %v92_v29 = vld [vmem:[%s7058_s0 + $0xd8] sm:$0xff] }
  0xe2   :  { %v434_v21 = vmul.f32 %v5346_v5, %v328_v31 }
  0xe3   :  { %4919 = vset.pattern.permute.xlu1 %v5060_v8  ;;  %v697_v47 = vadd.f32 %v5380_v44, %v658_v40  ;;  %v758_v35 = vpack.c.bf16 %v728_v54, %v727_v42  ;;  %v760_v13 = vpack.c.bf16 %v732_v6, %v731_v32 }
  0xe4   :  { %575 = vperm.xlu1 %4919, %v5254_v30   ;;  %v151_v52 = vpop.permute.xlu0 %150  ;;  %v89_v30 = vld [vmem:[%s7058_s0 + $0xc0] sm:$0xff]  ;;  %v466_v61 = vadd.f32 %v434_v21, %v270_v22 }
  0xe5   :  { %v332_v50 = vpop.permute.xlu1 %331  ;;  %v729_v36 = vmax.f32 %v697_v47, 0.0  ;;  %4814 = vmatmul.mubr.msk.bf16.vlgmr.msra.gmra.mxu0 %vm812_vm0, %v758_v35 }
  0xe6   :  { %v435_v43 = vmul.f32 %v5346_v5, %v332_v50  ;;  %v272_v50 = vmul.f32 %v5349_v7, %v151_v52 }
  0xe7   :  { %v759_v10 = vpack.c.bf16 %v730_v63, %v729_v36 }
  0xe8   :  { %579 = vperm.xlu1 %4919, %v5265_v33   ;;  %v5413_v58 = vpop.permute.xlu0 %160  ;;  %v467_v19 = vadd.f32 %v435_v43, %v271_v12 }
  0xe9   :  { %4817 = vmatprep.mubr.msk.bf16.mxu0 %vm812_vm0, %v759_v10 }
  0xea   :  { %v156_v11 = vpop.permute.xlu1 %155  ;;  %v663_v23 = vadd.f32 %v631_v18, %v467_v19 }
  0xeb   :  { %v273_v47 = vmul.f32 %v5349_v7, %v156_v11 }
  0xec   :  { %4920 = vset.pattern.permute.xlu1 %v5059_v1  ;;  %v5422_v33 = vpop.permute.xlu0 %185  ;;  %v702_v49 = vadd.f32 %v5380_v44, %v663_v23 }
  0xed   :  { %220 = vperm.xlu1 %4920, %v89_v30   ;;  %4818 = vmatmul.mubr.msk.bf16.gmra.mxu0 %vm812_vm0, %v760_v13 }
  0xee   :  { %v734_v31 = vmax.f32 %v702_v49, 0.0 }
  0xef   :  { %v340_v20 = vpop.permute.xlu1 %339 }
  0xf0   :  { %v5429_v45 = vpop.permute.xlu0 %190  ;;  %v437_v42 = vmul.f32 %v5346_v5, %v340_v20  ;;  %v274_v20 = vmul.f32 %v5349_v7, %v5413_v58  ;;  %v634_v58 = vmul.f32 %v5353_v9, %v5314_v51  ;;  %v4942_v51 = vld [vmem:[%s7063_s5 + $0x60] ss:$8 sps:$4 sm:$0xff]  }
  0xf1   :  { %4921 = vset.pattern.permute.xlu1 %v5058_v0 }
  0xf2   :  { %391 = vperm.xlu1 %4921, %v89_v30   ;;  %v469_v56 = vadd.f32 %v437_v42, %v273_v47 }
  0xf4   :  { %v524_v46 = vpop.permute.xlu1 %523  ;;  %v5433_v24 = vpop.permute.xlu0 %200 }
  0xf5   :  { %v630_v15 = vmul.f32 %v5353_v9, %v524_v46  ;;  %v4939_v46 = vld [vmem:[%s7063_s5 + $0x70] ss:$8 sps:$4 sm:$0xff]  }
  0xf6   :  { %395 = vperm.xlu1 %4921, %v5195_v17  }
  0xf7   :  { %v662_v25 = vadd.f32 %v630_v15, %v466_v61 }
  0xf8   :  { %v532_v28 = vpop.permute.xlu1 %531  ;;  %v5441_v14 = vpop.permute.xlu0 %225 }
  0xf9   :  { %v701_v54 = vadd.f32 %v5380_v44, %v662_v25  ;;  %v632_v6 = vmul.f32 %v5353_v9, %v532_v28 }
  0xfa   :  { %4922 = vset.pattern.permute.xlu1 %v5059_v1 }
  0xfb   :  { %v733_v37 = vmax.f32 %v701_v54, 0.0  ;;  %235 = vperm.xlu1 %4922, %v92_v29  }
  0xfc   :  { %v536_v34 = vpop.permute.xlu1 %535  ;;  %v5444_v17 = vpop.permute.xlu0 %230 }
  0xfd   :  { %v761_v38 = vpack.c.bf16 %v734_v31, %v733_v37  ;;  %v633_v35 = vmul.f32 %v5353_v9, %v536_v34  ;;  %v637_v31 = vmul.f32 %v5353_v9, %v5317_v53  ;;  %v4945_v53 = vld [vmem:[%s7063_s5 + $0x50] ss:$8 sps:$4 sm:$0xff]  }
  0xff   :  { %4923 = vset.pattern.permute.xlu1 %v5058_v0  ;;  %4821 = vmatprep.mubr.msk.bf16.mxu0 %vm812_vm0, %v761_v38  ;;  %v665_v32 = vadd.f32 %v633_v35, %v469_v56 }
 0x100   :  { %403 = vperm.xlu1 %4923, %v92_v29   ;;  %v5449_v16 = vpop.permute.xlu0 %240 }
 0x101   :  { %v166_v40 = vpop.permute.xlu1 %165  ;;  %v704_v11 = vadd.f32 %v5380_v44, %v665_v32  ;;  %v4946_v32 = vld [vmem:[%s7063_s5 + $0x44] ss:$8 sps:$4 sm:$0xff]  }
 0x102   :  { %v275_v37 = vmul.f32 %v5349_v7, %v166_v40 }
 0x103   :  { %v736_v52 = vmax.f32 %v704_v11, 0.0 }
 0x104   :  { %4924 = vset.pattern.permute.xlu1 %v5060_v8 }
 0x105   :  { %587 = vperm.xlu1 %4924, %v89_v30   ;;  %v336_v63 = vpop.permute.xlu0 %335 }
 0x106   :  { %v344_v36 = vpop.permute.xlu1 %343  ;;  %v436_v10 = vmul.f32 %v5346_v5, %v336_v63 }
 0x107   :  { %v438_v21 = vmul.f32 %v5346_v5, %v344_v36 }
 0x108   :  { %v468_v12 = vadd.f32 %v436_v10, %v272_v50 }
 0x109   :  { %595 = vperm.xlu1 %4924, %v5228_v26   ;;  %v348_v22 = vpop.permute.xlu0 %347  ;;  %v4937_v26 = vld [vmem:[%s7063_s5 + $0x74] ss:$8 sps:$4 sm:$0xff]   ;;  %v470_v61 = vadd.f32 %v438_v21, %v274_v20 }
 0x10a   :  { %v664_v43 = vadd.f32 %v632_v6, %v468_v12  ;;  %1218 = vmatprep.subr.bf16.mxu1 %v4937_v26  ;;  %v439_v25 = vmul.f32 %v5346_v5, %v348_v22  ;;  %v4948_v6 = vld [vmem:[%s7063_s5 + $0x40] ss:$8 sps:$4 sm:$0xff]   ;;  %v4949_v22 = vld [vmem:[%s7063_s5 + $0x34] ss:$8 sps:$4 sm:$0xff]  }
 0x10b   :  { %v171_v13 = vpop.permute.xlu1 %170  ;;  %1219 = vmatpush1.bf16.msra.mxu1 %v4939_v46  ;;  %v666_v34 = vadd.f32 %v634_v58, %v470_v61  ;;  %v4952_v61 = vld [vmem:[%s7063_s5 + $0x24] ss:$8 sps:$4 sm:$0xff]  }
 0x10c   :  { %v703_v18 = vadd.f32 %v5380_v44, %v664_v43  ;;  %v471_v47 = vadd.f32 %v439_v25, %v275_v37  ;;  %v276_v56 = vmul.f32 %v5349_v7, %v171_v13 }
 0x10d   :  { %599 = vperm.xlu1 %4924, %v92_v29   ;;  %v4940_v29 = vld [vmem:[%s7063_s5 + $0x64] ss:$8 sps:$4 sm:$0xff]   ;;  %v352_v54 = vpop.permute.xlu0 %351  ;;  %v705_v40 = vadd.f32 %v5380_v44, %v666_v34 }
 0x10e   :  { %v735_v19 = vmax.f32 %v703_v18, 0.0  ;;  %1220 = vmatprep.subr.bf16.mxu1 %v4940_v29  ;;  %v440_v35 = vmul.f32 %v5346_v5, %v352_v54 }
 0x10f   :  { %v176_v30 = vpop.permute.xlu1 %175  ;;  %1221 = vmatpush1.bf16.msra.mxu1 %v4942_v51  ;;  %v737_v13 = vmax.f32 %v705_v40, 0.0 }
 0x110   :  { %v762_v23 = vpack.c.bf16 %v736_v52, %v735_v19  ;;  %v277_v28 = vmul.f32 %v5349_v7, %v176_v30  ;;  %v472_v12 = vadd.f32 %v440_v35, %v276_v56 }
 0x111   :  { %4927 = vset.pattern.permute.xlu1 %v5059_v1  ;;  %v368_v34 = vpop.permute.xlu0 %367 }
 0x112   :  { %245 = vperm.xlu1 %4927, %v5282_v39   ;;  %4822 = vmatmul.mubr.msk.bf16.gmra.mxu0 %vm812_vm0, %v762_v23  ;;  %v4951_v23 = vld [vmem:[%s7063_s5 + $0x30] ss:$8 sps:$4 sm:$0xff]  }
 0x114   :  { %v356_v15 = vpop.permute.xlu1 %355 }
 0x115   :  { %v441_v49 = vmul.f32 %v5346_v5, %v356_v15 }
 0x116   :  { %4928 = vset.pattern.permute.xlu1 %v5058_v0 }
 0x117   :  { %407 = vperm.xlu1 %4928, %v5234_v27   ;;  %v473_v38 = vadd.f32 %v441_v49, %v277_v28  ;;  %v4943_v27 = vld [vmem:[%s7063_s5 + $0x54] ss:$8 sps:$4 sm:$0xff]   ;;  %v4954_v49 = vld [vmem:[%s7063_s5 + $0x20] ss:$8 sps:$4 sm:$0xff]   ;;  %v4957_v28 = vld [vmem:[%s7063_s5 + $0x10] ss:$8 sps:$4 sm:$0xff]  }
 0x118   :  { %1222 = vmatprep.subr.bf16.mxu1 %v4943_v27 }
 0x119   :  { %v544_v42 = vpop.permute.xlu1 %543  ;;  %v669_v63 = vadd.f32 %v637_v31, %v473_v38  ;;  %1223 = vmatpush1.bf16.msra.mxu1 %v4945_v53 }
 0x11a   :  { %v635_v50 = vmul.f32 %v5353_v9, %v544_v42  ;;  %1224 = vmatprep.subr.bf16.mxu1 %v4946_v32  ;;  %v444_v42 = vmul.f32 %v5346_v5, %v368_v34 }
 0x11b   :  { %4929 = vset.pattern.permute.xlu1 %v5059_v1  ;;  %v708_v18 = vadd.f32 %v5380_v44, %v669_v63 }
 0x11c   :  { %v667_v36 = vadd.f32 %v635_v50, %v471_v47  ;;  %250 = vperm.xlu1 %4929, %v5289_v41  }
 0x11d   :  { %v548_v10 = vpop.permute.xlu1 %547  ;;  %1225 = vmatpush1.bf16.msra.mxu1 %v4948_v6  ;;  %v740_v26 = vmax.f32 %v708_v18, 0.0 }
 0x11e   :  { %v706_v11 = vadd.f32 %v5380_v44, %v667_v36  ;;  %v636_v43 = vmul.f32 %v5353_v9, %v548_v10  ;;  %1226 = vmatprep.subr.bf16.mxu1 %v4949_v22 }
 0x120   :  { %v738_v52 = vmax.f32 %v706_v11, 0.0  ;;  %v668_v19 = vadd.f32 %v636_v43, %v472_v12  ;;  %255 = vperm.xlu1 %4929, %v5308_v48  }
 0x121   :  { %1227 = vmatpush1.bf16.msra.mxu1 %v4951_v23 }
 0x122   :  { %v763_v30 = vpack.c.bf16 %v738_v52, %v737_v13  ;;  %v707_v20 = vadd.f32 %v5380_v44, %v668_v19  ;;  %v181_v21 = vpop.permute.xlu1 %180  ;;  %1228 = vmatprep.subr.bf16.mxu1 %v4952_v61  ;;  %v642_v61 = vmul.f32 %v5353_v9, %v5325_v57 }
 0x123   :  { %v278_v38 = vmul.f32 %v5349_v7, %v181_v21 }
 0x124   :  { %v739_v46 = vmax.f32 %v707_v20, 0.0  ;;  %4930 = vset.pattern.permute.xlu1 %v5058_v0  ;;  %4825 = vmatprep.mubr.msk.bf16.mxu0 %vm812_vm0, %v763_v30  ;;  %v279_v0 = vmul.f32 %v5349_v7, %v5422_v33  ;;  %v4960_v33 = vld [vmem:[%s7063_s5] ss:$8 sps:$4 sm:$0xff]  }
 0x125   :  { %419 = vperm.xlu1 %4930, %v5308_v48   ;;  %1229 = vmatpush1.bf16.msra.mxu1 %v4954_v49  ;;  %v4955_v48 = vld [vmem:[%s7063_s5 + $0x14] ss:$8 sps:$4 sm:$0xff]  }
 0x126   :  { %v764_v58 = vpack.c.bf16 %v740_v26, %v739_v46  ;;  %1230 = vmatprep.subr.bf16.mxu1 %v4955_v48  ;;  %v282_v46 = vmul.f32 %v5349_v7, %v5433_v24 }
 0x127   :  { %v360_v15 = vpop.permute.xlu1 %359 }
 0x128   :  { %4826 = vmatmul.mubr.msk.bf16.gmra.mxu0 %vm812_vm0, %v764_v58 }
 0x129   :  { %4932 = vset.pattern.permute.xlu1 %v5060_v8  ;;  %v639_v8 = vmul.f32 %v5353_v9, %v5322_v55  ;;  %1231 = vmatpush1.bf16.msra.mxu1 %v4957_v28  ;;  %v442_v55 = vmul.f32 %v5346_v5, %v360_v15 }
 0x12a   :  { %607 = vperm.xlu1 %4932, %v5282_v39   ;;  %v4958_v39 = vld [vmem:[%s7063_s5 + $0x4] ss:$8 sps:$4 sm:$0xff]  }
 0x12b   :  { %v364_v25 = vpop.permute.xlu1 %363  ;;  %1232 = vmatprep.subr.bf16.mxu1 %v4958_v39  ;;  %v474_v35 = vadd.f32 %v442_v55, %v278_v38 }
 0x12c   :  { %v443_v29 = vmul.f32 %v5346_v5, %v364_v25  ;;  %v380_v25 = vpop.permute.xlu0 %379 }
 0x12d   :  { %1233 = vmatpush1.bf16.msra.mxu1 %v4960_v33  ;;  %v645_v33 = vmul.f32 %v5353_v9, %v5329_v60 }
 0x12e   :  { %v475_v54 = vadd.f32 %v443_v29, %v279_v0  ;;  %611 = vperm.xlu1 %4932, %v5289_v41   ;;  %v280_v41 = vmul.f32 %v5349_v7, %v5429_v45 }
 0x130   :  { %v671_v51 = vadd.f32 %v639_v8, %v475_v54  ;;  %v196_v31 = vpop.permute.xlu1 %195  ;;  %v476_v53 = vadd.f32 %v444_v42, %v280_v41  ;;  %v447_v8 = vmul.f32 %v5346_v5, %v380_v25 }
 0x131   :  { %v281_v10 = vmul.f32 %v5349_v7, %v196_v31 }
 0x132   :  { %v710_v27 = vadd.f32 %v5380_v44, %v671_v51  ;;  %v384_v51 = vpop.permute.xlu0 %383 }
 0x133   :  { %v448_v31 = vmul.f32 %v5346_v5, %v384_v51 }
 0x134   :  { %v742_v45 = vmax.f32 %v710_v27, 0.0 }
 0x135   :  { %v372_v37 = vpop.permute.xlu1 %371 }
 0x136   :  { %v445_v63 = vmul.f32 %v5346_v5, %v372_v37 }
 0x138   :  { %v477_v43 = vadd.f32 %v445_v63, %v281_v10 }
 0x13a   :  { %v556_v47 = vpop.permute.xlu1 %555 }
 0x13b   :  { %v638_v50 = vmul.f32 %v5353_v9, %v556_v47 }
 0x13d   :  { %v670_v56 = vadd.f32 %v638_v50, %v474_v35 }
 0x13e   :  { %v564_v40 = vpop.permute.xlu1 %563 }
 0x13f   :  { %v709_v36 = vadd.f32 %v5380_v44, %v670_v56  ;;  %v640_v32 = vmul.f32 %v5353_v9, %v564_v40 }
 0x141   :  { %v741_v6 = vmax.f32 %v709_v36, 0.0  ;;  %v672_v12 = vadd.f32 %v640_v32, %v476_v53 }
 0x142   :  { %v568_v11 = vpop.permute.xlu1 %567 }
 0x143   :  { %v765_v13 = vpack.c.bf16 %v742_v45, %v741_v6  ;;  %v641_v18 = vmul.f32 %v5353_v9, %v568_v11  ;;  %v711_v52 = vadd.f32 %v5380_v44, %v672_v12 }
 0x145   :  { %v673_v19 = vadd.f32 %v641_v18, %v477_v43  ;;  %4829 = vmatprep.mubr.msk.bf16.mxu0 %vm812_vm0, %v765_v13  ;;  %v743_v21 = vmax.f32 %v711_v52, 0.0  ;;  %v287_v43 = vmul.f32 %v5349_v7, %v5441_v14  ;;  %v647_v18 = vmul.f32 %v5353_v9, %v5343_v4 }
 0x147   :  { %v712_v30 = vadd.f32 %v5380_v44, %v673_v19  ;;  %v206_v20 = vpop.permute.xlu1 %205 }
 0x148   :  { %v283_v54 = vmul.f32 %v5349_v7, %v206_v20 }
 0x149   :  { %v744_v22 = vmax.f32 %v712_v30, 0.0 }
 0x14a   :  { %v479_v37 = vadd.f32 %v447_v8, %v283_v54 }
 0x14b   :  { %v766_v23 = vpack.c.bf16 %v744_v22, %v743_v21  ;;  %v400_v22 = vpop.permute.xlu0 %399 }
 0x14c   :  { %v376_v26 = vpop.permute.xlu1 %375  ;;  %v452_v14 = vmul.f32 %v5346_v5, %v400_v22 }
 0x14d   :  { %v446_v58 = vmul.f32 %v5346_v5, %v376_v26  ;;  %4830 = vmatmul.mubr.msk.bf16.gmra.mxu0 %vm812_vm0, %v766_v23 }
 0x14f   :  { %v478_v15 = vadd.f32 %v446_v58, %v282_v46  ;;  %v288_v46 = vmul.f32 %v5349_v7, %v5444_v17 }
 0x151   :  { %v674_v49 = vadd.f32 %v642_v61, %v478_v15  ;;  %v211_v0 = vpop.permute.xlu1 %210 }
 0x152   :  { %v284_v34 = vmul.f32 %v5349_v7, %v211_v0  ;;  %v484_v0 = vadd.f32 %v452_v14, %v288_v46 }
 0x153   :  { %v713_v41 = vadd.f32 %v5380_v44, %v674_v49 }
 0x154   :  { %v480_v35 = vadd.f32 %v448_v31, %v284_v34 }
 0x155   :  { %v216_v48 = vpop.permute.xlu1 %215  ;;  %v745_v60 = vmax.f32 %v713_v41, 0.0 }
 0x156   :  { %v285_v24 = vmul.f32 %v5349_v7, %v216_v48 }
 0x15a   :  { %v388_v28 = vpop.permute.xlu1 %387 }
 0x15b   :  { %v449_v29 = vmul.f32 %v5346_v5, %v388_v28 }
 0x15d   :  { %v481_v39 = vadd.f32 %v449_v29, %v285_v24 }
 0x15f   :  { %v576_v57 = vpop.permute.xlu1 %575  ;;  %v677_v38 = vadd.f32 %v645_v33, %v481_v39 }
 0x160   :  { %v643_v55 = vmul.f32 %v5353_v9, %v576_v57 }
 0x161   :  { %v716_v56 = vadd.f32 %v5380_v44, %v677_v38 }
 0x162   :  { %v675_v42 = vadd.f32 %v643_v55, %v479_v37 }
 0x163   :  { %v580_v47 = vpop.permute.xlu1 %579  ;;  %v748_v45 = vmax.f32 %v716_v56, 0.0 }
 0x164   :  { %v714_v50 = vadd.f32 %v5380_v44, %v675_v42  ;;  %v644_v27 = vmul.f32 %v5353_v9, %v580_v47  ;;  %v412_v47 = vpop.permute.xlu0 %411 }
 0x166   :  { %v746_v53 = vmax.f32 %v714_v50, 0.0  ;;  %v676_v40 = vadd.f32 %v644_v27, %v480_v35 }
 0x168   :  { %v767_v63 = vpack.c.bf16 %v746_v53, %v745_v60  ;;  %v715_v36 = vadd.f32 %v5380_v44, %v676_v40  ;;  %v221_v32 = vpop.permute.xlu1 %220  ;;  %v416_v50 = vpop.permute.xlu0 %415  ;;  %v290_v53 = vmul.f32 %v5349_v7, %v5449_v16 }
 0x169   :  { %v286_v23 = vmul.f32 %v5349_v7, %v221_v32 }
 0x16a   :  { %v747_v10 = vmax.f32 %v715_v36, 0.0  ;;  %4833 = vmatprep.mubr.msk.bf16.mxu0 %vm812_vm0, %v767_v63 }
 0x16c   :  { %v768_v6 = vpack.c.bf16 %v748_v45, %v747_v10  ;;  %v604_v56 = vpop.permute.xlu0 %603 }
 0x16d   :  { %v392_v12 = vpop.permute.xlu1 %391  ;;  %v650_v63 = vmul.f32 %v5353_v9, %v604_v56 }
 0x16e   :  { %4834 = vmatmul.mubr.msk.bf16.gmra.mxu0 %vm812_vm0, %v768_v6  ;;  %v450_v21 = vmul.f32 %v5346_v5, %v392_v12  ;;  %v455_v12 = vmul.f32 %v5346_v5, %v412_v47 }
 0x170   :  { %v482_v58 = vadd.f32 %v450_v21, %v286_v23  ;;  %v616_v45 = vpop.permute.xlu0 %615 }
 0x171   :  { %v396_v11 = vpop.permute.xlu1 %395 }
 0x172   :  { %v451_v13 = vmul.f32 %v5346_v5, %v396_v11 }
 0x174   :  { %v483_v52 = vadd.f32 %v451_v13, %v287_v43  ;;  %v653_v13 = vmul.f32 %v5353_v9, %v616_v45 }
 0x176   :  { %v679_v19 = vadd.f32 %v647_v18, %v483_v52  ;;  %v236_v30 = vpop.permute.xlu1 %235 }
 0x177   :  { %v289_v8 = vmul.f32 %v5349_v7, %v236_v30 }
 0x178   :  { %v718_v4 = vadd.f32 %v5380_v44, %v679_v19 }
 0x17a   :  { %v750_v29 = vmax.f32 %v718_v4, 0.0 }
 0x17b   :  { %v404_v20 = vpop.permute.xlu1 %403 }
 0x17c   :  { %v453_v48 = vmul.f32 %v5346_v5, %v404_v20  ;;  %v456_v20 = vmul.f32 %v5346_v5, %v416_v50 }
 0x17e   :  { %v485_v39 = vadd.f32 %v453_v48, %v289_v8 }
 0x180   :  { %v588_v26 = vpop.permute.xlu1 %587 }
 0x181   :  { %v646_v61 = vmul.f32 %v5353_v9, %v588_v26 }
 0x183   :  { %v678_v15 = vadd.f32 %v646_v61, %v482_v58  ;;  %v5622_v61 = vld [vmem:[%s7062_s4] ss:$0 sm:$0xff] }
 0x184   :  { %v596_v49 = vpop.permute.xlu1 %595 }
 0x185   :  { %v717_v25 = vadd.f32 %v5380_v44, %v678_v15  ;;  %v648_v28 = vmul.f32 %v5353_v9, %v596_v49 }
 0x187   :  { %v749_v17 = vmax.f32 %v717_v25, 0.0  ;;  %v680_v54 = vadd.f32 %v648_v28, %v484_v0 }
 0x188   :  { %v600_v24 = vpop.permute.xlu1 %599 }
 0x189   :  { %v769_v33 = vpack.c.bf16 %v750_v29, %v749_v17  ;;  %v649_v51 = vmul.f32 %v5353_v9, %v600_v24  ;;  %v719_v57 = vadd.f32 %v5380_v44, %v680_v54 }
 0x18b   :  { %v681_v31 = vadd.f32 %v649_v51, %v485_v39  ;;  %4837 = vmatprep.mubr.msk.bf16.mxu0 %vm812_vm0, %v769_v33  ;;  %v751_v55 = vmax.f32 %v719_v57, 0.0 }
 0x18d   :  { %v720_v37 = vadd.f32 %v5380_v44, %v681_v31  ;;  %v246_v34 = vpop.permute.xlu1 %245 }
 0x18e   :  { %v291_v10 = vmul.f32 %v5349_v7, %v246_v34 }
 0x18f   :  { %v752_v41 = vmax.f32 %v720_v37, 0.0 }
 0x190   :  { %v487_v52 = vadd.f32 %v455_v12, %v291_v10 }
 0x191   :  { %v770_v38 = vpack.c.bf16 %v752_v41, %v751_v55 }
 0x192   :  { %v408_v42 = vpop.permute.xlu1 %407 }
 0x193   :  { %4838 = vmatmul.mubr.msk.bf16.gmra.mxu0 %vm812_vm0, %v770_v38  ;;  %v454_v60 = vmul.f32 %v5346_v5, %v408_v42 }
 0x195   :  { %v486_v40 = vadd.f32 %v454_v60, %v290_v53 }
 0x197   :  { %v251_v35 = vpop.permute.xlu1 %250  ;;  %v682_v11 = vadd.f32 %v650_v63, %v486_v40 }
 0x198   :  { %v292_v16 = vmul.f32 %v5349_v7, %v251_v35 }
 0x199   :  { %v721_v21 = vadd.f32 %v5380_v44, %v682_v11 }
 0x19a   :  { %v488_v14 = vadd.f32 %v456_v20, %v292_v16 }
 0x19b   :  { %v256_v27 = vpop.permute.xlu1 %255 }
 0x19c   :  { %v293_v6 = vmul.f32 %v5349_v7, %v256_v27 }
 0x1a0   :  { %v420_v36 = vpop.permute.xlu1 %419 }
 0x1a1   :  { %v457_v32 = vmul.f32 %v5346_v5, %v420_v36  ;;  %v753_v5 = vmax.f32 %v721_v21, 0.0 }
 0x1a3   :  { %v489_v43 = vadd.f32 %v457_v32, %v293_v6 }
 0x1a5   :  { %v608_v18 = vpop.permute.xlu1 %607  ;;  %v4815_v30 = vpop.f32.mrf.mxu0  ;;  %v685_v22 = vadd.f32 %v653_v13, %v489_v43 }
 0x1a6   :  { %v651_v19 = vmul.f32 %v5353_v9, %v608_v18  ;;  %v904_v28 = vadd.f32 %v4815_v30, %v5622_v61 }
 0x1a7   :  { %v895_v26 = vpop.f32.mrf.mxu0  ;;  %v724_v49 = vadd.f32 %v5380_v44, %v685_v22 }
 0x1a8   :  { %v683_v23 = vadd.f32 %v651_v19, %v487_v52  ;;  %v896_v15 = vadd.f32 %v5622_v61, %v895_v26  ;;  %v1024_v31 = vmax.f32 %v904_v28, 0.0  ;;  %v4963_v26 = vld [vmem:[%s7064_s6 + $0x74] ss:$8 sps:$4 sm:$0xff]  }
 0x1a9   :  { %v612_v46 = vpop.permute.xlu1 %611  ;;  %v4816_v4 = vpop.f32.mrf.mxu0  ;;  %v756_v33 = vmax.f32 %v724_v49, 0.0  ;;  %1527 = vmatprep.subr.bf16.mxu0 %v4963_v26  ;;  %v4969_v49 = vld [vmem:[%s7064_s6 + $0x54] ss:$8 sps:$4 sm:$0xff]  }
 0x1aa   :  { %v722_v58 = vadd.f32 %v5380_v44, %v683_v23  ;;  %v652_v7 = vmul.f32 %v5353_v9, %v612_v46  ;;  %v1022_v24 = vmax.f32 %v896_v15, 0.0  ;;  %v907_v9 = vadd.f32 %v4816_v4, %v5622_v61  ;;  %v4961_v23 = vld [vmem:[%s7064_s6 + $0x70] ss:$8 sps:$4 sm:$0xff]   ;;  %v4964_v15 = vld [vmem:[%s7064_s6 + $0x60] ss:$8 sps:$4 sm:$0xff]  }
 0x1ab   :  { %v898_v25 = vpop.f32.mrf.mxu0  ;;  %1528 = vmatpush1.bf16.msra.mxu0 %v4961_v23 }
 0x1ac   :  { %v754_v0 = vmax.f32 %v722_v58, 0.0  ;;  %v684_v48 = vadd.f32 %v652_v7, %v488_v14  ;;  %v899_v29 = vadd.f32 %v5622_v61, %v898_v25  ;;  %v1025_v42 = vmax.f32 %v907_v9, 0.0 }
 0x1ad   :  { %v4819_v54 = vpop.f32.mrf.mxu0 }
 0x1ae   :  { %v771_v8 = vpack.c.bf16 %v754_v0, %v753_v5  ;;  %v723_v17 = vadd.f32 %v5380_v44, %v684_v48  ;;  %v1023_v39 = vmax.f32 %v899_v29, 0.0  ;;  %v920_v35 = vadd.f32 %v4819_v54, %v5622_v61  ;;  %v4966_v5 = vld [vmem:[%s7064_s6 + $0x64] ss:$8 sps:$4 sm:$0xff]   ;;  %v4967_v48 = vld [vmem:[%s7064_s6 + $0x50] ss:$8 sps:$4 sm:$0xff]  }
 0x1af   :  { %v911_v57 = vpop.f32.mrf.mxu0  ;;  %v1107_v63 = vpack.c.bf16 %v1025_v42, %v1024_v31  ;;  %1529 = vmatprep.subr.bf16.mxu0 %v4966_v5  ;;  %v4970_v29 = vld [vmem:[%s7064_s6 + $0x40] ss:$8 sps:$4 sm:$0xff]  }
 0x1b0   :  { %v755_v51 = vmax.f32 %v723_v17, 0.0  ;;  %4841 = vmatprep.mubr.msk.bf16.mxu0 %vm812_vm0, %v771_v8  ;;  %v1054_v37 = vmax.f32 %v1022_v24, %v1023_v39  ;;  %v912_v34 = vadd.f32 %v5622_v61, %v911_v57  ;;  %v1106_v55 = vpack.c.bf16 %v1023_v39, %v1022_v24  ;;  %1530 = vmatpush1.bf16.msra.mxu0 %v4964_v15  ;;  %v4972_v8 = vld [vmem:[%s7064_s6 + $0x44] ss:$8 sps:$4 sm:$0xff]  }
 0x1b1   :  { %v4820_v38 = vpop.f32.mrf.mxu0  ;;  %v1028_v36 = vmax.f32 %v920_v35, 0.0  ;;  %1531 = vmatprep.subr.bf16.mxu0 %v4969_v49 }
 0x1b2   :  { %v772_v41 = vpack.c.bf16 %v756_v33, %v755_v51  ;;  %v1055_v47 = vmax.f32 %v1054_v37, %v1024_v31  ;;  %1251 = vmatmul.mubr.bf16.vlgmr.msra.gmra.mxu1 %v1106_v55  ;;  %v1026_v50 = vmax.f32 %v912_v34, 0.0  ;;  %v923_v53 = vadd.f32 %v4820_v38, %v5622_v61 }
 0x1b3   :  { %v914_v44 = vpop.f32.mrf.mxu0  ;;  %1260 = vmatprep.mubr.bf16.mxu1 %v5059_v1 }
 0x1b4   :  { %4842 = vmatmul.mubr.msk.bf16.gmra.mxu0 %vm812_vm0, %v772_v41  ;;  %v1056_v27 = vmax.f32 %v1055_v47, %v1025_v42  ;;  %v915_v60 = vadd.f32 %v5622_v61, %v914_v44  ;;  %v1029_v45 = vmax.f32 %v923_v53, 0.0 }
 0x1b5   :  { %1559 = vmatprep.mubr.bf16.mxu0 %v5059_v1  ;;  %1532 = vmatpush1.bf16.msra.mxu0 %v4967_v48 }
 0x1b6   :  { %v1057_v56 = vmax.f32 %v1056_v27, %v1026_v50  ;;  %v1027_v40 = vmax.f32 %v915_v60, 0.0  ;;  %v1109_v11 = vpack.c.bf16 %v1029_v45, %v1028_v36  ;;  %1533 = vmatprep.subr.bf16.mxu0 %v4972_v8 }
 0x1b8   :  { %v1058_v32 = vmax.f32 %v1057_v56, %v1027_v40  ;;  %v1108_v12 = vpack.c.bf16 %v1027_v40, %v1026_v50 }
 0x1b9   :  { %1534 = vmatpush1.bf16.msra.mxu0 %v4970_v29 }
 0x1ba   :  { %v1059_v10 = vmax.f32 %v1058_v32, %v1028_v36  ;;  %1261 = vmatmul.mubr.bf16.gmra.mxu1 %v1107_v63  ;;  %v4973_v63 = vld [vmem:[%s7064_s6 + $0x30] ss:$8 sps:$4 sm:$0xff]   ;;  %v4975_v36 = vld [vmem:[%s7064_s6 + $0x34] ss:$8 sps:$4 sm:$0xff]  }
 0x1bb   :  { %1270 = vmatprep.mubr.bf16.mxu1 %v5059_v1  ;;  %1535 = vmatprep.subr.bf16.mxu0 %v4975_v36 }
 0x1bc   :  { %v1060_v6 = vmax.f32 %v1059_v10, %v1029_v45 }
 0x1bd   :  { %1536 = vmatpush1.bf16.msra.mxu0 %v4973_v63 }
 0x1be   :  { %v1061_v54 = vrot.slane %v1060_v6, 4 }
 0x1c0   :  { %v1062_v51 = vmax.f32 %v1060_v6, %v1061_v54 }
 0x1c2   :  { %1271 = vmatmul.mubr.bf16.gmra.mxu1 %v1108_v12  ;;  %v1063_v41 = vrot.slane %v1062_v51, 2 }
 0x1c3   :  { %1280 = vmatprep.mubr.bf16.mxu1 %v5059_v1 }
 0x1c4   :  { %v1064_v50 = vmax.f32 %v1062_v51, %v1063_v41 }
 0x1c6   :  { %v1065_v56 = vrot.slane %v1064_v50, 1 }
 0x1c8   :  { %v1066_v45 = vmax.f32 %v1064_v50, %v1065_v56 }
 0x1ca   :  { %1281 = vmatmul.mubr.bf16.gmra.mxu1 %v1109_v11  ;;  %v1411_v12 = vpack.c.bf16 %v1066_v45, %v1066_v45 }
 0x1cb   :  { %1290 = vmatprep.mubr.bf16.mxu1 %v5059_v1 }
 0x1d2   :  { %v4823_v43 = vpop.f32.mrf.mxu0 }
 0x1d3   :  { %v936_v19 = vadd.f32 %v4823_v43, %v5622_v61 }
 0x1d4   :  { %v927_v13 = vpop.f32.mrf.mxu0 }
 0x1d5   :  { %v928_v52 = vadd.f32 %v5622_v61, %v927_v13  ;;  %v1032_v46 = vmax.f32 %v936_v19, 0.0  ;;  %v1435_v13 = vunpack.c.l.b16 %v1411_v12  ;;  %v4976_v19 = vld [vmem:[%s7064_s6 + $0x20] ss:$8 sps:$4 sm:$0xff]  }
 0x1d6   :  { %v4824_v18 = vpop.f32.mrf.mxu0 }
 0x1d7   :  { %v1030_v20 = vmax.f32 %v928_v52, 0.0  ;;  %v939_v21 = vadd.f32 %v4824_v18, %v5622_v61 }
 0x1d8   :  { %v930_v16 = vpop.f32.mrf.mxu0 }
 0x1d9   :  { %v931_v30 = vadd.f32 %v5622_v61, %v930_v16  ;;  %v1033_v7 = vmax.f32 %v939_v21, 0.0  ;;  %v4978_v16 = vld [vmem:[%s7064_s6 + $0x24] ss:$8 sps:$4 sm:$0xff]   ;;  %v4981_v21 = vld [vmem:[%s7064_s6 + $0x14] ss:$8 sps:$4 sm:$0xff]  }
 0x1da   :  { %1537 = vmatprep.subr.bf16.mxu0 %v4978_v16 }
 0x1db   :  { %v1031_v22 = vmax.f32 %v931_v30, 0.0  ;;  %v1111_v25 = vpack.c.bf16 %v1033_v7, %v1032_v46  ;;  %1538 = vmatpush1.bf16.msra.mxu0 %v4976_v19 }
 0x1dc   :  { %1539 = vmatprep.subr.bf16.mxu0 %v4981_v21 }
 0x1dd   :  { %v1067_v14 = vmax.f32 %v1030_v20, %v1031_v22  ;;  %v1110_v58 = vpack.c.bf16 %v1031_v22, %v1030_v20  ;;  %v4979_v22 = vld [vmem:[%s7064_s6 + $0x10] ss:$8 sps:$4 sm:$0xff]  }
 0x1df   :  { %v1068_v4 = vmax.f32 %v1067_v14, %v1032_v46  ;;  %1291 = vmatmul.mubr.bf16.gmra.mxu1 %v1110_v58  ;;  %1540 = vmatpush1.bf16.msra.mxu0 %v4979_v22  ;;  %v4982_v14 = vld [vmem:[%s7064_s6] ss:$8 sps:$4 sm:$0xff]   ;;  %v4984_v58 = vld [vmem:[%s7064_s6 + $0x4] ss:$8 sps:$4 sm:$0xff]  }
 0x1e0   :  { %1300 = vmatprep.mubr.bf16.mxu1 %v5059_v1  ;;  %1541 = vmatprep.subr.bf16.mxu0 %v4984_v58 }
 0x1e1   :  { %v1069_v0 = vmax.f32 %v1068_v4, %v1033_v7 }
 0x1e3   :  { %1542 = vmatpush1.bf16.msra.mxu0 %v4982_v14 }
 0x1e7   :  { %1301 = vmatmul.mubr.bf16.gmra.mxu1 %v1111_v25 }
 0x1e8   :  { %v4827_v28 = vpop.f32.mrf.mxu0  ;;  %1310 = vmatprep.mubr.bf16.mxu1 %v5059_v1 }
 0x1e9   :  { %v952_v57 = vadd.f32 %v4827_v28, %v5622_v61 }
 0x1ea   :  { %v943_v17 = vpop.f32.mrf.mxu0 }
 0x1eb   :  { %v944_v24 = vadd.f32 %v5622_v61, %v943_v17  ;;  %v1036_v38 = vmax.f32 %v952_v57, 0.0 }
 0x1ec   :  { %v4828_v9 = vpop.f32.mrf.mxu0 }
 0x1ed   :  { %v1034_v39 = vmax.f32 %v944_v24, 0.0  ;;  %v955_v34 = vadd.f32 %v4828_v9, %v5622_v61 }
 0x1ee   :  { %v946_v33 = vpop.f32.mrf.mxu0 }
 0x1ef   :  { %v1070_v31 = vmax.f32 %v1069_v0, %v1034_v39  ;;  %v947_v37 = vadd.f32 %v5622_v61, %v946_v33  ;;  %v1037_v44 = vmax.f32 %v955_v34, 0.0 }
 0x1f1   :  { %v1035_v55 = vmax.f32 %v947_v37, 0.0  ;;  %v1113_v53 = vpack.c.bf16 %v1037_v44, %v1036_v38 }
 0x1f3   :  { %v1071_v42 = vmax.f32 %v1070_v31, %v1035_v55  ;;  %v1112_v47 = vpack.c.bf16 %v1035_v55, %v1034_v39 }
 0x1f5   :  { %v1072_v35 = vmax.f32 %v1071_v42, %v1036_v38  ;;  %1311 = vmatmul.mubr.bf16.gmra.mxu1 %v1112_v47 }
 0x1f6   :  { %1320 = vmatprep.mubr.bf16.mxu1 %v5059_v1 }
 0x1f7   :  { %v1073_v27 = vmax.f32 %v1072_v35, %v1037_v44 }
 0x1f9   :  { %v1074_v60 = vrot.slane %v1073_v27, 4 }
 0x1fb   :  { %v1075_v40 = vmax.f32 %v1073_v27, %v1074_v60 }
 0x1fd   :  { %v1076_v32 = vrot.slane %v1075_v40, 2  ;;  %1321 = vmatmul.mubr.bf16.gmra.mxu1 %v1113_v53 }
 0x1fe   :  { %1330 = vmatprep.mubr.bf16.mxu1 %v5059_v1 }
 0x1ff   :  { %v1077_v10 = vmax.f32 %v1075_v40, %v1076_v32 }
 0x201   :  { %v1078_v6 = vrot.slane %v1077_v10, 1 }
 0x203   :  { %v1079_v11 = vmax.f32 %v1077_v10, %v1078_v6 }
 0x205   :  { %v1412_v43 = vpack.c.bf16 %v1079_v11, %v1079_v11 }
 0x207   :  { %v1436_v18 = vunpack.c.l.b16 %v1412_v43 }
 0x209   :  { %v5685_v52 = vsel %vm1439_vm1, %v1436_v18, %v1435_v13 }
 0x20d   :  { %v4831_v30 = vpop.f32.mrf.mxu0 }
 0x20e   :  { %v968_v7 = vadd.f32 %v4831_v30, %v5622_v61 }
 0x20f   :  { %v959_v20 = vpop.f32.mrf.mxu0 }
 0x210   :  { %v960_v26 = vadd.f32 %v5622_v61, %v959_v20  ;;  %v1040_v0 = vmax.f32 %v968_v7, 0.0 }
 0x211   :  { %v4832_v23 = vpop.f32.mrf.mxu0 }
 0x212   :  { %v1038_v15 = vmax.f32 %v960_v26, 0.0  ;;  %v971_v5 = vadd.f32 %v4832_v23, %v5622_v61 }
 0x213   :  { %v962_v46 = vpop.f32.mrf.mxu0 }
 0x214   :  { %v963_v4 = vadd.f32 %v5622_v61, %v962_v46  ;;  %v1041_v28 = vmax.f32 %v971_v5, 0.0 }
 0x216   :  { %v1039_v49 = vmax.f32 %v963_v4, 0.0  ;;  %v1115_v17 = vpack.c.bf16 %v1041_v28, %v1040_v0 }
 0x218   :  { %v1080_v48 = vmax.f32 %v1038_v15, %v1039_v49  ;;  %v1114_v25 = vpack.c.bf16 %v1039_v49, %v1038_v15 }
 0x21a   :  { %v1081_v29 = vmax.f32 %v1080_v48, %v1040_v0  ;;  %1331 = vmatmul.mubr.bf16.gmra.mxu1 %v1114_v25 }
 0x21b   :  { %1340 = vmatprep.mubr.bf16.mxu1 %v5059_v1 }
 0x21c   :  { %v1082_v8 = vmax.f32 %v1081_v29, %v1041_v28 }
 0x222   :  { %1341 = vmatmul.mubr.bf16.gmra.mxu1 %v1115_v17 }
 0x223   :  { %1350 = vmatprep.mubr.bf16.mxu1 %v5059_v1 }
 0x22e   :  { %v4835_v54 = vpop.f32.mrf.mxu0 }
 0x22f   :  { %v984_v57 = vadd.f32 %v4835_v54, %v5622_v61 }
 0x230   :  { %v975_v24 = vpop.f32.mrf.mxu0 }
 0x231   :  { %v976_v9 = vadd.f32 %v5622_v61, %v975_v24  ;;  %v1044_v41 = vmax.f32 %v984_v57, 0.0  ;;  %v1928_v57 = vld [vmem:[#allocation5 + $0x1c8] sm:$0xff] }
 0x232   :  { %v4836_v39 = vpop.f32.mrf.mxu0 }
 0x233   :  { %v1042_v33 = vmax.f32 %v976_v9, 0.0  ;;  %v987_v34 = vadd.f32 %v4836_v39, %v5622_v61 }
 0x234   :  { %v978_v51 = vpop.f32.mrf.mxu0 }
 0x235   :  { %v1083_v31 = vmax.f32 %v1082_v8, %v1042_v33  ;;  %v979_v37 = vadd.f32 %v5622_v61, %v978_v51  ;;  %v1045_v47 = vmax.f32 %v987_v34, 0.0 }
 0x237   :  { %v1043_v55 = vmax.f32 %v979_v37, 0.0  ;;  %v1117_v27 = vpack.c.bf16 %v1045_v47, %v1044_v41 }
 0x239   :  { %v1084_v38 = vmax.f32 %v1083_v31, %v1043_v55  ;;  %v1116_v42 = vpack.c.bf16 %v1043_v55, %v1042_v33  ;;  %v1932_v31 = vld [vmem:[#allocation5 + $0x1e8] sm:$0xff] }
 0x23a   :  { %v4691_v37 = vcombine.low %v1928_v57, %v1932_v31  ;;  %v4692_v34 = vcombine.high %v1928_v57, %v1932_v31  ;;  %v1891_v57 = vld [vmem:[#allocation5 + $0xa0] sm:$0xff] }
 0x23b   :  { %v1085_v44 = vmax.f32 %v1084_v38, %v1044_v41  ;;  %1351 = vmatmul.mubr.bf16.gmra.mxu1 %v1116_v42  ;;  %v1924_v41 = vld [vmem:[#allocation5 + $0x1a8] sm:$0xff] }
 0x23c   :  { %1360 = vmatprep.mubr.bf16.mxu1 %v5059_v1  ;;  %v1912_v38 = vld [vmem:[#allocation5 + $0x148] sm:$0xff]  ;;  %2874 = vmatprep.subr.bf16.mxu1 %v4692_v34 }
 0x23d   :  { %v1086_v35 = vmax.f32 %v1085_v44, %v1045_v47  ;;  %v1916_v47 = vld [vmem:[#allocation5 + $0x168] sm:$0xff]  ;;  %2875 = vmatpush1.bf16.msra.mxu1 %v4691_v37 }
 0x23f   :  { %v1087_v50 = vrot.slane %v1086_v35, 4 }
 0x241   :  { %v1088_v60 = vmax.f32 %v1086_v35, %v1087_v50 }
 0x243   :  { %v1089_v56 = vrot.slane %v1088_v60, 2  ;;  %1361 = vmatmul.mubr.bf16.gmra.mxu1 %v1117_v27  ;;  %v1904_v27 = vld [vmem:[#allocation5 + $0x108] sm:$0xff] }
 0x244   :  { %1370 = vmatprep.mubr.bf16.mxu1 %v5059_v1 }
 0x245   :  { %v1090_v53 = vmax.f32 %v1088_v60, %v1089_v56  ;;  %v1908_v60 = vld [vmem:[#allocation5 + $0x128] sm:$0xff] }
 0x247   :  { %v1091_v40 = vrot.slane %v1090_v53, 1 }
 0x249   :  { %v1092_v63 = vmax.f32 %v1090_v53, %v1091_v40  ;;  %v4675_v53 = vcombine.low %v1912_v38, %v1916_v47  ;;  %v4668_v40 = vcombine.high %v1904_v27, %v1908_v60 }
 0x24b   :  { %v1413_v36 = vpack.c.bf16 %v1092_v63, %v1092_v63 }
 0x24d   :  { %v1437_v32 = vunpack.c.l.b16 %v1413_v36 }
 0x24f   :  { %v5719_v45 = vsel %vm1441_vm2, %v1437_v32, %v5685_v52  ;;  %v4667_v32 = vcombine.low %v1904_v27, %v1908_v60 }
 0x253   :  { %v4839_v10 = vpop.f32.mrf.mxu0 }
 0x254   :  { %v1000_v20 = vadd.f32 %v4839_v10, %v5622_v61 }
 0x255   :  { %v991_v6 = vpop.f32.mrf.mxu0 }
 0x256   :  { %v992_v11 = vadd.f32 %v5622_v61, %v991_v6  ;;  %v1048_v21 = vmax.f32 %v1000_v20, 0.0  ;;  %v1919_v20 = vld [vmem:[#allocation5 + $0x180] sm:$0xff] }
 0x257   :  { %v4840_v12 = vpop.f32.mrf.mxu0 }
 0x258   :  { %v1046_v18 = vmax.f32 %v992_v11, 0.0  ;;  %v1003_v19 = vadd.f32 %v4840_v12, %v5622_v61  ;;  %v1896_v12 = vld [vmem:[#allocation5 + $0xc8] sm:$0xff] }
 0x259   :  { %v994_v43 = vpop.f32.mrf.mxu0  ;;  %v1900_v11 = vld [vmem:[#allocation5 + $0xe8] sm:$0xff] }
 0x25a   :  { %v995_v13 = vadd.f32 %v5622_v61, %v994_v43  ;;  %v1049_v52 = vmax.f32 %v1003_v19, 0.0  ;;  %v4659_v43 = vcombine.low %v1896_v12, %v1900_v11 }
 0x25c   :  { %v1047_v16 = vmax.f32 %v995_v13, 0.0  ;;  %v1119_v22 = vpack.c.bf16 %v1049_v52, %v1048_v21  ;;  %v4660_v13 = vcombine.high %v1896_v12, %v1900_v11  ;;  %v1988_v11 = vld [vmem:[#allocation5 + $0x3a8] sm:$0xff] }
 0x25e   :  { %v1118_v30 = vpack.c.bf16 %v1047_v16, %v1046_v18  ;;  %v1093_v23 = vmax.f32 %v1046_v18, %v1047_v16  ;;  %v1927_v18 = vld [vmem:[#allocation5 + $0x1c0] sm:$0xff] }
 0x25f   :  { %v1931_v16 = vld [vmem:[#allocation5 + $0x1e0] sm:$0xff] }
 0x260   :  { %1371 = vmatmul.mubr.bf16.gmra.mxu1 %v1118_v30  ;;  %v1094_v14 = vmax.f32 %v1093_v23, %v1048_v21  ;;  %v4689_v19 = vcombine.low %v1927_v18, %v1931_v16  ;;  %v4690_v30 = vcombine.high %v1927_v18, %v1931_v16  ;;  %v1888_v21 = vld [vmem:[#allocation5 + $0x88] sm:$0xff] }
 0x261   :  { %1380 = vmatprep.mubr.bf16.mxu1 %v5059_v1  ;;  %v1892_v23 = vld [vmem:[#allocation5 + $0xa8] sm:$0xff] }
 0x262   :  { %v1095_v49 = vmax.f32 %v1094_v14, %v1049_v52  ;;  %2681 = vmatprep.subr.bf16.mxu0 %v4690_v30  ;;  %v1923_v52 = vld [vmem:[#allocation5 + $0x1a0] sm:$0xff]  ;;  %v4651_v14 = vcombine.low %v1888_v21, %v1892_v23  ;;  %v1976_v30 = vld [vmem:[#allocation5 + $0x348] sm:$0xff] }
 0x268   :  { %1381 = vmatmul.mubr.bf16.gmra.mxu1 %v1119_v22  ;;  %v4681_v22 = vcombine.low %v1919_v20, %v1923_v52 }
 0x269   :  { %1390 = vmatprep.mubr.bf16.mxu1 %v5059_v1 }
 0x274   :  { %v4843_v26 = vpop.f32.mrf.mxu0 }
 0x275   :  { %v1016_v5 = vadd.f32 %v4843_v26, %v5622_v61  ;;  %v1911_v26 = vld [vmem:[#allocation5 + $0x140] sm:$0xff] }
 0x276   :  { %v1007_v46 = vpop.f32.mrf.mxu0 }
 0x277   :  { %v1008_v58 = vadd.f32 %v5622_v61, %v1007_v46  ;;  %v1052_v29 = vmax.f32 %v1016_v5, 0.0  ;;  %v1915_v46 = vld [vmem:[#allocation5 + $0x160] sm:$0xff]  ;;  %v1880_v5 = vld [vmem:[#allocation5 + $0x48] sm:$0xff] }
 0x278   :  { %v4844_v7 = vpop.f32.mrf.mxu0 }
 0x279   :  { %v1050_v4 = vmax.f32 %v1008_v58, 0.0  ;;  %v1019_v25 = vadd.f32 %v4844_v7, %v5622_v61  ;;  %v4652_v58 = vcombine.high %v1888_v21, %v1892_v23  ;;  %v4674_v7 = vcombine.high %v1911_v26, %v1915_v46 }
 0x27a   :  { %v1010_v15 = vpop.f32.mrf.mxu0 }
 0x27b   :  { %v1011_v0 = vadd.f32 %v5622_v61, %v1010_v15  ;;  %v1096_v48 = vmax.f32 %v1095_v49, %v1050_v4  ;;  %v1053_v54 = vmax.f32 %v1019_v25, 0.0  ;;  %v1920_v61 = vld [vmem:[#allocation5 + $0x188] sm:$0xff]  ;;  %v1907_v15 = vld [vmem:[#allocation5 + $0x120] sm:$0xff] }
 0x27c   :  { %v4684_v42 = vcombine.high %v1920_v61, %v1924_v41  ;;  %v4683_v35 = vcombine.low %v1920_v61, %v1924_v41  ;;  %v1884_v49 = vld [vmem:[#allocation5 + $0x68] sm:$0xff]  ;;  %v1883_v61 = vld [vmem:[#allocation5 + $0x60] sm:$0xff] }
 0x27d   :  { %v1051_v28 = vmax.f32 %v1011_v0, 0.0  ;;  %v1121_v33 = vpack.c.bf16 %v1053_v54, %v1052_v29  ;;  %v4673_v0 = vcombine.low %v1911_v26, %v1915_v46  ;;  %v1872_v25 = vld [vmem:[#allocation5 + $0x8] sm:$0xff] }
 0x27e   :  { %2876 = vmatprep.subr.bf16.mxu1 %v4684_v42  ;;  %v1871_v42 = vld [vmem:[#allocation5] sm:$0xff] }
 0x27f   :  { %v1097_v8 = vmax.f32 %v1096_v48, %v1051_v28  ;;  %v1120_v17 = vpack.c.bf16 %v1051_v28, %v1050_v4  ;;  %2877 = vmatpush1.bf16.msra.mxu1 %v4683_v35  ;;  %v1903_v4 = vld [vmem:[#allocation5 + $0x100] sm:$0xff]  ;;  %v4644_v48 = vcombine.high %v1880_v5, %v1884_v49 }
 0x280   :  { %v4666_v28 = vcombine.high %v1903_v4, %v1907_v15 }
 0x281   :  { %v1098_v24 = vmax.f32 %v1097_v8, %v1052_v29  ;;  %1391 = vmatmul.mubr.bf16.gmra.mxu1 %v1120_v17  ;;  %v4643_v29 = vcombine.low %v1880_v5, %v1884_v49  ;;  %v1876_v8 = vld [vmem:[#allocation5 + $0x28] sm:$0xff]  ;;  %v1895_v17 = vld [vmem:[#allocation5 + $0xc0] sm:$0xff] }
 0x282   :  { %1400 = vmatprep.mubr.bf16.mxu1 %v5059_v1  ;;  %v4676_v1 = vcombine.high %v1912_v38, %v1916_v47  ;;  %v1875_v47 = vld [vmem:[#allocation5 + $0x20] sm:$0xff]  ;;  %v1960_v49 = vld [vmem:[#allocation5 + $0x2c8] sm:$0xff] }
 0x283   :  { %v1099_v9 = vmax.f32 %v1098_v24, %v1053_v54  ;;  %v1899_v54 = vld [vmem:[#allocation5 + $0xe0] sm:$0xff]  ;;  %v4636_v24 = vcombine.high %v1872_v25, %v1876_v8  ;;  %v4634_v35 = vcombine.high %v1871_v42, %v1875_v47 }
 0x284   :  { %2878 = vmatprep.subr.bf16.mxu1 %v4676_v1  ;;  %v4657_v31 = vcombine.low %v1895_v17, %v1899_v54  ;;  %v1992_v1 = vld [vmem:[#allocation5 + $0x3c8] sm:$0xff]  ;;  %v1963_v5 = vld [vmem:[#allocation5 + $0x2e0] sm:$0xff] }
 0x285   :  { %v1100_v39 = vrot.slane %v1099_v9, 4  ;;  %2879 = vmatpush1.bf16.msra.mxu1 %v4675_v53  ;;  %v1995_v53 = vld [vmem:[#allocation5 + $0x3e0] sm:$0xff] }
 0x286   :  { %2880 = vmatprep.subr.bf16.mxu1 %v4668_v40 }
 0x287   :  { %v1101_v51 = vmax.f32 %v1099_v9, %v1100_v39  ;;  %v4665_v9 = vcombine.low %v1903_v4, %v1907_v15  ;;  %v4658_v39 = vcombine.high %v1895_v17, %v1899_v54  ;;  %v1959_v15 = vld [vmem:[#allocation5 + $0x2c0] sm:$0xff]  ;;  %v1952_v54 = vld [vmem:[#allocation5 + $0x288] sm:$0xff] }
 0x288   :  { %v1955_v17 = vld [vmem:[#allocation5 + $0x2a0] sm:$0xff] }
 0x289   :  { %v1102_v55 = vrot.slane %v1101_v51, 2  ;;  %1401 = vmatmul.mubr.bf16.gmra.mxu1 %v1121_v33  ;;  %v4635_v33 = vcombine.low %v1872_v25, %v1876_v8  ;;  %v4721_v25 = vcombine.low %v1959_v15, %v1963_v5  ;;  %v1951_v8 = vld [vmem:[#allocation5 + $0x280] sm:$0xff] }
 0x28a   :  { %2881 = vmatpush1.bf16.msra.mxu1 %v4667_v32  ;;  %v1987_v32 = vld [vmem:[#allocation5 + $0x3a0] sm:$0xff] }
 0x28b   :  { %v1103_v44 = vmax.f32 %v1101_v51, %v1102_v55  ;;  %2882 = vmatprep.subr.bf16.mxu1 %v4660_v13  ;;  %v1887_v51 = vld [vmem:[#allocation5 + $0x80] sm:$0xff] }
 0x28c   :  { %v4650_v37 = vcombine.high %v1887_v51, %v1891_v57  ;;  %v4649_v34 = vcombine.low %v1887_v51, %v1891_v57  ;;  %v1879_v55 = vld [vmem:[#allocation5 + $0x40] sm:$0xff] }
 0x28d   :  { %v1104_v50 = vrot.slane %v1103_v44, 1  ;;  %v4641_v41 = vcombine.low %v1879_v55, %v1883_v61  ;;  %v4642_v38 = vcombine.high %v1879_v55, %v1883_v61  ;;  %v1979_v13 = vld [vmem:[#allocation5 + $0x360] sm:$0xff] }
 0x28e   :  { %2883 = vmatpush1.bf16.msra.mxu1 %v4659_v43  ;;  %v1975_v43 = vld [vmem:[#allocation5 + $0x340] sm:$0xff] }
 0x28f   :  { %v1105_v56 = vmax.f32 %v1103_v44, %v1104_v50  ;;  %2884 = vmatprep.subr.bf16.mxu1 %v4652_v58  ;;  %v4633_v44 = vcombine.low %v1871_v42, %v1875_v47  ;;  %v1996_v50 = vld [vmem:[#allocation5 + $0x3e8] sm:$0xff] }
 0x290   :  { %v4755_v27 = vcombine.low %v1992_v1, %v1996_v50  ;;  %v4756_v60 = vcombine.high %v1992_v1, %v1996_v50  ;;  %v1972_v58 = vld [vmem:[#allocation5 + $0x328] sm:$0xff] }
 0x291   :  { %v1414_v63 = vpack.c.bf16 %v1105_v56, %v1105_v56  ;;  %v1991_v56 = vld [vmem:[#allocation5 + $0x3c0] sm:$0xff]  ;;  %v1936_v1 = vld [vmem:[#allocation5 + $0x208] sm:$0xff] }
 0x292   :  { %2885 = vmatpush1.bf16.msra.mxu1 %v4651_v14  ;;  %v4753_v40 = vcombine.low %v1991_v56, %v1995_v53  ;;  %v1968_v14 = vld [vmem:[#allocation5 + $0x308] sm:$0xff] }
 0x293   :  { %v1438_v36 = vunpack.c.l.b16 %v1414_v63  ;;  %2886 = vmatprep.subr.bf16.mxu1 %v4644_v48  ;;  %v4754_v63 = vcombine.high %v1991_v56, %v1995_v53  ;;  %v4731_v4 = vcombine.low %v1968_v14, %v1972_v58  ;;  %v1964_v48 = vld [vmem:[#allocation5 + $0x2e8] sm:$0xff] }
 0x295   :  { %v1444_v10 = vsel %vm1443_vm3, %v1438_v36, %v5719_v45  ;;  %v4682_v45 = vcombine.high %v1919_v20, %v1923_v52  ;;  %v1983_v36 = vld [vmem:[#allocation5 + $0x380] sm:$0xff]  ;;  %v1980_v20 = vld [vmem:[#allocation5 + $0x368] sm:$0xff] }
 0x296   :  { %v1445_v6 = vpack.c.b16 %v1444_v10, %v1444_v10  ;;  %2887 = vmatpush1.bf16.msra.mxu1 %v4643_v29  ;;  %v1984_v10 = vld [vmem:[#allocation5 + $0x388] sm:$0xff]  ;;  %v4746_v12 = vcombine.high %v1983_v36, %v1987_v32  ;;  %v1967_v52 = vld [vmem:[#allocation5 + $0x300] sm:$0xff]  ;;  %v4740_v21 = vcombine.high %v1976_v30, %v1980_v20  ;;  %v4739_v23 = vcombine.low %v1976_v30, %v1980_v20  ;;  %v1934_v30 = vld [vmem:[#allocation5 + $0x1f8] sm:$0xff] }
 0x297   :  { %2888 = vmatprep.subr.bf16.mxu1 %v4636_v24  ;;  %v4747_v18 = vcombine.low %v1984_v10, %v1988_v11  ;;  %v4748_v16 = vcombine.high %v1984_v10, %v1988_v11  ;;  %v4724_v29 = vcombine.high %v1960_v49, %v1964_v48  ;;  %v5734_v24 = vpop.f32.mrf.mxu1 }
 0x298   :  { %1560 = vmatmul.mubr.bf16.vlgmr.msra.gmra.mxu0 %v1445_v6  ;;  %v4745_v6 = vcombine.low %v1983_v36, %v1987_v32  ;;  %v5740_v36 = vld [vmem:[#allocation5 + $0x1d0] sm:$0xff] }
 0x299   :  { %2682 = vmatpush1.bf16.msra.mxu0 %v4689_v19  ;;  %v4738_v19 = vcombine.high %v1975_v43, %v1979_v13  ;;  %v5736_v55 = vpop.f32.mrf.mxu1  ;;  %v5742_v32 = vld [vmem:[#allocation5 + $0x1f0] sm:$0xff] }
 0x29a   :  { %2683 = vmatprep.subr.bf16.mxu0 %v4682_v45  ;;  %2889 = vmatpush1.bf16.msra.mxu1 %v4635_v33  ;;  %v4737_v45 = vcombine.low %v1975_v43, %v1979_v13  ;;  %v4713_v33 = vcombine.low %v1951_v8, %v1955_v17 }
 0x29b   :  { %2890 = vmatprep.subr.bf16.mxu1 %v4756_v60  ;;  %v1940_v60 = vld [vmem:[#allocation5 + $0x228] sm:$0xff]  ;;  %v5738_v56 = vpop.f32.mrf.mxu1 }
 0x29c   :  { %v4699_v53 = vcombine.low %v1936_v1, %v1940_v60 }
 0x29d   :  { %2684 = vmatpush1.bf16.msra.mxu0 %v4681_v22  ;;  %v1971_v22 = vld [vmem:[#allocation5 + $0x320] sm:$0xff] }
 0x29e   :  { %2685 = vmatprep.subr.bf16.mxu0 %v4674_v7  ;;  %2891 = vmatpush2.bf16.msra.mxu1 %v4755_v27  ;;  %v4730_v26 = vcombine.high %v1967_v52, %v1971_v22  ;;  %v4729_v46 = vcombine.low %v1967_v52, %v1971_v22  ;;  %v4732_v7 = vcombine.high %v1968_v14, %v1972_v58 }
 0x29f   :  { %2892 = vmatprep.subr.bf16.mxu1 %v4748_v16 }
 0x2a1   :  { %2686 = vmatpush1.bf16.msra.mxu0 %v4673_v0  ;;  %v4722_v0 = vcombine.high %v1959_v15, %v1963_v5 }
 0x2a2   :  { %2687 = vmatprep.subr.bf16.mxu0 %v4666_v28  ;;  %2893 = vmatpush2.bf16.msra.mxu1 %v4747_v18  ;;  %v4723_v28 = vcombine.low %v1960_v49, %v1964_v48 }
 0x2a3   :  { %2894 = vmatprep.subr.bf16.mxu1 %v4740_v21 }
 0x2a5   :  { %2688 = vmatpush1.bf16.msra.mxu0 %v4665_v9  ;;  %v4714_v9 = vcombine.high %v1951_v8, %v1955_v17 }
 0x2a6   :  { %2689 = vmatprep.subr.bf16.mxu0 %v4658_v39  ;;  %2895 = vmatpush2.bf16.msra.mxu1 %v4739_v23  ;;  %v1956_v39 = vld [vmem:[#allocation5 + $0x2a8] sm:$0xff] }
 0x2a7   :  { %2896 = vmatprep.subr.bf16.mxu1 %v4732_v7  ;;  %v4715_v51 = vcombine.low %v1952_v54, %v1956_v39  ;;  %v4716_v57 = vcombine.high %v1952_v54, %v1956_v39  ;;  %v5061_v54 = vmov 1966171168  }
 0x2a9   :  { %2690 = vmatpush1.bf16.msra.mxu0 %v4657_v31  ;;  %v1943_v31 = vld [vmem:[#allocation5 + $0x240] sm:$0xff] }
 0x2aa   :  { %2691 = vmatprep.subr.bf16.mxu0 %v4650_v37  ;;  %2897 = vmatpush2.bf16.msra.mxu1 %v4731_v4  ;;  %v1947_v37 = vld [vmem:[#allocation5 + $0x260] sm:$0xff] }
 0x2ab   :  { %2898 = vmatprep.subr.bf16.mxu1 %v4724_v29  ;;  %v4706_v61 = vcombine.high %v1943_v31, %v1947_v37 }
 0x2ad   :  { %2692 = vmatpush1.bf16.msra.mxu0 %v4649_v34  ;;  %v1944_v34 = vld [vmem:[#allocation5 + $0x248] sm:$0xff] }
 0x2ae   :  { %2693 = vmatprep.subr.bf16.mxu0 %v4642_v38  ;;  %2899 = vmatpush2.bf16.msra.mxu1 %v4723_v28  ;;  %v4705_v38 = vcombine.low %v1943_v31, %v1947_v37 }
 0x2af   :  { %2900 = vmatprep.subr.bf16.mxu1 %v4716_v57 }
 0x2b1   :  { %2694 = vmatpush1.bf16.msra.mxu0 %v4641_v41  ;;  %v1948_v41 = vld [vmem:[#allocation5 + $0x268] sm:$0xff] }
 0x2b2   :  { %2695 = vmatprep.subr.bf16.mxu0 %v4634_v35  ;;  %2901 = vmatpush2.bf16.msra.mxu1 %v4715_v51  ;;  %v4707_v42 = vcombine.low %v1944_v34, %v1948_v41  ;;  %v4708_v47 = vcombine.high %v1944_v34, %v1948_v41  ;;  %v1939_v35 = vld [vmem:[#allocation5 + $0x220] sm:$0xff] }
 0x2b4   :  { %2902 = vmatprep.subr.bf16.mxu1 %v4708_v47 }
 0x2b5   :  { %2696 = vmatpush1.bf16.msra.mxu0 %v4633_v44  ;;  %v1935_v44 = vld [vmem:[#allocation5 + $0x200] sm:$0xff] }
 0x2b6   :  { %2697 = vmatprep.subr.bf16.mxu0 %v4754_v63  ;;  %v4697_v50 = vcombine.low %v1935_v44, %v1939_v35  ;;  %v4698_v27 = vcombine.high %v1935_v44, %v1939_v35  ;;  %2903 = vmatpush2.bf16.msra.mxu1 %v4707_v42  ;;  %v1258_v63 = vpop.f32.mrf.mxu1  ;;  %v1699_v35 = vld [vmem:[%s7065_s7] sm:$0x3] }
 0x2b9   :  { %2698 = vmatpush2.bf16.msra.mxu0 %v4753_v40  ;;  %v4700_v40 = vcombine.high %v1936_v1, %v1940_v60  ;;  %v5826_v60 = vrot.slane %v1699_v35, %v5332_v62 }
 0x2ba   :  { %2699 = vmatprep.subr.bf16.mxu0 %v4746_v12  ;;  %v5748_v12 = vpop.f32.mrf.mxu1 }
 0x2bb   :  { %2904 = vmatprep.subr.bf16.mxu1 %v4700_v40 }
 0x2bc   :  { %2905 = vmatpush2.bf16.msra.mxu1 %v4699_v53  ;;  %v1264_v11 = vpop.f32.mrf.mxu1  ;;  %v5829_v53 = vrot.slane %v1699_v35, %v5339_v2 }
 0x2bd   :  { %2700 = vmatpush2.bf16.msra.mxu0 %v4745_v6  ;;  %v4694_v6 = vcombine.high %v5740_v36, %v5742_v32 }
 0x2be   :  { %2701 = vmatprep.subr.bf16.mxu0 %v4738_v19  ;;  %v5750_v43 = vpop.f32.mrf.mxu1  ;;  %v1930_v19 = vld [vmem:[#allocation5 + $0x1d8] sm:$0xff] }
 0x2bf   :  { %v5758_v52 = vcombine.low %v1930_v19, %v1934_v30  ;;  %v5760_v21 = vcombine.high %v1930_v19, %v1934_v30 }
 0x2c0   :  { %v1268_v13 = vpop.f32.mrf.mxu1 }
 0x2c1   :  { %2702 = vmatpush2.bf16.msra.mxu0 %v4737_v45  ;;  %7106 = vst [vmem:[#allocation12_spill] sm:$0xff] %v5758_v52  ;;  %4845 = vmatprep.subr.bf16.mxu1 %v5760_v21 }
 0x2c2   :  { %2703 = vmatprep.subr.bf16.mxu0 %v4730_v26  ;;  %v5752_v18 = vpop.f32.mrf.mxu1 }
 0x2c4   :  { %v5754_v16 = vpop.f32.mrf.mxu1 }
 0x2c5   :  { %2704 = vmatpush2.bf16.msra.mxu0 %v4729_v46 }
 0x2c6   :  { %2705 = vmatprep.subr.bf16.mxu0 %v4722_v0  ;;  %v5756_v20 = vpop.f32.mrf.mxu1 }
 0x2c8   :  { %v5763_v22 = vpop.f32.mrf.mxu1 }
 0x2c9   :  { %2706 = vmatpush2.bf16.msra.mxu0 %v4721_v25 }
 0x2ca   :  { %2707 = vmatprep.subr.bf16.mxu0 %v4714_v9  ;;  %v5765_v45 = vpop.f32.mrf.mxu1  ;;  %v1572_v9 = vunpack.c.l.s4 %v5061_v54 }
 0x2cc   :  { %v5767_v23 = vpop.f32.mrf.mxu1 }
 0x2cd   :  { %2708 = vmatpush2.bf16.msra.mxu0 %v4713_v33  ;;  %v1573_v33 = vunpack.c.0.s8 %v1572_v9 }
 0x2ce   :  { %2709 = vmatprep.subr.bf16.mxu0 %v4706_v61  ;;  %v5769_v26 = vpop.f32.mrf.mxu1 }
 0x2cf   :  { %v1576_v37 = vsub.s32 %v1573_v33, %v5327_v59 }
 0x2d0   :  { %v5771_v46 = vpop.f32.mrf.mxu1 }
 0x2d1   :  { %2710 = vmatpush2.bf16.msra.mxu0 %v4705_v38 }
 0x2d2   :  { %2711 = vmatprep.subr.bf16.mxu0 %v4698_v27  ;;  %v5773_v14 = vpop.f32.mrf.mxu1 }
 0x2d4   :  { %v5775_v58 = vpop.f32.mrf.mxu1 }
 0x2d5   :  { %2712 = vmatpush2.bf16.msra.mxu0 %v4697_v50 }
 0x2d6   :  { %3067 = vmatprep.subr.bf16.mxu0 %v4694_v6  ;;  %v5777_v7 = vpop.f32.mrf.mxu1 }
 0x2d8   :  { %v5779_v4 = vpop.f32.mrf.mxu1 }
 0x2da   :  { %v5781_v15 = vpop.f32.mrf.mxu1 }
 0x2dc   :  { %v5783_v5 = vpop.f32.mrf.mxu1 }
 0x2de   :  { %v5785_v49 = vpop.f32.mrf.mxu1 }
 0x2e0   :  { %v5787_v0 = vpop.f32.mrf.mxu1 }
 0x2e2   :  { %v5789_v48 = vpop.f32.mrf.mxu1 }
 0x2e4   :  { %v5791_v25 = vpop.f32.mrf.mxu1 }
 0x2e6   :  { %v5793_v28 = vpop.f32.mrf.mxu1 }
 0x2e8   :  { %v5795_v29 = vpop.f32.mrf.mxu1 }
 0x2ea   :  { %v5797_v8 = vpop.f32.mrf.mxu1 }
 0x2ec   :  { %v5799_v17 = vpop.f32.mrf.mxu1 }
 0x2ee   :  { %v5801_v39 = vpop.f32.mrf.mxu1 }
 0x2f0   :  { %v5803_v51 = vpop.f32.mrf.mxu1 }
 0x2f2   :  { %v5805_v31 = vpop.f32.mrf.mxu1 }
 0x2f4   :  { %v5808_v38 = vpop.f32.mrf.mxu1 }
 0x2f6   :  { %v5815_v1 = vpop.f32.mrf.mxu1 }
 0x2f8   :  { %v5836_v30 = vpop.f32.mrf.mxu1 }
 0x358   :  { %v1561_v57 = vpop.f32.mrf.mxu0 }
 0x35a   :  { %v1563_v34 = vpop.f32.mrf.mxu0 }
 0x35b   :  { %v1570_v61 = vcombine.low %v1561_v57, %v1563_v34 }
 0x35c   :  { %v1565_v41 = vpop.f32.mrf.mxu0 }
 0x35d   :  { %v1577_v42 = vrot.slane %v1570_v61, %v1576_v37 }
 0x35e   :  { %v1566_v47 = vpop.f32.mrf.mxu0 }
 0x35f   :  { %v5810_v44 = vrot.slane %v1577_v42, %v1576_v37 }
 0x361   :  { %v5819_v50 = vrot.slane %v5810_v44, %v5339_v2  ;;  %v5823_v27 = vrot.slane %v5810_v44, %v5332_v62 }
 0x363   :  { %v1636_v40 = vadd.f32 %v5823_v27, %v5736_v55  ;;  %v1638_v6 = vadd.f32 %v5823_v27, %v1258_v63  ;;  %v1635_v19 = vadd.f32 %v5819_v50, %v5734_v24  ;;  %v1637_v54 = vadd.f32 %v5819_v50, %v5738_v56 }
 0x364   :  { %v1640_v9 = vadd.f32 %v5823_v27, %v1264_v11  ;;  %v1642_v55 = vadd.f32 %v5823_v27, %v1268_v13  ;;  %v1639_v24 = vadd.f32 %v5819_v50, %v5748_v12  ;;  %v1641_v56 = vadd.f32 %v5819_v50, %v5750_v43 }
 0x365   :  { %v1712_v33 = vadd.f32 %v5826_v60, %v1636_v40  ;;  %v1714_v57 = vadd.f32 %v5826_v60, %v1638_v6  ;;  %v1711_v34 = vadd.f32 %v5829_v53, %v1635_v19  ;;  %v1713_v63 = vadd.f32 %v5829_v53, %v1637_v54  ;;  %v1921_v40 = vld [vmem:[#allocation5 + $0x190] sm:$0xff]  ;;  %v5852_v19 = vpop.f32.mrf.mxu1 }
 0x366   :  { %v1716_v61 = vadd.f32 %v5826_v60, %v1640_v9  ;;  %v1718_v35 = vadd.f32 %v5826_v60, %v1642_v55  ;;  %v1925_v6 = vld [vmem:[#allocation5 + $0x1b0] sm:$0xff]  ;;  %v1578_v13 = vcombine.high %v1577_v42, %v1577_v42  ;;  %v1644_v12 = vadd.f32 %v5823_v27, %v5754_v16 }
 0x367   :  { %v1776_v41 = vmax.f32 %v1712_v33, 0.0  ;;  %v1778_v11 = vmax.f32 %v1714_v57, 0.0  ;;  %v1775_v47 = vmax.f32 %v1711_v34, 0.0  ;;  %v1777_v3 = vmax.f32 %v1713_v63, 0.0  ;;  %v1922_v33 = vld [vmem:[#allocation5 + $0x198] sm:$0xff]  ;;  %v5864_v63 = vld [vmem:[#allocation5 + $0x150] sm:$0xff] }
 0x368   :  { %v1780_v54 = vmax.f32 %v1716_v61, 0.0  ;;  %v1782_v9 = vmax.f32 %v1718_v35, 0.0  ;;  %v1646_v43 = vadd.f32 %v5823_v27, %v5763_v22  ;;  %v1926_v57 = vld [vmem:[#allocation5 + $0x1b8] sm:$0xff]  ;;  %v4686_v55 = vcombine.high %v1921_v40, %v1925_v6  ;;  %v1917_v61 = vld [vmem:[#allocation5 + $0x170] sm:$0xff] }
 0x369   :  { %v5854_v10 = vpack.c.bf16 %v1778_v11, %v1776_v41  ;;  %v5860_v34 = vpack.c.bf16 %v1777_v3, %v1775_v47  ;;  %v1715_v59 = vadd.f32 %v5829_v53, %v1639_v24  ;;  %v1717_v42 = vadd.f32 %v5829_v53, %v1641_v56  ;;  %v5872_v3 = vpop.f32.mrf.mxu1 }
 0x36a   :  { %v5868_v16 = vpack.c.bf16 %v1782_v9, %v1780_v54  ;;  %v1720_v22 = vadd.f32 %v5826_v60, %v1644_v12  ;;  %v1722_v41 = vadd.f32 %v5826_v60, %v1646_v43  ;;  %v4685_v24 = vcombine.low %v1921_v40, %v1925_v6  ;;  %v5892_v6 = vld [vmem:[#allocation5 + $0x110] sm:$0xff] }
 0x36b   :  { %2713 = vmatprep.mubr.bf16.mxu0 %v5854_v10  ;;  %2906 = vmatprep.mubr.bf16.mxu1 %v5854_v10  ;;  %v5876_v56 = vcombine.high %v1922_v33, %v1926_v57  ;;  %v5878_v11 = vrot.slane %v1578_v13, %v1576_v37  ;;  %v7108_v47 = vcombine.low %v5740_v36, %v5742_v32  ;;  %v1779_v9 = vmax.f32 %v1715_v59, 0.0  ;;  %v5894_v36 = vld [vmem:[#allocation5 + $0x130] sm:$0xff]  ;;  %v1914_v59 = vld [vmem:[#allocation5 + $0x158] sm:$0xff] }
 0x36c   :  { %2714 = vmatmul.mubr.bf16.vlgmr.msra.gmra.mxu0 %v5860_v34  ;;  %2907 = vmatmul.mubr.bf16.vlgmr.msra.gmra.mxu1 %v5860_v34  ;;  %v4678_v35 = vcombine.high %v5864_v63, %v1917_v61  ;;  %v5885_v54 = vcombine.low %v1922_v33, %v1926_v57  ;;  %v1781_v12 = vmax.f32 %v1717_v42, 0.0  ;;  %v1643_v40 = vadd.f32 %v5819_v50, %v5752_v18  ;;  %v1918_v57 = vld [vmem:[#allocation5 + $0x178] sm:$0xff]  ;;  %v5901_v18 = vpop.f32.mrf.mxu1  ;;  %v5907_v42 = vld [vmem:[#allocation5 + $0xd0] sm:$0xff] }
 0x36d   :  { %7107 = vst [vmem:[#allocation13_spill] sm:$0xff] %v5876_v56  ;;  %3068 = vmatpush1.bf16.msra.mxu0 %v7108_v47  ;;  %2723 = vmatprep.mubr.bf16.mxu0 %v5868_v16  ;;  %v1645_v37 = vadd.f32 %v5819_v50, %v5756_v20  ;;  %v1784_v32 = vmax.f32 %v1720_v22, 0.0  ;;  %v1786_v13 = vmax.f32 %v1722_v41, 0.0  ;;  %v1648_v43 = vadd.f32 %v5823_v27, %v5767_v23  ;;  %v5913_v22 = vld [vmem:[#allocation5 + $0xf0] sm:$0xff]  ;;  %v1906_v47 = vld [vmem:[#allocation5 + $0x118] sm:$0xff] }
 0x36e   :  { %7109 = vst [vmem:[#allocation14_spill] sm:$0xff] %v5885_v54  ;;  %2916 = vmatprep.mubr.bf16.mxu1 %v5868_v16  ;;  %3069 = vmatprep.subr.bf16.mxu0 %v4686_v55  ;;  %v1650_v33 = vadd.f32 %v5823_v27, %v5771_v46  ;;  %v4677_v20 = vcombine.low %v5864_v63, %v1917_v61 }
 0x36f   :  { %4861 = vmatpush1.bf16.msra.mxu1 %v5758_v52  ;;  %v4670_v55 = vcombine.high %v5892_v6, %v5894_v36  ;;  %v5909_v23 = vpack.c.bf16 %v1781_v12, %v1779_v9  ;;  %v1719_v46 = vadd.f32 %v5829_v53, %v1643_v40  ;;  %v1721_v27 = vadd.f32 %v5829_v53, %v1645_v37  ;;  %v5926_v12 = vpop.f32.mrf.mxu1 }
 0x370   :  { %4846 = vmatprep.subr.bf16.mxu1 %v5876_v56  ;;  %v5915_v41 = vcombine.high %v1914_v59, %v1918_v57  ;;  %v5919_v63 = vrot.slane %v5878_v11, %v5332_v62  ;;  %v5921_v61 = vpack.c.bf16 %v1786_v13, %v1784_v32  ;;  %v1724_v9 = vadd.f32 %v5826_v60, %v1648_v43  ;;  %v5946_v56 = vld [vmem:[#allocation5 + $0x90] sm:$0xff] }
 0x371   :  { %3070 = vmatpush1.bf16.msra.mxu0 %v4685_v24  ;;  %7110 = vst [vmem:[#allocation15_spill] sm:$0xff] %v5909_v23  ;;  %v1910_v24 = vld [vmem:[#allocation5 + $0x138] sm:$0xff]  ;;  %v5930_v40 = vcombine.low %v1914_v59, %v1918_v57  ;;  %v4669_v37 = vcombine.low %v5892_v6, %v5894_v36  ;;  %v4662_v32 = vcombine.high %v5907_v42, %v5913_v22  ;;  %v5940_v43 = vpop.f32.mrf.mxu1 }
 0x372   :  { %3071 = vmatprep.subr.bf16.mxu0 %v4678_v35  ;;  %7111 = vst [vmem:[#allocation16_spill] sm:$0xff] %v5915_v41  ;;  %7112 = vst [vmem:[#allocation17_spill] sm:$0xff] %v5921_v61  ;;  %v1726_v35 = vadd.f32 %v5826_v60, %v1650_v33  ;;  %v5938_v13 = vcombine.high %v1906_v47, %v1910_v24  ;;  %v1783_v33 = vmax.f32 %v1719_v46, 0.0  ;;  %v1788_v6 = vmax.f32 %v1724_v9, 0.0 }
 0x373   :  { %4862 = vmatpush1.bf16.msra.mxu1 %v5885_v54  ;;  %7113 = vst [vmem:[#allocation18_spill] sm:$0xff] %v5930_v40  ;;  %v1785_v54 = vmax.f32 %v1721_v27, 0.0  ;;  %v1647_v59 = vadd.f32 %v5819_v50, %v5765_v45  ;;  %v1649_v57 = vadd.f32 %v5819_v50, %v5769_v26  ;;  %v1652_v52 = vadd.f32 %v5919_v63, %v5775_v58  ;;  %v1898_v45 = vld [vmem:[#allocation5 + $0xd8] sm:$0xff]  ;;  %v5960_v27 = vld [vmem:[#allocation5 + $0x50] sm:$0xff]  ;;  %v5965_v58 = vpop.f32.mrf.mxu1 }
 0x374   :  { %2724 = vmatmul.mubr.bf16.gmra.mxu0 %v5909_v23  ;;  %2917 = vmatmul.mubr.bf16.gmra.mxu1 %v5909_v23  ;;  %7114 = vst [vmem:[#allocation19_spill] sm:$0xff] %v5938_v13  ;;  %v1790_v36 = vmax.f32 %v1726_v35, 0.0  ;;  %v1654_v46 = vadd.f32 %v5919_v63, %v5779_v4  ;;  %v4661_v26 = vcombine.low %v5907_v42, %v5913_v22  ;;  %v5975_v22 = vld [vmem:[#allocation5 + $0x70] sm:$0xff] }
 0x375   :  { %2733 = vmatprep.mubr.bf16.mxu0 %v5921_v61  ;;  %2926 = vmatprep.mubr.bf16.mxu1 %v5921_v61  ;;  %v5948_v61 = vld [vmem:[#allocation5 + $0xb0] sm:$0xff]  ;;  %v5969_v4 = vrot.slane %v5878_v11, %v5339_v2  ;;  %v5971_v9 = vpack.c.bf16 %v1785_v54, %v1783_v33  ;;  %v1723_v35 = vadd.f32 %v5829_v53, %v1647_v59  ;;  %v5997_v59 = vpop.f32.mrf.mxu1 }
 0x376   :  { %3072 = vmatpush1.bf16.msra.mxu0 %v4677_v20  ;;  %4847 = vmatprep.subr.bf16.mxu1 %v5915_v41  ;;  %v1902_v20 = vld [vmem:[#allocation5 + $0xf8] sm:$0xff]  ;;  %v4654_v50 = vcombine.high %v5946_v56, %v5948_v61  ;;  %v1725_v42 = vadd.f32 %v5829_v53, %v1649_v57  ;;  %v1730_v41 = vadd.f32 %v5826_v60, %v1654_v46 }
 0x377   :  { %3073 = vmatprep.subr.bf16.mxu0 %v4670_v55  ;;  %4863 = vmatpush1.bf16.msra.mxu1 %v5930_v40  ;;  %v5962_v55 = vcombine.low %v1906_v47, %v1910_v24  ;;  %7116 = vst [vmem:[#allocation21_spill] sm:$0xff] %v5971_v9  ;;  %v1890_v40 = vld [vmem:[#allocation5 + $0x98] sm:$0xff]  ;;  %v5977_v24 = vpack.c.bf16 %v1790_v36, %v1788_v6  ;;  %v1787_v57 = vmax.f32 %v1723_v35, 0.0  ;;  %v6004_v36 = vld [vmem:[#allocation5 + $0x30] sm:$0xff] }
 0x378   :  { %4848 = vmatprep.subr.bf16.mxu1 %v5938_v13  ;;  %v1894_v47 = vld [vmem:[#allocation5 + $0xb8] sm:$0xff]  ;;  %v1728_v13 = vadd.f32 %v5826_v60, %v1652_v52  ;;  %v5981_v23 = vcombine.high %v1898_v45, %v1902_v20  ;;  %v4653_v54 = vcombine.low %v5946_v56, %v5948_v61  ;;  %v5991_v52 = vld [vmem:[#allocation5 + $0x10] sm:$0xff]  ;;  %v5993_v33 = vcombine.low %v1898_v45, %v1902_v20 }
 0x379   :  { %7115 = vst [vmem:[#allocation20_spill] sm:$0xff] %v5962_v55  ;;  %7117 = vst [vmem:[#allocation22_spill] sm:$0xff] %v5977_v24  ;;  %v1789_v6 = vmax.f32 %v1725_v42, 0.0  ;;  %v1651_v56 = vadd.f32 %v5969_v4, %v5773_v14  ;;  %v1653_v61 = vadd.f32 %v5969_v4, %v5777_v7  ;;  %v1882_v46 = vld [vmem:[#allocation5 + $0x58] sm:$0xff]  ;;  %v1658_v35 = vadd.f32 %v5919_v63, %v5787_v0 }
 0x37a   :  { %3074 = vmatpush1.bf16.msra.mxu0 %v4669_v37  ;;  %7118 = vst [vmem:[#allocation23_spill] sm:$0xff] %v5981_v23  ;;  %v4646_v37 = vcombine.high %v5960_v27, %v5975_v22  ;;  %7119 = vst [vmem:[#allocation24_spill] sm:$0xff] %v5993_v33  ;;  %v1886_v45 = vld [vmem:[#allocation5 + $0x78] sm:$0xff]  ;;  %v1792_v20 = vmax.f32 %v1728_v13, 0.0  ;;  %v4645_v14 = vcombine.low %v5960_v27, %v5975_v22  ;;  %v6021_v13 = vpop.f32.mrf.mxu1  ;;  %v6028_v27 = vld [vmem:[#allocation5 + $0x3f0] sm:$0xff] }
 0x37b   :  { %3075 = vmatprep.subr.bf16.mxu0 %v4662_v32  ;;  %v5995_v32 = vcombine.high %v1890_v40, %v1894_v47  ;;  %4864 = vmatpush1.bf16.msra.mxu1 %v5962_v55  ;;  %v4638_v7 = vcombine.high %v5991_v52, %v6004_v36  ;;  %v6017_v42 = vcombine.low %v1890_v40, %v1894_v47  ;;  %v1874_v22 = vld [vmem:[#allocation5 + $0x18] sm:$0xff] }
 0x37c   :  { %2734 = vmatmul.mubr.bf16.gmra.mxu0 %v5971_v9  ;;  %2927 = vmatmul.mubr.bf16.gmra.mxu1 %v5971_v9  ;;  %v1656_v9 = vadd.f32 %v5919_v63, %v5783_v5  ;;  %v6023_v5 = vpack.c.bf16 %v1789_v6, %v1787_v57  ;;  %v1727_v0 = vadd.f32 %v5829_v53, %v1651_v56  ;;  %v6049_v6 = vpop.f32.mrf.mxu1 }
 0x37d   :  { %2743 = vmatprep.mubr.bf16.mxu0 %v5977_v24  ;;  %2936 = vmatprep.mubr.bf16.mxu1 %v5977_v24  ;;  %7120 = vst [vmem:[#allocation25_spill] sm:$0xff] %v5995_v32  ;;  %v1794_v24 = vmax.f32 %v1730_v41, 0.0  ;;  %7121 = vst [vmem:[#allocation26_spill] sm:$0xff] %v6017_v42  ;;  %v6019_v41 = vcombine.high %v1882_v46, %v1886_v45  ;;  %v1734_v47 = vadd.f32 %v5826_v60, %v1658_v35  ;;  %v1994_v35 = vld [vmem:[#allocation5 + $0x3d8] sm:$0xff] }
 0x37e   :  { %3076 = vmatpush1.bf16.msra.mxu0 %v4661_v26  ;;  %4849 = vmatprep.subr.bf16.mxu1 %v5981_v23  ;;  %v6015_v26 = vld [vmem:[#allocation5 + $0x3d0] sm:$0xff]  ;;  %v1878_v23 = vld [vmem:[#allocation5 + $0x38] sm:$0xff]  ;;  %v1732_v40 = vadd.f32 %v5826_v60, %v1656_v9  ;;  %v6045_v57 = vcombine.low %v1882_v46, %v1886_v45  ;;  %v1791_v56 = vmax.f32 %v1727_v0, 0.0  ;;  %v1662_v0 = vadd.f32 %v5919_v63, %v5795_v29 }
 0x37f   :  { %3077 = vmatprep.subr.bf16.mxu0 %v4654_v50  ;;  %7122 = vst [vmem:[#allocation27_spill] sm:$0xff] %v6019_v41  ;;  %v1729_v50 = vadd.f32 %v5829_v53, %v1653_v61  ;;  %4865 = vmatpush1.bf16.msra.mxu1 %v5993_v33  ;;  %v6030_v55 = vpack.c.bf16 %v1794_v24, %v1792_v20  ;;  %v6043_v9 = vld [vmem:[#allocation5 + $0x390] sm:$0xff]  ;;  %v1998_v46 = vld [vmem:[#allocation5 + $0x3f8] sm:$0xff] }
 0x380   :  { %4850 = vmatprep.subr.bf16.mxu1 %v5995_v32  ;;  %v4758_v24 = vcombine.high %v6015_v26, %v6028_v27  ;;  %7123 = vst [vmem:[#allocation28_spill] sm:$0xff] %v6045_v57  ;;  %v6056_v20 = vld [vmem:[#allocation5 + $0x3b0] sm:$0xff]  ;;  %v1796_v45 = vmax.f32 %v1732_v40, 0.0  ;;  %v1798_v32 = vmax.f32 %v1734_v47, 0.0  ;;  %v1660_v33 = vadd.f32 %v5919_v63, %v5791_v25  ;;  %v6075_v25 = vpop.f32.mrf.mxu1 }
 0x381   :  { %v1793_v61 = vmax.f32 %v1729_v50, 0.0  ;;  %v6069_v50 = vld [vmem:[#allocation5 + $0x370] sm:$0xff]  ;;  %v6071_v40 = vcombine.low %v1874_v22, %v1878_v23  ;;  %v6073_v47 = vcombine.high %v1994_v35, %v1998_v46 }
 0x382   :  { %3078 = vmatpush1.bf16.msra.mxu0 %v4653_v54  ;;  %v4637_v54 = vcombine.low %v5991_v52, %v6004_v36  ;;  %v1655_v52 = vadd.f32 %v5969_v4, %v5781_v15  ;;  %v1657_v36 = vadd.f32 %v5969_v4, %v5785_v49  ;;  %v4757_v15 = vcombine.low %v6015_v26, %v6028_v27  ;;  %v1986_v26 = vld [vmem:[#allocation5 + $0x398] sm:$0xff] }
 0x383   :  { %3079 = vmatprep.subr.bf16.mxu0 %v4646_v37  ;;  %v6047_v37 = vcombine.high %v1874_v22, %v1878_v23  ;;  %4866 = vmatpush1.bf16.msra.mxu1 %v6017_v42  ;;  %v4750_v49 = vcombine.high %v6043_v9, %v6056_v20  ;;  %7125 = vst [vmem:[#allocation30_spill] sm:$0xff] %v6071_v40  ;;  %7126 = vst [vmem:[#allocation31_spill] sm:$0xff] %v6073_v47  ;;  %v1990_v27 = vld [vmem:[#allocation5 + $0x3b8] sm:$0xff] }
 0x384   :  { %2744 = vmatmul.mubr.bf16.gmra.mxu0 %v6023_v5  ;;  %2937 = vmatmul.mubr.bf16.gmra.mxu1 %v6023_v5  ;;  %v6077_v29 = vpack.c.bf16 %v1793_v61, %v1791_v56  ;;  %v6082_v42 = vpack.c.bf16 %v1798_v32, %v1796_v45  ;;  %v1736_v23 = vadd.f32 %v5826_v60, %v1660_v33  ;;  %v6099_v33 = vld [vmem:[#allocation5 + $0x310] sm:$0xff] }
 0x385   :  { %2753 = vmatprep.mubr.bf16.mxu0 %v6030_v55  ;;  %2946 = vmatprep.mubr.bf16.mxu1 %v6030_v55  ;;  %7124 = vst [vmem:[#allocation29_spill] sm:$0xff] %v6047_v37  ;;  %v1738_v22 = vadd.f32 %v5826_v60, %v1662_v0  ;;  %v6095_v32 = vcombine.high %v5810_v44, %v5810_v44  ;;  %v6112_v45 = vld [vmem:[#allocation5 + $0x330] sm:$0xff]  ;;  %v1978_v0 = vld [vmem:[#allocation5 + $0x358] sm:$0xff] }
 0x386   :  { %3080 = vmatpush1.bf16.msra.mxu0 %v4645_v14  ;;  %4851 = vmatprep.subr.bf16.mxu1 %v6019_v41  ;;  %v6067_v14 = vld [vmem:[#allocation5 + $0x350] sm:$0xff]  ;;  %v1733_v41 = vadd.f32 %v5829_v53, %v1657_v36  ;;  %v6103_v61 = vcombine.high %v1986_v26, %v1990_v27  ;;  %v1661_v44 = vadd.f32 %v5969_v4, %v5793_v28 }
 0x387   :  { %3081 = vmatprep.subr.bf16.mxu0 %v4638_v7  ;;  %v1731_v7 = vadd.f32 %v5829_v53, %v1655_v52  ;;  %4867 = vmatpush1.bf16.msra.mxu1 %v6045_v57  ;;  %v4742_v56 = vcombine.high %v6067_v14, %v6069_v50  ;;  %v6105_v52 = vpop.f32.mrf.mxu1  ;;  %v1664_v57 = vadd.f32 %v5919_v63, %v5799_v17 }
 0x388   :  { %4852 = vmatprep.subr.bf16.mxu1 %v6047_v37  ;;  %7128 = vst [vmem:[#allocation33_spill] sm:$0xff] %v6103_v61  ;;  %v1797_v36 = vmax.f32 %v1733_v41, 0.0  ;;  %v1802_v37 = vmax.f32 %v1738_v22, 0.0  ;;  %v1666_v41 = vadd.f32 %v5919_v63, %v5803_v51  ;;  %v6123_v28 = vrot.slane %v6095_v32, %v5332_v62  ;;  %v1970_v22 = vld [vmem:[#allocation5 + $0x318] sm:$0xff] }
 0x389   :  { %v6133_v51 = vpop.f32.mrf.mxu1 }
 0x38a   :  { %3082 = vmatpush1.bf16.msra.mxu0 %v4637_v54  ;;  %v4749_v54 = vcombine.low %v6043_v9, %v6056_v20  ;;  %v1795_v9 = vmax.f32 %v1731_v7, 0.0  ;;  %v1659_v20 = vadd.f32 %v5969_v4, %v5789_v48  ;;  %v4741_v48 = vcombine.low %v6067_v14, %v6069_v50  ;;  %v6127_v7 = vld [vmem:[#allocation5 + $0x2d0] sm:$0xff] }
 0x38b   :  { %3083 = vmatprep.subr.bf16.mxu0 %v4758_v24  ;;  %v6101_v24 = vcombine.low %v1994_v35, %v1998_v46  ;;  %4868 = vmatpush1.bf16.msra.mxu1 %v6071_v40  ;;  %v1982_v35 = vld [vmem:[#allocation5 + $0x378] sm:$0xff]  ;;  %v1800_v46 = vmax.f32 %v1736_v23, 0.0  ;;  %v6129_v23 = vcombine.low %v1986_v26, %v1990_v27  ;;  %v1737_v14 = vadd.f32 %v5829_v53, %v1661_v44  ;;  %v6140_v50 = vld [vmem:[#allocation5 + $0x2f0] sm:$0xff] }
 0x38c   :  { %2754 = vmatmul.mubr.bf16.gmra.mxu0 %v6077_v29  ;;  %2947 = vmatmul.mubr.bf16.gmra.mxu1 %v6077_v29  ;;  %v6131_v17 = vcombine.high %v1978_v0, %v1982_v35  ;;  %v6135_v63 = vpack.c.bf16 %v1797_v36, %v1795_v9  ;;  %v1740_v26 = vadd.f32 %v5826_v60, %v1664_v57  ;;  %v6147_v9 = vpop.f32.mrf.mxu1 }
 0x38d   :  { %2763 = vmatprep.mubr.bf16.mxu0 %v6082_v42  ;;  %2956 = vmatprep.mubr.bf16.mxu1 %v6082_v42  ;;  %7127 = vst [vmem:[#allocation32_spill] sm:$0xff] %v6101_v24  ;;  %v6142_v40 = vpack.c.bf16 %v1802_v37, %v1800_v46  ;;  %v1742_v27 = vadd.f32 %v5826_v60, %v1666_v41  ;;  %v6157_v37 = vld [vmem:[#allocation5 + $0x290] sm:$0xff]  ;;  %v1801_v44 = vmax.f32 %v1737_v14, 0.0  ;;  %v1962_v41 = vld [vmem:[#allocation5 + $0x2d8] sm:$0xff] }
 0x38e   :  { %3084 = vmatpush2.bf16.msra.mxu0 %v4757_v15  ;;  %4853 = vmatprep.subr.bf16.mxu1 %v6073_v47  ;;  %v4734_v15 = vcombine.high %v6099_v33, %v6112_v45  ;;  %v1974_v47 = vld [vmem:[#allocation5 + $0x338] sm:$0xff]  ;;  %v4726_v57 = vcombine.high %v6127_v7, %v6140_v50  ;;  %v1663_v46 = vadd.f32 %v5969_v4, %v5797_v8  ;;  %v6173_v8 = vpop.f32.mrf.mxu1 }
 0x38f   :  { %3085 = vmatprep.subr.bf16.mxu0 %v4750_v49  ;;  %v1735_v49 = vadd.f32 %v5829_v53, %v1659_v20  ;;  %4869 = vmatpush2.bf16.msra.mxu1 %v6101_v24  ;;  %7129 = vst [vmem:[#allocation34_spill] sm:$0xff] %v6142_v40  ;;  %v6161_v36 = vcombine.high %v1970_v22, %v1974_v47  ;;  %v1804_v24 = vmax.f32 %v1740_v26, 0.0 }
 0x390   :  { %4854 = vmatprep.subr.bf16.mxu1 %v6103_v61  ;;  %v1966_v61 = vld [vmem:[#allocation5 + $0x2f8] sm:$0xff] }
 0x391   :  { %7130 = vst [vmem:[#allocation35_spill] sm:$0xff] %v6161_v36  ;;  %v1799_v20 = vmax.f32 %v1735_v49, 0.0  ;;  %v6182_v49 = vcombine.low %v1970_v22, %v1974_v47  ;;  %v6196_v22 = vpop.f32.mrf.mxu1 }
 0x392   :  { %3086 = vmatpush2.bf16.msra.mxu0 %v4749_v54  ;;  %v4733_v54 = vcombine.low %v6099_v33, %v6112_v45  ;;  %v1665_v33 = vadd.f32 %v5969_v4, %v5801_v39  ;;  %v1957_v45 = vld [vmem:[#allocation5 + $0x2b0] sm:$0xff]  ;;  %v4725_v39 = vcombine.low %v6127_v7, %v6140_v50  ;;  %v6179_v4 = vrot.slane %v6095_v32, %v5339_v2 }
 0x393   :  { %3087 = vmatprep.subr.bf16.mxu0 %v4742_v56  ;;  %v6159_v56 = vcombine.low %v1978_v0, %v1982_v35  ;;  %4870 = vmatpush2.bf16.msra.mxu1 %v6129_v23  ;;  %v1668_v0 = vadd.f32 %v6123_v28, %v5808_v38  ;;  %v1670_v35 = vadd.f32 %v6123_v28, %v5836_v30  ;;  %v1945_v7 = vld [vmem:[#allocation5 + $0x250] sm:$0xff] }
 0x394   :  { %2764 = vmatmul.mubr.bf16.gmra.mxu0 %v6135_v63  ;;  %2957 = vmatmul.mubr.bf16.gmra.mxu1 %v6135_v63  ;;  %7131 = vst [vmem:[#allocation36_spill] sm:$0xff] %v6182_v49  ;;  %v6184_v38 = vcombine.high %v1962_v41, %v1966_v61  ;;  %v6186_v14 = vpack.c.bf16 %v1801_v44, %v1799_v20  ;;  %v1949_v50 = vld [vmem:[#allocation5 + $0x270] sm:$0xff]  ;;  %v1958_v20 = vld [vmem:[#allocation5 + $0x2b8] sm:$0xff] }
 0x395   :  { %2773 = vmatprep.mubr.bf16.mxu0 %v6142_v40  ;;  %2966 = vmatprep.mubr.bf16.mxu1 %v6142_v40  ;;  %v1806_v40 = vmax.f32 %v1742_v27, 0.0  ;;  %v1739_v30 = vadd.f32 %v5829_v53, %v1663_v46  ;;  %v1744_v32 = vadd.f32 %v5826_v60, %v1668_v0  ;;  %v1746_v47 = vadd.f32 %v5826_v60, %v1670_v35  ;;  %v1941_v0 = vld [vmem:[#allocation5 + $0x230] sm:$0xff] }
 0x396   :  { %3088 = vmatpush2.bf16.msra.mxu0 %v4741_v48  ;;  %4855 = vmatprep.subr.bf16.mxu1 %v6131_v17  ;;  %v4718_v48 = vcombine.high %v6157_v37, %v1957_v45  ;;  %7132 = vst [vmem:[#allocation37_spill] sm:$0xff] %v6184_v38  ;;  %v4717_v27 = vcombine.low %v6157_v37, %v1957_v45  ;;  %v1937_v45 = vld [vmem:[#allocation5 + $0x210] sm:$0xff] }
 0x397   :  { %3089 = vmatprep.subr.bf16.mxu0 %v4734_v15  ;;  %v1741_v15 = vadd.f32 %v5829_v53, %v1665_v33  ;;  %4871 = vmatpush2.bf16.msra.mxu1 %v6159_v56  ;;  %v6191_v26 = vpack.c.bf16 %v1806_v40, %v1804_v24  ;;  %v1667_v40 = vadd.f32 %v6179_v4, %v5805_v31  ;;  %v1803_v44 = vmax.f32 %v1739_v30, 0.0  ;;  %v1950_v30 = vld [vmem:[#allocation5 + $0x278] sm:$0xff] }
 0x398   :  { %4856 = vmatprep.subr.bf16.mxu1 %v6161_v36  ;;  %v4710_v24 = vcombine.high %v1945_v7, %v1949_v50  ;;  %v1669_v33 = vadd.f32 %v6179_v4, %v5815_v1  ;;  %v1672_v37 = vadd.f32 %v6123_v28, %v5872_v3  ;;  %v1808_v35 = vmax.f32 %v1744_v32, 0.0  ;;  %v1946_v1 = vld [vmem:[#allocation5 + $0x258] sm:$0xff] }
 0x399   :  { %v1805_v46 = vmax.f32 %v1741_v15, 0.0  ;;  %v1810_v36 = vmax.f32 %v1746_v47, 0.0  ;;  %v1674_v31 = vadd.f32 %v6123_v28, %v5926_v12  ;;  %v1743_v3 = vadd.f32 %v5829_v53, %v1667_v40 }
 0x39a   :  { %3090 = vmatpush2.bf16.msra.mxu0 %v4733_v54  ;;  %v1954_v54 = vld [vmem:[#allocation5 + $0x298] sm:$0xff]  ;;  %v1745_v47 = vadd.f32 %v5829_v53, %v1669_v33  ;;  %v1748_v12 = vadd.f32 %v5826_v60, %v1672_v37  ;;  %v4701_v40 = vcombine.low %v1937_v45, %v1941_v0  ;;  %v6246_v33 = vcombine.low %v1946_v1, %v1950_v30 }
 0x39b   :  { %3091 = vmatprep.subr.bf16.mxu0 %v4726_v57  ;;  %v6205_v57 = vcombine.low %v1962_v41, %v1966_v61  ;;  %4872 = vmatpush2.bf16.msra.mxu1 %v6182_v49  ;;  %v6215_v61 = vcombine.high %v1954_v54, %v1958_v20  ;;  %v6217_v41 = vpop.f32.mrf.mxu1  ;;  %v6220_v15 = vcombine.low %v1954_v54, %v1958_v20  ;;  %v1938_v54 = vld [vmem:[#allocation5 + $0x218] sm:$0xff] }
 0x39c   :  { %2774 = vmatmul.mubr.bf16.gmra.mxu0 %v6186_v14  ;;  %2967 = vmatmul.mubr.bf16.gmra.mxu1 %v6186_v14  ;;  %v4702_v49 = vcombine.high %v1937_v45, %v1941_v0  ;;  %v6222_v32 = vpack.c.bf16 %v1805_v46, %v1803_v44  ;;  %v1942_v20 = vld [vmem:[#allocation5 + $0x238] sm:$0xff]  ;;  %v1673_v44 = vadd.f32 %v6179_v4, %v5901_v18  ;;  %v1812_v37 = vmax.f32 %v1748_v12, 0.0 }
 0x39d   :  { %2783 = vmatprep.mubr.bf16.mxu0 %v6191_v26  ;;  %2976 = vmatprep.mubr.bf16.mxu1 %v6191_v26  ;;  %v1676_v46 = vadd.f32 %v6123_v28, %v5965_v58  ;;  %v1675_v12 = vadd.f32 %v6179_v4, %v5940_v43 }
 0x39e   :  { %3092 = vmatpush2.bf16.msra.mxu0 %v4725_v39  ;;  %4857 = vmatprep.subr.bf16.mxu1 %v6184_v38  ;;  %v4709_v39 = vcombine.low %v1945_v7, %v1949_v50  ;;  %v1750_v38 = vadd.f32 %v5826_v60, %v1674_v31  ;;  %v6231_v7 = vcombine.high %v1946_v1, %v1950_v30  ;;  %v6233_v50 = vpop.f32.mrf.mxu1 }
 0x39f   :  { %3093 = vmatprep.subr.bf16.mxu0 %v4718_v48  ;;  %4873 = vmatpush2.bf16.msra.mxu1 %v6205_v57  ;;  %v6227_v48 = vpack.c.bf16 %v1810_v36, %v1808_v35  ;;  %v1807_v36 = vmax.f32 %v1743_v3, 0.0  ;;  %v1678_v31 = vadd.f32 %v6123_v28, %v6021_v13  ;;  %v1749_v0 = vadd.f32 %v5829_v53, %v1673_v44 }
 0x3a0   :  { %4858 = vmatprep.subr.bf16.mxu1 %v6215_v61  ;;  %v1814_v35 = vmax.f32 %v1750_v38, 0.0  ;;  %v6253_v45 = vpop.f32.mrf.mxu1  ;;  %v6260_v38 = vcombine.low %v1938_v54, %v1942_v20  ;;  %v1752_v13 = vadd.f32 %v5826_v60, %v1676_v46  ;;  %v1594_v3 = vcombine.high %v5878_v11, %v5878_v11 }
 0x3a1   :  { %v1682_v11 = vadd.f32 %v6123_v28, %v6133_v51  ;;  %v1751_v43 = vadd.f32 %v5829_v53, %v1675_v12 }
 0x3a2   :  { %3094 = vmatpush2.bf16.msra.mxu0 %v4717_v27  ;;  %v1671_v27 = vadd.f32 %v6179_v4, %v5852_v19  ;;  %v6251_v19 = vcombine.high %v1938_v54, %v1942_v20  ;;  %v6262_v1 = vpack.c.bf16 %v1814_v35, %v1812_v37  ;;  %v6268_v30 = vpop.f32.mrf.mxu1  ;;  %v1816_v54 = vmax.f32 %v1752_v13, 0.0 }
 0x3a3   :  { %3095 = vmatprep.subr.bf16.mxu0 %v4710_v24  ;;  %v1809_v24 = vmax.f32 %v1745_v47, 0.0  ;;  %4874 = vmatpush2.bf16.msra.mxu1 %v6220_v15  ;;  %v1813_v47 = vmax.f32 %v1749_v0, 0.0  ;;  %v1815_v51 = vmax.f32 %v1751_v43, 0.0  ;;  %v6311_v12 = vrot.slane %v1594_v3, %v5339_v2 }
 0x3a4   :  { %2784 = vmatmul.mubr.bf16.gmra.mxu0 %v6222_v32  ;;  %2977 = vmatmul.mubr.bf16.gmra.mxu1 %v6222_v32  ;;  %v1747_v18 = vadd.f32 %v5829_v53, %v1671_v27  ;;  %v1388_v27 = vpop.f32.mrf.mxu1 }
 0x3a5   :  { %2793 = vmatprep.mubr.bf16.mxu0 %v6227_v48  ;;  %2986 = vmatprep.mubr.bf16.mxu1 %v6227_v48  ;;  %v6256_v58 = vpack.c.bf16 %v1809_v24, %v1807_v36  ;;  %v1680_v36 = vadd.f32 %v6123_v28, %v6075_v25  ;;  %v1758_v25 = vadd.f32 %v5826_v60, %v1682_v11 }
 0x3a6   :  { %3096 = vmatpush2.bf16.msra.mxu0 %v4709_v39  ;;  %4859 = vmatprep.subr.bf16.mxu1 %v6231_v7  ;;  %v1811_v39 = vmax.f32 %v1747_v18, 0.0  ;;  %v1681_v18 = vadd.f32 %v6179_v4, %v6105_v52  ;;  %v1685_v11 = vadd.f32 %v6311_v12, %v6196_v22 }
 0x3a7   :  { %3097 = vmatprep.subr.bf16.mxu0 %v4702_v49  ;;  %4875 = vmatpush2.bf16.msra.mxu1 %v6246_v33  ;;  %v1754_v49 = vadd.f32 %v5826_v60, %v1678_v31  ;;  %v1756_v37 = vadd.f32 %v5826_v60, %v1680_v36  ;;  %v1679_v31 = vadd.f32 %v6179_v4, %v6049_v6  ;;  %v1822_v13 = vmax.f32 %v1758_v25, 0.0 }
 0x3a8   :  { %4860 = vmatprep.subr.bf16.mxu1 %v6251_v19  ;;  %v6287_v24 = vpack.c.bf16 %v1813_v47, %v1811_v39  ;;  %v1757_v6 = vadd.f32 %v5829_v53, %v1681_v18  ;;  %v1683_v36 = vadd.f32 %v6311_v12, %v6147_v9  ;;  %v1761_v18 = vadd.f32 %v5829_v53, %v1685_v11 }
 0x3a9   :  { %v1818_v20 = vmax.f32 %v1754_v49, 0.0  ;;  %v1820_v0 = vmax.f32 %v1756_v37, 0.0 }
 0x3aa   :  { %3098 = vmatpush2.bf16.msra.mxu0 %v4701_v40  ;;  %v6285_v40 = vpop.f32.mrf.mxu1 }
 0x3ab   :  { %3260 = vmatprep.subr.bf16.mxu0 %v5760_v21  ;;  %v1677_v21 = vadd.f32 %v6179_v4, %v5997_v59  ;;  %4876 = vmatpush2.bf16.msra.mxu1 %v6260_v38  ;;  %v6292_v59 = vrot.slane %v1594_v3, %v5332_v62  ;;  %v6294_v46 = vpack.c.bf16 %v1818_v20, %v1816_v54  ;;  %v1821_v3 = vmax.f32 %v1757_v6, 0.0 }
 0x3ac   :  { %2794 = vmatmul.mubr.bf16.gmra.mxu0 %v6256_v58  ;;  %2987 = vmatmul.mubr.bf16.gmra.mxu1 %v6256_v58  ;;  %v1394_v28 = vpop.f32.mrf.mxu1  ;;  %v1755_v54 = vadd.f32 %v5829_v53, %v1679_v31  ;;  %v6317_v20 = vpack.c.bf16 %v1822_v13, %v1820_v0  ;;  %v1759_v31 = vadd.f32 %v5829_v53, %v1683_v36  ;;  %v1825_v13 = vmax.f32 %v1761_v18, 0.0 }
 0x3ad   :  { %2803 = vmatprep.mubr.bf16.mxu0 %v6262_v1  ;;  %2996 = vmatprep.mubr.bf16.mxu1 %v6262_v1  ;;  %v1753_v44 = vadd.f32 %v5829_v53, %v1677_v21  ;;  %v1684_v49 = vadd.f32 %v6292_v59, %v6173_v8  ;;  %v1686_v39 = vadd.f32 %v6292_v59, %v6217_v41 }
 0x3ae   :  { %v1396_v47 = vpop.f32.mrf.mxu1  ;;  %v1819_v41 = vmax.f32 %v1755_v54, 0.0  ;;  %v1688_v37 = vadd.f32 %v6292_v59, %v6253_v45  ;;  %v1690_v25 = vadd.f32 %v6292_v59, %v1388_v27  ;;  %v1823_v27 = vmax.f32 %v1759_v31, 0.0 }
 0x3af   :  { %v1817_v35 = vmax.f32 %v1753_v44, 0.0  ;;  %v1760_v52 = vadd.f32 %v5826_v60, %v1684_v49  ;;  %v1762_v4 = vadd.f32 %v5826_v60, %v1686_v39  ;;  %v1687_v49 = vadd.f32 %v6311_v12, %v6233_v50 }
 0x3b0   :  { %v1398_v8 = vpop.f32.mrf.mxu1  ;;  %v1764_v9 = vadd.f32 %v5826_v60, %v1688_v37  ;;  %v1766_v22 = vadd.f32 %v5826_v60, %v1690_v25  ;;  %v1689_v39 = vadd.f32 %v6311_v12, %v6268_v30  ;;  %v1691_v37 = vadd.f32 %v6311_v12, %v6285_v40 }
 0x3b1   :  { %v6313_v21 = vpack.c.bf16 %v1817_v35, %v1815_v51  ;;  %v1824_v43 = vmax.f32 %v1760_v52, 0.0  ;;  %v1826_v44 = vmax.f32 %v1762_v4, 0.0  ;;  %v6332_v35 = vpack.c.bf16 %v1821_v3, %v1819_v41 }
 0x3b2   :  { %v1402_v51 = vpop.f32.mrf.mxu1  ;;  %v1828_v54 = vmax.f32 %v1764_v9, 0.0  ;;  %v1830_v6 = vmax.f32 %v1766_v22, 0.0  ;;  %v1692_v52 = vadd.f32 %v6292_v59, %v1394_v28  ;;  %v1694_v4 = vadd.f32 %v6292_v59, %v1398_v8 }
 0x3b3   :  { %v6336_v0 = vpack.c.bf16 %v1826_v44, %v1824_v43  ;;  %v6350_v3 = vpack.c.bf16 %v1825_v13, %v1823_v27  ;;  %v1763_v36 = vadd.f32 %v5829_v53, %v1687_v49  ;;  %v1765_v11 = vadd.f32 %v5829_v53, %v1689_v39 }
 0x3b4   :  { %2804 = vmatmul.mubr.bf16.gmra.mxu0 %v6287_v24  ;;  %2997 = vmatmul.mubr.bf16.gmra.mxu1 %v6287_v24  ;;  %v1404_v45 = vpop.f32.mrf.mxu1  ;;  %v6354_v43 = vpack.c.bf16 %v1830_v6, %v1828_v54  ;;  %v1768_v50 = vadd.f32 %v5826_v60, %v1692_v52  ;;  %v1770_v44 = vadd.f32 %v5826_v60, %v1694_v4 }
 0x3b5   :  { %2813 = vmatprep.mubr.bf16.mxu0 %v6294_v46  ;;  %3006 = vmatprep.mubr.bf16.mxu1 %v6294_v46  ;;  %v1827_v28 = vmax.f32 %v1763_v36, 0.0  ;;  %v1829_v8 = vmax.f32 %v1765_v11, 0.0  ;;  %v1693_v25 = vadd.f32 %v6311_v12, %v1396_v47  ;;  %v1696_v9 = vadd.f32 %v6292_v59, %v1404_v45 }
 0x3b6   :  { %v1406_v41 = vpop.f32.mrf.mxu1  ;;  %v1832_v31 = vmax.f32 %v1768_v50, 0.0  ;;  %v1834_v18 = vmax.f32 %v1770_v44, 0.0  ;;  %v1767_v13 = vadd.f32 %v5829_v53, %v1691_v37  ;;  %v1695_v45 = vadd.f32 %v6311_v12, %v1402_v51  ;;  %v7134_v44 = vld [vmem:[#allocation12_spill] sm:$0xff] }
 0x3b7   :  { %v6367_v27 = vpack.c.bf16 %v1829_v8, %v1827_v28  ;;  %v1769_v49 = vadd.f32 %v5829_v53, %v1693_v25  ;;  %v1772_v54 = vadd.f32 %v5826_v60, %v1696_v9  ;;  %v1697_v6 = vadd.f32 %v6311_v12, %v1406_v41  ;;  %v7136_v28 = vld [vmem:[#allocation13_spill] sm:$0xff]  ;;  %v7137_v8 = vld [vmem:[#allocation14_spill] sm:$0xff]  ;;  %v7138_v37 = vld [vmem:[#allocation16_spill] sm:$0xff] }
 0x3b8   :  { %v1408_v30 = vpop.f32.mrf.mxu1  ;;  %v6371_v39 = vpack.c.bf16 %v1834_v18, %v1832_v31  ;;  %v7139_v25 = vld [vmem:[#allocation21_spill] sm:$0xff]  ;;  %v7140_v31 = vld [vmem:[#allocation22_spill] sm:$0xff]  ;;  %v7142_v9 = vld [vmem:[#allocation19_spill] sm:$0xff] }
 0x3b9   :  { %v1698_v22 = vadd.f32 %v6292_v59, %v1408_v30  ;;  %v1831_v59 = vmax.f32 %v1767_v13, 0.0  ;;  %v1833_v47 = vmax.f32 %v1769_v49, 0.0  ;;  %v1836_v52 = vmax.f32 %v1772_v54, 0.0  ;;  %v7135_v30 = vld [vmem:[#allocation17_spill] sm:$0xff]  ;;  %v7141_v18 = vld [vmem:[#allocation18_spill] sm:$0xff]  ;;  %v7145_v13 = vld [vmem:[#allocation24_spill] sm:$0xff] }
 0x3ba   :  { %v1773_v11 = vadd.f32 %v5829_v53, %v1697_v6  ;;  %v7146_v49 = vld [vmem:[#allocation25_spill] sm:$0xff]  ;;  %v7147_v54 = vld [vmem:[#allocation26_spill] sm:$0xff]  ;;  %v7152_v6 = vld [vmem:[#allocation31_spill] sm:$0xff] }
 0x3bb   :  { %v1774_v40 = vadd.f32 %v5826_v60, %v1698_v22  ;;  %v6381_v36 = vpack.c.bf16 %v1833_v47, %v1831_v59  ;;  %v1771_v60 = vadd.f32 %v5829_v53, %v1695_v45  ;;  %v7133_v53 = vld [vmem:[#allocation15_spill] sm:$0xff]  ;;  %v7149_v59 = vld [vmem:[#allocation28_spill] sm:$0xff]  ;;  %v7150_v47 = vld [vmem:[#allocation29_spill] sm:$0xff] }
 0x3bc   :  { %2814 = vmatmul.mubr.bf16.gmra.mxu0 %v6313_v21  ;;  %3007 = vmatmul.mubr.bf16.gmra.mxu1 %v6313_v21  ;;  %v1837_v12 = vmax.f32 %v1773_v11, 0.0  ;;  %v7144_v22 = vld [vmem:[#allocation23_spill] sm:$0xff]  ;;  %v7151_v45 = vld [vmem:[#allocation30_spill] sm:$0xff] }
 0x3bd   :  { %2823 = vmatprep.mubr.bf16.mxu0 %v6317_v20  ;;  %3016 = vmatprep.mubr.bf16.mxu1 %v6317_v20  ;;  %v1838_v4 = vmax.f32 %v1774_v40, 0.0  ;;  %v1835_v51 = vmax.f32 %v1771_v60, 0.0  ;;  %v7148_v40 = vld [vmem:[#allocation27_spill] sm:$0xff] }
 0x3bf   :  { %v6385_v50 = vpack.c.bf16 %v1838_v4, %v1836_v52  ;;  %v6391_v41 = vpack.c.bf16 %v1837_v12, %v1835_v51  ;;  %v7154_v52 = vld [vmem:[#allocation32_spill] sm:$0xff]  ;;  %v7158_v4 = vld [vmem:[#allocation37_spill] sm:$0xff] }
 0x3c4   :  { %2824 = vmatmul.mubr.bf16.gmra.mxu0 %v6332_v35  ;;  %3017 = vmatmul.mubr.bf16.gmra.mxu1 %v6332_v35 }
 0x3c5   :  { %2833 = vmatprep.mubr.bf16.mxu0 %v6336_v0  ;;  %3026 = vmatprep.mubr.bf16.mxu1 %v6336_v0 }
 0x3cc   :  { %2834 = vmatmul.mubr.bf16.gmra.mxu0 %v6350_v3  ;;  %3027 = vmatmul.mubr.bf16.gmra.mxu1 %v6350_v3 }
 0x3cd   :  { %2843 = vmatprep.mubr.bf16.mxu0 %v6354_v43  ;;  %3036 = vmatprep.mubr.bf16.mxu1 %v6354_v43 }
 0x3d4   :  { %2844 = vmatmul.mubr.bf16.gmra.mxu0 %v6367_v27  ;;  %3037 = vmatmul.mubr.bf16.gmra.mxu1 %v6367_v27 }
 0x3d5   :  { %2853 = vmatprep.mubr.bf16.mxu0 %v6371_v39  ;;  %3046 = vmatprep.mubr.bf16.mxu1 %v6371_v39 }
 0x3dc   :  { %2854 = vmatmul.mubr.bf16.gmra.mxu0 %v6381_v36  ;;  %3047 = vmatmul.mubr.bf16.gmra.mxu1 %v6381_v36 }
 0x3dd   :  { %2863 = vmatprep.mubr.bf16.mxu0 %v6385_v50  ;;  %3056 = vmatprep.mubr.bf16.mxu1 %v6385_v50 }
 0x3e4   :  { %2864 = vmatmul.mubr.bf16.gmra.mxu0 %v6391_v41  ;;  %3057 = vmatmul.mubr.bf16.gmra.mxu1 %v6391_v41 }
 0x3e5   :  { %3099 = vmatprep.mubr.bf16.mxu0 %v5854_v10  ;;  %3302 = vmatprep.mubr.bf16.mxu1 %v5868_v16 }
 0x3ec   :  { %3100 = vmatmul.mubr.bf16.vlgmr.msra.gmra.mxu0 %v5860_v34  ;;  %3303 = vmatmul.mubr.bf16.vlgmr.msra.gmra.mxu1 %v7133_v53 }
 0x3ed   :  { %3261 = vmatpush1.bf16.msra.mxu0 %v7134_v44  ;;  %3109 = vmatprep.mubr.bf16.mxu0 %v5868_v16  ;;  %v7143_v16 = vld [vmem:[#allocation20_spill] sm:$0xff] }
 0x3ee   :  { %3312 = vmatprep.mubr.bf16.mxu1 %v7135_v30  ;;  %3262 = vmatprep.subr.bf16.mxu0 %v7136_v28 }
 0x3f1   :  { %3263 = vmatpush1.bf16.msra.mxu0 %v7137_v8 }
 0x3f2   :  { %3264 = vmatprep.subr.bf16.mxu0 %v7138_v37 }
 0x3f4   :  { %3110 = vmatmul.mubr.bf16.gmra.mxu0 %v7133_v53  ;;  %3313 = vmatmul.mubr.bf16.gmra.mxu1 %v7139_v25 }
 0x3f5   :  { %3119 = vmatprep.mubr.bf16.mxu0 %v7135_v30  ;;  %3322 = vmatprep.mubr.bf16.mxu1 %v7140_v31 }
 0x3f6   :  { %3265 = vmatpush1.bf16.msra.mxu0 %v7141_v18 }
 0x3f7   :  { %3266 = vmatprep.subr.bf16.mxu0 %v7142_v9 }
 0x3fa   :  { %3267 = vmatpush1.bf16.msra.mxu0 %v7143_v16 }
 0x3fb   :  { %3268 = vmatprep.subr.bf16.mxu0 %v7144_v22 }
 0x3fc   :  { %3120 = vmatmul.mubr.bf16.gmra.mxu0 %v7139_v25  ;;  %3323 = vmatmul.mubr.bf16.gmra.mxu1 %v6023_v5 }
 0x3fd   :  { %3129 = vmatprep.mubr.bf16.mxu0 %v7140_v31  ;;  %3332 = vmatprep.mubr.bf16.mxu1 %v6030_v55 }
 0x3fe   :  { %3269 = vmatpush1.bf16.msra.mxu0 %v7145_v13 }
 0x3ff   :  { %3270 = vmatprep.subr.bf16.mxu0 %v7146_v49 }
 0x402   :  { %3271 = vmatpush1.bf16.msra.mxu0 %v7147_v54 }
 0x403   :  { %3272 = vmatprep.subr.bf16.mxu0 %v7148_v40 }
 0x404   :  { %3130 = vmatmul.mubr.bf16.gmra.mxu0 %v6023_v5  ;;  %3333 = vmatmul.mubr.bf16.gmra.mxu1 %v6077_v29  ;;  %v7153_v5 = vld [vmem:[#allocation34_spill] sm:$0xff] }
 0x405   :  { %3139 = vmatprep.mubr.bf16.mxu0 %v6030_v55  ;;  %3342 = vmatprep.mubr.bf16.mxu1 %v6082_v42  ;;  %v7155_v55 = vld [vmem:[#allocation33_spill] sm:$0xff] }
 0x406   :  { %3273 = vmatpush1.bf16.msra.mxu0 %v7149_v59 }
 0x407   :  { %3274 = vmatprep.subr.bf16.mxu0 %v7150_v47 }
 0x40a   :  { %3275 = vmatpush1.bf16.msra.mxu0 %v7151_v45 }
 0x40b   :  { %3276 = vmatprep.subr.bf16.mxu0 %v7152_v6 }
 0x40c   :  { %3140 = vmatmul.mubr.bf16.gmra.mxu0 %v6077_v29  ;;  %3343 = vmatmul.mubr.bf16.gmra.mxu1 %v6135_v63  ;;  %v7157_v29 = vld [vmem:[#allocation36_spill] sm:$0xff] }
 0x40d   :  { %3149 = vmatprep.mubr.bf16.mxu0 %v6082_v42  ;;  %3352 = vmatprep.mubr.bf16.mxu1 %v7153_v5  ;;  %v7156_v42 = vld [vmem:[#allocation35_spill] sm:$0xff] }
 0x40e   :  { %3277 = vmatpush2.bf16.msra.mxu0 %v7154_v52 }
 0x40f   :  { %3278 = vmatprep.subr.bf16.mxu0 %v7155_v55 }
 0x412   :  { %3279 = vmatpush2.bf16.msra.mxu0 %v6129_v23  ;;  %v1999_v23 = vld [vmem:[%s7067_s9] sm:$0xff] }
 0x413   :  { %3280 = vmatprep.subr.bf16.mxu0 %v6131_v17  ;;  %v7159_v17 = vld [vmem:[#allocation11_spill] sm:$0xff] }
 0x414   :  { %3150 = vmatmul.mubr.bf16.gmra.mxu0 %v6135_v63  ;;  %3353 = vmatmul.mubr.bf16.gmra.mxu1 %v6186_v14  ;;  %v2015_v63 = vsub.s32 3, %v7159_v17 }
 0x415   :  { %3159 = vmatprep.mubr.bf16.mxu0 %v7153_v5  ;;  %3362 = vmatprep.mubr.bf16.mxu1 %v6191_v26 }
 0x416   :  { %3281 = vmatpush2.bf16.msra.mxu0 %v6159_v56  ;;  %v6464_v56 = vrot.slane %v1999_v23, %v5339_v2 }
 0x417   :  { %3282 = vmatprep.subr.bf16.mxu0 %v7156_v42 }
 0x41a   :  { %3283 = vmatpush2.bf16.msra.mxu0 %v7157_v29 }
 0x41b   :  { %3284 = vmatprep.subr.bf16.mxu0 %v7158_v4 }
 0x41c   :  { %3160 = vmatmul.mubr.bf16.gmra.mxu0 %v6186_v14  ;;  %3363 = vmatmul.mubr.bf16.gmra.mxu1 %v6222_v32  ;;  %v7160_v14 = vsub.s32 2, %v7159_v17 }
 0x41d   :  { %3169 = vmatprep.mubr.bf16.mxu0 %v6191_v26  ;;  %3372 = vmatprep.mubr.bf16.mxu1 %v6227_v48 }
 0x41e   :  { %3285 = vmatpush2.bf16.msra.mxu0 %v6205_v57  ;;  %v6468_v26 = vrot.slane %v1999_v23, %v7160_v14 }
 0x41f   :  { %3286 = vmatprep.subr.bf16.mxu0 %v6215_v61 }
 0x422   :  { %3287 = vmatpush2.bf16.msra.mxu0 %v6220_v15  ;;  %v6474_v15 = vrot.slane %v1999_v23, %v5332_v62 }
 0x423   :  { %3288 = vmatprep.subr.bf16.mxu0 %v6231_v7 }
 0x424   :  { %3170 = vmatmul.mubr.bf16.gmra.mxu0 %v6222_v32  ;;  %3373 = vmatmul.mubr.bf16.gmra.mxu1 %v6256_v58  ;;  %v6476_v32 = vrot.slane %v1999_v23, %v2015_v63 }
 0x425   :  { %3179 = vmatprep.mubr.bf16.mxu0 %v6227_v48  ;;  %3382 = vmatprep.mubr.bf16.mxu1 %v6262_v1 }
 0x426   :  { %3289 = vmatpush2.bf16.msra.mxu0 %v6246_v33 }
 0x427   :  { %3290 = vmatprep.subr.bf16.mxu0 %v6251_v19 }
 0x42a   :  { %3291 = vmatpush2.bf16.msra.mxu0 %v6260_v38 }
 0x42c   :  { %v2715_v57 = vpop.f32.mrf.mxu0  ;;  %v2908_v61 = vpop.f32.mrf.mxu1  ;;  %3180 = vmatmul.mubr.bf16.gmra.mxu0 %v6256_v58  ;;  %3383 = vmatmul.mubr.bf16.gmra.mxu1 %v6287_v24 }
 0x42d   :  { %3189 = vmatprep.mubr.bf16.mxu0 %v6262_v1  ;;  %3392 = vmatprep.mubr.bf16.mxu1 %v6294_v46  ;;  %v2716_v2 = vadd.f32 %v2715_v57, %v6464_v56  ;;  %v2909_v48 = vadd.f32 %v2908_v61, %v6468_v26 }
 0x42e   :  { %v2717_v7 = vpop.f32.mrf.mxu0  ;;  %v2910_v33 = vpop.f32.mrf.mxu1 }
 0x42f   :  { %v2718_v19 = vadd.f32 %v2717_v7, %v6474_v15  ;;  %v2911_v58 = vadd.f32 %v2910_v33, %v6476_v32  ;;  %v3453_v51 = vmax.f32 %v2716_v2, 0.0  ;;  %v3455_v1 = vmax.f32 %v2909_v48, 0.0 }
 0x430   :  { %v2719_v38 = vpop.f32.mrf.mxu0  ;;  %v2912_v60 = vpop.f32.mrf.mxu1 }
 0x431   :  { %v2720_v62 = vadd.f32 %v2719_v38, %v6464_v56  ;;  %v2913_v11 = vadd.f32 %v2912_v60, %v6468_v26  ;;  %v3454_v37 = vmax.f32 %v2718_v19, 0.0  ;;  %v3456_v25 = vmax.f32 %v2911_v58, 0.0 }
 0x432   :  { %v2721_v12 = vpop.f32.mrf.mxu0  ;;  %v2914_v53 = vpop.f32.mrf.mxu1 }
 0x433   :  { %v3461_v44 = vmax.f32 %v2720_v62, 0.0  ;;  %v3463_v30 = vmax.f32 %v2913_v11, 0.0  ;;  %v2722_v28 = vadd.f32 %v2721_v12, %v6474_v15  ;;  %v2915_v8 = vadd.f32 %v2914_v53, %v6476_v32 }
 0x434   :  { %v2725_v31 = vpop.f32.mrf.mxu0  ;;  %v2918_v18 = vpop.f32.mrf.mxu1  ;;  %3190 = vmatmul.mubr.bf16.gmra.mxu0 %v6287_v24  ;;  %3393 = vmatmul.mubr.bf16.gmra.mxu1 %v6313_v21 }
 0x435   :  { %v3709_v9 = vmax.f32 %v3453_v51, %v3461_v44  ;;  %v3735_v16 = vmax.f32 %v3455_v1, %v3463_v30  ;;  %v3462_v22 = vmax.f32 %v2722_v28, 0.0  ;;  %v3464_v13 = vmax.f32 %v2915_v8, 0.0  ;;  %3199 = vmatprep.mubr.bf16.mxu0 %v6294_v46  ;;  %3402 = vmatprep.mubr.bf16.mxu1 %v6317_v20 }
 0x436   :  { %v2726_v49 = vadd.f32 %v2725_v31, %v6464_v56  ;;  %v2919_v54 = vadd.f32 %v2918_v18, %v6468_v26  ;;  %v2727_v40 = vpop.f32.mrf.mxu0  ;;  %v2920_v59 = vpop.f32.mrf.mxu1 }
 0x437   :  { %v3722_v47 = vmax.f32 %v3454_v37, %v3462_v22  ;;  %v3748_v45 = vmax.f32 %v3456_v25, %v3464_v13  ;;  %v2728_v24 = vadd.f32 %v2727_v40, %v6474_v15  ;;  %v2921_v6 = vadd.f32 %v2920_v59, %v6476_v32 }
 0x438   :  { %v3469_v5 = vmax.f32 %v2726_v49, 0.0  ;;  %v3471_v52 = vmax.f32 %v2919_v54, 0.0  ;;  %v2729_v55 = vpop.f32.mrf.mxu0  ;;  %v2922_v42 = vpop.f32.mrf.mxu1 }
 0x439   :  { %v3470_v29 = vmax.f32 %v2728_v24, 0.0  ;;  %v3472_v46 = vmax.f32 %v2921_v6, 0.0  ;;  %v2730_v4 = vadd.f32 %v2729_v55, %v6464_v56  ;;  %v2923_v23 = vadd.f32 %v2922_v42, %v6468_v26 }
 0x43a   :  { %v3710_v63 = vmax.f32 %v3709_v9, %v3469_v5  ;;  %v3736_v14 = vmax.f32 %v3735_v16, %v3471_v52  ;;  %v2731_v57 = vpop.f32.mrf.mxu0  ;;  %v2924_v61 = vpop.f32.mrf.mxu1 }
 0x43b   :  { %v3723_v2 = vmax.f32 %v3722_v47, %v3470_v29  ;;  %v3749_v48 = vmax.f32 %v3748_v45, %v3472_v46  ;;  %v3477_v7 = vmax.f32 %v2730_v4, 0.0  ;;  %v3479_v33 = vmax.f32 %v2923_v23, 0.0 }
 0x43c   :  { %v2732_v19 = vadd.f32 %v2731_v57, %v6474_v15  ;;  %v2925_v58 = vadd.f32 %v2924_v61, %v6476_v32  ;;  %v2735_v38 = vpop.f32.mrf.mxu0  ;;  %v2928_v60 = vpop.f32.mrf.mxu1  ;;  %3200 = vmatmul.mubr.bf16.gmra.mxu0 %v6313_v21  ;;  %3403 = vmatmul.mubr.bf16.gmra.mxu1 %v6332_v35 }
 0x43d   :  { %v3711_v62 = vmax.f32 %v3710_v63, %v3477_v7  ;;  %v3737_v11 = vmax.f32 %v3736_v14, %v3479_v33  ;;  %v2736_v51 = vadd.f32 %v2735_v38, %v6464_v56  ;;  %v2929_v1 = vadd.f32 %v2928_v60, %v6468_v26  ;;  %3209 = vmatprep.mubr.bf16.mxu0 %v6317_v20 }
 0x43e   :  { %v3478_v12 = vmax.f32 %v2732_v19, 0.0  ;;  %v3480_v53 = vmax.f32 %v2925_v58, 0.0  ;;  %3412 = vmatprep.mubr.bf16.mxu1 %v6336_v0  ;;  %v2737_v44 = vpop.f32.mrf.mxu0  ;;  %v2930_v30 = vpop.f32.mrf.mxu1  ;;  %v5062_v63 = vmov 1983009808  }
 0x43f   :  { %v3485_v28 = vmax.f32 %v2736_v51, 0.0  ;;  %v3487_v8 = vmax.f32 %v2929_v1, 0.0  ;;  %v2738_v21 = vadd.f32 %v2737_v44, %v6474_v15  ;;  %v2931_v37 = vadd.f32 %v2930_v30, %v6476_v32 }
 0x440   :  { %v3724_v25 = vmax.f32 %v3723_v2, %v3478_v12  ;;  %v3750_v31 = vmax.f32 %v3749_v48, %v3480_v53  ;;  %v2739_v18 = vpop.f32.mrf.mxu0  ;;  %v2932_v9 = vpop.f32.mrf.mxu1  ;;  %v4192_v14 = vunpack.c.l.s4 %v5062_v63 }
 0x441   :  { %v3712_v16 = vmax.f32 %v3711_v62, %v3485_v28  ;;  %v3738_v22 = vmax.f32 %v3737_v11, %v3487_v8  ;;  %v3486_v13 = vmax.f32 %v2738_v21, 0.0  ;;  %v3488_v20 = vmax.f32 %v2931_v37, 0.0 }
 0x442   :  { %v2740_v49 = vadd.f32 %v2739_v18, %v6464_v56  ;;  %v2933_v54 = vadd.f32 %v2932_v9, %v6468_v26  ;;  %v2741_v40 = vpop.f32.mrf.mxu0  ;;  %v2934_v59 = vpop.f32.mrf.mxu1  ;;  %v4193_v12 = vunpack.c.0.s8 %v4192_v14 }
 0x443   :  { %v3725_v47 = vmax.f32 %v3724_v25, %v3486_v13  ;;  %v3751_v45 = vmax.f32 %v3750_v31, %v3488_v20  ;;  %v2742_v24 = vadd.f32 %v2741_v40, %v6474_v15  ;;  %v2935_v6 = vadd.f32 %v2934_v59, %v6476_v32 }
 0x444   :  { %v3493_v5 = vmax.f32 %v2740_v49, 0.0  ;;  %v3495_v52 = vmax.f32 %v2933_v54, 0.0  ;;  %v2745_v55 = vpop.f32.mrf.mxu0  ;;  %v2938_v42 = vpop.f32.mrf.mxu1  ;;  %3210 = vmatmul.mubr.bf16.gmra.mxu0 %v6332_v35  ;;  %3413 = vmatmul.mubr.bf16.gmra.mxu1 %v6350_v3  ;;  %v6529_v54 = vsub.s32 %v4193_v12, %v7159_v17 }
 0x445   :  { %v3494_v29 = vmax.f32 %v2742_v24, 0.0  ;;  %v3496_v46 = vmax.f32 %v2935_v6, 0.0  ;;  %v2746_v4 = vadd.f32 %v2745_v55, %v6464_v56  ;;  %v2939_v23 = vadd.f32 %v2938_v42, %v6468_v26  ;;  %3219 = vmatprep.mubr.bf16.mxu0 %v6336_v0  ;;  %3422 = vmatprep.mubr.bf16.mxu1 %v6354_v43 }
 0x446   :  { %v3713_v57 = vmax.f32 %v3712_v16, %v3493_v5  ;;  %v3739_v61 = vmax.f32 %v3738_v22, %v3495_v52  ;;  %v2747_v2 = vpop.f32.mrf.mxu0  ;;  %v2940_v48 = vpop.f32.mrf.mxu1 }
 0x447   :  { %v3726_v7 = vmax.f32 %v3725_v47, %v3494_v29  ;;  %v3752_v35 = vmax.f32 %v3751_v45, %v3496_v46  ;;  %v3501_v33 = vmax.f32 %v2746_v4, 0.0  ;;  %v3503_v19 = vmax.f32 %v2939_v23, 0.0 }
 0x448   :  { %v2748_v58 = vadd.f32 %v2747_v2, %v6474_v15  ;;  %v2941_v38 = vadd.f32 %v2940_v48, %v6476_v32  ;;  %v2749_v60 = vpop.f32.mrf.mxu0  ;;  %v2942_v62 = vpop.f32.mrf.mxu1 }
 0x449   :  { %v3714_v11 = vmax.f32 %v3713_v57, %v3501_v33  ;;  %v3740_v0 = vmax.f32 %v3739_v61, %v3503_v19  ;;  %v2750_v51 = vadd.f32 %v2749_v60, %v6464_v56  ;;  %v2943_v1 = vadd.f32 %v2942_v62, %v6468_v26 }
 0x44a   :  { %v3502_v53 = vmax.f32 %v2748_v58, 0.0  ;;  %v3504_v44 = vmax.f32 %v2941_v38, 0.0  ;;  %v2751_v30 = vpop.f32.mrf.mxu0  ;;  %v2944_v28 = vpop.f32.mrf.mxu1 }
 0x44b   :  { %v3509_v8 = vmax.f32 %v2750_v51, 0.0  ;;  %v3511_v21 = vmax.f32 %v2943_v1, 0.0  ;;  %v2752_v37 = vadd.f32 %v2751_v30, %v6474_v15  ;;  %v2945_v25 = vadd.f32 %v2944_v28, %v6476_v32 }
 0x44c   :  { %v3727_v31 = vmax.f32 %v3726_v7, %v3502_v53  ;;  %v3753_v18 = vmax.f32 %v3752_v35, %v3504_v44  ;;  %v2755_v9 = vpop.f32.mrf.mxu0  ;;  %v2948_v16 = vpop.f32.mrf.mxu1  ;;  %3220 = vmatmul.mubr.bf16.gmra.mxu0 %v6350_v3  ;;  %3423 = vmatmul.mubr.bf16.gmra.mxu1 %v6367_v27 }
 0x44d   :  { %v3715_v22 = vmax.f32 %v3714_v11, %v3509_v8  ;;  %v3741_v13 = vmax.f32 %v3740_v0, %v3511_v21  ;;  %v3510_v20 = vmax.f32 %v2752_v37, 0.0  ;;  %v3512_v49 = vmax.f32 %v2945_v25, 0.0  ;;  %3229 = vmatprep.mubr.bf16.mxu0 %v6354_v43  ;;  %3432 = vmatprep.mubr.bf16.mxu1 %v6371_v39 }
 0x44e   :  { %v2756_v40 = vadd.f32 %v2755_v9, %v6464_v56  ;;  %v2949_v59 = vadd.f32 %v2948_v16, %v6468_v26  ;;  %v2757_v47 = vpop.f32.mrf.mxu0  ;;  %v2950_v45 = vpop.f32.mrf.mxu1 }
 0x44f   :  { %v3716_v3 = vrot.slane %v3715_v22, 4  ;;  %v3742_v24 = vrot.slane %v3741_v13, 4  ;;  %v3728_v6 = vmax.f32 %v3727_v31, %v3510_v20  ;;  %v3754_v5 = vmax.f32 %v3753_v18, %v3512_v49 }
 0x450   :  { %v3517_v52 = vmax.f32 %v2756_v40, 0.0  ;;  %v3519_v55 = vmax.f32 %v2949_v59, 0.0  ;;  %v2758_v42 = vadd.f32 %v2757_v47, %v6474_v15  ;;  %v2951_v43 = vadd.f32 %v2950_v45, %v6476_v32  ;;  %v2759_v29 = vpop.f32.mrf.mxu0  ;;  %v2952_v46 = vpop.f32.mrf.mxu1 }
 0x451   :  { %v3717_v4 = vmax.f32 %v3715_v22, %v3716_v3  ;;  %v3743_v23 = vmax.f32 %v3741_v13, %v3742_v24  ;;  %v3729_v63 = vrot.slane %v3728_v6, 4  ;;  %v3755_v14 = vrot.slane %v3754_v5, 4 }
 0x452   :  { %v3518_v57 = vmax.f32 %v2758_v42, 0.0  ;;  %v3520_v61 = vmax.f32 %v2951_v43, 0.0  ;;  %v2760_v2 = vadd.f32 %v2759_v29, %v6464_v56  ;;  %v2953_v48 = vadd.f32 %v2952_v46, %v6468_v26  ;;  %v2761_v7 = vpop.f32.mrf.mxu0  ;;  %v2954_v35 = vpop.f32.mrf.mxu1 }
 0x453   :  { %v3718_v33 = vrot.slane %v3717_v4, 2  ;;  %v3744_v19 = vrot.slane %v3743_v23, 2  ;;  %v3730_v58 = vmax.f32 %v3728_v6, %v3729_v63  ;;  %v3756_v38 = vmax.f32 %v3754_v5, %v3755_v14 }
 0x454   :  { %v3525_v60 = vmax.f32 %v2760_v2, 0.0  ;;  %v3527_v62 = vmax.f32 %v2953_v48, 0.0  ;;  %v2762_v11 = vadd.f32 %v2761_v7, %v6474_v15  ;;  %v2955_v0 = vadd.f32 %v2954_v35, %v6476_v32  ;;  %v2765_v51 = vpop.f32.mrf.mxu0  ;;  %v2958_v1 = vpop.f32.mrf.mxu1  ;;  %3230 = vmatmul.mubr.bf16.gmra.mxu0 %v6367_v27  ;;  %3433 = vmatmul.mubr.bf16.gmra.mxu1 %v6381_v36 }
 0x455   :  { %v3719_v12 = vmax.f32 %v3717_v4, %v3718_v33  ;;  %v3745_v53 = vmax.f32 %v3743_v23, %v3744_v19  ;;  %v3731_v44 = vrot.slane %v3730_v58, 2  ;;  %v3757_v30 = vrot.slane %v3756_v38, 2  ;;  %3239 = vmatprep.mubr.bf16.mxu0 %v6371_v39  ;;  %3442 = vmatprep.mubr.bf16.mxu1 %v6385_v50 }
 0x456   :  { %v3813_v28 = vmax.f32 %v3517_v52, %v3525_v60  ;;  %v3839_v8 = vmax.f32 %v3519_v55, %v3527_v62  ;;  %v3526_v21 = vmax.f32 %v2762_v11, 0.0  ;;  %v3528_v37 = vmax.f32 %v2955_v0, 0.0  ;;  %v2767_v25 = vpop.f32.mrf.mxu0  ;;  %v2960_v31 = vpop.f32.mrf.mxu1 }
 0x457   :  { %v3720_v18 = vrot.slane %v3719_v12, 1  ;;  %v3746_v9 = vrot.slane %v3745_v53, 1  ;;  %v3732_v16 = vmax.f32 %v3730_v58, %v3731_v44  ;;  %v3758_v27 = vmax.f32 %v3756_v38, %v3757_v30 }
 0x458   :  { %v3826_v22 = vmax.f32 %v3518_v57, %v3526_v21  ;;  %v3852_v13 = vmax.f32 %v3520_v61, %v3528_v37  ;;  %v2766_v20 = vadd.f32 %v2765_v51, %v6464_v56  ;;  %v2959_v49 = vadd.f32 %v2958_v1, %v6468_v26  ;;  %v2769_v40 = vpop.f32.mrf.mxu0  ;;  %v2962_v39 = vpop.f32.mrf.mxu1 }
 0x459   :  { %v3721_v59 = vmax.f32 %v3719_v12, %v3720_v18  ;;  %v3747_v47 = vmax.f32 %v3745_v53, %v3746_v9  ;;  %v3733_v45 = vrot.slane %v3732_v16, 1  ;;  %v3759_v3 = vrot.slane %v3758_v27, 1 }
 0x45a   :  { %v3533_v24 = vmax.f32 %v2766_v20, 0.0  ;;  %v3535_v6 = vmax.f32 %v2959_v49, 0.0  ;;  %v2768_v5 = vadd.f32 %v2767_v25, %v6474_v15  ;;  %v2961_v52 = vadd.f32 %v2960_v31, %v6476_v32  ;;  %v2771_v55 = vpop.f32.mrf.mxu0  ;;  %v2964_v42 = vpop.f32.mrf.mxu1 }
 0x45b   :  { %v3734_v43 = vmax.f32 %v3732_v16, %v3733_v45  ;;  %v3760_v29 = vmax.f32 %v3758_v27, %v3759_v3  ;;  %v2770_v46 = vadd.f32 %v2769_v40, %v6464_v56  ;;  %v2963_v4 = vadd.f32 %v2962_v39, %v6468_v26 }
 0x45c   :  { %v3814_v23 = vmax.f32 %v3813_v28, %v3533_v24  ;;  %v3840_v63 = vmax.f32 %v3839_v8, %v3535_v6  ;;  %v3534_v14 = vmax.f32 %v2768_v5, 0.0  ;;  %v3536_v57 = vmax.f32 %v2961_v52, 0.0  ;;  %v2775_v61 = vpop.f32.mrf.mxu0  ;;  %v2968_v2 = vpop.f32.mrf.mxu1  ;;  %3240 = vmatmul.mubr.bf16.gmra.mxu0 %v6381_v36  ;;  %3443 = vmatmul.mubr.bf16.gmra.mxu1 %v6391_v41 }
 0x45d   :  { %v4761_v48 = vpack.c.bf16 %v3734_v43, %v3721_v59  ;;  %v4762_v7 = vpack.c.bf16 %v3760_v29, %v3747_v47  ;;  %v3541_v35 = vmax.f32 %v2770_v46, 0.0  ;;  %v3543_v33 = vmax.f32 %v2963_v4, 0.0  ;;  %3249 = vmatprep.mubr.bf16.mxu0 %v6385_v50 }
 0x45e   :  { %v3827_v19 = vmax.f32 %v3826_v22, %v3534_v14  ;;  %v3853_v58 = vmax.f32 %v3852_v13, %v3536_v57  ;;  %v2772_v38 = vadd.f32 %v2771_v55, %v6474_v15  ;;  %v2965_v60 = vadd.f32 %v2964_v42, %v6476_v32  ;;  %v2777_v62 = vpop.f32.mrf.mxu0  ;;  %v2970_v11 = vpop.f32.mrf.mxu1 }
 0x45f   :  { %v6555_v0 = vrot.slane %v4761_v48, %v6529_v54  ;;  %v6558_v36 = vrot.slane %v4762_v7, %v6529_v54  ;;  %v3815_v51 = vmax.f32 %v3814_v23, %v3541_v35  ;;  %v3841_v1 = vmax.f32 %v3840_v63, %v3543_v33 }
 0x460   :  { %v3542_v12 = vmax.f32 %v2772_v38, 0.0  ;;  %v3544_v53 = vmax.f32 %v2965_v60, 0.0  ;;  %v2776_v50 = vadd.f32 %v2775_v61, %v6464_v56  ;;  %v2969_v44 = vadd.f32 %v2968_v2, %v6468_v26  ;;  %v2779_v30 = vpop.f32.mrf.mxu0  ;;  %v2972_v28 = vpop.f32.mrf.mxu1 }
 0x461   :  { %v4205_v8 = vcombine.low %v6555_v0, %v6558_v36  ;;  %v2778_v21 = vadd.f32 %v2777_v62, %v6474_v15  ;;  %v2971_v37 = vadd.f32 %v2970_v11, %v6476_v32  ;;  %v2780_v40 = vadd.f32 %v2779_v30, %v6464_v56 }
 0x462   :  { %v3828_v25 = vmax.f32 %v3827_v19, %v3542_v12  ;;  %v3854_v31 = vmax.f32 %v3853_v58, %v3544_v53  ;;  %v3549_v18 = vmax.f32 %v2776_v50, 0.0  ;;  %v3551_v9 = vmax.f32 %v2969_v44, 0.0  ;;  %v2781_v16 = vpop.f32.mrf.mxu0  ;;  %v2974_v27 = vpop.f32.mrf.mxu1 }
 0x463   :  { %v3550_v22 = vmax.f32 %v2778_v21, 0.0  ;;  %v3552_v13 = vmax.f32 %v2971_v37, 0.0  ;;  %v2973_v39 = vadd.f32 %v2972_v28, %v6468_v26  ;;  %v3557_v24 = vmax.f32 %v2780_v40, 0.0 }
 0x464   :  { %v3816_v20 = vmax.f32 %v3815_v51, %v3549_v18  ;;  %v3842_v49 = vmax.f32 %v3841_v1, %v3551_v9  ;;  %v2785_v59 = vpop.f32.mrf.mxu0  ;;  %v2978_v47 = vpop.f32.mrf.mxu1  ;;  %3250 = vmatmul.mubr.bf16.gmra.mxu0 %v6391_v41  ;;  %v2782_v55 = vadd.f32 %v2781_v16, %v6474_v15  ;;  %v2975_v42 = vadd.f32 %v2974_v27, %v6476_v32 }
 0x465   :  { %3292 = vmatprep.mubr.bf16.mxu0 %v5854_v10  ;;  %v3829_v45 = vmax.f32 %v3828_v25, %v3550_v22  ;;  %v3855_v3 = vmax.f32 %v3854_v31, %v3552_v13  ;;  %v3559_v6 = vmax.f32 %v2973_v39, 0.0  ;;  %v2786_v43 = vadd.f32 %v2785_v59, %v6464_v56 }
 0x466   :  { %v2787_v5 = vpop.f32.mrf.mxu0  ;;  %v2980_v52 = vpop.f32.mrf.mxu1  ;;  %v2979_v29 = vadd.f32 %v2978_v47, %v6468_v26  ;;  %v3817_v46 = vmax.f32 %v3816_v20, %v3557_v24  ;;  %v3558_v14 = vmax.f32 %v2782_v55, 0.0  ;;  %v3560_v57 = vmax.f32 %v2975_v42, 0.0 }
 0x467   :  { %v3843_v4 = vmax.f32 %v3842_v49, %v3559_v6  ;;  %v2788_v41 = vadd.f32 %v2787_v5, %v6474_v15  ;;  %v2981_v10 = vadd.f32 %v2980_v52, %v6476_v32  ;;  %v3565_v61 = vmax.f32 %v2786_v43, 0.0 }
 0x468   :  { %v2789_v23 = vpop.f32.mrf.mxu0  ;;  %v2982_v63 = vpop.f32.mrf.mxu1  ;;  %v3567_v2 = vmax.f32 %v2979_v29, 0.0  ;;  %v3830_v38 = vmax.f32 %v3829_v45, %v3558_v14  ;;  %v3856_v60 = vmax.f32 %v3855_v3, %v3560_v57 }
 0x469   :  { %v3566_v48 = vmax.f32 %v2788_v41, 0.0  ;;  %v3568_v7 = vmax.f32 %v2981_v10, 0.0  ;;  %v2790_v35 = vadd.f32 %v2789_v23, %v6464_v56  ;;  %v2983_v33 = vadd.f32 %v2982_v63, %v6468_v26 }
 0x46a   :  { %v2791_v19 = vpop.f32.mrf.mxu0  ;;  %v2984_v58 = vpop.f32.mrf.mxu1  ;;  %v3818_v62 = vmax.f32 %v3817_v46, %v3565_v61  ;;  %v3844_v11 = vmax.f32 %v3843_v4, %v3567_v2 }
 0x46b   :  { %v3573_v51 = vmax.f32 %v2790_v35, 0.0  ;;  %v3575_v1 = vmax.f32 %v2983_v33, 0.0  ;;  %v2792_v12 = vadd.f32 %v2791_v19, %v6474_v15  ;;  %v2985_v53 = vadd.f32 %v2984_v58, %v6476_v32 }
 0x46c   :  { %v2795_v50 = vpop.f32.mrf.mxu0  ;;  %v2988_v44 = vpop.f32.mrf.mxu1  ;;  %3293 = vmatmul.mubr.bf16.vlgmr.msra.gmra.mxu0 %v5860_v34  ;;  %v3831_v30 = vmax.f32 %v3830_v38, %v3566_v48  ;;  %v3857_v28 = vmax.f32 %v3856_v60, %v3568_v7 }
 0x46d   :  { %v2796_v21 = vadd.f32 %v2795_v50, %v6464_v56  ;;  %v2989_v37 = vadd.f32 %v2988_v44, %v6468_v26  ;;  %v3819_v25 = vmax.f32 %v3818_v62, %v3573_v51  ;;  %v3845_v31 = vmax.f32 %v3844_v11, %v3575_v1 }
 0x46e   :  { %v3574_v18 = vmax.f32 %v2792_v12, 0.0  ;;  %v3576_v9 = vmax.f32 %v2985_v53, 0.0  ;;  %v2797_v16 = vpop.f32.mrf.mxu0  ;;  %v2990_v27 = vpop.f32.mrf.mxu1 }
 0x46f   :  { %v3581_v22 = vmax.f32 %v2796_v21, 0.0  ;;  %v3583_v13 = vmax.f32 %v2989_v37, 0.0  ;;  %v2798_v20 = vadd.f32 %v2797_v16, %v6474_v15  ;;  %v2991_v49 = vadd.f32 %v2990_v27, %v6476_v32 }
 0x470   :  { %v3820_v40 = vrot.slane %v3819_v25, 4  ;;  %v3846_v34 = vrot.slane %v3845_v31, 4  ;;  %v3832_v39 = vmax.f32 %v3831_v30, %v3574_v18  ;;  %v3858_v59 = vmax.f32 %v3857_v28, %v3576_v9  ;;  %v2799_v47 = vpop.f32.mrf.mxu0  ;;  %v2992_v45 = vpop.f32.mrf.mxu1 }
 0x471   :  { %v3582_v3 = vmax.f32 %v2798_v20, 0.0  ;;  %v3584_v24 = vmax.f32 %v2991_v49, 0.0  ;;  %v2800_v6 = vadd.f32 %v2799_v47, %v6464_v56  ;;  %v2993_v5 = vadd.f32 %v2992_v45, %v6468_v26 }
 0x472   :  { %v3821_v52 = vmax.f32 %v3819_v25, %v3820_v40  ;;  %v3847_v55 = vmax.f32 %v3845_v31, %v3846_v34  ;;  %v3833_v42 = vrot.slane %v3832_v39, 4  ;;  %v3859_v43 = vrot.slane %v3858_v59, 4  ;;  %v2801_v29 = vpop.f32.mrf.mxu0  ;;  %v2994_v46 = vpop.f32.mrf.mxu1 }
 0x473   :  { %v3589_v4 = vmax.f32 %v2800_v6, 0.0  ;;  %v3591_v41 = vmax.f32 %v2993_v5, 0.0  ;;  %v2802_v10 = vadd.f32 %v2801_v29, %v6474_v15  ;;  %v2995_v23 = vadd.f32 %v2994_v46, %v6476_v32 }
 0x474   :  { %v3822_v63 = vrot.slane %v3821_v52, 2  ;;  %v3848_v14 = vrot.slane %v3847_v55, 2  ;;  %v3834_v57 = vmax.f32 %v3832_v39, %v3833_v42  ;;  %v3860_v61 = vmax.f32 %v3858_v59, %v3859_v43  ;;  %v2805_v2 = vpop.f32.mrf.mxu0  ;;  %v2998_v48 = vpop.f32.mrf.mxu1 }
 0x475   :  { %v3917_v7 = vmax.f32 %v3581_v22, %v3589_v4  ;;  %v3943_v35 = vmax.f32 %v3583_v13, %v3591_v41  ;;  %v3590_v33 = vmax.f32 %v2802_v10, 0.0  ;;  %v3592_v19 = vmax.f32 %v2995_v23, 0.0 }
 0x476   :  { %v3823_v58 = vmax.f32 %v3821_v52, %v3822_v63  ;;  %v3849_v38 = vmax.f32 %v3847_v55, %v3848_v14  ;;  %v3835_v60 = vrot.slane %v3834_v57, 2  ;;  %v3861_v62 = vrot.slane %v3860_v61, 2  ;;  %v2807_v11 = vpop.f32.mrf.mxu0  ;;  %v3000_v51 = vpop.f32.mrf.mxu1 }
 0x477   :  { %v3930_v1 = vmax.f32 %v3582_v3, %v3590_v33  ;;  %v3956_v12 = vmax.f32 %v3584_v24, %v3592_v19  ;;  %v2806_v53 = vadd.f32 %v2805_v2, %v6464_v56  ;;  %v2999_v50 = vadd.f32 %v2998_v48, %v6468_v26 }
 0x478   :  { %v3824_v44 = vrot.slane %v3823_v58, 1  ;;  %v3850_v30 = vrot.slane %v3849_v38, 1  ;;  %v3836_v28 = vmax.f32 %v3834_v57, %v3835_v60  ;;  %v3862_v21 = vmax.f32 %v3860_v61, %v3861_v62  ;;  %v2809_v37 = vpop.f32.mrf.mxu0  ;;  %v3002_v25 = vpop.f32.mrf.mxu1 }
 0x479   :  { %v3597_v31 = vmax.f32 %v2806_v53, 0.0  ;;  %v3599_v18 = vmax.f32 %v2999_v50, 0.0  ;;  %v2808_v9 = vadd.f32 %v2807_v11, %v6474_v15  ;;  %v3001_v16 = vadd.f32 %v3000_v51, %v6476_v32 }
 0x47a   :  { %v3825_v27 = vmax.f32 %v3823_v58, %v3824_v44  ;;  %v3851_v22 = vmax.f32 %v3849_v38, %v3850_v30  ;;  %v3837_v13 = vrot.slane %v3836_v28, 1  ;;  %v3863_v20 = vrot.slane %v3862_v21, 1  ;;  %v2811_v49 = vpop.f32.mrf.mxu0  ;;  %v3004_v40 = vpop.f32.mrf.mxu1 }
 0x47b   :  { %v3918_v34 = vmax.f32 %v3917_v7, %v3597_v31  ;;  %v3944_v39 = vmax.f32 %v3943_v35, %v3599_v18  ;;  %v3598_v59 = vmax.f32 %v2808_v9, 0.0  ;;  %v3600_v47 = vmax.f32 %v3001_v16, 0.0 }
 0x47c   :  { %v3838_v45 = vmax.f32 %v3836_v28, %v3837_v13  ;;  %v3864_v3 = vmax.f32 %v3862_v21, %v3863_v20  ;;  %v2810_v24 = vadd.f32 %v2809_v37, %v6464_v56  ;;  %v3003_v6 = vadd.f32 %v3002_v25, %v6468_v26  ;;  %v2815_v5 = vpop.f32.mrf.mxu0  ;;  %v3008_v52 = vpop.f32.mrf.mxu1 }
 0x47d   :  { %v3931_v55 = vmax.f32 %v3930_v1, %v3598_v59  ;;  %v3957_v42 = vmax.f32 %v3956_v12, %v3600_v47  ;;  %v2812_v43 = vadd.f32 %v2811_v49, %v6474_v15  ;;  %v3005_v29 = vadd.f32 %v3004_v40, %v6476_v32 }
 0x47e   :  { %v4765_v46 = vpack.c.bf16 %v3838_v45, %v3825_v27  ;;  %v4766_v4 = vpack.c.bf16 %v3864_v3, %v3851_v22  ;;  %v3605_v41 = vmax.f32 %v2810_v24, 0.0  ;;  %v3607_v10 = vmax.f32 %v3003_v6, 0.0  ;;  %v2817_v23 = vpop.f32.mrf.mxu0  ;;  %v3010_v63 = vpop.f32.mrf.mxu1 }
 0x47f   :  { %v3606_v14 = vmax.f32 %v2812_v43, 0.0  ;;  %v3608_v57 = vmax.f32 %v3005_v29, 0.0  ;;  %v2816_v61 = vadd.f32 %v2815_v5, %v6464_v56  ;;  %v3009_v2 = vadd.f32 %v3008_v52, %v6468_v26 }
 0x480   :  { %v6600_v48 = vrot.slane %v4765_v46, %v6529_v54  ;;  %v6603_v7 = vrot.slane %v4766_v4, %v6529_v54  ;;  %v3919_v35 = vmax.f32 %v3918_v34, %v3605_v41  ;;  %v3945_v33 = vmax.f32 %v3944_v39, %v3607_v10  ;;  %v2819_v19 = vpop.f32.mrf.mxu0  ;;  %v3012_v58 = vpop.f32.mrf.mxu1 }
 0x481   :  { %v3932_v38 = vmax.f32 %v3931_v55, %v3606_v14  ;;  %v3958_v60 = vmax.f32 %v3957_v42, %v3608_v57  ;;  %v3613_v62 = vmax.f32 %v2816_v61, 0.0  ;;  %v3615_v11 = vmax.f32 %v3009_v2, 0.0 }
 0x482   :  { %v4239_v51 = vcombine.low %v6600_v48, %v6603_v7  ;;  %v2818_v1 = vadd.f32 %v2817_v23, %v6474_v15  ;;  %v3011_v12 = vadd.f32 %v3010_v63, %v6476_v32  ;;  %v2821_v53 = vpop.f32.mrf.mxu0  ;;  %v3014_v50 = vpop.f32.mrf.mxu1  ;;  %v2820_v28 = vadd.f32 %v2819_v19, %v6464_v56 }
 0x483   :  { %v3920_v44 = vmax.f32 %v3919_v35, %v3613_v62  ;;  %v3946_v30 = vmax.f32 %v3945_v33, %v3615_v11  ;;  %v3013_v21 = vadd.f32 %v3012_v58, %v6468_v26  ;;  %v2822_v27 = vadd.f32 %v2821_v53, %v6474_v15 }
 0x484   :  { %v3614_v37 = vmax.f32 %v2818_v1, 0.0  ;;  %v3616_v25 = vmax.f32 %v3011_v12, 0.0  ;;  %v2825_v31 = vpop.f32.mrf.mxu0  ;;  %v3018_v18 = vpop.f32.mrf.mxu1  ;;  %v3621_v9 = vmax.f32 %v2820_v28, 0.0  ;;  %v3015_v22 = vadd.f32 %v3014_v50, %v6476_v32 }
 0x485   :  { %v3623_v16 = vmax.f32 %v3013_v21, 0.0  ;;  %v3622_v59 = vmax.f32 %v2822_v27, 0.0  ;;  %v2826_v45 = vadd.f32 %v2825_v31, %v6464_v56  ;;  %v3019_v3 = vadd.f32 %v3018_v18, %v6468_v26 }
 0x486   :  { %v2827_v13 = vpop.f32.mrf.mxu0  ;;  %v3020_v20 = vpop.f32.mrf.mxu1  ;;  %v3933_v49 = vmax.f32 %v3932_v38, %v3614_v37  ;;  %v3959_v40 = vmax.f32 %v3958_v60, %v3616_v25  ;;  %v3921_v34 = vmax.f32 %v3920_v44, %v3621_v9  ;;  %v3624_v47 = vmax.f32 %v3015_v22, 0.0 }
 0x487   :  { %v3947_v39 = vmax.f32 %v3946_v30, %v3623_v16  ;;  %v2828_v5 = vadd.f32 %v2827_v13, %v6474_v15  ;;  %v3021_v52 = vadd.f32 %v3020_v20, %v6476_v32  ;;  %v3629_v46 = vmax.f32 %v2826_v45, 0.0 }
 0x488   :  { %v2829_v24 = vpop.f32.mrf.mxu0  ;;  %v3022_v6 = vpop.f32.mrf.mxu1  ;;  %v3934_v43 = vmax.f32 %v3933_v49, %v3622_v59  ;;  %v3960_v29 = vmax.f32 %v3959_v40, %v3624_v47  ;;  %v3631_v4 = vmax.f32 %v3019_v3, 0.0 }
 0x489   :  { %v2830_v55 = vadd.f32 %v2829_v24, %v6464_v56  ;;  %v3023_v42 = vadd.f32 %v3022_v6, %v6468_v26  ;;  %v3630_v23 = vmax.f32 %v2828_v5, 0.0  ;;  %v3632_v63 = vmax.f32 %v3021_v52, 0.0 }
 0x48a   :  { %v2831_v41 = vpop.f32.mrf.mxu0  ;;  %v3024_v10 = vpop.f32.mrf.mxu1  ;;  %v3922_v61 = vmax.f32 %v3921_v34, %v3629_v46  ;;  %v3948_v2 = vmax.f32 %v3947_v39, %v3631_v4 }
 0x48b   :  { %v3637_v14 = vmax.f32 %v2830_v55, 0.0  ;;  %v3639_v57 = vmax.f32 %v3023_v42, 0.0  ;;  %v2832_v35 = vadd.f32 %v2831_v41, %v6474_v15  ;;  %v3025_v33 = vadd.f32 %v3024_v10, %v6476_v32 }
 0x48c   :  { %v2835_v19 = vpop.f32.mrf.mxu0  ;;  %v3028_v58 = vpop.f32.mrf.mxu1  ;;  %v3935_v38 = vmax.f32 %v3934_v43, %v3630_v23  ;;  %v3961_v60 = vmax.f32 %v3960_v29, %v3632_v63 }
 0x48d   :  { %v2836_v62 = vadd.f32 %v2835_v19, %v6464_v56  ;;  %v3029_v11 = vadd.f32 %v3028_v58, %v6468_v26  ;;  %v3923_v1 = vmax.f32 %v3922_v61, %v3637_v14  ;;  %v3949_v12 = vmax.f32 %v3948_v2, %v3639_v57 }
 0x48e   :  { %v3638_v53 = vmax.f32 %v2832_v35, 0.0  ;;  %v3640_v50 = vmax.f32 %v3025_v33, 0.0  ;;  %v2837_v44 = vpop.f32.mrf.mxu0  ;;  %v3030_v30 = vpop.f32.mrf.mxu1 }
 0x48f   :  { %v3645_v28 = vmax.f32 %v2836_v62, 0.0  ;;  %v3647_v21 = vmax.f32 %v3029_v11, 0.0  ;;  %v2838_v37 = vadd.f32 %v2837_v44, %v6474_v15  ;;  %v3031_v25 = vadd.f32 %v3030_v30, %v6476_v32 }
 0x490   :  { %v3924_v31 = vrot.slane %v3923_v1, 4  ;;  %v3950_v18 = vrot.slane %v3949_v12, 4  ;;  %v3936_v9 = vmax.f32 %v3935_v38, %v3638_v53  ;;  %v3962_v16 = vmax.f32 %v3961_v60, %v3640_v50  ;;  %v2839_v27 = vpop.f32.mrf.mxu0  ;;  %v3032_v22 = vpop.f32.mrf.mxu1 }
 0x491   :  { %v3646_v13 = vmax.f32 %v2838_v37, 0.0  ;;  %v3648_v20 = vmax.f32 %v3031_v25, 0.0  ;;  %v2840_v49 = vadd.f32 %v2839_v27, %v6464_v56  ;;  %v3033_v40 = vadd.f32 %v3032_v22, %v6468_v26 }
 0x492   :  { %v3925_v34 = vmax.f32 %v3923_v1, %v3924_v31  ;;  %v3951_v39 = vmax.f32 %v3949_v12, %v3950_v18  ;;  %v3937_v59 = vrot.slane %v3936_v9, 4  ;;  %v3963_v47 = vrot.slane %v3962_v16, 4  ;;  %v2841_v45 = vpop.f32.mrf.mxu0  ;;  %v3034_v3 = vpop.f32.mrf.mxu1 }
 0x493   :  { %v3653_v24 = vmax.f32 %v2840_v49, 0.0  ;;  %v3655_v6 = vmax.f32 %v3033_v40, 0.0  ;;  %v2842_v5 = vadd.f32 %v2841_v45, %v6474_v15  ;;  %v3035_v52 = vadd.f32 %v3034_v3, %v6476_v32 }
 0x494   :  { %v3926_v55 = vrot.slane %v3925_v34, 2  ;;  %v3952_v42 = vrot.slane %v3951_v39, 2  ;;  %v3938_v43 = vmax.f32 %v3936_v9, %v3937_v59  ;;  %v3964_v29 = vmax.f32 %v3962_v16, %v3963_v47  ;;  %v2845_v46 = vpop.f32.mrf.mxu0  ;;  %v3038_v4 = vpop.f32.mrf.mxu1 }
 0x495   :  { %v4021_v41 = vmax.f32 %v3645_v28, %v3653_v24  ;;  %v4047_v10 = vmax.f32 %v3647_v21, %v3655_v6  ;;  %v3654_v23 = vmax.f32 %v2842_v5, 0.0  ;;  %v3656_v63 = vmax.f32 %v3035_v52, 0.0 }
 0x496   :  { %v3927_v14 = vmax.f32 %v3925_v34, %v3926_v55  ;;  %v3953_v57 = vmax.f32 %v3951_v39, %v3952_v42  ;;  %v3939_v61 = vrot.slane %v3938_v43, 2  ;;  %v3965_v2 = vrot.slane %v3964_v29, 2  ;;  %v2847_v35 = vpop.f32.mrf.mxu0  ;;  %v3040_v33 = vpop.f32.mrf.mxu1 }
 0x497   :  { %v4034_v19 = vmax.f32 %v3646_v13, %v3654_v23  ;;  %v4060_v58 = vmax.f32 %v3648_v20, %v3656_v63  ;;  %v2846_v38 = vadd.f32 %v2845_v46, %v6464_v56  ;;  %v3039_v60 = vadd.f32 %v3038_v4, %v6468_v26 }
 0x498   :  { %v3928_v62 = vrot.slane %v3927_v14, 1  ;;  %v3954_v11 = vrot.slane %v3953_v57, 1  ;;  %v3940_v1 = vmax.f32 %v3938_v43, %v3939_v61  ;;  %v3966_v12 = vmax.f32 %v3964_v29, %v3965_v2  ;;  %v2849_v53 = vpop.f32.mrf.mxu0  ;;  %v3042_v50 = vpop.f32.mrf.mxu1 }
 0x499   :  { %v3661_v44 = vmax.f32 %v2846_v38, 0.0  ;;  %v3663_v30 = vmax.f32 %v3039_v60, 0.0  ;;  %v2848_v28 = vadd.f32 %v2847_v35, %v6474_v15  ;;  %v3041_v21 = vadd.f32 %v3040_v33, %v6476_v32 }
 0x49a   :  { %v3929_v37 = vmax.f32 %v3927_v14, %v3928_v62  ;;  %v3955_v25 = vmax.f32 %v3953_v57, %v3954_v11  ;;  %v3941_v31 = vrot.slane %v3940_v1, 1  ;;  %v3967_v18 = vrot.slane %v3966_v12, 1  ;;  %v2851_v9 = vpop.f32.mrf.mxu0  ;;  %v3044_v16 = vpop.f32.mrf.mxu1 }
 0x49b   :  { %v4022_v27 = vmax.f32 %v4021_v41, %v3661_v44  ;;  %v4048_v22 = vmax.f32 %v4047_v10, %v3663_v30  ;;  %v3662_v13 = vmax.f32 %v2848_v28, 0.0  ;;  %v3664_v20 = vmax.f32 %v3041_v21, 0.0 }
 0x49c   :  { %v3942_v49 = vmax.f32 %v3940_v1, %v3941_v31  ;;  %v3968_v40 = vmax.f32 %v3966_v12, %v3967_v18  ;;  %v2850_v34 = vadd.f32 %v2849_v53, %v6464_v56  ;;  %v3043_v39 = vadd.f32 %v3042_v50, %v6468_v26  ;;  %v2855_v59 = vpop.f32.mrf.mxu0  ;;  %v3048_v47 = vpop.f32.mrf.mxu1 }
 0x49d   :  { %v4035_v45 = vmax.f32 %v4034_v19, %v3662_v13  ;;  %v4061_v3 = vmax.f32 %v4060_v58, %v3664_v20  ;;  %v2852_v24 = vadd.f32 %v2851_v9, %v6474_v15  ;;  %v3045_v6 = vadd.f32 %v3044_v16, %v6476_v32 }
 0x49e   :  { %v4769_v5 = vpack.c.bf16 %v3942_v49, %v3929_v37  ;;  %v4770_v52 = vpack.c.bf16 %v3968_v40, %v3955_v25  ;;  %v3669_v55 = vmax.f32 %v2850_v34, 0.0  ;;  %v3671_v42 = vmax.f32 %v3043_v39, 0.0  ;;  %v2857_v43 = vpop.f32.mrf.mxu0  ;;  %v3050_v29 = vpop.f32.mrf.mxu1 }
 0x49f   :  { %v3670_v46 = vmax.f32 %v2852_v24, 0.0  ;;  %v3672_v4 = vmax.f32 %v3045_v6, 0.0  ;;  %v2856_v41 = vadd.f32 %v2855_v59, %v6464_v56  ;;  %v3049_v10 = vadd.f32 %v3048_v47, %v6468_v26 }
 0x4a0   :  { %v6640_v23 = vrot.slane %v4769_v5, %v6529_v54  ;;  %v6643_v63 = vrot.slane %v4770_v52, %v6529_v54  ;;  %v4023_v14 = vmax.f32 %v4022_v27, %v3669_v55  ;;  %v4049_v57 = vmax.f32 %v4048_v22, %v3671_v42  ;;  %v2859_v61 = vpop.f32.mrf.mxu0  ;;  %v3052_v2 = vpop.f32.mrf.mxu1 }
 0x4a1   :  { %v4036_v35 = vmax.f32 %v4035_v45, %v3670_v46  ;;  %v4062_v33 = vmax.f32 %v4061_v3, %v3672_v4  ;;  %v3677_v19 = vmax.f32 %v2856_v41, 0.0  ;;  %v3679_v58 = vmax.f32 %v3049_v10, 0.0 }
 0x4a2   :  { %v4273_v38 = vcombine.low %v6640_v23, %v6643_v63  ;;  %v2858_v60 = vadd.f32 %v2857_v43, %v6474_v15  ;;  %v3051_v62 = vadd.f32 %v3050_v29, %v6476_v32  ;;  %v2861_v11 = vpop.f32.mrf.mxu0  ;;  %v3054_v1 = vpop.f32.mrf.mxu1  ;;  %v2860_v50 = vadd.f32 %v2859_v61, %v6464_v56 }
 0x4a3   :  { %v4024_v12 = vmax.f32 %v4023_v14, %v3677_v19  ;;  %v4050_v53 = vmax.f32 %v4049_v57, %v3679_v58  ;;  %v3053_v44 = vadd.f32 %v3052_v2, %v6468_v26  ;;  %v2019_v25 = vsub.s32 4, %v7159_v17 }
 0x4a4   :  { %v3678_v30 = vmax.f32 %v2858_v60, 0.0  ;;  %v3680_v28 = vmax.f32 %v3051_v62, 0.0  ;;  %v2865_v21 = vpop.f32.mrf.mxu0  ;;  %v3058_v37 = vpop.f32.mrf.mxu1  ;;  %v2023_v31 = vsub.s32 5, %v7159_v17  ;;  %v3685_v18 = vmax.f32 %v2860_v50, 0.0 }
 0x4a5   :  { %v3687_v9 = vmax.f32 %v3053_v44, 0.0  ;;  %v2862_v16 = vadd.f32 %v2861_v11, %v6474_v15  ;;  %v3055_v27 = vadd.f32 %v3054_v1, %v6476_v32  ;;  %v2866_v20 = vadd.f32 %v2865_v21, %v6464_v56 }
 0x4a6   :  { %v4037_v22 = vmax.f32 %v4036_v35, %v3678_v30  ;;  %v4063_v13 = vmax.f32 %v4062_v33, %v3680_v28  ;;  %v3059_v49 = vadd.f32 %v3058_v37, %v6468_v26  ;;  %v2867_v40 = vpop.f32.mrf.mxu0  ;;  %v3060_v34 = vpop.f32.mrf.mxu1  ;;  %v4025_v39 = vmax.f32 %v4024_v12, %v3685_v18 }
 0x4a7   :  { %v4051_v59 = vmax.f32 %v4050_v53, %v3687_v9  ;;  %v3686_v47 = vmax.f32 %v2862_v16, 0.0  ;;  %v3688_v45 = vmax.f32 %v3055_v27, 0.0  ;;  %v3693_v3 = vmax.f32 %v2866_v20, 0.0 }
 0x4a8   :  { %v3695_v24 = vmax.f32 %v3059_v49, 0.0  ;;  %v2868_v6 = vadd.f32 %v2867_v40, %v6474_v15  ;;  %v3061_v5 = vadd.f32 %v3060_v34, %v6476_v32  ;;  %v2869_v52 = vpop.f32.mrf.mxu0  ;;  %v3062_v55 = vpop.f32.mrf.mxu1  ;;  %v2027_v11 = vsub.s32 6, %v7159_v17 }
 0x4a9   :  { %v4038_v42 = vmax.f32 %v4037_v22, %v3686_v47  ;;  %v4064_v43 = vmax.f32 %v4063_v13, %v3688_v45  ;;  %v2870_v29 = vadd.f32 %v2869_v52, %v6464_v56  ;;  %v3063_v46 = vadd.f32 %v3062_v55, %v6468_v26  ;;  %v4985_v56 = vld [vmem:[%s7067_s9] sm:$0xff]  ;;  %s5063_s9 = smov [#allocation7]  }
 0x4aa   :  { %v4026_v4 = vmax.f32 %v4025_v39, %v3693_v3  ;;  %v4052_v41 = vmax.f32 %v4051_v59, %v3695_v24  ;;  %v3694_v10 = vmax.f32 %v2868_v6, 0.0  ;;  %v3696_v14 = vmax.f32 %v3061_v5, 0.0  ;;  %v2871_v57 = vpop.f32.mrf.mxu0  ;;  %v3064_v61 = vpop.f32.mrf.mxu1  ;;  %s4569_s20 = sshll.u32 %s5063_s9, 4  ;;  %s4570_s20 = int_to_ptr.vmem [resolvable:$true] %s4569_s20 }
 0x4ab   :  { %v3701_v2 = vmax.f32 %v2870_v29, 0.0  ;;  %v3703_v35 = vmax.f32 %v3063_v46, 0.0  ;;  %v2872_v33 = vadd.f32 %v2871_v57, %v6474_v15  ;;  %v3065_v19 = vadd.f32 %v3064_v61, %v6476_v32  ;;  %s5026_s21 = scalar_lea.vmem %s4570_s20, 256  ;;  %p5031_p11 = scmp.lt.s32.totalorder %s4570_s20, %s4570_s20 }
 0x4ac   :  { %v4039_v58 = vmax.f32 %v4038_v42, %v3694_v10  ;;  %v4065_v60 = vmax.f32 %v4064_v43, %v3696_v14  ;;  %v6666_v62 = vrot.slane %v4985_v56, %v2019_v25  ;;  %v3101_v26 = vpop.f32.mrf.mxu0  ;;  %v6669_v1 = vpop.f32.mrf.mxu1  ;;  %v4777_v15 = vcombine.low %v6558_v36, %v6558_v36  ;;  %p5027_p10 = scmp.ne.s32.totalorder %s4570_s20, %s5026_s21  ;;  %p5032_p12 = scmp.lt.s32.totalorder %s5026_s21, %s5026_s21 }
 0x4ad   :  { %v4027_v12 = vmax.f32 %v4026_v4, %v3701_v2  ;;  %v4053_v53 = vmax.f32 %v4052_v41, %v3703_v35  ;;  %v3702_v50 = vmax.f32 %v2872_v33, 0.0  ;;  %v3704_v44 = vmax.f32 %v3065_v19, 0.0 }
 0x4ae   :  { %v6673_v32 = vrot.slane %v4985_v56, %v2023_v31  ;;  %v3103_v30 = vpop.f32.mrf.mxu0  ;;  %v2031_v28 = vsub.s32 7, %v7159_v17  ;;  %v6676_v21 = vpop.f32.mrf.mxu1  ;;  %v6682_v16 = vrot.slane %v4205_v8, %v6529_v54  ;;  %v3102_v27 = vadd.f32 %v3101_v26, %v6666_v62  ;;  %p5033_p13 = por %p5032_p12, %p5031_p11 }
 0x4af   :  { %v4028_v37 = vrot.slane %v4027_v12, 4  ;;  %v4054_v25 = vrot.slane %v4053_v53, 4  ;;  %v4040_v18 = vmax.f32 %v4039_v58, %v3702_v50  ;;  %v4066_v9 = vmax.f32 %v4065_v60, %v3704_v44 }
 0x4b0   :  { %v6685_v22 = vrot.slane %v4985_v56, %v2027_v11  ;;  %v3105_v31 = vpop.f32.mrf.mxu0  ;;  %v6687_v13 = vpop.f32.mrf.mxu1  ;;  %v6690_v34 = vrot.slane %v4777_v15, %v6529_v54  ;;  %v3104_v39 = vadd.f32 %v3103_v30, %v6673_v32  ;;  %v6693_v59 = vrot.slane %v4985_v56, %v2031_v28  ;;  %p5034_p0 = pnand %p5033_p13, %p5027_p10 }
 0x4b1   :  { %v4029_v17 = vmax.f32 %v4027_v12, %v4028_v37  ;;  %v4055_v20 = vmax.f32 %v4053_v53, %v4054_v25  ;;  %v4041_v49 = vrot.slane %v4040_v18, 4  ;;  %v4067_v40 = vrot.slane %v4066_v9, 4 }
 0x4b2   :  { %v3106_v0 = vadd.f32 %v3105_v31, %v6666_v62  ;;  %v3107_v36 = vpop.f32.mrf.mxu0  ;;  %v6696_v8 = vpop.f32.mrf.mxu1  ;;  %v4445_v6 = vunpack.c.l.b16 %v6682_v16  ;;  %v3457_v5 = vmax.f32 %v3102_v27, 0.0  ;;  %v3458_v10 = vmax.f32 %v3104_v39, 0.0 }
 0x4b3   :  { %v4030_v47 = vrot.slane %v4029_v17, 2  ;;  %v4056_v45 = vrot.slane %v4055_v20, 2  ;;  %v4042_v3 = vmax.f32 %v4040_v18, %v4041_v49  ;;  %v4068_v24 = vmax.f32 %v4066_v9, %v4067_v40 }
 0x4b4   :  { %v3465_v52 = vmax.f32 %v3106_v0, 0.0  ;;  %v3108_v55 = vadd.f32 %v3107_v36, %v6673_v32  ;;  %v3111_v42 = vpop.f32.mrf.mxu0  ;;  %v6700_v43 = vpop.f32.mrf.mxu1  ;;  %v4779_v56 = vcombine.low %v6603_v7, %v6603_v7  ;;  %v4446_v44 = vunpack.c.h.b16 %v6682_v16 }
 0x4b5   :  { %v4031_v29 = vmax.f32 %v4029_v17, %v4030_v47  ;;  %v4057_v46 = vmax.f32 %v4055_v20, %v4056_v45  ;;  %v4043_v4 = vrot.slane %v4042_v3, 2  ;;  %v4069_v41 = vrot.slane %v4068_v24, 2 }
 0x4b6   :  { %v3761_v14 = vmax.f32 %v3457_v5, %v3465_v52  ;;  %v3466_v57 = vmax.f32 %v3108_v55, 0.0  ;;  %v3112_v61 = vadd.f32 %v3111_v42, %v6666_v62  ;;  %v3113_v2 = vpop.f32.mrf.mxu0  ;;  %v6703_v35 = vpop.f32.mrf.mxu1  ;;  %v6715_v15 = vrot.slane %v4239_v51, %v6529_v54 }
 0x4b7   :  { %v4032_v33 = vrot.slane %v4031_v29, 1  ;;  %v4058_v19 = vrot.slane %v4057_v46, 1  ;;  %v4044_v58 = vmax.f32 %v4042_v3, %v4043_v4  ;;  %v4070_v60 = vmax.f32 %v4068_v24, %v4069_v41 }
 0x4b8   :  { %v3774_v26 = vmax.f32 %v3458_v10, %v3466_v57  ;;  %v3473_v11 = vmax.f32 %v3112_v61, 0.0  ;;  %v3114_v12 = vadd.f32 %v3113_v2, %v6673_v32  ;;  %v3115_v53 = vpop.f32.mrf.mxu0  ;;  %v6708_v50 = vpop.f32.mrf.mxu1  ;;  %v4447_v37 = vunpack.c.l.b16 %v6690_v34 }
 0x4b9   :  { %v4045_v30 = vrot.slane %v4044_v58, 1  ;;  %v4071_v28 = vrot.slane %v4070_v60, 1  ;;  %v4033_v25 = vmax.f32 %v4031_v29, %v4032_v33  ;;  %v4059_v17 = vmax.f32 %v4057_v46, %v4058_v19 }
 0x4ba   :  { %v3762_v18 = vmax.f32 %v3761_v14, %v3473_v11  ;;  %v3474_v9 = vmax.f32 %v3114_v12, 0.0  ;;  %v3117_v27 = vpop.f32.mrf.mxu0  ;;  %v6718_v31 = vpop.f32.mrf.mxu1  ;;  %v3116_v40 = vadd.f32 %v3115_v53, %v6666_v62  ;;  %v4448_v39 = vunpack.c.h.b16 %v6690_v34 }
 0x4bb   :  { %v4046_v20 = vmax.f32 %v4044_v58, %v4045_v30  ;;  %v4072_v49 = vmax.f32 %v4070_v60, %v4071_v28  ;;  %v6723_v48 = vrot.slane %v4779_v56, %v6529_v54  ;;  %v3118_v51 = vadd.f32 %v3117_v27, %v6673_v32 }
 0x4bc   :  { %v3775_v7 = vmax.f32 %v3774_v26, %v3474_v9  ;;  %v3121_v0 = vpop.f32.mrf.mxu0  ;;  %v6726_v36 = vpop.f32.mrf.mxu1  ;;  %v4453_v47 = vunpack.c.l.b16 %v6715_v15  ;;  %v3481_v24 = vmax.f32 %v3116_v40, 0.0  ;;  %v4454_v5 = vunpack.c.h.b16 %v6715_v15 }
 0x4bd   :  { %v4773_v45 = vpack.c.bf16 %v4046_v20, %v4033_v25  ;;  %v4774_v3 = vpack.c.bf16 %v4072_v49, %v4059_v17  ;;  %v4781_v52 = vcombine.low %v6643_v63, %v6643_v63  ;;  %v3482_v55 = vmax.f32 %v3118_v51, 0.0 }
 0x4be   :  { %v3122_v42 = vadd.f32 %v3121_v0, %v6666_v62  ;;  %v3123_v29 = vpop.f32.mrf.mxu0  ;;  %v6733_v46 = vpop.f32.mrf.mxu1  ;;  %v3763_v10 = vmax.f32 %v3762_v18, %v3481_v24  ;;  %v4455_v57 = vunpack.c.l.b16 %v6723_v48  ;;  %v4392_v61 = vrot.slane %v4273_v38, %v6529_v54 }
 0x4bf   :  { %v4299_v4 = vrot.slane %v4773_v45, %v6529_v54  ;;  %v4306_v41 = vrot.slane %v4774_v3, %v6529_v54  ;;  %v3124_v14 = vadd.f32 %v3123_v29, %v6673_v32  ;;  %v3776_v2 = vmax.f32 %v3775_v7, %v3482_v55 }
 0x4c0   :  { %v3489_v33 = vmax.f32 %v3122_v42, 0.0  ;;  %v3125_v19 = vpop.f32.mrf.mxu0  ;;  %v6743_v58 = vpop.f32.mrf.mxu1  ;;  %v4456_v12 = vunpack.c.h.b16 %v6723_v48  ;;  %v6748_v53 = vrot.slane %v4781_v52, %v6529_v54  ;;  %v4477_v23 = vrot.slane %v4453_v47, 7 }
 0x4c1   :  { %v4307_v60 = vcombine.low %v4299_v4, %v4306_v41  ;;  %v4783_v56 = vcombine.low %v4306_v41, %v4306_v41  ;;  %v3490_v26 = vmax.f32 %v3124_v14, 0.0  ;;  %v3126_v11 = vadd.f32 %v3125_v19, %v6666_v62 }
 0x4c2   :  { %v3764_v30 = vmax.f32 %v3763_v10, %v3489_v33  ;;  %v3127_v28 = vpop.f32.mrf.mxu0  ;;  %v6750_v25 = vpop.f32.mrf.mxu1  ;;  %v4461_v49 = vunpack.c.l.b16 %v4392_v61  ;;  %v4462_v40 = vunpack.c.h.b16 %v4392_v61  ;;  %v4478_v7 = vsel %vm1439_vm1, %v4477_v23, %v4445_v6 }
 0x4c3   :  { %v4422_v63 = vrot.slane %v4307_v60, %v6529_v54  ;;  %v6754_v38 = vrot.slane %v4783_v56, %v6529_v54  ;;  %v3777_v18 = vmax.f32 %v3776_v2, %v3490_v26  ;;  %v3497_v9 = vmax.f32 %v3126_v11, 0.0 }
 0x4c4   :  { %v3128_v27 = vadd.f32 %v3127_v28, %v6673_v32  ;;  %v3131_v17 = vpop.f32.mrf.mxu0  ;;  %v3334_v20 = vpop.f32.mrf.mxu1  ;;  %v4463_v55 = vunpack.c.l.b16 %v6748_v53  ;;  %v4464_v42 = vunpack.c.h.b16 %v6748_v53  ;;  %v4479_v19 = vrot.slane %v4461_v49, 6 }
 0x4c5   :  { %v3765_v51 = vmax.f32 %v3764_v30, %v3497_v9  ;;  %v3132_v0 = vadd.f32 %v3131_v17, %v6666_v62  ;;  %v3335_v47 = vadd.f32 %v3334_v20, %v6685_v22  ;;  %v4469_v45 = vunpack.c.l.b16 %v4422_v63 }
 0x4c6   :  { %v3498_v3 = vmax.f32 %v3128_v27, 0.0  ;;  %v3133_v24 = vpop.f32.mrf.mxu0  ;;  %v3336_v52 = vpop.f32.mrf.mxu1  ;;  %v4470_v29 = vunpack.c.h.b16 %v4422_v63  ;;  %v4471_v6 = vunpack.c.l.b16 %v6754_v38  ;;  %v4480_v9 = vsel %vm1441_vm2, %v4479_v19, %v4478_v7 }
 0x4c7   :  { %v3505_v4 = vmax.f32 %v3132_v0, 0.0  ;;  %v3134_v41 = vadd.f32 %v3133_v24, %v6673_v32  ;;  %v3337_v10 = vadd.f32 %v3336_v52, %v6693_v59  ;;  %v3523_v61 = vmax.f32 %v3335_v47, 0.0 }
 0x4c8   :  { %v3778_v14 = vmax.f32 %v3777_v18, %v3498_v3  ;;  %v3135_v2 = vpop.f32.mrf.mxu0  ;;  %v3338_v33 = vpop.f32.mrf.mxu1  ;;  %v4481_v60 = vrot.slane %v4469_v45, 5  ;;  %v4483_v27 = vrot.slane %v4454_v5, 7  ;;  %v4485_v18 = vrot.slane %v4462_v40, 6 }
 0x4c9   :  { %v3766_v56 = vmax.f32 %v3765_v51, %v3505_v4  ;;  %v3506_v26 = vmax.f32 %v3134_v41, 0.0  ;;  %v3524_v11 = vmax.f32 %v3337_v10, 0.0  ;;  %v3136_v30 = vadd.f32 %v3135_v2, %v6666_v62 }
 0x4ca   :  { %v3339_v28 = vadd.f32 %v3338_v33, %v6685_v22  ;;  %v3137_v23 = vpop.f32.mrf.mxu0  ;;  %v3340_v63 = vpop.f32.mrf.mxu1  ;;  %v6775_v3 = vsel %vm1443_vm3, %v4481_v60, %v4480_v9  ;;  %v4484_v7 = vsel %vm1439_vm1, %v4483_v27, %v4446_v44  ;;  %v4487_v24 = vrot.slane %v4470_v29, 5 }
 0x4cb   :  { %v3779_v17 = vmax.f32 %v3778_v14, %v3506_v26  ;;  %v3513_v20 = vmax.f32 %v3136_v30, 0.0  ;;  %v3138_v49 = vadd.f32 %v3137_v23, %v6673_v32  ;;  %v3341_v51 = vadd.f32 %v3340_v63, %v6693_v59 }
 0x4cc   :  { %v3531_v0 = vmax.f32 %v3339_v28, 0.0  ;;  %v3141_v47 = vpop.f32.mrf.mxu0  ;;  %v3344_v45 = vpop.f32.mrf.mxu1  ;;  %v4486_v2 = vsel %vm1441_vm2, %v4485_v18, %v4484_v7  ;;  %v4489_v33 = vrot.slane %v4455_v57, 7 }
 0x4cd   :  { %v3767_v15 = vmax.f32 %v3766_v56, %v3513_v20  ;;  %v3514_v5 = vmax.f32 %v3138_v49, 0.0  ;;  %v3532_v40 = vmax.f32 %v3341_v51, 0.0  ;;  %v3142_v52 = vadd.f32 %v3141_v47, %v6666_v62 }
 0x4ce   :  { %v3891_v4 = vmax.f32 %v3523_v61, %v3531_v0  ;;  %v3345_v41 = vadd.f32 %v3344_v45, %v6685_v22  ;;  %v3143_v10 = vpop.f32.mrf.mxu0  ;;  %v3346_v14 = vpop.f32.mrf.mxu1  ;;  %v6788_v28 = vsel %vm1443_vm3, %v4487_v24, %v4486_v2  ;;  %v4490_v49 = vsel %vm1439_vm1, %v4489_v33, %v4447_v37 }
 0x4cf   :  { %v3768_v19 = vrot.slane %v3767_v15, 4  ;;  %v3780_v16 = vmax.f32 %v3779_v17, %v3514_v5  ;;  %v3904_v60 = vmax.f32 %v3524_v11, %v3532_v40  ;;  %v3521_v44 = vmax.f32 %v3142_v52, 0.0 }
 0x4d0   :  { %v3539_v29 = vmax.f32 %v3345_v41, 0.0  ;;  %v3144_v56 = vadd.f32 %v3143_v10, %v6673_v32  ;;  %v3347_v26 = vadd.f32 %v3346_v14, %v6693_v59  ;;  %v3145_v30 = vpop.f32.mrf.mxu0  ;;  %v3348_v61 = vpop.f32.mrf.mxu1  ;;  %v4491_v52 = vrot.slane %v4463_v55, 6 }
 0x4d1   :  { %v3769_v23 = vmax.f32 %v3767_v15, %v3768_v19  ;;  %v3781_v63 = vrot.slane %v3780_v16, 4  ;;  %v3146_v9 = vadd.f32 %v3145_v30, %v6666_v62  ;;  %v3349_v57 = vadd.f32 %v3348_v61, %v6685_v22 }
 0x4d2   :  { %v3892_v27 = vmax.f32 %v3891_v4, %v3539_v29  ;;  %v3522_v18 = vmax.f32 %v3144_v56, 0.0  ;;  %v3540_v11 = vmax.f32 %v3347_v26, 0.0  ;;  %v3147_v17 = vpop.f32.mrf.mxu0  ;;  %v3350_v20 = vpop.f32.mrf.mxu1 }
 0x4d3   :  { %v3770_v51 = vrot.slane %v3769_v23, 2  ;;  %v3782_v0 = vmax.f32 %v3780_v16, %v3781_v63  ;;  %v3529_v47 = vmax.f32 %v3146_v9, 0.0  ;;  %v3547_v45 = vmax.f32 %v3349_v57, 0.0 }
 0x4d4   :  { %v3905_v7 = vmax.f32 %v3904_v60, %v3540_v11  ;;  %v3148_v24 = vadd.f32 %v3147_v17, %v6673_v32  ;;  %v3351_v15 = vadd.f32 %v3350_v20, %v6693_v59  ;;  %v3151_v5 = vpop.f32.mrf.mxu0  ;;  %v3354_v40 = vpop.f32.mrf.mxu1 }
 0x4d5   :  { %v3771_v4 = vmax.f32 %v3769_v23, %v3770_v51  ;;  %v3783_v41 = vrot.slane %v3782_v0, 2  ;;  %v3865_v10 = vmax.f32 %v3521_v44, %v3529_v47  ;;  %v3893_v14 = vmax.f32 %v3892_v27, %v3547_v45 }
 0x4d6   :  { %v3530_v2 = vmax.f32 %v3148_v24, 0.0  ;;  %v3548_v37 = vmax.f32 %v3351_v15, 0.0  ;;  %v3152_v33 = vadd.f32 %v3151_v5, %v6666_v62  ;;  %v3355_v19 = vadd.f32 %v3354_v40, %v6685_v22  ;;  %v3153_v16 = vpop.f32.mrf.mxu0  ;;  %v3356_v60 = vpop.f32.mrf.mxu1 }
 0x4d7   :  { %v3772_v29 = vrot.slane %v3771_v4, 1  ;;  %v3784_v56 = vmax.f32 %v3782_v0, %v3783_v41  ;;  %v3154_v26 = vadd.f32 %v3153_v16, %v6673_v32  ;;  %v3357_v30 = vadd.f32 %v3356_v60, %v6693_v59 }
 0x4d8   :  { %v3878_v61 = vmax.f32 %v3522_v18, %v3530_v2  ;;  %v3906_v55 = vmax.f32 %v3905_v7, %v3548_v37  ;;  %v3537_v23 = vmax.f32 %v3152_v33, 0.0  ;;  %v3555_v63 = vmax.f32 %v3355_v19, 0.0  ;;  %v3155_v44 = vpop.f32.mrf.mxu0  ;;  %v3358_v9 = vpop.f32.mrf.mxu1 }
 0x4d9   :  { %v6803_v57 = vmax.f32 %v3771_v4, %v3772_v29  ;;  %v3785_v27 = vrot.slane %v3784_v56, 1  ;;  %v3538_v11 = vmax.f32 %v3154_v26, 0.0  ;;  %v3556_v17 = vmax.f32 %v3357_v30, 0.0 }
 0x4da   :  { %v3866_v20 = vmax.f32 %v3865_v10, %v3537_v23  ;;  %v3894_v51 = vmax.f32 %v3893_v14, %v3555_v63  ;;  %v3156_v47 = vadd.f32 %v3155_v44, %v6666_v62  ;;  %v3359_v0 = vadd.f32 %v3358_v9, %v6685_v22  ;;  %v3157_v45 = vpop.f32.mrf.mxu0  ;;  %v3360_v24 = vpop.f32.mrf.mxu1 }
 0x4db   :  { %7161 = vst [vmem:[#allocation15_spill] sm:$0xff] %v6803_v57  ;;  %v6807_v15 = vmax.f32 %v3784_v56, %v3785_v27  ;;  %v3879_v18 = vmax.f32 %v3878_v61, %v3538_v11  ;;  %v3907_v7 = vmax.f32 %v3906_v55, %v3556_v17  ;;  %v3158_v5 = vadd.f32 %v3157_v45, %v6673_v32 }
 0x4dc   :  { %v3545_v40 = vmax.f32 %v3156_v47, 0.0  ;;  %v3563_v4 = vmax.f32 %v3359_v0, 0.0  ;;  %v3361_v41 = vadd.f32 %v3360_v24, %v6693_v59  ;;  %v3161_v2 = vpop.f32.mrf.mxu0  ;;  %v3364_v37 = vpop.f32.mrf.mxu1  ;;  %v4492_v10 = vsel %vm1441_vm2, %v4491_v52, %v4490_v49 }
 0x4dd   :  { %7162 = vst [vmem:[#allocation12_spill] sm:$0xff] %v6807_v15  ;;  %v3546_v33 = vmax.f32 %v3158_v5, 0.0  ;;  %v3162_v19 = vadd.f32 %v3161_v2, %v6666_v62  ;;  %v3365_v16 = vadd.f32 %v3364_v37, %v6685_v22  ;;  %v4493_v61 = vrot.slane %v4471_v6, 5 }
 0x4de   :  { %v3867_v60 = vmax.f32 %v3866_v20, %v3545_v40  ;;  %v3895_v29 = vmax.f32 %v3894_v51, %v3563_v4  ;;  %v3564_v56 = vmax.f32 %v3361_v41, 0.0  ;;  %v3163_v26 = vpop.f32.mrf.mxu0  ;;  %v3366_v30 = vpop.f32.mrf.mxu1  ;;  %v4472_v49 = vunpack.c.h.b16 %v6754_v38 }
 0x4df   :  { %v3880_v55 = vmax.f32 %v3879_v18, %v3546_v33  ;;  %v3553_v23 = vmax.f32 %v3162_v19, 0.0  ;;  %v3571_v63 = vmax.f32 %v3365_v16, 0.0  ;;  %v3164_v44 = vadd.f32 %v3163_v26, %v6673_v32 }
 0x4e0   :  { %v3908_v52 = vmax.f32 %v3907_v7, %v3564_v56  ;;  %v3367_v9 = vadd.f32 %v3366_v30, %v6693_v59  ;;  %v3165_v27 = vpop.f32.mrf.mxu0  ;;  %v3368_v11 = vpop.f32.mrf.mxu1  ;;  %v6822_v17 = vsel %vm1443_vm3, %v4493_v61, %v4492_v10  ;;  %v4495_v18 = vrot.slane %v4456_v12, 7 }
 0x4e1   :  { %v3868_v20 = vmax.f32 %v3867_v60, %v3553_v23  ;;  %v3896_v51 = vmax.f32 %v3895_v29, %v3571_v63  ;;  %v3166_v47 = vadd.f32 %v3165_v27, %v6666_v62  ;;  %v3369_v6 = vadd.f32 %v3368_v11, %v6685_v22 }
 0x4e2   :  { %v3554_v0 = vmax.f32 %v3164_v44, 0.0  ;;  %v3572_v45 = vmax.f32 %v3367_v9, 0.0  ;;  %v3167_v24 = vpop.f32.mrf.mxu0  ;;  %v3370_v38 = vpop.f32.mrf.mxu1  ;;  %v4497_v7 = vrot.slane %v4464_v42, 6  ;;  %v4496_v19 = vsel %vm1439_vm1, %v4495_v18, %v4448_v39 }
 0x4e3   :  { %v3561_v5 = vmax.f32 %v3166_v47, 0.0  ;;  %v3579_v40 = vmax.f32 %v3369_v6, 0.0  ;;  %v3168_v4 = vadd.f32 %v3167_v24, %v6673_v32  ;;  %v3371_v41 = vadd.f32 %v3370_v38, %v6693_v59 }
 0x4e4   :  { %v3881_v2 = vmax.f32 %v3880_v55, %v3554_v0  ;;  %v3909_v37 = vmax.f32 %v3908_v52, %v3572_v45  ;;  %v3171_v10 = vpop.f32.mrf.mxu0  ;;  %v6832_v33 = vpop.f32.mrf.mxu1  ;;  %v4499_v48 = vrot.slane %v4472_v49, 5  ;;  %v4498_v26 = vsel %vm1441_vm2, %v4497_v7, %v4496_v19 }
 0x4e5   :  { %v3869_v12 = vmax.f32 %v3868_v20, %v3561_v5  ;;  %v3897_v16 = vmax.f32 %v3896_v51, %v3579_v40  ;;  %v3562_v53 = vmax.f32 %v3168_v4, 0.0  ;;  %v3580_v42 = vmax.f32 %v3371_v41, 0.0 }
 0x4e6   :  { %v3172_v60 = vadd.f32 %v3171_v10, %v6666_v62  ;;  %v3173_v29 = vpop.f32.mrf.mxu0  ;;  %v6838_v56 = vpop.f32.mrf.mxu1  ;;  %v6845_v52 = vsel %vm1443_vm3, %v4499_v48, %v4498_v26 }
 0x4e7   :  { %v3898_v61 = vrot.slane %v3897_v16, 4  ;;  %v3882_v55 = vmax.f32 %v3881_v2, %v3562_v53  ;;  %v3910_v34 = vmax.f32 %v3909_v37, %v3580_v42  ;;  %v3174_v39 = vadd.f32 %v3173_v29, %v6673_v32 }
 0x4e8   :  { %v3569_v23 = vmax.f32 %v3172_v60, 0.0  ;;  %v3175_v63 = vpop.f32.mrf.mxu0  ;;  %v3378_v49 = vpop.f32.mrf.mxu1 }
 0x4e9   :  { %v3899_v44 = vmax.f32 %v3897_v16, %v3898_v61  ;;  %v3911_v9 = vrot.slane %v3910_v34, 4  ;;  %v3570_v27 = vmax.f32 %v3174_v39, 0.0  ;;  %v3176_v11 = vadd.f32 %v3175_v63, %v6666_v62 }
 0x4ea   :  { %v3870_v20 = vmax.f32 %v3869_v12, %v3569_v23  ;;  %v3177_v51 = vpop.f32.mrf.mxu0  ;;  %v3380_v47 = vpop.f32.mrf.mxu1 }
 0x4eb   :  { %v3900_v0 = vrot.slane %v3899_v44, 2  ;;  %v3912_v45 = vmax.f32 %v3910_v34, %v3911_v9  ;;  %v3883_v24 = vmax.f32 %v3882_v55, %v3570_v27  ;;  %v3577_v38 = vmax.f32 %v3176_v11, 0.0 }
 0x4ec   :  { %v3178_v18 = vadd.f32 %v3177_v51, %v6673_v32  ;;  %v3181_v7 = vpop.f32.mrf.mxu0  ;;  %v3384_v5 = vpop.f32.mrf.mxu1 }
 0x4ed   :  { %v3901_v40 = vmax.f32 %v3899_v44, %v3900_v0  ;;  %v3913_v4 = vrot.slane %v3912_v45, 2  ;;  %v3871_v41 = vmax.f32 %v3870_v20, %v3577_v38  ;;  %v3182_v53 = vadd.f32 %v3181_v7, %v6666_v62 }
 0x4ee   :  { %v3578_v2 = vmax.f32 %v3178_v18, 0.0  ;;  %v3183_v37 = vpop.f32.mrf.mxu0  ;;  %v3386_v10 = vpop.f32.mrf.mxu1 }
 0x4ef   :  { %v3902_v19 = vrot.slane %v3901_v40, 1  ;;  %v3914_v48 = vmax.f32 %v3912_v45, %v3913_v4  ;;  %v3872_v12 = vrot.slane %v3871_v41, 4  ;;  %v3585_v27 = vmax.f32 %v3182_v53, 0.0 }
 0x4f0   :  { %v3884_v16 = vmax.f32 %v3883_v24, %v3578_v2  ;;  %v3185_v42 = vpop.f32.mrf.mxu0  ;;  %v6852_v60 = vpop.f32.mrf.mxu1 }
 0x4f1   :  { %v3915_v29 = vrot.slane %v3914_v48, 1  ;;  %v3873_v26 = vmax.f32 %v3871_v41, %v3872_v12  ;;  %v3186_v55 = vadd.f32 %v3185_v42, %v6666_v62  ;;  %v3903_v23 = vmax.f32 %v3901_v40, %v3902_v19 }
 0x4f2   :  { %v3885_v61 = vrot.slane %v3884_v16, 4  ;;  %v3187_v34 = vpop.f32.mrf.mxu0  ;;  %v6855_v39 = vpop.f32.mrf.mxu1  ;;  %v3375_v40 = vadd.f32 %v6832_v33, %v6685_v22  ;;  %v3379_v19 = vadd.f32 %v3378_v49, %v6685_v22 }
 0x4f3   :  { %v3916_v63 = vmax.f32 %v3914_v48, %v3915_v29  ;;  %v3874_v44 = vrot.slane %v3873_v26, 2  ;;  %v3593_v11 = vmax.f32 %v3186_v55, 0.0  ;;  %v3377_v48 = vadd.f32 %v6838_v56, %v6693_v59 }
 0x4f4   :  { %v3886_v9 = vmax.f32 %v3884_v16, %v3885_v61  ;;  %v3191_v20 = vpop.f32.mrf.mxu0  ;;  %v6857_v51 = vpop.f32.mrf.mxu1  ;;  %v3381_v29 = vadd.f32 %v3380_v47, %v6693_v59  ;;  %v3587_v33 = vmax.f32 %v3375_v40, 0.0  ;;  %v3595_v49 = vmax.f32 %v3379_v19, 0.0 }
 0x4f5   :  { %v4768_v0 = vpack.c.bf16 %v3916_v63, %v3903_v23  ;;  %v3875_v45 = vmax.f32 %v3873_v26, %v3874_v44  ;;  %v3969_v38 = vmax.f32 %v3585_v27, %v3593_v11  ;;  %v3188_v26 = vadd.f32 %v3187_v34, %v6673_v32 }
 0x4f6   :  { %v3887_v24 = vrot.slane %v3886_v9, 2  ;;  %v3193_v18 = vpop.f32.mrf.mxu0  ;;  %v6859_v7 = vpop.f32.mrf.mxu1  ;;  %v3192_v23 = vadd.f32 %v3191_v20, %v6666_v62  ;;  %v3588_v27 = vmax.f32 %v3377_v48, 0.0  ;;  %v3387_v20 = vadd.f32 %v3386_v10, %v6693_v59 }
 0x4f7   :  { %v3876_v4 = vrot.slane %v3875_v45, 1  ;;  %v3194_v56 = vadd.f32 %v3193_v18, %v6673_v32  ;;  %v6884_v19 = vrot.slane %v4768_v0, %v6529_v54 }
 0x4f8   :  { %v3888_v41 = vmax.f32 %v3886_v9, %v3887_v24  ;;  %v3195_v2 = vpop.f32.mrf.mxu0  ;;  %v6861_v12 = vpop.f32.mrf.mxu1  ;;  %v3184_v9 = vadd.f32 %v3183_v37, %v6673_v32  ;;  %v3385_v24 = vadd.f32 %v3384_v5, %v6685_v22  ;;  %v3601_v18 = vmax.f32 %v3192_v23, 0.0 }
 0x4f9   :  { %v3877_v61 = vmax.f32 %v3875_v45, %v3876_v4  ;;  %v3196_v47 = vadd.f32 %v3195_v2, %v6666_v62  ;;  %v3596_v4 = vmax.f32 %v3381_v29, 0.0  ;;  %v3602_v29 = vmax.f32 %v3194_v56, 0.0 }
 0x4fa   :  { %v3889_v16 = vrot.slane %v3888_v41, 1  ;;  %v3197_v53 = vpop.f32.mrf.mxu0  ;;  %v6868_v42 = vpop.f32.mrf.mxu1 }
 0x4fb   :  { %v3198_v40 = vadd.f32 %v3197_v53, %v6673_v32  ;;  %v3609_v0 = vmax.f32 %v3196_v47, 0.0  ;;  %v4008_v23 = vmax.f32 %v3588_v27, %v3596_v4  ;;  %v3395_v4 = vadd.f32 %v6857_v51, %v6685_v22 }
 0x4fc   :  { %v3890_v55 = vmax.f32 %v3888_v41, %v3889_v16  ;;  %v3201_v63 = vpop.f32.mrf.mxu0  ;;  %v6873_v44 = vpop.f32.mrf.mxu1  ;;  %v3594_v41 = vmax.f32 %v3188_v26, 0.0  ;;  %v3995_v16 = vmax.f32 %v3587_v33, %v3595_v49  ;;  %v3603_v26 = vmax.f32 %v3385_v24, 0.0 }
 0x4fd   :  { %v3202_v5 = vadd.f32 %v3201_v63, %v6666_v62  ;;  %v3604_v63 = vmax.f32 %v3387_v20, 0.0  ;;  %v3610_v30 = vmax.f32 %v3198_v40, 0.0  ;;  %v3389_v33 = vadd.f32 %v6852_v60, %v6685_v22 }
 0x4fe   :  { %v4767_v11 = vpack.c.bf16 %v3890_v55, %v3877_v61  ;;  %v3203_v34 = vpop.f32.mrf.mxu0  ;;  %v6879_v45 = vpop.f32.mrf.mxu1  ;;  %v3586_v61 = vmax.f32 %v3184_v9, 0.0  ;;  %v3970_v49 = vmax.f32 %v3969_v38, %v3601_v18  ;;  %v3391_v24 = vadd.f32 %v6855_v39, %v6693_v59 }
 0x4ff   :  { %v3204_v10 = vadd.f32 %v3203_v34, %v6673_v32  ;;  %v3617_v9 = vmax.f32 %v3202_v5, 0.0  ;;  %v3996_v27 = vmax.f32 %v3995_v16, %v3603_v26  ;;  %v3397_v40 = vadd.f32 %v6859_v7, %v6693_v59 }
 0x500   :  { %v6887_v37 = vrot.slane %v4767_v11, %v6529_v54  ;;  %v3205_v48 = vpop.f32.mrf.mxu0  ;;  %v6890_v2 = vpop.f32.mrf.mxu1  ;;  %v3982_v6 = vmax.f32 %v3586_v61, %v3594_v41  ;;  %v3971_v20 = vmax.f32 %v3970_v49, %v3609_v0  ;;  %v4009_v39 = vmax.f32 %v4008_v23, %v3604_v63 }
 0x501   :  { %v3206_v55 = vadd.f32 %v3205_v48, %v6666_v62  ;;  %v3618_v48 = vmax.f32 %v3204_v10, 0.0  ;;  %v3612_v26 = vmax.f32 %v3391_v24, 0.0  ;;  %v3399_v51 = vadd.f32 %v6861_v12, %v6685_v22 }
 0x502   :  { %v3207_v11 = vpop.f32.mrf.mxu0  ;;  %v6896_v14 = vpop.f32.mrf.mxu1  ;;  %v3983_v47 = vmax.f32 %v3982_v6, %v3602_v29  ;;  %v3611_v6 = vmax.f32 %v3389_v33, 0.0  ;;  %v3972_v29 = vmax.f32 %v3971_v20, %v3617_v9  ;;  %v3619_v49 = vmax.f32 %v3395_v4, 0.0 }
 0x503   :  { %v3208_v56 = vadd.f32 %v3207_v11, %v6673_v32  ;;  %v3625_v41 = vmax.f32 %v3206_v55, 0.0  ;;  %v3401_v7 = vadd.f32 %v6868_v42, %v6693_v59  ;;  %v3620_v63 = vmax.f32 %v3397_v40, 0.0 }
 0x504   :  { %v3211_v34 = vpop.f32.mrf.mxu0  ;;  %v3414_v53 = vpop.f32.mrf.mxu1  ;;  %v3984_v18 = vmax.f32 %v3983_v47, %v3610_v30  ;;  %v3997_v24 = vmax.f32 %v3996_v27, %v3611_v6  ;;  %v3407_v12 = vadd.f32 %v6879_v45, %v6693_v59  ;;  %v4010_v20 = vmax.f32 %v4009_v39, %v3612_v26 }
 0x505   :  { %v3212_v57 = vadd.f32 %v3211_v34, %v6666_v62  ;;  %v3626_v5 = vmax.f32 %v3208_v56, 0.0  ;;  %v3973_v30 = vmax.f32 %v3972_v29, %v3625_v41  ;;  %v3627_v41 = vmax.f32 %v3399_v51, 0.0 }
 0x506   :  { %v3213_v60 = vpop.f32.mrf.mxu0  ;;  %v3416_v38 = vpop.f32.mrf.mxu1  ;;  %v3985_v0 = vmax.f32 %v3984_v18, %v3618_v48  ;;  %v3628_v40 = vmax.f32 %v3401_v7, 0.0  ;;  %v6922_v45 = vadd.f32 %v6890_v2, %v6685_v22  ;;  %v7163_v2 = vpack.c.b16 %v6788_v28, %v6775_v3 }
 0x507   :  { %v3214_v61 = vadd.f32 %v3213_v60, %v6673_v32  ;;  %v3633_v10 = vmax.f32 %v3212_v57, 0.0  ;;  %v3405_v57 = vadd.f32 %v6873_v44, %v6685_v22  ;;  %v3417_v7 = vadd.f32 %v3416_v38, %v6693_v59 }
 0x508   :  { %v3215_v11 = vpop.f32.mrf.mxu0  ;;  %v3418_v16 = vpop.f32.mrf.mxu1  ;;  %v3986_v33 = vmax.f32 %v3985_v0, %v3626_v5  ;;  %v4011_v5 = vmax.f32 %v4010_v20, %v3620_v63 }
 0x509   :  { %v3634_v55 = vmax.f32 %v3214_v61, 0.0  ;;  %v3216_v56 = vadd.f32 %v3215_v11, %v6666_v62  ;;  %v3974_v47 = vmax.f32 %v3973_v30, %v3633_v10  ;;  %v3998_v61 = vmax.f32 %v3997_v24, %v3619_v49 }
 0x50a   :  { %v3217_v34 = vpop.f32.mrf.mxu0  ;;  %v3420_v23 = vpop.f32.mrf.mxu1  ;;  %v3635_v0 = vmax.f32 %v3405_v57, 0.0  ;;  %v3419_v27 = vadd.f32 %v3418_v16, %v6685_v22  ;;  %v3415_v49 = vadd.f32 %v3414_v53, %v6685_v22  ;;  %v3652_v3 = vmax.f32 %v3417_v7, 0.0 }
 0x50b   :  { %v3218_v9 = vadd.f32 %v3217_v34, %v6673_v32  ;;  %v3641_v48 = vmax.f32 %v3216_v56, 0.0  ;;  %v3987_v60 = vmax.f32 %v3986_v33, %v3634_v55  ;;  %v3636_v34 = vmax.f32 %v3407_v12, 0.0 }
 0x50c   :  { %v3221_v4 = vpop.f32.mrf.mxu0  ;;  %v3424_v42 = vpop.f32.mrf.mxu1  ;;  %v3421_v39 = vadd.f32 %v3420_v23, %v6693_v59  ;;  %v3999_v55 = vmax.f32 %v3998_v61, %v3627_v41  ;;  %v4012_v56 = vmax.f32 %v4011_v5, %v3628_v40  ;;  %v6931_v33 = vrot.slane %v7163_v2, %v6529_v54 }
 0x50d   :  { %v3642_v18 = vmax.f32 %v3218_v9, 0.0  ;;  %v3975_v29 = vmax.f32 %v3974_v47, %v3641_v48  ;;  %v6937_v23 = vadd.f32 %v6896_v14, %v6693_v59  ;;  %v3659_v53 = vmax.f32 %v3419_v27, 0.0 }
 0x50e   :  { %v3223_v11 = vpop.f32.mrf.mxu0  ;;  %v3426_v44 = vpop.f32.mrf.mxu1  ;;  %v6933_v9 = vmax.f32 %v3999_v55, %v3635_v0  ;;  %v6939_v38 = vmax.f32 %v4012_v56, %v3636_v34  ;;  %v3660_v48 = vmax.f32 %v3421_v39, 0.0  ;;  %v3425_v40 = vadd.f32 %v3424_v42, %v6685_v22 }
 0x50f   :  { %v3988_v6 = vmax.f32 %v3987_v60, %v3642_v18  ;;  %v3976_v10 = vrot.slane %v3975_v29, 4  ;;  %v3651_v60 = vmax.f32 %v3415_v49, 0.0  ;;  %v3222_v18 = vadd.f32 %v3221_v4, %v6666_v62 }
 0x510   :  { %v3225_v26 = vpop.f32.mrf.mxu0  ;;  %v3428_v51 = vpop.f32.mrf.mxu1  ;;  %v3427_v14 = vadd.f32 %v3426_v44, %v6693_v59  ;;  %v4112_v55 = vmax.f32 %v3652_v3, %v3660_v48  ;;  %v3224_v49 = vadd.f32 %v3223_v11, %v6673_v32 }
 0x511   :  { %v3989_v30 = vrot.slane %v3988_v6, 4  ;;  %v3977_v63 = vmax.f32 %v3975_v29, %v3976_v10  ;;  %v3226_v29 = vadd.f32 %v3225_v26, %v6666_v62  ;;  %v3429_v4 = vadd.f32 %v3428_v51, %v6685_v22 }
 0x512   :  { %v3227_v16 = vpop.f32.mrf.mxu0  ;;  %v3430_v57 = vpop.f32.mrf.mxu1  ;;  %v3649_v44 = vmax.f32 %v3222_v18, 0.0  ;;  %v3668_v2 = vmax.f32 %v3427_v14, 0.0  ;;  %v3650_v3 = vmax.f32 %v3224_v49, 0.0 }
 0x513   :  { %v3990_v24 = vmax.f32 %v3988_v6, %v3989_v30  ;;  %v3978_v47 = vrot.slane %v3977_v63, 2  ;;  %v4099_v6 = vmax.f32 %v3651_v60, %v3659_v53  ;;  %v3228_v10 = vadd.f32 %v3227_v16, %v6673_v32 }
 0x514   :  { %v3231_v20 = vpop.f32.mrf.mxu0  ;;  %v3434_v41 = vpop.f32.mrf.mxu1  ;;  %v3431_v26 = vadd.f32 %v3430_v57, %v6693_v59  ;;  %v3657_v53 = vmax.f32 %v3226_v29, 0.0 }
 0x515   :  { %v3991_v28 = vrot.slane %v3990_v24, 2  ;;  %v3979_v61 = vmax.f32 %v3977_v63, %v3978_v47  ;;  %v3232_v56 = vadd.f32 %v3231_v20, %v6666_v62  ;;  %v3667_v63 = vmax.f32 %v3425_v40, 0.0 }
 0x516   :  { %v3233_v5 = vpop.f32.mrf.mxu0  ;;  %v3436_v0 = vpop.f32.mrf.mxu1  ;;  %v3658_v51 = vmax.f32 %v3228_v10, 0.0  ;;  %v3435_v57 = vadd.f32 %v3434_v41, %v6685_v22  ;;  %v3676_v29 = vmax.f32 %v3431_v26, 0.0 }
 0x517   :  { %v3992_v34 = vmax.f32 %v3990_v24, %v3991_v28  ;;  %v3980_v39 = vrot.slane %v3979_v61, 1  ;;  %v3234_v24 = vadd.f32 %v3233_v5, %v6673_v32  ;;  %v3437_v60 = vadd.f32 %v3436_v0, %v6693_v59 }
 0x518   :  { %v3235_v7 = vpop.f32.mrf.mxu0  ;;  %v3438_v42 = vpop.f32.mrf.mxu1  ;;  %v3675_v28 = vmax.f32 %v3429_v4, 0.0  ;;  %v3665_v5 = vmax.f32 %v3232_v56, 0.0  ;;  %v4086_v4 = vmax.f32 %v3650_v3, %v3658_v51 }
 0x519   :  { %v3993_v30 = vrot.slane %v3992_v34, 1  ;;  %v6953_v48 = vmax.f32 %v3979_v61, %v3980_v39  ;;  %v3236_v20 = vadd.f32 %v3235_v7, %v6666_v62  ;;  %v3666_v61 = vmax.f32 %v3234_v24, 0.0 }
 0x51a   :  { %v3237_v16 = vpop.f32.mrf.mxu0  ;;  %v3440_v47 = vpop.f32.mrf.mxu1  ;;  %v4100_v39 = vmax.f32 %v4099_v6, %v3667_v63  ;;  %v3684_v12 = vmax.f32 %v3437_v60, 0.0  ;;  %v3439_v14 = vadd.f32 %v3438_v42, %v6685_v22  ;;  %v3683_v63 = vmax.f32 %v3435_v57, 0.0 }
 0x51b   :  { %v6955_v11 = vmax.f32 %v3992_v34, %v3993_v30  ;;  %v4113_v34 = vmax.f32 %v4112_v55, %v3668_v2  ;;  %v4073_v30 = vmax.f32 %v3649_v44, %v3657_v53  ;;  %v3238_v10 = vadd.f32 %v3237_v16, %v6673_v32 }
 0x51c   :  { %v3241_v18 = vpop.f32.mrf.mxu0  ;;  %v3444_v40 = vpop.f32.mrf.mxu1  ;;  %v3441_v41 = vadd.f32 %v3440_v47, %v6693_v59  ;;  %v4101_v27 = vmax.f32 %v4100_v39, %v3675_v28  ;;  %v3673_v15 = vmax.f32 %v3236_v20, 0.0  ;;  %v4087_v2 = vmax.f32 %v4086_v4, %v3666_v61 }
 0x51d   :  { %v3242_v7 = vadd.f32 %v3241_v18, %v6666_v62  ;;  %v4114_v55 = vmax.f32 %v4113_v34, %v3676_v29  ;;  %v4074_v44 = vmax.f32 %v4073_v30, %v3665_v5  ;;  %v3674_v53 = vmax.f32 %v3238_v10, 0.0 }
 0x51e   :  { %v3243_v0 = vpop.f32.mrf.mxu0  ;;  %v3446_v49 = vpop.f32.mrf.mxu1  ;;  %v3445_v24 = vadd.f32 %v3444_v40, %v6685_v22  ;;  %v3692_v28 = vmax.f32 %v3441_v41, 0.0  ;;  %v3691_v39 = vmax.f32 %v3439_v14, 0.0  ;;  %v4102_v10 = vmax.f32 %v4101_v27, %v3683_v63 }
 0x51f   :  { %v3244_v26 = vadd.f32 %v3243_v0, %v6673_v32  ;;  %v3447_v16 = vadd.f32 %v3446_v49, %v6693_v59  ;;  %v4115_v3 = vmax.f32 %v4114_v55, %v3684_v12  ;;  %v3681_v42 = vmax.f32 %v3242_v7, 0.0 }
 0x520   :  { %v3245_v56 = vpop.f32.mrf.mxu0  ;;  %v3448_v6 = vpop.f32.mrf.mxu1  ;;  %v4075_v18 = vmax.f32 %v4074_v44, %v3673_v15  ;;  %v4088_v0 = vmax.f32 %v4087_v2, %v3674_v53  ;;  %v3699_v49 = vmax.f32 %v3445_v24, 0.0  ;;  %v7164_v14 = vmax.f32 %v6937_v23, 0.0 }
 0x521   :  { %v3246_v47 = vadd.f32 %v3245_v56, %v6666_v62  ;;  %v3682_v29 = vmax.f32 %v3244_v26, 0.0  ;;  %v3449_v57 = vadd.f32 %v3448_v6, %v6685_v22  ;;  %v3700_v61 = vmax.f32 %v3447_v16, 0.0 }
 0x522   :  { %v3247_v51 = vpop.f32.mrf.mxu0  ;;  %v3450_v60 = vpop.f32.mrf.mxu1  ;;  %v4116_v41 = vmax.f32 %v4115_v3, %v3692_v28  ;;  %v4076_v7 = vmax.f32 %v4075_v18, %v3681_v42  ;;  %v4014_v26 = vmax.f32 %v6939_v38, %v7164_v14  ;;  %v4103_v6 = vmax.f32 %v4102_v10, %v3691_v39 }
 0x523   :  { %v3248_v20 = vadd.f32 %v3247_v51, %v6673_v32  ;;  %v3689_v34 = vmax.f32 %v3246_v47, 0.0  ;;  %v3451_v40 = vadd.f32 %v3450_v60, %v6693_v59  ;;  %v4089_v55 = vmax.f32 %v4088_v0, %v3682_v29 }
 0x524   :  { %v3251_v5 = vpop.f32.mrf.mxu0  ;;  %v4117_v47 = vmax.f32 %v4116_v41, %v3700_v61  ;;  %v3707_v27 = vmax.f32 %v3449_v57, 0.0  ;;  %v7165_v2 = vmax.f32 %v6922_v45, 0.0  ;;  %v4104_v24 = vmax.f32 %v4103_v6, %v3699_v49 }
 0x525   :  { %v3252_v30 = vadd.f32 %v3251_v5, %v6666_v62  ;;  %v3690_v12 = vmax.f32 %v3248_v20, 0.0  ;;  %v3708_v56 = vmax.f32 %v3451_v40, 0.0  ;;  %v4077_v51 = vmax.f32 %v4076_v7, %v3689_v34 }
 0x526   :  { %v3253_v4 = vpop.f32.mrf.mxu0  ;;  %v4001_v53 = vmax.f32 %v6933_v9, %v7165_v2  ;;  %v4015_v18 = vrot.slane %v4014_v26, 4  ;;  %v7166_v29 = vpack.c.b16 %v6845_v52, %v6822_v17  ;;  %v4105_v57 = vmax.f32 %v4104_v24, %v3707_v27 }
 0x527   :  { %v3697_v15 = vmax.f32 %v3252_v30, 0.0  ;;  %v3254_v44 = vadd.f32 %v3253_v4, %v6673_v32  ;;  %v4090_v60 = vmax.f32 %v4089_v55, %v3690_v12  ;;  %v4118_v28 = vmax.f32 %v4117_v47, %v3708_v56 }
 0x528   :  { %v3255_v16 = vpop.f32.mrf.mxu0  ;;  %v3305_v61 = vadd.f32 %v6669_v1, %v6685_v22  ;;  %v3307_v34 = vadd.f32 %v6676_v21, %v6693_v59  ;;  %v4002_v30 = vrot.slane %v4001_v53, 4  ;;  %v3309_v17 = vadd.f32 %v6687_v13, %v6685_v22 }
 0x529   :  { %v3256_v63 = vadd.f32 %v3255_v16, %v6666_v62  ;;  %v3698_v3 = vmax.f32 %v3254_v44, 0.0  ;;  %v4078_v38 = vmax.f32 %v4077_v51, %v3697_v15  ;;  %v4542_v62 = vrot.slane %v7166_v29, %v6529_v54 }
 0x52a   :  { %v3257_v23 = vpop.f32.mrf.mxu0  ;;  %v4119_v10 = vrot.slane %v4118_v28, 4  ;;  %v4016_v12 = vmax.f32 %v4014_v26, %v4015_v18  ;;  %v4106_v4 = vrot.slane %v4105_v57, 4  ;;  %v3475_v7 = vmax.f32 %v3305_v61, 0.0 }
 0x52b   :  { %v3705_v42 = vmax.f32 %v3256_v63, 0.0  ;;  %v3258_v20 = vadd.f32 %v3257_v23, %v6673_v32  ;;  %v4091_v45 = vmax.f32 %v4090_v60, %v3698_v3  ;;  %v4543_v32 = vcombine.low %v6931_v33, %v4542_v62 }
 0x52c   :  { %v3294_v39 = vpop.f32.mrf.mxu0  ;;  %v3476_v56 = vmax.f32 %v3307_v34, 0.0  ;;  %v3311_v14 = vadd.f32 %v6696_v8, %v6693_v59  ;;  %v4003_v6 = vmax.f32 %v4001_v53, %v4002_v30  ;;  %v4120_v13 = vmax.f32 %v4118_v28, %v4119_v10 }
 0x52d   :  { %v4079_v5 = vmax.f32 %v4078_v38, %v3705_v42  ;;  %v3706_v9 = vmax.f32 %v3258_v20, 0.0  ;;  %v3295_v52 = vadd.f32 %v3294_v39, %v6685_v22  ;;  %4561 = vst [vmem:[#allocation7] sm:$0xff] %v4543_v32  ;;  %v3315_v44 = vadd.f32 %v6700_v43, %v6685_v22 }
 0x52e   :  { %v3296_v40 = vpop.f32.mrf.mxu0  ;;  %v3483_v51 = vmax.f32 %v3309_v17, 0.0  ;;  %v4017_v27 = vrot.slane %v4016_v12, 2  ;;  %v4107_v63 = vmax.f32 %v4105_v57, %v4106_v4  ;;  %v3317_v24 = vadd.f32 %v6703_v35, %v6693_v59 }
 0x52f   :  { %v4092_v0 = vmax.f32 %v4091_v45, %v3706_v9  ;;  %v4080_v41 = vrot.slane %v4079_v5, 4  ;;  %v3297_v21 = vadd.f32 %v3296_v40, %v6693_v59  ;;  %v3459_v26 = vmax.f32 %v3295_v52, 0.0 }
 0x530   :  { %v3298_v49 = vpop.f32.mrf.mxu0  ;;  %v3319_v53 = vadd.f32 %v6708_v50, %v6685_v22  ;;  %v4004_v23 = vrot.slane %v4003_v6, 2  ;;  %v4121_v28 = vrot.slane %v4120_v13, 2  ;;  %v3484_v38 = vmax.f32 %v3311_v14, 0.0 }
 0x531   :  { %v4093_v1 = vrot.slane %v4092_v0, 4  ;;  %v3299_v33 = vadd.f32 %v3298_v49, %v6685_v22  ;;  %v4081_v2 = vmax.f32 %v4079_v5, %v4080_v41  ;;  %v3460_v60 = vmax.f32 %v3297_v21, 0.0 }
 0x532   :  { %v3300_v15 = vpop.f32.mrf.mxu0  ;;  %v3491_v42 = vmax.f32 %v3315_v44, 0.0  ;;  %v3321_v39 = vadd.f32 %v6718_v31, %v6693_v59  ;;  %v4018_v29 = vmax.f32 %v4016_v12, %v4017_v27  ;;  %v4108_v62 = vrot.slane %v4107_v63, 2 }
 0x533   :  { %v4094_v55 = vmax.f32 %v4092_v0, %v4093_v1  ;;  %v3467_v16 = vmax.f32 %v3299_v33, 0.0  ;;  %v3301_v47 = vadd.f32 %v3300_v15, %v6693_v59  ;;  %v4082_v57 = vrot.slane %v4081_v2, 2 }
 0x534   :  { %v3492_v35 = vmax.f32 %v3317_v24, 0.0  ;;  %v3325_v45 = vadd.f32 %v6726_v36, %v6685_v22  ;;  %v3499_v50 = vmax.f32 %v3319_v53, 0.0  ;;  %v4005_v61 = vmax.f32 %v4003_v6, %v4004_v23 }
 0x535   :  { %v3787_v3 = vmax.f32 %v3459_v26, %v3467_v16  ;;  %v3468_v8 = vmax.f32 %v3301_v47, 0.0  ;;  %v4095_v43 = vrot.slane %v4094_v55, 2  ;;  %v4122_v34 = vmax.f32 %v4120_v13, %v4121_v28 }
 0x536   :  { %v3327_v32 = vadd.f32 %v6733_v46, %v6693_v59  ;;  %v3329_v30 = vadd.f32 %v6743_v58, %v6685_v22  ;;  %v3500_v0 = vmax.f32 %v3321_v39, 0.0  ;;  %v4019_v17 = vrot.slane %v4018_v29, 1 }
 0x537   :  { %v3788_v20 = vmax.f32 %v3787_v3, %v3475_v7  ;;  %v3800_v18 = vmax.f32 %v3460_v60, %v3468_v8  ;;  %v4096_v40 = vmax.f32 %v4094_v55, %v4095_v43  ;;  %v4109_v52 = vmax.f32 %v4107_v63, %v4108_v62 }
 0x538   :  { %v4083_v49 = vmax.f32 %v4081_v2, %v4082_v57  ;;  %v3507_v12 = vmax.f32 %v3325_v45, 0.0  ;;  %v3331_v36 = vadd.f32 %v6750_v25, %v6693_v59  ;;  %v4006_v1 = vrot.slane %v4005_v61, 1 }
 0x539   :  { %v3789_v5 = vmax.f32 %v3788_v20, %v3483_v51  ;;  %v3801_v9 = vmax.f32 %v3800_v18, %v3476_v56  ;;  %v4123_v7 = vrot.slane %v4122_v34, 1  ;;  %v4097_v56 = vrot.slane %v4096_v40, 1 }
 0x53a   :  { %v3508_v21 = vmax.f32 %v3327_v32, 0.0  ;;  %v3515_v46 = vmax.f32 %v3329_v30, 0.0  ;;  %v4020_v22 = vmax.f32 %v4018_v29, %v4019_v17  ;;  %v4110_v58 = vrot.slane %v4109_v52, 1 }
 0x53b   :  { %v3790_v31 = vmax.f32 %v3789_v5, %v3491_v42  ;;  %v3802_v10 = vmax.f32 %v3801_v9, %v3484_v38  ;;  %v4084_v14 = vrot.slane %v4083_v49, 1  ;;  %v3516_v6 = vmax.f32 %v3331_v36, 0.0 }
 0x53c   :  { %v4007_v44 = vmax.f32 %v4005_v61, %v4006_v1  ;;  %v4124_v26 = vmax.f32 %v4122_v34, %v4123_v7  ;;  %v4098_v16 = vmax.f32 %v4096_v40, %v4097_v56  ;;  %v4111_v51 = vmax.f32 %v4109_v52, %v4110_v58 }
 0x53d   :  { %v3791_v4 = vmax.f32 %v3790_v31, %v3499_v50  ;;  %v3803_v41 = vmax.f32 %v3802_v10, %v3492_v35  ;;  %v4085_v27 = vmax.f32 %v4083_v49, %v4084_v14  ;;  %v7167_v3 = vpack.c.bf16 %v6955_v11, %v6953_v48 }
 0x53e   :  { %v4772_v25 = vpack.c.bf16 %v4020_v22, %v4007_v44  ;;  %v4776_v24 = vpack.c.bf16 %v4124_v26, %v4111_v51  ;;  %v4780_v62 = vcombine.low %v6884_v19, %v6884_v19  ;;  %v7168_v48 = vcombine.low %v6887_v37, %v6884_v19  ;;  %v7169_v19 = vld [vmem:[#allocation12_spill] sm:$0xff]  ;;  %v7170_v37 = vld [vmem:[#allocation15_spill] sm:$0xff] }
 0x53f   :  { %v3792_v33 = vmax.f32 %v3791_v4, %v3507_v12  ;;  %v3804_v15 = vmax.f32 %v3803_v41, %v3500_v0  ;;  %v4775_v60 = vpack.c.bf16 %v4098_v16, %v4085_v27  ;;  %v4282_v8 = vrot.slane %v7167_v3, %v6529_v54 }
 0x540   :  { %v4289_v28 = vrot.slane %v4772_v25, %v6529_v54  ;;  %v4323_v42 = vrot.slane %v4776_v24, %v6529_v54  ;;  %v4377_v11 = vrot.slane %v7168_v48, %v6529_v54  ;;  %v4384_v34 = vrot.slane %v4780_v62, %v6529_v54 }
 0x541   :  { %v3793_v13 = vmax.f32 %v3792_v33, %v3515_v46  ;;  %v3805_v55 = vmax.f32 %v3804_v15, %v3508_v21  ;;  %v4316_v20 = vrot.slane %v4775_v60, %v6529_v54  ;;  %v7171_v17 = vpack.c.bf16 %v7169_v19, %v7170_v37 }
 0x542   :  { %v4290_v18 = vcombine.low %v4282_v8, %v4289_v28  ;;  %v4782_v57 = vcombine.low %v4289_v28, %v4289_v28  ;;  %v4784_v45 = vcombine.low %v4323_v42, %v4323_v42  ;;  %v4457_v32 = vunpack.c.l.b16 %v4377_v11 }
 0x543   :  { %v3794_v47 = vrot.slane %v3793_v13, 4  ;;  %v3806_v59 = vmax.f32 %v3805_v55, %v3516_v6  ;;  %v4324_v5 = vcombine.low %v4316_v20, %v4323_v42  ;;  %v4458_v30 = vunpack.c.h.b16 %v4377_v11 }
 0x544   :  { %v4407_v9 = vrot.slane %v4290_v18, %v6529_v54  ;;  %v4414_v40 = vrot.slane %v4782_v57, %v6529_v54  ;;  %v4444_v10 = vrot.slane %v4784_v45, %v6529_v54  ;;  %v4214_v52 = vrot.slane %v7171_v17, %v6529_v54 }
 0x545   :  { %v3795_v63 = vmax.f32 %v3793_v13, %v3794_v47  ;;  %v3807_v2 = vrot.slane %v3806_v59, 4  ;;  %v4437_v0 = vrot.slane %v4324_v5, %v6529_v54  ;;  %v4459_v4 = vunpack.c.l.b16 %v4384_v34 }
 0x546   :  { %v4465_v12 = vunpack.c.l.b16 %v4407_v9  ;;  %v4466_v36 = vunpack.c.h.b16 %v4407_v9  ;;  %v4460_v41 = vunpack.c.h.b16 %v4384_v34  ;;  %v4467_v1 = vunpack.c.l.b16 %v4414_v40 }
 0x547   :  { %v3796_v53 = vrot.slane %v3795_v63, 2  ;;  %v3808_v23 = vmax.f32 %v3806_v59, %v3807_v2  ;;  %v4468_v7 = vunpack.c.h.b16 %v4414_v40  ;;  %v4501_v46 = vrot.slane %v4457_v32, 7 }
 0x548   :  { %v4507_v33 = vrot.slane %v4458_v30, 7  ;;  %v4473_v15 = vunpack.c.l.b16 %v4437_v0  ;;  %v4474_v22 = vunpack.c.h.b16 %v4437_v0  ;;  %v4475_v58 = vunpack.c.l.b16 %v4444_v10 }
 0x549   :  { %v3797_v43 = vmax.f32 %v3795_v63, %v3796_v53  ;;  %v3809_v38 = vrot.slane %v3808_v23, 2  ;;  %v4476_v14 = vunpack.c.h.b16 %v4444_v10  ;;  %v4503_v55 = vrot.slane %v4465_v12, 6 }
 0x54a   :  { %v4509_v44 = vrot.slane %v4466_v36, 6  ;;  %v4513_v26 = vrot.slane %v4459_v4, 7  ;;  %v4515_v16 = vrot.slane %v4467_v1, 6  ;;  %v4519_v47 = vrot.slane %v4460_v41, 7 }
 0x54b   :  { %v3798_v39 = vrot.slane %v3797_v43, 1  ;;  %v3810_v29 = vmax.f32 %v3808_v23, %v3809_v38  ;;  %v4521_v59 = vrot.slane %v4468_v7, 6  ;;  %v4505_v2 = vrot.slane %v4473_v15, 5 }
 0x54c   :  { %v4511_v24 = vrot.slane %v4474_v22, 5  ;;  %v4517_v60 = vrot.slane %v4475_v58, 5  ;;  %v4523_v3 = vrot.slane %v4476_v14, 5 }
 0x54d   :  { %v3811_v35 = vrot.slane %v3810_v29, 1  ;;  %v3799_v50 = vmax.f32 %v3797_v43, %v3798_v39 }
 0x54f   :  { %v3812_v61 = vmax.f32 %v3810_v29, %v3811_v35 }
 0x551   :  { %v4764_v31 = vpack.c.bf16 %v3812_v61, %v3799_v50 }
 0x553   :  { %v4221_v49 = vrot.slane %v4764_v31, %v6529_v54 }
 0x555   :  { %v4222_v56 = vcombine.low %v4214_v52, %v4221_v49  ;;  %v4778_v21 = vcombine.low %v4221_v49, %v4221_v49 }
 0x557   :  { %v4347_v6 = vrot.slane %v4222_v56, %v6529_v54  ;;  %v4354_v13 = vrot.slane %v4778_v21, %v6529_v54 }
 0x559   :  { %v4449_v25 = vunpack.c.l.b16 %v4347_v6  ;;  %v4450_v51 = vunpack.c.h.b16 %v4347_v6  ;;  %v4451_v27 = vunpack.c.l.b16 %v4354_v13  ;;  %v4452_v63 = vunpack.c.h.b16 %v4354_v13 }
 0x55b   :  { %v4502_v8 = vsel %vm1439_vm1, %v4501_v46, %v4449_v25  ;;  %v4508_v53 = vsel %vm1439_vm1, %v4507_v33, %v4450_v51  ;;  %v4514_v23 = vsel %vm1439_vm1, %v4513_v26, %v4451_v27  ;;  %v4520_v28 = vsel %vm1439_vm1, %v4519_v47, %v4452_v63 }
 0x55c   :  { %v4504_v43 = vsel %vm1441_vm2, %v4503_v55, %v4502_v8  ;;  %v4510_v38 = vsel %vm1441_vm2, %v4509_v44, %v4508_v53  ;;  %v4516_v42 = vsel %vm1441_vm2, %v4515_v16, %v4514_v23  ;;  %v4522_v20 = vsel %vm1441_vm2, %v4521_v59, %v4520_v28 }
 0x55d   :  { %v4506_v18 = vsel %vm1443_vm3, %v4505_v2, %v4504_v43  ;;  %v4512_v39 = vsel %vm1443_vm3, %v4511_v24, %v4510_v38  ;;  %v4518_v29 = vsel %vm1443_vm3, %v4517_v60, %v4516_v42  ;;  %v4524_v62 = vsel %vm1443_vm3, %v4523_v3, %v4522_v20 }
 0x55e   :  { %v4527_v57 = vpack.c.b16 %v4512_v39, %v4506_v18  ;;  %v4528_v48 = vpack.c.b16 %v4524_v62, %v4518_v29 }
 0x560   :  { %v4550_v11 = vrot.slane %v4527_v57, %v6529_v54  ;;  %v4557_v35 = vrot.slane %v4528_v48, %v6529_v54 }
 0x562   :  { %v4558_v45 = vcombine.low %v4550_v11, %v4557_v35 }
 0x564   :  { %4562 = vst [vmem:[#allocation7 + $0x8] sm:$0xff] %v4558_v45 }
 0x565   :  { %5037 = shalt.err (!%p5034_p0)
}
 0x566   :  { %4572 = dma.vmem_to_hbm [thread:$0]  %s4570_s20, 256, %s7068_s10, [#allocation4]  }
 0x567   :  { %5050 = dma.done.wait [#allocation4], 256  }
 0x568   :  { %5051 = vsyncadd [#allocation4], 4294967040 }
 0x569   :  { %4576 = vsyncpa [#allocation3], 1 }
 0x56a   :  { %4577 = vsyncpa [#allocation6], 1 }
 0x56b   :  { %4578 = vsyncpa [#allocation4], 1 }

// kernel: tpu_custom_call.1
= control target key start
LH: loop header
LB: loop body
LE: loop exit
PB: predicated region body
PF: predicated region fallthrough
CT: control target
= control target key end

     0   :  { %15 = vsyncpa [#allocation3], 0  ;;  %s7058_s0 = inlined_call_operand.vmem [shape: f32[4,64,4], index: 0, kind: input, shape index: {}]   ;;  %s7059_s1 = inlined_call_operand.vmem [shape: f32[3,64], index: 1, kind: input, shape index: {}]   ;;  %s7060_s2 = inlined_call_operand.vmem [shape: f32[1,64], index: 2, kind: input, shape index: {}]   ;;  %s7061_s3 = inlined_call_operand.hbm [shape: bf16[64,128], index: 3, kind: input, shape index: {}]   ;;  %s7062_s4 = inlined_call_operand.vmem [shape: f32[1,128], index: 4, kind: input, shape index: {}]   ;;  %s7063_s5 = inlined_call_operand.vmem [shape: bf16[128,256], index: 5, kind: input, shape index: {}]   ;;  %s7064_s6 = inlined_call_operand.vmem [shape: bf16[128,256], index: 6, kind: input, shape index: {}]   ;;  %s7065_s7 = inlined_call_operand.vmem [shape: f32[1,256], index: 7, kind: input, shape index: {}]   ;;  %s7066_s8 = inlined_call_operand.hbm [shape: bf16[256,1024], index: 8, kind: input, shape index: {}]   ;;  %s7067_s9 = inlined_call_operand.vmem [shape: f32[1,1024], index: 9, kind: input, shape index: {}]   ;;  %s7068_s10 = inlined_call_operand.hbm [shape: bf16[4,1024], index: 10, kind: output, shape index: {}]  }
   0x1   :  { %16 = vsyncpa [#allocation6], 0 }
   0x2   :  { %17 = vsyncpa [#allocation4], 0  ;;  %s5052_s13 = smov [#allocation2]  }
   0x3   :  { %s29_s14 = sshll.u32 %s5052_s13, 4  ;;  %s30_s14 = int_to_ptr.vmem [resolvable:$true] %s29_s14 }
   0x4   :  { %s4994_s15 = scalar_lea.vmem %s30_s14, 512  ;;  %p4999_p1 = scmp.lt.s32.totalorder %s30_s14, %s30_s14 }
   0x5   :  { %p4995_p0 = scmp.ne.s32.totalorder %s30_s14, %s4994_s15  ;;  %p5000_p2 = scmp.lt.s32.totalorder %s4994_s15, %s4994_s15 }
   0x7   :  { %p5001_p3 = por %p5000_p2, %p4999_p1 }
   0x9   :  { %p5002_p4 = pnand %p5001_p3, %p4995_p0 }
   0xb   :  { %5005 = shalt.err (!%p5002_p4)
}
   0xc   :  { %s5053_s16 = smov 64   ;;  %s5054_s17 = smov 4  }
   0xd   :  { %35 = dma.hbm_to_vmem [thread:$0]  %s7061_s3, 512, %s30_s14, [#allocation3], %s5053_s16, %s5053_s16, %s5054_s17  }
   0xe   :  { %s5055_s20 = smov [#allocation5]  }
   0xf   :  { %s49_s21 = sshll.u32 %s5055_s20, 4  ;;  %s50_s21 = int_to_ptr.vmem [resolvable:$true] %s49_s21 }
  0x10   :  { %s5014_s22 = scalar_lea.vmem %s50_s21, 16384  ;;  %p5019_p6 = scmp.lt.s32.totalorder %s50_s21, %s50_s21 }
  0x11   :  { %p5015_p5 = scmp.ne.s32.totalorder %s50_s21, %s5014_s22  ;;  %p5020_p7 = scmp.lt.s32.totalorder %s5014_s22, %s5014_s22 }
  0x13   :  { %p5021_p8 = por %p5020_p7, %p5019_p6 }
  0x15   :  { %p5022_p9 = pnand %p5021_p8, %p5015_p5 }
  0x17   :  { %5025 = shalt.err (!%p5022_p9)
}
  0x18   :  { %s5056_s23 = smov 512   ;;  %s5057_s24 = smov 32  }
  0x19   :  { %55 = dma.hbm_to_vmem [thread:$0]  %s7066_s8, 16384, %s50_s21, [#allocation6], %s5056_s23, %s5056_s23, %s5057_s24  }
  0x1a   :  { %5046 = dma.done.wait [#allocation3], 512  }
  0x1b   :  { %5047 = vsyncadd [#allocation3], 4294966784 }
  0x1c   :  { %5048 = dma.done.wait [#allocation6], 16384  }
  0x1d   :  { %5049 = vsyncadd [#allocation6], 4294950912  ;;  %v5058_v0 = vmov 1   ;;  %v5059_v1 = vmov 0   ;;  %v67_v2 = vld [vmem:[%s7058_s0 + $0x10] sm:$0xff]  ;;  %v65_v3 = vld [vmem:[%s7058_s0] sm:$0xff]  ;;  %v258_v56 = vlaneseq }
  0x1e   :  { %4891 = vset.pattern.permute.xlu0 %v5058_v0  ;;  %4889 = vset.pattern.permute.xlu1 %v5058_v0  ;;  %v70_v4 = vld [vmem:[%s7058_s0 + $0x28] sm:$0xff]  ;;  %v71_v6 = vld [vmem:[%s7058_s0 + $0x30] sm:$0xff]  ;;  %v68_v7 = vld [vmem:[%s7058_s0 + $0x18] sm:$0xff]  ;;  %v5060_v8 = vmov 2   ;;  %vm812_vm0 = vcmask 523264   ;;  %vm1439_vm1 = vcmask 1041409  }
  0x1f   :  { %1250 = vmatprep.mubr.bf16.mxu1 %v5059_v1  ;;  %303 = vperm.xlu0 %4891, %v67_v2   ;;  %v66_v5 = vld [vmem:[%s7058_s0 + $0x8] sm:$0xff]  ;;  %v69_v9 = vld [vmem:[%s7058_s0 + $0x20] sm:$0xff]  ;;  %v72_v10 = vld [vmem:[%s7058_s0 + $0x38] sm:$0xff]  ;;  %v5327_v59 = vshrl.u32 %v258_v56, 7  ;;  %vm1441_vm2 = vcmask 1042434   ;;  %vm1443_vm3 = vcmask 1043459  }
  0x20   :  { %295 = vperm.xlu1 %4889, %v65_v3   ;;  %v74_v11 = vld [vmem:[%s7058_s0 + $0x48] sm:$0xff]  ;;  %v5162_v12 = vld [vmem:[%s7058_s0 + $0x60] sm:$0xff]  ;;  %v5168_v13 = vld [vmem:[%s7058_s0 + $0x78] sm:$0xff] }
  0x21   :  { %v5175_v14 = vld [vmem:[%s7058_s0 + $0x88] sm:$0xff]  ;;  %v5182_v15 = vld [vmem:[%s7058_s0 + $0xa0] sm:$0xff]  ;;  %v5189_v16 = vld [vmem:[%s7058_s0 + $0xb8] sm:$0xff]  ;;  %7105 = vst [vmem:[#allocation11_spill] sm:$0xff] %v5327_v59  ;;  %v5332_v62 = vsub.s32 1, %v5327_v59 }
  0x22   :  { %v5195_v17 = vld [vmem:[%s7058_s0 + $0xc8] sm:$0xff]  ;;  %v4933_v18 = vld [vmem:[#allocation2 + $0x18] sm:$0xff]   ;;  %v4934_v19 = vld [vmem:[#allocation2 + $0x10] sm:$0xff]  }
  0x23   :  { %315 = vperm.xlu0 %4891, %v70_v4   ;;  %4805 = vmatprep.subr.bf16.mxu0 %v4933_v18  ;;  %v4935_v20 = vld [vmem:[#allocation2 + $0x8] sm:$0xff]   ;;  %v73_v21 = vld [vmem:[%s7058_s0 + $0x40] sm:$0xff]  ;;  %v75_v23 = vld [vmem:[%s7058_s0 + $0x50] sm:$0xff] }
  0x24   :  { %299 = vperm.xlu1 %4889, %v66_v5   ;;  %4806 = vmatpush3.bf16.msra.mxu0 %v4933_v18  ;;  %v4936_v22 = vld [vmem:[#allocation2] sm:$0xff]   ;;  %v76_v24 = vld [vmem:[%s7058_s0 + $0x58] sm:$0xff]  ;;  %v5219_v25 = vld [vmem:[%s7058_s0 + $0x90] sm:$0xff] }
  0x25   :  { %4807 = vmatprep.subr.bf16.mxu0 %v4934_v19  ;;  %v5228_v26 = vld [vmem:[%s7058_s0 + $0xd0] sm:$0xff]  ;;  %v5234_v27 = vld [vmem:[%s7058_s0 + $0xe0] sm:$0xff]  ;;  %v78_v28 = vld [vmem:[%s7058_s0 + $0x68] sm:$0xff] }
  0x26   :  { %v79_v29 = vld [vmem:[%s7058_s0 + $0x70] sm:$0xff]  ;;  %v5254_v30 = vld [vmem:[%s7058_s0 + $0xa8] sm:$0xff]  ;;  %v81_v38 = vld [vmem:[%s7058_s0 + $0x80] sm:$0xff] }
  0x27   :  { %319 = vperm.xlu0 %4891, %v71_v6   ;;  %v5265_v33 = vld [vmem:[%s7058_s0 + $0xb0] sm:$0xff]  ;;  %v5282_v39 = vld [vmem:[%s7058_s0 + $0xe8] sm:$0xff]  ;;  %v84_v47 = vld [vmem:[%s7058_s0 + $0x98] sm:$0xff] }
  0x28   :  { %4890 = vset.pattern.permute.xlu1 %v5059_v1  ;;  %4808 = vmatpush3.bf16.msra.mxu0 %v4934_v19  ;;  %v5289_v41 = vld [vmem:[%s7058_s0 + $0xf0] sm:$0xff]  ;;  %v5308_v48 = vld [vmem:[%s7058_s0 + $0xf8] sm:$0xff]  ;;  %v97_v63 = vld [vmem:[%s7059_s1] sm:$0x7] }
  0x29   :  { %115 = vperm.xlu1 %4890, %v68_v7   ;;  %4809 = vmatprep.subr.bf16.mxu0 %v4935_v20 }
  0x2b   :  { %4897 = vset.pattern.permute.xlu0 %v5060_v8 }
  0x2c   :  { %495 = vperm.xlu0 %4897, %v66_v5   ;;  %4810 = vmatpush3.bf16.msra.mxu0 %v4935_v20 }
  0x2d   :  { %4892 = vset.pattern.permute.xlu1 %v5058_v0  ;;  %4811 = vmatprep.subr.bf16.mxu0 %v4936_v22 }
  0x2e   :  { %307 = vperm.xlu1 %4892, %v68_v7  }
  0x30   :  { %507 = vperm.xlu0 %4897, %v69_v9   ;;  %4812 = vmatpush3.bf16.msra.mxu0 %v4936_v22 }
  0x32   :  { %4893 = vset.pattern.permute.xlu1 %v5060_v8 }
  0x33   :  { %491 = vperm.xlu1 %4893, %v65_v3  }
  0x34   :  { %519 = vperm.xlu0 %4897, %v72_v10  }
  0x37   :  { %499 = vperm.xlu1 %4893, %v67_v2  }
  0x38   :  { %527 = vperm.xlu0 %4897, %v74_v11  }
  0x3b   :  { %503 = vperm.xlu1 %4893, %v68_v7  }
  0x3c   :  { %539 = vperm.xlu0 %4897, %v5162_v12  }
  0x3f   :  { %4894 = vset.pattern.permute.xlu1 %v5059_v1 }
  0x40   :  { %125 = vperm.xlu1 %4894, %v70_v4   ;;  %551 = vperm.xlu0 %4897, %v5168_v13  }
  0x44   :  { %4895 = vset.pattern.permute.xlu1 %v5058_v0  ;;  %559 = vperm.xlu0 %4897, %v5175_v14  }
  0x45   :  { %311 = vperm.xlu1 %4895, %v69_v9  }
  0x48   :  { %571 = vperm.xlu0 %4897, %v5182_v15  }
  0x49   :  { %4896 = vset.pattern.permute.xlu1 %v5059_v1 }
  0x4a   :  { %130 = vperm.xlu1 %4896, %v71_v6  }
  0x4c   :  { %583 = vperm.xlu0 %4897, %v5189_v16  }
  0x4e   :  { %135 = vperm.xlu1 %4896, %v72_v10  }
  0x50   :  { %591 = vperm.xlu0 %4897, %v5195_v17  }
  0x52   :  { %4898 = vset.pattern.permute.xlu1 %v5058_v0 }
  0x53   :  { %323 = vperm.xlu1 %4898, %v72_v10  }
  0x54   :  { %4925 = vset.pattern.permute.xlu0 %v5059_v1 }
  0x55   :  { %100 = vperm.xlu0 %4925, %v65_v3   ;;  %v7069_v3 = vsub.s32 2, %v5327_v59 }
  0x57   :  { %4899 = vset.pattern.permute.xlu1 %v5060_v8 }
  0x58   :  { %511 = vperm.xlu1 %4899, %v70_v4  }
  0x59   :  { %105 = vperm.xlu0 %4925, %v66_v5   ;;  %v5346_v5 = vrot.slane %v97_v63, %v5332_v62 }
  0x5c   :  { %515 = vperm.xlu1 %4899, %v71_v6  }
  0x5d   :  { %110 = vperm.xlu0 %4925, %v67_v2   ;;  %v5339_v2 = vsub.s32 0, %v5327_v59 }
  0x5f   :  { %v5349_v7 = vrot.slane %v97_v63, %v5339_v2 }
  0x60   :  { %4900 = vset.pattern.permute.xlu1 %v5059_v1 }
  0x61   :  { %140 = vperm.xlu1 %4900, %v73_v21   ;;  %120 = vperm.xlu0 %4925, %v69_v9   ;;  %v5353_v9 = vrot.slane %v97_v63, %v7069_v3 }
  0x65   :  { %4901 = vset.pattern.permute.xlu1 %v5058_v0  ;;  %145 = vperm.xlu0 %4925, %v74_v11  }
  0x66   :  { %327 = vperm.xlu1 %4901, %v73_v21  }
  0x69   :  { %150 = vperm.xlu0 %4925, %v75_v23  }
  0x6a   :  { %331 = vperm.xlu1 %4901, %v74_v11  }
  0x6d   :  { %160 = vperm.xlu0 %4925, %v5162_v12  }
  0x6e   :  { %4902 = vset.pattern.permute.xlu1 %v5059_v1 }
  0x6f   :  { %155 = vperm.xlu1 %4902, %v76_v24  }
  0x71   :  { %185 = vperm.xlu0 %4925, %v5175_v14  }
  0x73   :  { %4903 = vset.pattern.permute.xlu1 %v5058_v0 }
  0x74   :  { %339 = vperm.xlu1 %4903, %v76_v24  }
  0x75   :  { %190 = vperm.xlu0 %4925, %v5219_v25  }
  0x78   :  { %4904 = vset.pattern.permute.xlu1 %v5060_v8 }
  0x79   :  { %523 = vperm.xlu1 %4904, %v73_v21   ;;  %200 = vperm.xlu0 %4925, %v5182_v15  }
  0x7d   :  { %531 = vperm.xlu1 %4904, %v75_v23   ;;  %225 = vperm.xlu0 %4925, %v5195_v17  }
  0x81   :  { %535 = vperm.xlu1 %4904, %v76_v24   ;;  %230 = vperm.xlu0 %4925, %v5228_v26  }
  0x85   :  { %4905 = vset.pattern.permute.xlu1 %v5059_v1  ;;  %240 = vperm.xlu0 %4925, %v5234_v27  }
  0x86   :  { %165 = vperm.xlu1 %4905, %v78_v28  }
  0x89   :  { %4926 = vset.pattern.permute.xlu0 %v5058_v0 }
  0x8a   :  { %4906 = vset.pattern.permute.xlu1 %v5058_v0  ;;  %335 = vperm.xlu0 %4926, %v75_v23  }
  0x8b   :  { %343 = vperm.xlu1 %4906, %v5162_v12  }
  0x8e   :  { %347 = vperm.xlu0 %4926, %v78_v28  }
  0x8f   :  { %4907 = vset.pattern.permute.xlu1 %v5059_v1 }
  0x90   :  { %170 = vperm.xlu1 %4907, %v79_v29  }
  0x92   :  { %351 = vperm.xlu0 %4926, %v79_v29  }
  0x94   :  { %175 = vperm.xlu1 %4907, %v5168_v13  }
  0x96   :  { %367 = vperm.xlu0 %4926, %v5219_v25  }
  0x98   :  { %4908 = vset.pattern.permute.xlu1 %v5058_v0 }
  0x99   :  { %355 = vperm.xlu1 %4908, %v5168_v13  }
  0x9a   :  { %v5259_v32 = vpop.permute.xlu0 %303  ;;  %379 = vperm.xlu0 %4926, %v5254_v30  }
  0x9b   :  { %v5257_v31 = vpop.permute.xlu1 %295 }
  0x9c   :  { %v426_v11 = vmul.f32 %v5346_v5, %v5257_v31 }
  0x9d   :  { %4909 = vset.pattern.permute.xlu1 %v5060_v8 }
  0x9e   :  { %543 = vperm.xlu1 %4909, %v78_v28   ;;  %v5270_v35 = vpop.permute.xlu0 %315  ;;  %383 = vperm.xlu0 %4926, %v5265_v33  }
  0x9f   :  { %v5268_v34 = vpop.permute.xlu1 %299 }
  0xa0   :  { %v427_v22 = vmul.f32 %v5346_v5, %v5268_v34  ;;  %v428_v34 = vmul.f32 %v5346_v5, %v5259_v32 }
  0xa2   :  { %547 = vperm.xlu1 %4909, %v79_v29   ;;  %v5273_v36 = vpop.permute.xlu0 %319  ;;  %399 = vperm.xlu0 %4926, %v5228_v26   ;;  %v431_v29 = vmul.f32 %v5346_v5, %v5270_v35 }
  0xa4   :  { %v116_v37 = vpop.permute.xlu1 %115 }
  0xa5   :  { %v265_v18 = vmul.f32 %v5349_v7, %v116_v37 }
  0xa6   :  { %4910 = vset.pattern.permute.xlu1 %v5059_v1  ;;  %411 = vperm.xlu0 %4926, %v5282_v39  }
  0xa7   :  { %180 = vperm.xlu1 %4910, %v81_v38   ;;  %v496_v40 = vpop.permute.xlu0 %495 }
  0xa9   :  { %v308_v42 = vpop.permute.xlu1 %307 }
  0xaa   :  { %415 = vperm.xlu0 %4926, %v5289_v41   ;;  %v429_v12 = vmul.f32 %v5346_v5, %v308_v42 }
  0xab   :  { %4911 = vset.pattern.permute.xlu1 %v5058_v0  ;;  %v5293_v43 = vpop.permute.xlu0 %507 }
  0xac   :  { %359 = vperm.xlu1 %4911, %v81_v38   ;;  %v461_v24 = vadd.f32 %v429_v12, %v265_v18  ;;  %v626_v32 = vmul.f32 %v5353_v9, %v5293_v43 }
  0xae   :  { %v492_v44 = vpop.permute.xlu1 %491  ;;  %4931 = vset.pattern.permute.xlu0 %v5060_v8 }
  0xaf   :  { %v5297_v45 = vpop.permute.xlu0 %519  ;;  %603 = vperm.xlu0 %4931, %v5234_v27   ;;  %v622_v19 = vmul.f32 %v5353_v9, %v492_v44  ;;  %v5380_v44 = vld [vmem:[%s7060_s2] ss:$0 sm:$0xff] }
  0xb0   :  { %363 = vperm.xlu1 %4911, %v5175_v14  }
  0xb2   :  { %v5300_v46 = vpop.permute.xlu1 %499 }
  0xb3   :  { %v5311_v49 = vpop.permute.xlu0 %527  ;;  %615 = vperm.xlu0 %4931, %v5308_v48  }
  0xb4   :  { %4912 = vset.pattern.permute.xlu1 %v5059_v1 }
  0xb5   :  { %195 = vperm.xlu1 %4912, %v84_v47  }
  0xb6   :  { %v504_v50 = vpop.permute.xlu1 %503 }
  0xb7   :  { %v5314_v51 = vpop.permute.xlu0 %539  ;;  %v625_v20 = vmul.f32 %v5353_v9, %v504_v50 }
  0xb9   :  { %4913 = vset.pattern.permute.xlu1 %v5058_v0 }
  0xba   :  { %371 = vperm.xlu1 %4913, %v84_v47  }
  0xbb   :  { %v126_v52 = vpop.permute.xlu1 %125  ;;  %v5317_v53 = vpop.permute.xlu0 %551 }
  0xbc   :  { %v267_v31 = vmul.f32 %v5349_v7, %v126_v52 }
  0xbe   :  { %4914 = vset.pattern.permute.xlu1 %v5060_v8 }
  0xbf   :  { %555 = vperm.xlu1 %4914, %v81_v38   ;;  %v5322_v55 = vpop.permute.xlu0 %559  ;;  %v657_v38 = vadd.f32 %v625_v20, %v461_v24 }
  0xc0   :  { %v5320_v54 = vpop.permute.xlu1 %311 }
  0xc1   :  { %v696_v12 = vadd.f32 %v5380_v44, %v657_v38 }
  0xc3   :  { %563 = vperm.xlu1 %4914, %v5219_v25   ;;  %v5325_v57 = vpop.permute.xlu0 %571 }
  0xc5   :  { %v131_v58 = vpop.permute.xlu1 %130 }
  0xc7   :  { %567 = vperm.xlu1 %4914, %v84_v47   ;;  %v5329_v60 = vpop.permute.xlu0 %583  ;;  %v268_v47 = vmul.f32 %v5349_v7, %v131_v58  ;;  %v624_v58 = vmul.f32 %v5353_v9, %v5300_v46 }
  0xc9   :  { %v136_v61 = vpop.permute.xlu1 %135 }
  0xcb   :  { %4915 = vset.pattern.permute.xlu1 %v5059_v1  ;;  %v5343_v4 = vpop.permute.xlu0 %591 }
  0xcc   :  { %205 = vperm.xlu1 %4915, %v5254_v30  }
  0xce   :  { %v324_v6 = vpop.permute.xlu1 %323 }
  0xcf   :  { %v433_v35 = vmul.f32 %v5346_v5, %v324_v6  ;;  %v463_v6 = vadd.f32 %v431_v29, %v267_v31 }
  0xd0   :  { %4916 = vset.pattern.permute.xlu1 %v5058_v0  ;;  %v101_v10 = vpop.permute.xlu0 %100 }
  0xd1   :  { %375 = vperm.xlu1 %4916, %v5182_v15   ;;  %v262_v13 = vmul.f32 %v5349_v7, %v101_v10  ;;  %v623_v15 = vmul.f32 %v5353_v9, %v496_v40  ;;  %v432_v40 = vmul.f32 %v5346_v5, %v5273_v36  ;;  %v629_v10 = vmul.f32 %v5353_v9, %v5297_v45 }
  0xd3   :  { %v512_v14 = vpop.permute.xlu1 %511  ;;  %v458_v21 = vadd.f32 %v426_v11, %v262_v13  ;;  %v269_v11 = vmul.f32 %v5349_v7, %v136_v61  ;;  %v464_v20 = vadd.f32 %v432_v40, %v268_v47 }
  0xd4   :  { %v106_v23 = vpop.permute.xlu0 %105  ;;  %v627_v50 = vmul.f32 %v5353_v9, %v512_v14 }
  0xd5   :  { %4917 = vset.pattern.permute.xlu1 %v5059_v1  ;;  %v654_v25 = vadd.f32 %v622_v19, %v458_v21  ;;  %v263_v28 = vmul.f32 %v5349_v7, %v106_v23  ;;  %v430_v19 = vmul.f32 %v5346_v5, %v5320_v54  ;;  %v465_v21 = vadd.f32 %v433_v35, %v269_v11 }
  0xd6   :  { %210 = vperm.xlu1 %4917, %v5265_v33   ;;  %v659_v45 = vadd.f32 %v627_v50, %v463_v6  ;;  %v728_v54 = vmax.f32 %v696_v12, 0.0 }
  0xd7   :  { %v516_v37 = vpop.permute.xlu1 %515  ;;  %v459_v42 = vadd.f32 %v427_v22, %v263_v28  ;;  %v693_v36 = vadd.f32 %v5380_v44, %v654_v25 }
  0xd8   :  { %v111_v52 = vpop.permute.xlu0 %110  ;;  %v628_v43 = vmul.f32 %v5353_v9, %v516_v37  ;;  %v698_v38 = vadd.f32 %v5380_v44, %v659_v45 }
  0xd9   :  { %v655_v56 = vadd.f32 %v623_v15, %v459_v42  ;;  %v264_v63 = vmul.f32 %v5349_v7, %v111_v52  ;;  %v725_v61 = vmax.f32 %v693_v36, 0.0 }
  0xda   :  { %215 = vperm.xlu1 %4917, %v5189_v16   ;;  %v660_v24 = vadd.f32 %v628_v43, %v464_v20 }
  0xdb   :  { %v460_v13 = vadd.f32 %v428_v34, %v264_v63  ;;  %v694_v18 = vadd.f32 %v5380_v44, %v655_v56  ;;  %v661_v34 = vadd.f32 %v629_v10, %v465_v21  ;;  %v730_v63 = vmax.f32 %v698_v38, 0.0 }
  0xdc   :  { %v141_v14 = vpop.permute.xlu1 %140  ;;  %v121_v22 = vpop.permute.xlu0 %120 }
  0xdd   :  { %v656_v23 = vadd.f32 %v624_v58, %v460_v13  ;;  %v266_v46 = vmul.f32 %v5349_v7, %v121_v22  ;;  %v726_v15 = vmax.f32 %v694_v18, 0.0  ;;  %v700_v56 = vadd.f32 %v5380_v44, %v661_v34 }
  0xde   :  { %4918 = vset.pattern.permute.xlu1 %v5058_v0  ;;  %v631_v18 = vmul.f32 %v5353_v9, %v5311_v49  ;;  %v270_v22 = vmul.f32 %v5349_v7, %v141_v14 }
  0xdf   :  { %387 = vperm.xlu1 %4918, %v5189_v16   ;;  %v695_v25 = vadd.f32 %v5380_v44, %v656_v23  ;;  %v462_v28 = vadd.f32 %v430_v19, %v266_v46  ;;  %v757_v29 = vpack.c.bf16 %v726_v15, %v725_v61  ;;  %v699_v16 = vadd.f32 %v5380_v44, %v660_v24 }
  0xe0   :  { %v146_v37 = vpop.permute.xlu0 %145  ;;  %v732_v6 = vmax.f32 %v700_v56, 0.0 }
  0xe1   :  { %v328_v31 = vpop.permute.xlu1 %327  ;;  %v727_v42 = vmax.f32 %v695_v25, 0.0  ;;  %v658_v40 = vadd.f32 %v626_v32, %v462_v28  ;;  %4813 = vmatprep.mubr.msk.bf16.mxu0 %vm812_vm0, %v757_v29  ;;  %v731_v32 = vmax.f32 %v699_v16, 0.0  ;;  %v271_v12 = vmul.f32 %v5349_v7, %v146_v37  ;;  %v92_v29 = vld [vmem:[%s7058_s0 + $0xd8] sm:$0xff] }
  0xe2   :  { %v434_v21 = vmul.f32 %v5346_v5, %v328_v31 }
  0xe3   :  { %4919 = vset.pattern.permute.xlu1 %v5060_v8  ;;  %v697_v47 = vadd.f32 %v5380_v44, %v658_v40  ;;  %v758_v35 = vpack.c.bf16 %v728_v54, %v727_v42  ;;  %v760_v13 = vpack.c.bf16 %v732_v6, %v731_v32 }
  0xe4   :  { %575 = vperm.xlu1 %4919, %v5254_v30   ;;  %v151_v52 = vpop.permute.xlu0 %150  ;;  %v89_v30 = vld [vmem:[%s7058_s0 + $0xc0] sm:$0xff]  ;;  %v466_v61 = vadd.f32 %v434_v21, %v270_v22 }
  0xe5   :  { %v332_v50 = vpop.permute.xlu1 %331  ;;  %v729_v36 = vmax.f32 %v697_v47, 0.0  ;;  %4814 = vmatmul.mubr.msk.bf16.vlgmr.msra.gmra.mxu0 %vm812_vm0, %v758_v35 }
  0xe6   :  { %v435_v43 = vmul.f32 %v5346_v5, %v332_v50  ;;  %v272_v50 = vmul.f32 %v5349_v7, %v151_v52 }
  0xe7   :  { %v759_v10 = vpack.c.bf16 %v730_v63, %v729_v36 }
  0xe8   :  { %579 = vperm.xlu1 %4919, %v5265_v33   ;;  %v5413_v58 = vpop.permute.xlu0 %160  ;;  %v467_v19 = vadd.f32 %v435_v43, %v271_v12 }
  0xe9   :  { %4817 = vmatprep.mubr.msk.bf16.mxu0 %vm812_vm0, %v759_v10 }
  0xea   :  { %v156_v11 = vpop.permute.xlu1 %155  ;;  %v663_v23 = vadd.f32 %v631_v18, %v467_v19 }
  0xeb   :  { %v273_v47 = vmul.f32 %v5349_v7, %v156_v11 }
  0xec   :  { %4920 = vset.pattern.permute.xlu1 %v5059_v1  ;;  %v5422_v33 = vpop.permute.xlu0 %185  ;;  %v702_v49 = vadd.f32 %v5380_v44, %v663_v23 }
  0xed   :  { %220 = vperm.xlu1 %4920, %v89_v30   ;;  %4818 = vmatmul.mubr.msk.bf16.gmra.mxu0 %vm812_vm0, %v760_v13 }
  0xee   :  { %v734_v31 = vmax.f32 %v702_v49, 0.0 }
  0xef   :  { %v340_v20 = vpop.permute.xlu1 %339 }
  0xf0   :  { %v5429_v45 = vpop.permute.xlu0 %190  ;;  %v437_v42 = vmul.f32 %v5346_v5, %v340_v20  ;;  %v274_v20 = vmul.f32 %v5349_v7, %v5413_v58  ;;  %v634_v58 = vmul.f32 %v5353_v9, %v5314_v51  ;;  %v4942_v51 = vld [vmem:[%s7063_s5 + $0x60] ss:$8 sps:$4 sm:$0xff]  }
  0xf1   :  { %4921 = vset.pattern.permute.xlu1 %v5058_v0 }
  0xf2   :  { %391 = vperm.xlu1 %4921, %v89_v30   ;;  %v469_v56 = vadd.f32 %v437_v42, %v273_v47 }
  0xf4   :  { %v524_v46 = vpop.permute.xlu1 %523  ;;  %v5433_v24 = vpop.permute.xlu0 %200 }
  0xf5   :  { %v630_v15 = vmul.f32 %v5353_v9, %v524_v46  ;;  %v4939_v46 = vld [vmem:[%s7063_s5 + $0x70] ss:$8 sps:$4 sm:$0xff]  }
  0xf6   :  { %395 = vperm.xlu1 %4921, %v5195_v17  }
  0xf7   :  { %v662_v25 = vadd.f32 %v630_v15, %v466_v61 }
  0xf8   :  { %v532_v28 = vpop.permute.xlu1 %531  ;;  %v5441_v14 = vpop.permute.xlu0 %225 }
  0xf9   :  { %v701_v54 = vadd.f32 %v5380_v44, %v662_v25  ;;  %v632_v6 = vmul.f32 %v5353_v9, %v532_v28 }
  0xfa   :  { %4922 = vset.pattern.permute.xlu1 %v5059_v1 }
  0xfb   :  { %v733_v37 = vmax.f32 %v701_v54, 0.0  ;;  %235 = vperm.xlu1 %4922, %v92_v29  }
  0xfc   :  { %v536_v34 = vpop.permute.xlu1 %535  ;;  %v5444_v17 = vpop.permute.xlu0 %230 }
  0xfd   :  { %v761_v38 = vpack.c.bf16 %v734_v31, %v733_v37  ;;  %v633_v35 = vmul.f32 %v5353_v9, %v536_v34  ;;  %v637_v31 = vmul.f32 %v5353_v9, %v5317_v53  ;;  %v4945_v53 = vld [vmem:[%s7063_s5 + $0x50] ss:$8 sps:$4 sm:$0xff]  }
  0xff   :  { %4923 = vset.pattern.permute.xlu1 %v5058_v0  ;;  %4821 = vmatprep.mubr.msk.bf16.mxu0 %vm812_vm0, %v761_v38  ;;  %v665_v32 = vadd.f32 %v633_v35, %v469_v56 }
 0x100   :  { %403 = vperm.xlu1 %4923, %v92_v29   ;;  %v5449_v16 = vpop.permute.xlu0 %240 }
 0x101   :  { %v166_v40 = vpop.permute.xlu1 %165  ;;  %v704_v11 = vadd.f32 %v5380_v44, %v665_v32  ;;  %v4946_v32 = vld [vmem:[%s7063_s5 + $0x44] ss:$8 sps:$4 sm:$0xff]  }
 0x102   :  { %v275_v37 = vmul.f32 %v5349_v7, %v166_v40 }
 0x103   :  { %v736_v52 = vmax.f32 %v704_v11, 0.0 }
 0x104   :  { %4924 = vset.pattern.permute.xlu1 %v5060_v8 }
 0x105   :  { %587 = vperm.xlu1 %4924, %v89_v30   ;;  %v336_v63 = vpop.permute.xlu0 %335 }
 0x106   :  { %v344_v36 = vpop.permute.xlu1 %343  ;;  %v436_v10 = vmul.f32 %v5346_v5, %v336_v63 }
 0x107   :  { %v438_v21 = vmul.f32 %v5346_v5, %v344_v36 }
 0x108   :  { %v468_v12 = vadd.f32 %v436_v10, %v272_v50 }
 0x109   :  { %595 = vperm.xlu1 %4924, %v5228_v26   ;;  %v348_v22 = vpop.permute.xlu0 %347  ;;  %v4937_v26 = vld [vmem:[%s7063_s5 + $0x74] ss:$8 sps:$4 sm:$0xff]   ;;  %v470_v61 = vadd.f32 %v438_v21, %v274_v20 }
 0x10a   :  { %v664_v43 = vadd.f32 %v632_v6, %v468_v12  ;;  %1218 = vmatprep.subr.bf16.mxu1 %v4937_v26  ;;  %v439_v25 = vmul.f32 %v5346_v5, %v348_v22  ;;  %v4948_v6 = vld [vmem:[%s7063_s5 + $0x40] ss:$8 sps:$4 sm:$0xff]   ;;  %v4949_v22 = vld [vmem:[%s7063_s5 + $0x34] ss:$8 sps:$4 sm:$0xff]  }
 0x10b   :  { %v171_v13 = vpop.permute.xlu1 %170  ;;  %1219 = vmatpush1.bf16.msra.mxu1 %v4939_v46  ;;  %v666_v34 = vadd.f32 %v634_v58, %v470_v61  ;;  %v4952_v61 = vld [vmem:[%s7063_s5 + $0x24] ss:$8 sps:$4 sm:$0xff]  }
 0x10c   :  { %v703_v18 = vadd.f32 %v5380_v44, %v664_v43  ;;  %v471_v47 = vadd.f32 %v439_v25, %v275_v37  ;;  %v276_v56 = vmul.f32 %v5349_v7, %v171_v13 }
 0x10d   :  { %599 = vperm.xlu1 %4924, %v92_v29   ;;  %v4940_v29 = vld [vmem:[%s7063_s5 + $0x64] ss:$8 sps:$4 sm:$0xff]   ;;  %v352_v54 = vpop.permute.xlu0 %351  ;;  %v705_v40 = vadd.f32 %v5380_v44, %v666_v34 }
 0x10e   :  { %v735_v19 = vmax.f32 %v703_v18, 0.0  ;;  %1220 = vmatprep.subr.bf16.mxu1 %v4940_v29  ;;  %v440_v35 = vmul.f32 %v5346_v5, %v352_v54 }
 0x10f   :  { %v176_v30 = vpop.permute.xlu1 %175  ;;  %1221 = vmatpush1.bf16.msra.mxu1 %v4942_v51  ;;  %v737_v13 = vmax.f32 %v705_v40, 0.0 }
 0x110   :  { %v762_v23 = vpack.c.bf16 %v736_v52, %v735_v19  ;;  %v277_v28 = vmul.f32 %v5349_v7, %v176_v30  ;;  %v472_v12 = vadd.f32 %v440_v35, %v276_v56 }
 0x111   :  { %4927 = vset.pattern.permute.xlu1 %v5059_v1  ;;  %v368_v34 = vpop.permute.xlu0 %367 }
 0x112   :  { %245 = vperm.xlu1 %4927, %v5282_v39   ;;  %4822 = vmatmul.mubr.msk.bf16.gmra.mxu0 %vm812_vm0, %v762_v23  ;;  %v4951_v23 = vld [vmem:[%s7063_s5 + $0x30] ss:$8 sps:$4 sm:$0xff]  }
 0x114   :  { %v356_v15 = vpop.permute.xlu1 %355 }
 0x115   :  { %v441_v49 = vmul.f32 %v5346_v5, %v356_v15 }
 0x116   :  { %4928 = vset.pattern.permute.xlu1 %v5058_v0 }
 0x117   :  { %407 = vperm.xlu1 %4928, %v5234_v27   ;;  %v473_v38 = vadd.f32 %v441_v49, %v277_v28  ;;  %v4943_v27 = vld [vmem:[%s7063_s5 + $0x54] ss:$8 sps:$4 sm:$0xff]   ;;  %v4954_v49 = vld [vmem:[%s7063_s5 + $0x20] ss:$8 sps:$4 sm:$0xff]   ;;  %v4957_v28 = vld [vmem:[%s7063_s5 + $0x10] ss:$8 sps:$4 sm:$0xff]  }
 0x118   :  { %1222 = vmatprep.subr.bf16.mxu1 %v4943_v27 }
 0x119   :  { %v544_v42 = vpop.permute.xlu1 %543  ;;  %v669_v63 = vadd.f32 %v637_v31, %v473_v38  ;;  %1223 = vmatpush1.bf16.msra.mxu1 %v4945_v53 }
 0x11a   :  { %v635_v50 = vmul.f32 %v5353_v9, %v544_v42  ;;  %1224 = vmatprep.subr.bf16.mxu1 %v4946_v32  ;;  %v444_v42 = vmul.f32 %v5346_v5, %v368_v34 }
 0x11b   :  { %4929 = vset.pattern.permute.xlu1 %v5059_v1  ;;  %v708_v18 = vadd.f32 %v5380_v44, %v669_v63 }
 0x11c   :  { %v667_v36 = vadd.f32 %v635_v50, %v471_v47  ;;  %250 = vperm.xlu1 %4929, %v5289_v41  }
 0x11d   :  { %v548_v10 = vpop.permute.xlu1 %547  ;;  %1225 = vmatpush1.bf16.msra.mxu1 %v4948_v6  ;;  %v740_v26 = vmax.f32 %v708_v18, 0.0 }
 0x11e   :  { %v706_v11 = vadd.f32 %v5380_v44, %v667_v36  ;;  %v636_v43 = vmul.f32 %v5353_v9, %v548_v10  ;;  %1226 = vmatprep.subr.bf16.mxu1 %v4949_v22 }
 0x120   :  { %v738_v52 = vmax.f32 %v706_v11, 0.0  ;;  %v668_v19 = vadd.f32 %v636_v43, %v472_v12  ;;  %255 = vperm.xlu1 %4929, %v5308_v48  }
 0x121   :  { %1227 = vmatpush1.bf16.msra.mxu1 %v4951_v23 }
 0x122   :  { %v763_v30 = vpack.c.bf16 %v738_v52, %v737_v13  ;;  %v707_v20 = vadd.f32 %v5380_v44, %v668_v19  ;;  %v181_v21 = vpop.permute.xlu1 %180  ;;  %1228 = vmatprep.subr.bf16.mxu1 %v4952_v61  ;;  %v642_v61 = vmul.f32 %v5353_v9, %v5325_v57 }
 0x123   :  { %v278_v38 = vmul.f32 %v5349_v7, %v181_v21 }
 0x124   :  { %v739_v46 = vmax.f32 %v707_v20, 0.0  ;;  %4930 = vset.pattern.permute.xlu1 %v5058_v0  ;;  %4825 = vmatprep.mubr.msk.bf16.mxu0 %vm812_vm0, %v763_v30  ;;  %v279_v0 = vmul.f32 %v5349_v7, %v5422_v33  ;;  %v4960_v33 = vld [vmem:[%s7063_s5] ss:$8 sps:$4 sm:$0xff]  }
 0x125   :  { %419 = vperm.xlu1 %4930, %v5308_v48   ;;  %1229 = vmatpush1.bf16.msra.mxu1 %v4954_v49  ;;  %v4955_v48 = vld [vmem:[%s7063_s5 + $0x14] ss:$8 sps:$4 sm:$0xff]  }
 0x126   :  { %v764_v58 = vpack.c.bf16 %v740_v26, %v739_v46  ;;  %1230 = vmatprep.subr.bf16.mxu1 %v4955_v48  ;;  %v282_v46 = vmul.f32 %v5349_v7, %v5433_v24 }
 0x127   :  { %v360_v15 = vpop.permute.xlu1 %359 }
 0x128   :  { %4826 = vmatmul.mubr.msk.bf16.gmra.mxu0 %vm812_vm0, %v764_v58 }
 0x129   :  { %4932 = vset.pattern.permute.xlu1 %v5060_v8  ;;  %v639_v8 = vmul.f32 %v5353_v9, %v5322_v55  ;;  %1231 = vmatpush1.bf16.msra.mxu1 %v4957_v28  ;;  %v442_v55 = vmul.f32 %v5346_v5, %v360_v15 }
 0x12a   :  { %607 = vperm.xlu1 %4932, %v5282_v39   ;;  %v4958_v39 = vld [vmem:[%s7063_s5 + $0x4] ss:$8 sps:$4 sm:$0xff]  }
 0x12b   :  { %v364_v25 = vpop.permute.xlu1 %363  ;;  %1232 = vmatprep.subr.bf16.mxu1 %v4958_v39  ;;  %v474_v35 = vadd.f32 %v442_v55, %v278_v38 }
 0x12c   :  { %v443_v29 = vmul.f32 %v5346_v5, %v364_v25  ;;  %v380_v25 = vpop.permute.xlu0 %379 }
 0x12d   :  { %1233 = vmatpush1.bf16.msra.mxu1 %v4960_v33  ;;  %v645_v33 = vmul.f32 %v5353_v9, %v5329_v60 }
 0x12e   :  { %v475_v54 = vadd.f32 %v443_v29, %v279_v0  ;;  %611 = vperm.xlu1 %4932, %v5289_v41   ;;  %v280_v41 = vmul.f32 %v5349_v7, %v5429_v45 }
 0x130   :  { %v671_v51 = vadd.f32 %v639_v8, %v475_v54  ;;  %v196_v31 = vpop.permute.xlu1 %195  ;;  %v476_v53 = vadd.f32 %v444_v42, %v280_v41  ;;  %v447_v8 = vmul.f32 %v5346_v5, %v380_v25 }
 0x131   :  { %v281_v10 = vmul.f32 %v5349_v7, %v196_v31 }
 0x132   :  { %v710_v27 = vadd.f32 %v5380_v44, %v671_v51  ;;  %v384_v51 = vpop.permute.xlu0 %383 }
 0x133   :  { %v448_v31 = vmul.f32 %v5346_v5, %v384_v51 }
 0x134   :  { %v742_v45 = vmax.f32 %v710_v27, 0.0 }
 0x135   :  { %v372_v37 = vpop.permute.xlu1 %371 }
 0x136   :  { %v445_v63 = vmul.f32 %v5346_v5, %v372_v37 }
 0x138   :  { %v477_v43 = vadd.f32 %v445_v63, %v281_v10 }
 0x13a   :  { %v556_v47 = vpop.permute.xlu1 %555 }
 0x13b   :  { %v638_v50 = vmul.f32 %v5353_v9, %v556_v47 }
 0x13d   :  { %v670_v56 = vadd.f32 %v638_v50, %v474_v35 }
 0x13e   :  { %v564_v40 = vpop.permute.xlu1 %563 }
 0x13f   :  { %v709_v36 = vadd.f32 %v5380_v44, %v670_v56  ;;  %v640_v32 = vmul.f32 %v5353_v9, %v564_v40 }
 0x141   :  { %v741_v6 = vmax.f32 %v709_v36, 0.0  ;;  %v672_v12 = vadd.f32 %v640_v32, %v476_v53 }
 0x142   :  { %v568_v11 = vpop.permute.xlu1 %567 }
 0x143   :  { %v765_v13 = vpack.c.bf16 %v742_v45, %v741_v6  ;;  %v641_v18 = vmul.f32 %v5353_v9, %v568_v11  ;;  %v711_v52 = vadd.f32 %v5380_v44, %v672_v12 }
 0x145   :  { %v673_v19 = vadd.f32 %v641_v18, %v477_v43  ;;  %4829 = vmatprep.mubr.msk.bf16.mxu0 %vm812_vm0, %v765_v13  ;;  %v743_v21 = vmax.f32 %v711_v52, 0.0  ;;  %v287_v43 = vmul.f32 %v5349_v7, %v5441_v14  ;;  %v647_v18 = vmul.f32 %v5353_v9, %v5343_v4 }
 0x147   :  { %v712_v30 = vadd.f32 %v5380_v44, %v673_v19  ;;  %v206_v20 = vpop.permute.xlu1 %205 }
 0x148   :  { %v283_v54 = vmul.f32 %v5349_v7, %v206_v20 }
 0x149   :  { %v744_v22 = vmax.f32 %v712_v30, 0.0 }
 0x14a   :  { %v479_v37 = vadd.f32 %v447_v8, %v283_v54 }
 0x14b   :  { %v766_v23 = vpack.c.bf16 %v744_v22, %v743_v21  ;;  %v400_v22 = vpop.permute.xlu0 %399 }
 0x14c   :  { %v376_v26 = vpop.permute.xlu1 %375  ;;  %v452_v14 = vmul.f32 %v5346_v5, %v400_v22 }
 0x14d   :  { %v446_v58 = vmul.f32 %v5346_v5, %v376_v26  ;;  %4830 = vmatmul.mubr.msk.bf16.gmra.mxu0 %vm812_vm0, %v766_v23 }
 0x14f   :  { %v478_v15 = vadd.f32 %v446_v58, %v282_v46  ;;  %v288_v46 = vmul.f32 %v5349_v7, %v5444_v17 }
 0x151   :  { %v674_v49 = vadd.f32 %v642_v61, %v478_v15  ;;  %v211_v0 = vpop.permute.xlu1 %210 }
 0x152   :  { %v284_v34 = vmul.f32 %v5349_v7, %v211_v0  ;;  %v484_v0 = vadd.f32 %v452_v14, %v288_v46 }
 0x153   :  { %v713_v41 = vadd.f32 %v5380_v44, %v674_v49 }
 0x154   :  { %v480_v35 = vadd.f32 %v448_v31, %v284_v34 }
 0x155   :  { %v216_v48 = vpop.permute.xlu1 %215  ;;  %v745_v60 = vmax.f32 %v713_v41, 0.0 }
 0x156   :  { %v285_v24 = vmul.f32 %v5349_v7, %v216_v48 }
 0x15a   :  { %v388_v28 = vpop.permute.xlu1 %387 }
 0x15b   :  { %v449_v29 = vmul.f32 %v5346_v5, %v388_v28 }
 0x15d   :  { %v481_v39 = vadd.f32 %v449_v29, %v285_v24 }
 0x15f   :  { %v576_v57 = vpop.permute.xlu1 %575  ;;  %v677_v38 = vadd.f32 %v645_v33, %v481_v39 }
 0x160   :  { %v643_v55 = vmul.f32 %v5353_v9, %v576_v57 }
 0x161   :  { %v716_v56 = vadd.f32 %v5380_v44, %v677_v38 }
 0x162   :  { %v675_v42 = vadd.f32 %v643_v55, %v479_v37 }
 0x163   :  { %v580_v47 = vpop.permute.xlu1 %579  ;;  %v748_v45 = vmax.f32 %v716_v56, 0.0 }
 0x164   :  { %v714_v50 = vadd.f32 %v5380_v44, %v675_v42  ;;  %v644_v27 = vmul.f32 %v5353_v9, %v580_v47  ;;  %v412_v47 = vpop.permute.xlu0 %411 }
 0x166   :  { %v746_v53 = vmax.f32 %v714_v50, 0.0  ;;  %v676_v40 = vadd.f32 %v644_v27, %v480_v35 }
 0x168   :  { %v767_v63 = vpack.c.bf16 %v746_v53, %v745_v60  ;;  %v715_v36 = vadd.f32 %v5380_v44, %v676_v40  ;;  %v221_v32 = vpop.permute.xlu1 %220  ;;  %v416_v50 = vpop.permute.xlu0 %415  ;;  %v290_v53 = vmul.f32 %v5349_v7, %v5449_v16 }
 0x169   :  { %v286_v23 = vmul.f32 %v5349_v7, %v221_v32 }
 0x16a   :  { %v747_v10 = vmax.f32 %v715_v36, 0.0  ;;  %4833 = vmatprep.mubr.msk.bf16.mxu0 %vm812_vm0, %v767_v63 }
 0x16c   :  { %v768_v6 = vpack.c.bf16 %v748_v45, %v747_v10  ;;  %v604_v56 = vpop.permute.xlu0 %603 }
 0x16d   :  { %v392_v12 = vpop.permute.xlu1 %391  ;;  %v650_v63 = vmul.f32 %v5353_v9, %v604_v56 }
 0x16e   :  { %4834 = vmatmul.mubr.msk.bf16.gmra.mxu0 %vm812_vm0, %v768_v6  ;;  %v450_v21 = vmul.f32 %v5346_v5, %v392_v12  ;;  %v455_v12 = vmul.f32 %v5346_v5, %v412_v47 }
 0x170   :  { %v482_v58 = vadd.f32 %v450_v21, %v286_v23  ;;  %v616_v45 = vpop.permute.xlu0 %615 }
 0x171   :  { %v396_v11 = vpop.permute.xlu1 %395 }
 0x172   :  { %v451_v13 = vmul.f32 %v5346_v5, %v396_v11 }
 0x174   :  { %v483_v52 = vadd.f32 %v451_v13, %v287_v43  ;;  %v653_v13 = vmul.f32 %v5353_v9, %v616_v45 }
 0x176   :  { %v679_v19 = vadd.f32 %v647_v18, %v483_v52  ;;  %v236_v30 = vpop.permute.xlu1 %235 }
 0x177   :  { %v289_v8 = vmul.f32 %v5349_v7, %v236_v30 }
 0x178   :  { %v718_v4 = vadd.f32 %v5380_v44, %v679_v19 }
 0x17a   :  { %v750_v29 = vmax.f32 %v718_v4, 0.0 }
 0x17b   :  { %v404_v20 = vpop.permute.xlu1 %403 }
 0x17c   :  { %v453_v48 = vmul.f32 %v5346_v5, %v404_v20  ;;  %v456_v20 = vmul.f32 %v5346_v5, %v416_v50 }
 0x17e   :  { %v485_v39 = vadd.f32 %v453_v48, %v289_v8 }
 0x180   :  { %v588_v26 = vpop.permute.xlu1 %587 }
 0x181   :  { %v646_v61 = vmul.f32 %v5353_v9, %v588_v26 }
 0x183   :  { %v678_v15 = vadd.f32 %v646_v61, %v482_v58  ;;  %v5622_v61 = vld [vmem:[%s7062_s4] ss:$0 sm:$0xff] }
 0x184   :  { %v596_v49 = vpop.permute.xlu1 %595 }
 0x185   :  { %v717_v25 = vadd.f32 %v5380_v44, %v678_v15  ;;  %v648_v28 = vmul.f32 %v5353_v9, %v596_v49 }
 0x187   :  { %v749_v17 = vmax.f32 %v717_v25, 0.0  ;;  %v680_v54 = vadd.f32 %v648_v28, %v484_v0 }
 0x188   :  { %v600_v24 = vpop.permute.xlu1 %599 }
 0x189   :  { %v769_v33 = vpack.c.bf16 %v750_v29, %v749_v17  ;;  %v649_v51 = vmul.f32 %v5353_v9, %v600_v24  ;;  %v719_v57 = vadd.f32 %v5380_v44, %v680_v54 }
 0x18b   :  { %v681_v31 = vadd.f32 %v649_v51, %v485_v39  ;;  %4837 = vmatprep.mubr.msk.bf16.mxu0 %vm812_vm0, %v769_v33  ;;  %v751_v55 = vmax.f32 %v719_v57, 0.0 }
 0x18d   :  { %v720_v37 = vadd.f32 %v5380_v44, %v681_v31  ;;  %v246_v34 = vpop.permute.xlu1 %245 }
 0x18e   :  { %v291_v10 = vmul.f32 %v5349_v7, %v246_v34 }
 0x18f   :  { %v752_v41 = vmax.f32 %v720_v37, 0.0 }
 0x190   :  { %v487_v52 = vadd.f32 %v455_v12, %v291_v10 }
 0x191   :  { %v770_v38 = vpack.c.bf16 %v752_v41, %v751_v55 }
 0x192   :  { %v408_v42 = vpop.permute.xlu1 %407 }
 0x193   :  { %4838 = vmatmul.mubr.msk.bf16.gmra.mxu0 %vm812_vm0, %v770_v38  ;;  %v454_v60 = vmul.f32 %v5346_v5, %v408_v42 }
 0x195   :  { %v486_v40 = vadd.f32 %v454_v60, %v290_v53 }
 0x197   :  { %v251_v35 = vpop.permute.xlu1 %250  ;;  %v682_v11 = vadd.f32 %v650_v63, %v486_v40 }
 0x198   :  { %v292_v16 = vmul.f32 %v5349_v7, %v251_v35 }
 0x199   :  { %v721_v21 = vadd.f32 %v5380_v44, %v682_v11 }
 0x19a   :  { %v488_v14 = vadd.f32 %v456_v20, %v292_v16 }
 0x19b   :  { %v256_v27 = vpop.permute.xlu1 %255 }
 0x19c   :  { %v293_v6 = vmul.f32 %v5349_v7, %v256_v27 }
 0x1a0   :  { %v420_v36 = vpop.permute.xlu1 %419 }
 0x1a1   :  { %v457_v32 = vmul.f32 %v5346_v5, %v420_v36  ;;  %v753_v5 = vmax.f32 %v721_v21, 0.0 }
 0x1a3   :  { %v489_v43 = vadd.f32 %v457_v32, %v293_v6 }
 0x1a5   :  { %v608_v18 = vpop.permute.xlu1 %607  ;;  %v4815_v30 = vpop.f32.mrf.mxu0  ;;  %v685_v22 = vadd.f32 %v653_v13, %v489_v43 }
 0x1a6   :  { %v651_v19 = vmul.f32 %v5353_v9, %v608_v18  ;;  %v904_v28 = vadd.f32 %v4815_v30, %v5622_v61 }
 0x1a7   :  { %v895_v26 = vpop.f32.mrf.mxu0  ;;  %v724_v49 = vadd.f32 %v5380_v44, %v685_v22 }
 0x1a8   :  { %v683_v23 = vadd.f32 %v651_v19, %v487_v52  ;;  %v896_v15 = vadd.f32 %v5622_v61, %v895_v26  ;;  %v1024_v31 = vmax.f32 %v904_v28, 0.0  ;;  %v4963_v26 = vld [vmem:[%s7064_s6 + $0x74] ss:$8 sps:$4 sm:$0xff]  }
 0x1a9   :  { %v612_v46 = vpop.permute.xlu1 %611  ;;  %v4816_v4 = vpop.f32.mrf.mxu0  ;;  %v756_v33 = vmax.f32 %v724_v49, 0.0  ;;  %1527 = vmatprep.subr.bf16.mxu0 %v4963_v26  ;;  %v4969_v49 = vld [vmem:[%s7064_s6 + $0x54] ss:$8 sps:$4 sm:$0xff]  }
 0x1aa   :  { %v722_v58 = vadd.f32 %v5380_v44, %v683_v23  ;;  %v652_v7 = vmul.f32 %v5353_v9, %v612_v46  ;;  %v1022_v24 = vmax.f32 %v896_v15, 0.0  ;;  %v907_v9 = vadd.f32 %v4816_v4, %v5622_v61  ;;  %v4961_v23 = vld [vmem:[%s7064_s6 + $0x70] ss:$8 sps:$4 sm:$0xff]   ;;  %v4964_v15 = vld [vmem:[%s7064_s6 + $0x60] ss:$8 sps:$4 sm:$0xff]  }
 0x1ab   :  { %v898_v25 = vpop.f32.mrf.mxu0  ;;  %1528 = vmatpush1.bf16.msra.mxu0 %v4961_v23 }
 0x1ac   :  { %v754_v0 = vmax.f32 %v722_v58, 0.0  ;;  %v684_v48 = vadd.f32 %v652_v7, %v488_v14  ;;  %v899_v29 = vadd.f32 %v5622_v61, %v898_v25  ;;  %v1025_v42 = vmax.f32 %v907_v9, 0.0 }
 0x1ad   :  { %v4819_v54 = vpop.f32.mrf.mxu0 }
 0x1ae   :  { %v771_v8 = vpack.c.bf16 %v754_v0, %v753_v5  ;;  %v723_v17 = vadd.f32 %v5380_v44, %v684_v48  ;;  %v1023_v39 = vmax.f32 %v899_v29, 0.0  ;;  %v920_v35 = vadd.f32 %v4819_v54, %v5622_v61  ;;  %v4966_v5 = vld [vmem:[%s7064_s6 + $0x64] ss:$8 sps:$4 sm:$0xff]   ;;  %v4967_v48 = vld [vmem:[%s7064_s6 + $0x50] ss:$8 sps:$4 sm:$0xff]  }
 0x1af   :  { %v911_v57 = vpop.f32.mrf.mxu0  ;;  %v1107_v63 = vpack.c.bf16 %v1025_v42, %v1024_v31  ;;  %1529 = vmatprep.subr.bf16.mxu0 %v4966_v5  ;;  %v4970_v29 = vld [vmem:[%s7064_s6 + $0x40] ss:$8 sps:$4 sm:$0xff]  }
 0x1b0   :  { %v755_v51 = vmax.f32 %v723_v17, 0.0  ;;  %4841 = vmatprep.mubr.msk.bf16.mxu0 %vm812_vm0, %v771_v8  ;;  %v1054_v37 = vmax.f32 %v1022_v24, %v1023_v39  ;;  %v912_v34 = vadd.f32 %v5622_v61, %v911_v57  ;;  %v1106_v55 = vpack.c.bf16 %v1023_v39, %v1022_v24  ;;  %1530 = vmatpush1.bf16.msra.mxu0 %v4964_v15  ;;  %v4972_v8 = vld [vmem:[%s7064_s6 + $0x44] ss:$8 sps:$4 sm:$0xff]  }
 0x1b1   :  { %v4820_v38 = vpop.f32.mrf.mxu0  ;;  %v1028_v36 = vmax.f32 %v920_v35, 0.0  ;;  %1531 = vmatprep.subr.bf16.mxu0 %v4969_v49 }
 0x1b2   :  { %v772_v41 = vpack.c.bf16 %v756_v33, %v755_v51  ;;  %v1055_v47 = vmax.f32 %v1054_v37, %v1024_v31  ;;  %1251 = vmatmul.mubr.bf16.vlgmr.msra.gmra.mxu1 %v1106_v55  ;;  %v1026_v50 = vmax.f32 %v912_v34, 0.0  ;;  %v923_v53 = vadd.f32 %v4820_v38, %v5622_v61 }
 0x1b3   :  { %v914_v44 = vpop.f32.mrf.mxu0  ;;  %1260 = vmatprep.mubr.bf16.mxu1 %v5059_v1 }
 0x1b4   :  { %4842 = vmatmul.mubr.msk.bf16.gmra.mxu0 %vm812_vm0, %v772_v41  ;;  %v1056_v27 = vmax.f32 %v1055_v47, %v1025_v42  ;;  %v915_v60 = vadd.f32 %v5622_v61, %v914_v44  ;;  %v1029_v45 = vmax.f32 %v923_v53, 0.0 }
 0x1b5   :  { %1559 = vmatprep.mubr.bf16.mxu0 %v5059_v1  ;;  %1532 = vmatpush1.bf16.msra.mxu0 %v4967_v48 }
 0x1b6   :  { %v1057_v56 = vmax.f32 %v1056_v27, %v1026_v50  ;;  %v1027_v40 = vmax.f32 %v915_v60, 0.0  ;;  %v1109_v11 = vpack.c.bf16 %v1029_v45, %v1028_v36  ;;  %1533 = vmatprep.subr.bf16.mxu0 %v4972_v8 }
 0x1b8   :  { %v1058_v32 = vmax.f32 %v1057_v56, %v1027_v40  ;;  %v1108_v12 = vpack.c.bf16 %v1027_v40, %v1026_v50 }
 0x1b9   :  { %1534 = vmatpush1.bf16.msra.mxu0 %v4970_v29 }
 0x1ba   :  { %v1059_v10 = vmax.f32 %v1058_v32, %v1028_v36  ;;  %1261 = vmatmul.mubr.bf16.gmra.mxu1 %v1107_v63  ;;  %v4973_v63 = vld [vmem:[%s7064_s6 + $0x30] ss:$8 sps:$4 sm:$0xff]   ;;  %v4975_v36 = vld [vmem:[%s7064_s6 + $0x34] ss:$8 sps:$4 sm:$0xff]  }
 0x1bb   :  { %1270 = vmatprep.mubr.bf16.mxu1 %v5059_v1  ;;  %1535 = vmatprep.subr.bf16.mxu0 %v4975_v36 }
 0x1bc   :  { %v1060_v6 = vmax.f32 %v1059_v10, %v1029_v45 }
 0x1bd   :  { %1536 = vmatpush1.bf16.msra.mxu0 %v4973_v63 }
 0x1be   :  { %v1061_v54 = vrot.slane %v1060_v6, 4 }
 0x1c0   :  { %v1062_v51 = vmax.f32 %v1060_v6, %v1061_v54 }
 0x1c2   :  { %1271 = vmatmul.mubr.bf16.gmra.mxu1 %v1108_v12  ;;  %v1063_v41 = vrot.slane %v1062_v51, 2 }
 0x1c3   :  { %1280 = vmatprep.mubr.bf16.mxu1 %v5059_v1 }
 0x1c4   :  { %v1064_v50 = vmax.f32 %v1062_v51, %v1063_v41 }
 0x1c6   :  { %v1065_v56 = vrot.slane %v1064_v50, 1 }
 0x1c8   :  { %v1066_v45 = vmax.f32 %v1064_v50, %v1065_v56 }
 0x1ca   :  { %1281 = vmatmul.mubr.bf16.gmra.mxu1 %v1109_v11  ;;  %v1411_v12 = vpack.c.bf16 %v1066_v45, %v1066_v45 }
 0x1cb   :  { %1290 = vmatprep.mubr.bf16.mxu1 %v5059_v1 }
 0x1d2   :  { %v4823_v43 = vpop.f32.mrf.mxu0 }
 0x1d3   :  { %v936_v19 = vadd.f32 %v4823_v43, %v5622_v61 }
 0x1d4   :  { %v927_v13 = vpop.f32.mrf.mxu0 }
 0x1d5   :  { %v928_v52 = vadd.f32 %v5622_v61, %v927_v13  ;;  %v1032_v46 = vmax.f32 %v936_v19, 0.0  ;;  %v1435_v13 = vunpack.c.l.b16 %v1411_v12  ;;  %v4976_v19 = vld [vmem:[%s7064_s6 + $0x20] ss:$8 sps:$4 sm:$0xff]  }
 0x1d6   :  { %v4824_v18 = vpop.f32.mrf.mxu0 }
 0x1d7   :  { %v1030_v20 = vmax.f32 %v928_v52, 0.0  ;;  %v939_v21 = vadd.f32 %v4824_v18, %v5622_v61 }
 0x1d8   :  { %v930_v16 = vpop.f32.mrf.mxu0 }
 0x1d9   :  { %v931_v30 = vadd.f32 %v5622_v61, %v930_v16  ;;  %v1033_v7 = vmax.f32 %v939_v21, 0.0  ;;  %v4978_v16 = vld [vmem:[%s7064_s6 + $0x24] ss:$8 sps:$4 sm:$0xff]   ;;  %v4981_v21 = vld [vmem:[%s7064_s6 + $0x14] ss:$8 sps:$4 sm:$0xff]  }
 0x1da   :  { %1537 = vmatprep.subr.bf16.mxu0 %v4978_v16 }
 0x1db   :  { %v1031_v22 = vmax.f32 %v931_v30, 0.0  ;;  %v1111_v25 = vpack.c.bf16 %v1033_v7, %v1032_v46  ;;  %1538 = vmatpush1.bf16.msra.mxu0 %v4976_v19 }
 0x1dc   :  { %1539 = vmatprep.subr.bf16.mxu0 %v4981_v21 }
 0x1dd   :  { %v1067_v14 = vmax.f32 %v1030_v20, %v1031_v22  ;;  %v1110_v58 = vpack.c.bf16 %v1031_v22, %v1030_v20  ;;  %v4979_v22 = vld [vmem:[%s7064_s6 + $0x10] ss:$8 sps:$4 sm:$0xff]  }
 0x1df   :  { %v1068_v4 = vmax.f32 %v1067_v14, %v1032_v46  ;;  %1291 = vmatmul.mubr.bf16.gmra.mxu1 %v1110_v58  ;;  %1540 = vmatpush1.bf16.msra.mxu0 %v4979_v22  ;;  %v4982_v14 = vld [vmem:[%s7064_s6] ss:$8 sps:$4 sm:$0xff]   ;;  %v4984_v58 = vld [vmem:[%s7064_s6 + $0x4] ss:$8 sps:$4 sm:$0xff]  }
 0x1e0   :  { %1300 = vmatprep.mubr.bf16.mxu1 %v5059_v1  ;;  %1541 = vmatprep.subr.bf16.mxu0 %v4984_v58 }
 0x1e1   :  { %v1069_v0 = vmax.f32 %v1068_v4, %v1033_v7 }
 0x1e3   :  { %1542 = vmatpush1.bf16.msra.mxu0 %v4982_v14 }
 0x1e7   :  { %1301 = vmatmul.mubr.bf16.gmra.mxu1 %v1111_v25 }
 0x1e8   :  { %v4827_v28 = vpop.f32.mrf.mxu0  ;;  %1310 = vmatprep.mubr.bf16.mxu1 %v5059_v1 }
 0x1e9   :  { %v952_v57 = vadd.f32 %v4827_v28, %v5622_v61 }
 0x1ea   :  { %v943_v17 = vpop.f32.mrf.mxu0 }
 0x1eb   :  { %v944_v24 = vadd.f32 %v5622_v61, %v943_v17  ;;  %v1036_v38 = vmax.f32 %v952_v57, 0.0 }
 0x1ec   :  { %v4828_v9 = vpop.f32.mrf.mxu0 }
 0x1ed   :  { %v1034_v39 = vmax.f32 %v944_v24, 0.0  ;;  %v955_v34 = vadd.f32 %v4828_v9, %v5622_v61 }
 0x1ee   :  { %v946_v33 = vpop.f32.mrf.mxu0 }
 0x1ef   :  { %v1070_v31 = vmax.f32 %v1069_v0, %v1034_v39  ;;  %v947_v37 = vadd.f32 %v5622_v61, %v946_v33  ;;  %v1037_v44 = vmax.f32 %v955_v34, 0.0 }
 0x1f1   :  { %v1035_v55 = vmax.f32 %v947_v37, 0.0  ;;  %v1113_v53 = vpack.c.bf16 %v1037_v44, %v1036_v38 }
 0x1f3   :  { %v1071_v42 = vmax.f32 %v1070_v31, %v1035_v55  ;;  %v1112_v47 = vpack.c.bf16 %v1035_v55, %v1034_v39 }
 0x1f5   :  { %v1072_v35 = vmax.f32 %v1071_v42, %v1036_v38  ;;  %1311 = vmatmul.mubr.bf16.gmra.mxu1 %v1112_v47 }
 0x1f6   :  { %1320 = vmatprep.mubr.bf16.mxu1 %v5059_v1 }
 0x1f7   :  { %v1073_v27 = vmax.f32 %v1072_v35, %v1037_v44 }
 0x1f9   :  { %v1074_v60 = vrot.slane %v1073_v27, 4 }
 0x1fb   :  { %v1075_v40 = vmax.f32 %v1073_v27, %v1074_v60 }
 0x1fd   :  { %v1076_v32 = vrot.slane %v1075_v40, 2  ;;  %1321 = vmatmul.mubr.bf16.gmra.mxu1 %v1113_v53 }
 0x1fe   :  { %1330 = vmatprep.mubr.bf16.mxu1 %v5059_v1 }
 0x1ff   :  { %v1077_v10 = vmax.f32 %v1075_v40, %v1076_v32 }
 0x201   :  { %v1078_v6 = vrot.slane %v1077_v10, 1 }
 0x203   :  { %v1079_v11 = vmax.f32 %v1077_v10, %v1078_v6 }
 0x205   :  { %v1412_v43 = vpack.c.bf16 %v1079_v11, %v1079_v11 }
 0x207   :  { %v1436_v18 = vunpack.c.l.b16 %v1412_v43 }
 0x209   :  { %v5685_v52 = vsel %vm1439_vm1, %v1436_v18, %v1435_v13 }
 0x20d   :  { %v4831_v30 = vpop.f32.mrf.mxu0 }
 0x20e   :  { %v968_v7 = vadd.f32 %v4831_v30, %v5622_v61 }
 0x20f   :  { %v959_v20 = vpop.f32.mrf.mxu0 }
 0x210   :  { %v960_v26 = vadd.f32 %v5622_v61, %v959_v20  ;;  %v1040_v0 = vmax.f32 %v968_v7, 0.0 }
 0x211   :  { %v4832_v23 = vpop.f32.mrf.mxu0 }
 0x212   :  { %v1038_v15 = vmax.f32 %v960_v26, 0.0  ;;  %v971_v5 = vadd.f32 %v4832_v23, %v5622_v61 }
 0x213   :  { %v962_v46 = vpop.f32.mrf.mxu0 }
 0x214   :  { %v963_v4 = vadd.f32 %v5622_v61, %v962_v46  ;;  %v1041_v28 = vmax.f32 %v971_v5, 0.0 }
 0x216   :  { %v1039_v49 = vmax.f32 %v963_v4, 0.0  ;;  %v1115_v17 = vpack.c.bf16 %v1041_v28, %v1040_v0 }
 0x218   :  { %v1080_v48 = vmax.f32 %v1038_v15, %v1039_v49  ;;  %v1114_v25 = vpack.c.bf16 %v1039_v49, %v1038_v15 }
 0x21a   :  { %v1081_v29 = vmax.f32 %v1080_v48, %v1040_v0  ;;  %1331 = vmatmul.mubr.bf16.gmra.mxu1 %v1114_v25 }
 0x21b   :  { %1340 = vmatprep.mubr.bf16.mxu1 %v5059_v1 }
 0x21c   :  { %v1082_v8 = vmax.f32 %v1081_v29, %v1041_v28 }
 0x222   :  { %1341 = vmatmul.mubr.bf16.gmra.mxu1 %v1115_v17 }
 0x223   :  { %1350 = vmatprep.mubr.bf16.mxu1 %v5059_v1 }
 0x22e   :  { %v4835_v54 = vpop.f32.mrf.mxu0 }
 0x22f   :  { %v984_v57 = vadd.f32 %v4835_v54, %v5622_v61 }
 0x230   :  { %v975_v24 = vpop.f32.mrf.mxu0 }
 0x231   :  { %v976_v9 = vadd.f32 %v5622_v61, %v975_v24  ;;  %v1044_v41 = vmax.f32 %v984_v57, 0.0  ;;  %v1928_v57 = vld [vmem:[#allocation5 + $0x1c8] sm:$0xff] }
 0x232   :  { %v4836_v39 = vpop.f32.mrf.mxu0 }
 0x233   :  { %v1042_v33 = vmax.f32 %v976_v9, 0.0  ;;  %v987_v34 = vadd.f32 %v4836_v39, %v5622_v61 }
 0x234   :  { %v978_v51 = vpop.f32.mrf.mxu0 }
 0x235   :  { %v1083_v31 = vmax.f32 %v1082_v8, %v1042_v33  ;;  %v979_v37 = vadd.f32 %v5622_v61, %v978_v51  ;;  %v1045_v47 = vmax.f32 %v987_v34, 0.0 }
 0x237   :  { %v1043_v55 = vmax.f32 %v979_v37, 0.0  ;;  %v1117_v27 = vpack.c.bf16 %v1045_v47, %v1044_v41 }
 0x239   :  { %v1084_v38 = vmax.f32 %v1083_v31, %v1043_v55  ;;  %v1116_v42 = vpack.c.bf16 %v1043_v55, %v1042_v33  ;;  %v1932_v31 = vld [vmem:[#allocation5 + $0x1e8] sm:$0xff] }
 0x23a   :  { %v4691_v37 = vcombine.low %v1928_v57, %v1932_v31  ;;  %v4692_v34 = vcombine.high %v1928_v57, %v1932_v31  ;;  %v1891_v57 = vld [vmem:[#allocation5 + $0xa0] sm:$0xff] }
 0x23b   :  { %v1085_v44 = vmax.f32 %v1084_v38, %v1044_v41  ;;  %1351 = vmatmul.mubr.bf16.gmra.mxu1 %v1116_v42  ;;  %v1924_v41 = vld [vmem:[#allocation5 + $0x1a8] sm:$0xff] }
 0x23c   :  { %1360 = vmatprep.mubr.bf16.mxu1 %v5059_v1  ;;  %v1912_v38 = vld [vmem:[#allocation5 + $0x148] sm:$0xff]  ;;  %2874 = vmatprep.subr.bf16.mxu1 %v4692_v34 }
 0x23d   :  { %v1086_v35 = vmax.f32 %v1085_v44, %v1045_v47  ;;  %v1916_v47 = vld [vmem:[#allocation5 + $0x168] sm:$0xff]  ;;  %2875 = vmatpush1.bf16.msra.mxu1 %v4691_v37 }
 0x23f   :  { %v1087_v50 = vrot.slane %v1086_v35, 4 }
 0x241   :  { %v1088_v60 = vmax.f32 %v1086_v35, %v1087_v50 }
 0x243   :  { %v1089_v56 = vrot.slane %v1088_v60, 2  ;;  %1361 = vmatmul.mubr.bf16.gmra.mxu1 %v1117_v27  ;;  %v1904_v27 = vld [vmem:[#allocation5 + $0x108] sm:$0xff] }
 0x244   :  { %1370 = vmatprep.mubr.bf16.mxu1 %v5059_v1 }
 0x245   :  { %v1090_v53 = vmax.f32 %v1088_v60, %v1089_v56  ;;  %v1908_v60 = vld [vmem:[#allocation5 + $0x128] sm:$0xff] }
 0x247   :  { %v1091_v40 = vrot.slane %v1090_v53, 1 }
 0x249   :  { %v1092_v63 = vmax.f32 %v1090_v53, %v1091_v40  ;;  %v4675_v53 = vcombine.low %v1912_v38, %v1916_v47  ;;  %v4668_v40 = vcombine.high %v1904_v27, %v1908_v60 }
 0x24b   :  { %v1413_v36 = vpack.c.bf16 %v1092_v63, %v1092_v63 }
 0x24d   :  { %v1437_v32 = vunpack.c.l.b16 %v1413_v36 }
 0x24f   :  { %v5719_v45 = vsel %vm1441_vm2, %v1437_v32, %v5685_v52  ;;  %v4667_v32 = vcombine.low %v1904_v27, %v1908_v60 }
 0x253   :  { %v4839_v10 = vpop.f32.mrf.mxu0 }
 0x254   :  { %v1000_v20 = vadd.f32 %v4839_v10, %v5622_v61 }
 0x255   :  { %v991_v6 = vpop.f32.mrf.mxu0 }
 0x256   :  { %v992_v11 = vadd.f32 %v5622_v61, %v991_v6  ;;  %v1048_v21 = vmax.f32 %v1000_v20, 0.0  ;;  %v1919_v20 = vld [vmem:[#allocation5 + $0x180] sm:$0xff] }
 0x257   :  { %v4840_v12 = vpop.f32.mrf.mxu0 }
 0x258   :  { %v1046_v18 = vmax.f32 %v992_v11, 0.0  ;;  %v1003_v19 = vadd.f32 %v4840_v12, %v5622_v61  ;;  %v1896_v12 = vld [vmem:[#allocation5 + $0xc8] sm:$0xff] }
 0x259   :  { %v994_v43 = vpop.f32.mrf.mxu0  ;;  %v1900_v11 = vld [vmem:[#allocation5 + $0xe8] sm:$0xff] }
 0x25a   :  { %v995_v13 = vadd.f32 %v5622_v61, %v994_v43  ;;  %v1049_v52 = vmax.f32 %v1003_v19, 0.0  ;;  %v4659_v43 = vcombine.low %v1896_v12, %v1900_v11 }
 0x25c   :  { %v1047_v16 = vmax.f32 %v995_v13, 0.0  ;;  %v1119_v22 = vpack.c.bf16 %v1049_v52, %v1048_v21  ;;  %v4660_v13 = vcombine.high %v1896_v12, %v1900_v11  ;;  %v1988_v11 = vld [vmem:[#allocation5 + $0x3a8] sm:$0xff] }
 0x25e   :  { %v1118_v30 = vpack.c.bf16 %v1047_v16, %v1046_v18  ;;  %v1093_v23 = vmax.f32 %v1046_v18, %v1047_v16  ;;  %v1927_v18 = vld [vmem:[#allocation5 + $0x1c0] sm:$0xff] }
 0x25f   :  { %v1931_v16 = vld [vmem:[#allocation5 + $0x1e0] sm:$0xff] }
 0x260   :  { %1371 = vmatmul.mubr.bf16.gmra.mxu1 %v1118_v30  ;;  %v1094_v14 = vmax.f32 %v1093_v23, %v1048_v21  ;;  %v4689_v19 = vcombine.low %v1927_v18, %v1931_v16  ;;  %v4690_v30 = vcombine.high %v1927_v18, %v1931_v16  ;;  %v1888_v21 = vld [vmem:[#allocation5 + $0x88] sm:$0xff] }
 0x261   :  { %1380 = vmatprep.mubr.bf16.mxu1 %v5059_v1  ;;  %v1892_v23 = vld [vmem:[#allocation5 + $0xa8] sm:$0xff] }
 0x262   :  { %v1095_v49 = vmax.f32 %v1094_v14, %v1049_v52  ;;  %2681 = vmatprep.subr.bf16.mxu0 %v4690_v30  ;;  %v1923_v52 = vld [vmem:[#allocation5 + $0x1a0] sm:$0xff]  ;;  %v4651_v14 = vcombine.low %v1888_v21, %v1892_v23  ;;  %v1976_v30 = vld [vmem:[#allocation5 + $0x348] sm:$0xff] }
 0x268   :  { %1381 = vmatmul.mubr.bf16.gmra.mxu1 %v1119_v22  ;;  %v4681_v22 = vcombine.low %v1919_v20, %v1923_v52 }
 0x269   :  { %1390 = vmatprep.mubr.bf16.mxu1 %v5059_v1 }
 0x274   :  { %v4843_v26 = vpop.f32.mrf.mxu0 }
 0x275   :  { %v1016_v5 = vadd.f32 %v4843_v26, %v5622_v61  ;;  %v1911_v26 = vld [vmem:[#allocation5 + $0x140] sm:$0xff] }
 0x276   :  { %v1007_v46 = vpop.f32.mrf.mxu0 }
 0x277   :  { %v1008_v58 = vadd.f32 %v5622_v61, %v1007_v46  ;;  %v1052_v29 = vmax.f32 %v1016_v5, 0.0  ;;  %v1915_v46 = vld [vmem:[#allocation5 + $0x160] sm:$0xff]  ;;  %v1880_v5 = vld [vmem:[#allocation5 + $0x48] sm:$0xff] }
 0x278   :  { %v4844_v7 = vpop.f32.mrf.mxu0 }
 0x279   :  { %v1050_v4 = vmax.f32 %v1008_v58, 0.0  ;;  %v1019_v25 = vadd.f32 %v4844_v7, %v5622_v61  ;;  %v4652_v58 = vcombine.high %v1888_v21, %v1892_v23  ;;  %v4674_v7 = vcombine.high %v1911_v26, %v1915_v46 }
 0x27a   :  { %v1010_v15 = vpop.f32.mrf.mxu0 }
 0x27b   :  { %v1011_v0 = vadd.f32 %v5622_v61, %v1010_v15  ;;  %v1096_v48 = vmax.f32 %v1095_v49, %v1050_v4  ;;  %v1053_v54 = vmax.f32 %v1019_v25, 0.0  ;;  %v1920_v61 = vld [vmem:[#allocation5 + $0x188] sm:$0xff]  ;;  %v1907_v15 = vld [vmem:[#allocation5 + $0x120] sm:$0xff] }
 0x27c   :  { %v4684_v42 = vcombine.high %v1920_v61, %v1924_v41  ;;  %v4683_v35 = vcombine.low %v1920_v61, %v1924_v41  ;;  %v1884_v49 = vld [vmem:[#allocation5 + $0x68] sm:$0xff]  ;;  %v1883_v61 = vld [vmem:[#allocation5 + $0x60] sm:$0xff] }
 0x27d   :  { %v1051_v28 = vmax.f32 %v1011_v0, 0.0  ;;  %v1121_v33 = vpack.c.bf16 %v1053_v54, %v1052_v29  ;;  %v4673_v0 = vcombine.low %v1911_v26, %v1915_v46  ;;  %v1872_v25 = vld [vmem:[#allocation5 + $0x8] sm:$0xff] }
 0x27e   :  { %2876 = vmatprep.subr.bf16.mxu1 %v4684_v42  ;;  %v1871_v42 = vld [vmem:[#allocation5] sm:$0xff] }
 0x27f   :  { %v1097_v8 = vmax.f32 %v1096_v48, %v1051_v28  ;;  %v1120_v17 = vpack.c.bf16 %v1051_v28, %v1050_v4  ;;  %2877 = vmatpush1.bf16.msra.mxu1 %v4683_v35  ;;  %v1903_v4 = vld [vmem:[#allocation5 + $0x100] sm:$0xff]  ;;  %v4644_v48 = vcombine.high %v1880_v5, %v1884_v49 }
 0x280   :  { %v4666_v28 = vcombine.high %v1903_v4, %v1907_v15 }
 0x281   :  { %v1098_v24 = vmax.f32 %v1097_v8, %v1052_v29  ;;  %1391 = vmatmul.mubr.bf16.gmra.mxu1 %v1120_v17  ;;  %v4643_v29 = vcombine.low %v1880_v5, %v1884_v49  ;;  %v1876_v8 = vld [vmem:[#allocation5 + $0x28] sm:$0xff]  ;;  %v1895_v17 = vld [vmem:[#allocation5 + $0xc0] sm:$0xff] }
 0x282   :  { %1400 = vmatprep.mubr.bf16.mxu1 %v5059_v1  ;;  %v4676_v1 = vcombine.high %v1912_v38, %v1916_v47  ;;  %v1875_v47 = vld [vmem:[#allocation5 + $0x20] sm:$0xff]  ;;  %v1960_v49 = vld [vmem:[#allocation5 + $0x2c8] sm:$0xff] }
 0x283   :  { %v1099_v9 = vmax.f32 %v1098_v24, %v1053_v54  ;;  %v1899_v54 = vld [vmem:[#allocation5 + $0xe0] sm:$0xff]  ;;  %v4636_v24 = vcombine.high %v1872_v25, %v1876_v8  ;;  %v4634_v35 = vcombine.high %v1871_v42, %v1875_v47 }
 0x284   :  { %2878 = vmatprep.subr.bf16.mxu1 %v4676_v1  ;;  %v4657_v31 = vcombine.low %v1895_v17, %v1899_v54  ;;  %v1992_v1 = vld [vmem:[#allocation5 + $0x3c8] sm:$0xff]  ;;  %v1963_v5 = vld [vmem:[#allocation5 + $0x2e0] sm:$0xff] }
 0x285   :  { %v1100_v39 = vrot.slane %v1099_v9, 4  ;;  %2879 = vmatpush1.bf16.msra.mxu1 %v4675_v53  ;;  %v1995_v53 = vld [vmem:[#allocation5 + $0x3e0] sm:$0xff] }
 0x286   :  { %2880 = vmatprep.subr.bf16.mxu1 %v4668_v40 }
 0x287   :  { %v1101_v51 = vmax.f32 %v1099_v9, %v1100_v39  ;;  %v4665_v9 = vcombine.low %v1903_v4, %v1907_v15  ;;  %v4658_v39 = vcombine.high %v1895_v17, %v1899_v54  ;;  %v1959_v15 = vld [vmem:[#allocation5 + $0x2c0] sm:$0xff]  ;;  %v1952_v54 = vld [vmem:[#allocation5 + $0x288] sm:$0xff] }
 0x288   :  { %v1955_v17 = vld [vmem:[#allocation5 + $0x2a0] sm:$0xff] }
 0x289   :  { %v1102_v55 = vrot.slane %v1101_v51, 2  ;;  %1401 = vmatmul.mubr.bf16.gmra.mxu1 %v1121_v33  ;;  %v4635_v33 = vcombine.low %v1872_v25, %v1876_v8  ;;  %v4721_v25 = vcombine.low %v1959_v15, %v1963_v5  ;;  %v1951_v8 = vld [vmem:[#allocation5 + $0x280] sm:$0xff] }
 0x28a   :  { %2881 = vmatpush1.bf16.msra.mxu1 %v4667_v32  ;;  %v1987_v32 = vld [vmem:[#allocation5 + $0x3a0] sm:$0xff] }
 0x28b   :  { %v1103_v44 = vmax.f32 %v1101_v51, %v1102_v55  ;;  %2882 = vmatprep.subr.bf16.mxu1 %v4660_v13  ;;  %v1887_v51 = vld [vmem:[#allocation5 + $0x80] sm:$0xff] }
 0x28c   :  { %v4650_v37 = vcombine.high %v1887_v51, %v1891_v57  ;;  %v4649_v34 = vcombine.low %v1887_v51, %v1891_v57  ;;  %v1879_v55 = vld [vmem:[#allocation5 + $0x40] sm:$0xff] }
 0x28d   :  { %v1104_v50 = vrot.slane %v1103_v44, 1  ;;  %v4641_v41 = vcombine.low %v1879_v55, %v1883_v61  ;;  %v4642_v38 = vcombine.high %v1879_v55, %v1883_v61  ;;  %v1979_v13 = vld [vmem:[#allocation5 + $0x360] sm:$0xff] }
 0x28e   :  { %2883 = vmatpush1.bf16.msra.mxu1 %v4659_v43  ;;  %v1975_v43 = vld [vmem:[#allocation5 + $0x340] sm:$0xff] }
 0x28f   :  { %v1105_v56 = vmax.f32 %v1103_v44, %v1104_v50  ;;  %2884 = vmatprep.subr.bf16.mxu1 %v4652_v58  ;;  %v4633_v44 = vcombine.low %v1871_v42, %v1875_v47  ;;  %v1996_v50 = vld [vmem:[#allocation5 + $0x3e8] sm:$0xff] }
 0x290   :  { %v4755_v27 = vcombine.low %v1992_v1, %v1996_v50  ;;  %v4756_v60 = vcombine.high %v1992_v1, %v1996_v50  ;;  %v1972_v58 = vld [vmem:[#allocation5 + $0x328] sm:$0xff] }
 0x291   :  { %v1414_v63 = vpack.c.bf16 %v1105_v56, %v1105_v56  ;;  %v1991_v56 = vld [vmem:[#allocation5 + $0x3c0] sm:$0xff]  ;;  %v1936_v1 = vld [vmem:[#allocation5 + $0x208] sm:$0xff] }
 0x292   :  { %2885 = vmatpush1.bf16.msra.mxu1 %v4651_v14  ;;  %v4753_v40 = vcombine.low %v1991_v56, %v1995_v53  ;;  %v1968_v14 = vld [vmem:[#allocation5 + $0x308] sm:$0xff] }
 0x293   :  { %v1438_v36 = vunpack.c.l.b16 %v1414_v63  ;;  %2886 = vmatprep.subr.bf16.mxu1 %v4644_v48  ;;  %v4754_v63 = vcombine.high %v1991_v56, %v1995_v53  ;;  %v4731_v4 = vcombine.low %v1968_v14, %v1972_v58  ;;  %v1964_v48 = vld [vmem:[#allocation5 + $0x2e8] sm:$0xff] }
 0x295   :  { %v1444_v10 = vsel %vm1443_vm3, %v1438_v36, %v5719_v45  ;;  %v4682_v45 = vcombine.high %v1919_v20, %v1923_v52  ;;  %v1983_v36 = vld [vmem:[#allocation5 + $0x380] sm:$0xff]  ;;  %v1980_v20 = vld [vmem:[#allocation5 + $0x368] sm:$0xff] }
 0x296   :  { %v1445_v6 = vpack.c.b16 %v1444_v10, %v1444_v10  ;;  %2887 = vmatpush1.bf16.msra.mxu1 %v4643_v29  ;;  %v1984_v10 = vld [vmem:[#allocation5 + $0x388] sm:$0xff]  ;;  %v4746_v12 = vcombine.high %v1983_v36, %v1987_v32  ;;  %v1967_v52 = vld [vmem:[#allocation5 + $0x300] sm:$0xff]  ;;  %v4740_v21 = vcombine.high %v1976_v30, %v1980_v20  ;;  %v4739_v23 = vcombine.low %v1976_v30, %v1980_v20  ;;  %v1934_v30 = vld [vmem:[#allocation5 + $0x1f8] sm:$0xff] }
 0x297   :  { %2888 = vmatprep.subr.bf16.mxu1 %v4636_v24  ;;  %v4747_v18 = vcombine.low %v1984_v10, %v1988_v11  ;;  %v4748_v16 = vcombine.high %v1984_v10, %v1988_v11  ;;  %v4724_v29 = vcombine.high %v1960_v49, %v1964_v48  ;;  %v5734_v24 = vpop.f32.mrf.mxu1 }
 0x298   :  { %1560 = vmatmul.mubr.bf16.vlgmr.msra.gmra.mxu0 %v1445_v6  ;;  %v4745_v6 = vcombine.low %v1983_v36, %v1987_v32  ;;  %v5740_v36 = vld [vmem:[#allocation5 + $0x1d0] sm:$0xff] }
 0x299   :  { %2682 = vmatpush1.bf16.msra.mxu0 %v4689_v19  ;;  %v4738_v19 = vcombine.high %v1975_v43, %v1979_v13  ;;  %v5736_v55 = vpop.f32.mrf.mxu1  ;;  %v5742_v32 = vld [vmem:[#allocation5 + $0x1f0] sm:$0xff] }
 0x29a   :  { %2683 = vmatprep.subr.bf16.mxu0 %v4682_v45  ;;  %2889 = vmatpush1.bf16.msra.mxu1 %v4635_v33  ;;  %v4737_v45 = vcombine.low %v1975_v43, %v1979_v13  ;;  %v4713_v33 = vcombine.low %v1951_v8, %v1955_v17 }
 0x29b   :  { %2890 = vmatprep.subr.bf16.mxu1 %v4756_v60  ;;  %v1940_v60 = vld [vmem:[#allocation5 + $0x228] sm:$0xff]  ;;  %v5738_v56 = vpop.f32.mrf.mxu1 }
 0x29c   :  { %v4699_v53 = vcombine.low %v1936_v1, %v1940_v60 }
 0x29d   :  { %2684 = vmatpush1.bf16.msra.mxu0 %v4681_v22  ;;  %v1971_v22 = vld [vmem:[#allocation5 + $0x320] sm:$0xff] }
 0x29e   :  { %2685 = vmatprep.subr.bf16.mxu0 %v4674_v7  ;;  %2891 = vmatpush2.bf16.msra.mxu1 %v4755_v27  ;;  %v4730_v26 = vcombine.high %v1967_v52, %v1971_v22  ;;  %v4729_v46 = vcombine.low %v1967_v52, %v1971_v22  ;;  %v4732_v7 = vcombine.high %v1968_v14, %v1972_v58 }
 0x29f   :  { %2892 = vmatprep.subr.bf16.mxu1 %v4748_v16 }
 0x2a1   :  { %2686 = vmatpush1.bf16.msra.mxu0 %v4673_v0  ;;  %v4722_v0 = vcombine.high %v1959_v15, %v1963_v5 }
 0x2a2   :  { %2687 = vmatprep.subr.bf16.mxu0 %v4666_v28  ;;  %2893 = vmatpush2.bf16.msra.mxu1 %v4747_v18  ;;  %v4723_v28 = vcombine.low %v1960_v49, %v1964_v48 }
 0x2a3   :  { %2894 = vmatprep.subr.bf16.mxu1 %v4740_v21 }
 0x2a5   :  { %2688 = vmatpush1.bf16.msra.mxu0 %v4665_v9  ;;  %v4714_v9 = vcombine.high %v1951_v8, %v1955_v17 }
 0x2a6   :  { %2689 = vmatprep.subr.bf16.mxu0 %v4658_v39  ;;  %2895 = vmatpush2.bf16.msra.mxu1 %v4739_v23  ;;  %v1956_v39 = vld [vmem:[#allocation5 + $0x2a8] sm:$0xff] }
 0x2a7   :  { %2896 = vmatprep.subr.bf16.mxu1 %v4732_v7  ;;  %v4715_v51 = vcombine.low %v1952_v54, %v1956_v39  ;;  %v4716_v57 = vcombine.high %v1952_v54, %v1956_v39  ;;  %v5061_v54 = vmov 1966171168  }
 0x2a9   :  { %2690 = vmatpush1.bf16.msra.mxu0 %v4657_v31  ;;  %v1943_v31 = vld [vmem:[#allocation5 + $0x240] sm:$0xff] }
 0x2aa   :  { %2691 = vmatprep.subr.bf16.mxu0 %v4650_v37  ;;  %2897 = vmatpush2.bf16.msra.mxu1 %v4731_v4  ;;  %v1947_v37 = vld [vmem:[#allocation5 + $0x260] sm:$0xff] }
 0x2ab   :  { %2898 = vmatprep.subr.bf16.mxu1 %v4724_v29  ;;  %v4706_v61 = vcombine.high %v1943_v31, %v1947_v37 }
 0x2ad   :  { %2692 = vmatpush1.bf16.msra.mxu0 %v4649_v34  ;;  %v1944_v34 = vld [vmem:[#allocation5 + $0x248] sm:$0xff] }
 0x2ae   :  { %2693 = vmatprep.subr.bf16.mxu0 %v4642_v38  ;;  %2899 = vmatpush2.bf16.msra.mxu1 %v4723_v28  ;;  %v4705_v38 = vcombine.low %v1943_v31, %v1947_v37 }
 0x2af   :  { %2900 = vmatprep.subr.bf16.mxu1 %v4716_v57 }
 0x2b1   :  { %2694 = vmatpush1.bf16.msra.mxu0 %v4641_v41  ;;  %v1948_v41 = vld [vmem:[#allocation5 + $0x268] sm:$0xff] }
 0x2b2   :  { %2695 = vmatprep.subr.bf16.mxu0 %v4634_v35  ;;  %2901 = vmatpush2.bf16.msra.mxu1 %v4715_v51  ;;  %v4707_v42 = vcombine.low %v1944_v34, %v1948_v41  ;;  %v4708_v47 = vcombine.high %v1944_v34, %v1948_v41  ;;  %v1939_v35 = vld [vmem:[#allocation5 + $0x220] sm:$0xff] }
 0x2b4   :  { %2902 = vmatprep.subr.bf16.mxu1 %v4708_v47 }
 0x2b5   :  { %2696 = vmatpush1.bf16.msra.mxu0 %v4633_v44  ;;  %v1935_v44 = vld [vmem:[#allocation5 + $0x200] sm:$0xff] }
 0x2b6   :  { %2697 = vmatprep.subr.bf16.mxu0 %v4754_v63  ;;  %v4697_v50 = vcombine.low %v1935_v44, %v1939_v35  ;;  %v4698_v27 = vcombine.high %v1935_v44, %v1939_v35  ;;  %2903 = vmatpush2.bf16.msra.mxu1 %v4707_v42  ;;  %v1258_v63 = vpop.f32.mrf.mxu1  ;;  %v1699_v35 = vld [vmem:[%s7065_s7] sm:$0x3] }
 0x2b9   :  { %2698 = vmatpush2.bf16.msra.mxu0 %v4753_v40  ;;  %v4700_v40 = vcombine.high %v1936_v1, %v1940_v60  ;;  %v5826_v60 = vrot.slane %v1699_v35, %v5332_v62 }
 0x2ba   :  { %2699 = vmatprep.subr.bf16.mxu0 %v4746_v12  ;;  %v5748_v12 = vpop.f32.mrf.mxu1 }
 0x2bb   :  { %2904 = vmatprep.subr.bf16.mxu1 %v4700_v40 }
 0x2bc   :  { %2905 = vmatpush2.bf16.msra.mxu1 %v4699_v53  ;;  %v1264_v11 = vpop.f32.mrf.mxu1  ;;  %v5829_v53 = vrot.slane %v1699_v35, %v5339_v2 }
 0x2bd   :  { %2700 = vmatpush2.bf16.msra.mxu0 %v4745_v6  ;;  %v4694_v6 = vcombine.high %v5740_v36, %v5742_v32 }
 0x2be   :  { %2701 = vmatprep.subr.bf16.mxu0 %v4738_v19  ;;  %v5750_v43 = vpop.f32.mrf.mxu1  ;;  %v1930_v19 = vld [vmem:[#allocation5 + $0x1d8] sm:$0xff] }
 0x2bf   :  { %v5758_v52 = vcombine.low %v1930_v19, %v1934_v30  ;;  %v5760_v21 = vcombine.high %v1930_v19, %v1934_v30 }
 0x2c0   :  { %v1268_v13 = vpop.f32.mrf.mxu1 }
 0x2c1   :  { %2702 = vmatpush2.bf16.msra.mxu0 %v4737_v45  ;;  %7106 = vst [vmem:[#allocation12_spill] sm:$0xff] %v5758_v52  ;;  %4845 = vmatprep.subr.bf16.mxu1 %v5760_v21 }
 0x2c2   :  { %2703 = vmatprep.subr.bf16.mxu0 %v4730_v26  ;;  %v5752_v18 = vpop.f32.mrf.mxu1 }
 0x2c4   :  { %v5754_v16 = vpop.f32.mrf.mxu1 }
 0x2c5   :  { %2704 = vmatpush2.bf16.msra.mxu0 %v4729_v46 }
 0x2c6   :  { %2705 = vmatprep.subr.bf16.mxu0 %v4722_v0  ;;  %v5756_v20 = vpop.f32.mrf.mxu1 }
 0x2c8   :  { %v5763_v22 = vpop.f32.mrf.mxu1 }
 0x2c9   :  { %2706 = vmatpush2.bf16.msra.mxu0 %v4721_v25 }
 0x2ca   :  { %2707 = vmatprep.subr.bf16.mxu0 %v4714_v9  ;;  %v5765_v45 = vpop.f32.mrf.mxu1  ;;  %v1572_v9 = vunpack.c.l.s4 %v5061_v54 }
 0x2cc   :  { %v5767_v23 = vpop.f32.mrf.mxu1 }
 0x2cd   :  { %2708 = vmatpush2.bf16.msra.mxu0 %v4713_v33  ;;  %v1573_v33 = vunpack.c.0.s8 %v1572_v9 }
 0x2ce   :  { %2709 = vmatprep.subr.bf16.mxu0 %v4706_v61  ;;  %v5769_v26 = vpop.f32.mrf.mxu1 }
 0x2cf   :  { %v1576_v37 = vsub.s32 %v1573_v33, %v5327_v59 }
 0x2d0   :  { %v5771_v46 = vpop.f32.mrf.mxu1 }
 0x2d1   :  { %2710 = vmatpush2.bf16.msra.mxu0 %v4705_v38 }
 0x2d2   :  { %2711 = vmatprep.subr.bf16.mxu0 %v4698_v27  ;;  %v5773_v14 = vpop.f32.mrf.mxu1 }
 0x2d4   :  { %v5775_v58 = vpop.f32.mrf.mxu1 }
 0x2d5   :  { %2712 = vmatpush2.bf16.msra.mxu0 %v4697_v50 }
 0x2d6   :  { %3067 = vmatprep.subr.bf16.mxu0 %v4694_v6  ;;  %v5777_v7 = vpop.f32.mrf.mxu1 }
 0x2d8   :  { %v5779_v4 = vpop.f32.mrf.mxu1 }
 0x2da   :  { %v5781_v15 = vpop.f32.mrf.mxu1 }
 0x2dc   :  { %v5783_v5 = vpop.f32.mrf.mxu1 }
 0x2de   :  { %v5785_v49 = vpop.f32.mrf.mxu1 }
 0x2e0   :  { %v5787_v0 = vpop.f32.mrf.mxu1 }
 0x2e2   :  { %v5789_v48 = vpop.f32.mrf.mxu1 }
 0x2e4   :  { %v5791_v25 = vpop.f32.mrf.mxu1 }
 0x2e6   :  { %v5793_v28 = vpop.f32.mrf.mxu1 }
 0x2e8   :  { %v5795_v29 = vpop.f32.mrf.mxu1 }
 0x2ea   :  { %v5797_v8 = vpop.f32.mrf.mxu1 }
 0x2ec   :  { %v5799_v17 = vpop.f32.mrf.mxu1 }
 0x2ee   :  { %v5801_v39 = vpop.f32.mrf.mxu1 }
 0x2f0   :  { %v5803_v51 = vpop.f32.mrf.mxu1 }
 0x2f2   :  { %v5805_v31 = vpop.f32.mrf.mxu1 }
 0x2f4   :  { %v5808_v38 = vpop.f32.mrf.mxu1 }
 0x2f6   :  { %v5815_v1 = vpop.f32.mrf.mxu1 }
 0x2f8   :  { %v5836_v30 = vpop.f32.mrf.mxu1 }
 0x358   :  { %v1561_v57 = vpop.f32.mrf.mxu0 }
 0x35a   :  { %v1563_v34 = vpop.f32.mrf.mxu0 }
 0x35b   :  { %v1570_v61 = vcombine.low %v1561_v57, %v1563_v34 }
 0x35c   :  { %v1565_v41 = vpop.f32.mrf.mxu0 }
 0x35d   :  { %v1577_v42 = vrot.slane %v1570_v61, %v1576_v37 }
 0x35e   :  { %v1566_v47 = vpop.f32.mrf.mxu0 }
 0x35f   :  { %v5810_v44 = vrot.slane %v1577_v42, %v1576_v37 }
 0x361   :  { %v5819_v50 = vrot.slane %v5810_v44, %v5339_v2  ;;  %v5823_v27 = vrot.slane %v5810_v44, %v5332_v62 }
 0x363   :  { %v1636_v40 = vadd.f32 %v5823_v27, %v5736_v55  ;;  %v1638_v6 = vadd.f32 %v5823_v27, %v1258_v63  ;;  %v1635_v19 = vadd.f32 %v5819_v50, %v5734_v24  ;;  %v1637_v54 = vadd.f32 %v5819_v50, %v5738_v56 }
 0x364   :  { %v1640_v9 = vadd.f32 %v5823_v27, %v1264_v11  ;;  %v1642_v55 = vadd.f32 %v5823_v27, %v1268_v13  ;;  %v1639_v24 = vadd.f32 %v5819_v50, %v5748_v12  ;;  %v1641_v56 = vadd.f32 %v5819_v50, %v5750_v43 }
 0x365   :  { %v1712_v33 = vadd.f32 %v5826_v60, %v1636_v40  ;;  %v1714_v57 = vadd.f32 %v5826_v60, %v1638_v6  ;;  %v1711_v34 = vadd.f32 %v5829_v53, %v1635_v19  ;;  %v1713_v63 = vadd.f32 %v5829_v53, %v1637_v54  ;;  %v1921_v40 = vld [vmem:[#allocation5 + $0x190] sm:$0xff]  ;;  %v5852_v19 = vpop.f32.mrf.mxu1 }
 0x366   :  { %v1716_v61 = vadd.f32 %v5826_v60, %v1640_v9  ;;  %v1718_v35 = vadd.f32 %v5826_v60, %v1642_v55  ;;  %v1925_v6 = vld [vmem:[#allocation5 + $0x1b0] sm:$0xff]  ;;  %v1578_v13 = vcombine.high %v1577_v42, %v1577_v42  ;;  %v1644_v12 = vadd.f32 %v5823_v27, %v5754_v16 }
 0x367   :  { %v1776_v41 = vmax.f32 %v1712_v33, 0.0  ;;  %v1778_v11 = vmax.f32 %v1714_v57, 0.0  ;;  %v1775_v47 = vmax.f32 %v1711_v34, 0.0  ;;  %v1777_v3 = vmax.f32 %v1713_v63, 0.0  ;;  %v1922_v33 = vld [vmem:[#allocation5 + $0x198] sm:$0xff]  ;;  %v5864_v63 = vld [vmem:[#allocation5 + $0x150] sm:$0xff] }
 0x368   :  { %v1780_v54 = vmax.f32 %v1716_v61, 0.0  ;;  %v1782_v9 = vmax.f32 %v1718_v35, 0.0  ;;  %v1646_v43 = vadd.f32 %v5823_v27, %v5763_v22  ;;  %v1926_v57 = vld [vmem:[#allocation5 + $0x1b8] sm:$0xff]  ;;  %v4686_v55 = vcombine.high %v1921_v40, %v1925_v6  ;;  %v1917_v61 = vld [vmem:[#allocation5 + $0x170] sm:$0xff] }
 0x369   :  { %v5854_v10 = vpack.c.bf16 %v1778_v11, %v1776_v41  ;;  %v5860_v34 = vpack.c.bf16 %v1777_v3, %v1775_v47  ;;  %v1715_v59 = vadd.f32 %v5829_v53, %v1639_v24  ;;  %v1717_v42 = vadd.f32 %v5829_v53, %v1641_v56  ;;  %v5872_v3 = vpop.f32.mrf.mxu1 }
 0x36a   :  { %v5868_v16 = vpack.c.bf16 %v1782_v9, %v1780_v54  ;;  %v1720_v22 = vadd.f32 %v5826_v60, %v1644_v12  ;;  %v1722_v41 = vadd.f32 %v5826_v60, %v1646_v43  ;;  %v4685_v24 = vcombine.low %v1921_v40, %v1925_v6  ;;  %v5892_v6 = vld [vmem:[#allocation5 + $0x110] sm:$0xff] }
 0x36b   :  { %2713 = vmatprep.mubr.bf16.mxu0 %v5854_v10  ;;  %2906 = vmatprep.mubr.bf16.mxu1 %v5854_v10  ;;  %v5876_v56 = vcombine.high %v1922_v33, %v1926_v57  ;;  %v5878_v11 = vrot.slane %v1578_v13, %v1576_v37  ;;  %v7108_v47 = vcombine.low %v5740_v36, %v5742_v32  ;;  %v1779_v9 = vmax.f32 %v1715_v59, 0.0  ;;  %v5894_v36 = vld [vmem:[#allocation5 + $0x130] sm:$0xff]  ;;  %v1914_v59 = vld [vmem:[#allocation5 + $0x158] sm:$0xff] }
 0x36c   :  { %2714 = vmatmul.mubr.bf16.vlgmr.msra.gmra.mxu0 %v5860_v34  ;;  %2907 = vmatmul.mubr.bf16.vlgmr.msra.gmra.mxu1 %v5860_v34  ;;  %v4678_v35 = vcombine.high %v5864_v63, %v1917_v61  ;;  %v5885_v54 = vcombine.low %v1922_v33, %v1926_v57  ;;  %v1781_v12 = vmax.f32 %v1717_v42, 0.0  ;;  %v1643_v40 = vadd.f32 %v5819_v50, %v5752_v18  ;;  %v1918_v57 = vld [vmem:[#allocation5 + $0x178] sm:$0xff]  ;;  %v5901_v18 = vpop.f32.mrf.mxu1  ;;  %v5907_v42 = vld [vmem:[#allocation5 + $0xd0] sm:$0xff] }
 0x36d   :  { %7107 = vst [vmem:[#allocation13_spill] sm:$0xff] %v5876_v56  ;;  %3068 = vmatpush1.bf16.msra.mxu0 %v7108_v47  ;;  %2723 = vmatprep.mubr.bf16.mxu0 %v5868_v16  ;;  %v1645_v37 = vadd.f32 %v5819_v50, %v5756_v20  ;;  %v1784_v32 = vmax.f32 %v1720_v22, 0.0  ;;  %v1786_v13 = vmax.f32 %v1722_v41, 0.0  ;;  %v1648_v43 = vadd.f32 %v5823_v27, %v5767_v23  ;;  %v5913_v22 = vld [vmem:[#allocation5 + $0xf0] sm:$0xff]  ;;  %v1906_v47 = vld [vmem:[#allocation5 + $0x118] sm:$0xff] }
 0x36e   :  { %7109 = vst [vmem:[#allocation14_spill] sm:$0xff] %v5885_v54  ;;  %2916 = vmatprep.mubr.bf16.mxu1 %v5868_v16  ;;  %3069 = vmatprep.subr.bf16.mxu0 %v4686_v55  ;;  %v1650_v33 = vadd.f32 %v5823_v27, %v5771_v46  ;;  %v4677_v20 = vcombine.low %v5864_v63, %v1917_v61 }
 0x36f   :  { %4861 = vmatpush1.bf16.msra.mxu1 %v5758_v52  ;;  %v4670_v55 = vcombine.high %v5892_v6, %v5894_v36  ;;  %v5909_v23 = vpack.c.bf16 %v1781_v12, %v1779_v9  ;;  %v1719_v46 = vadd.f32 %v5829_v53, %v1643_v40  ;;  %v1721_v27 = vadd.f32 %v5829_v53, %v1645_v37  ;;  %v5926_v12 = vpop.f32.mrf.mxu1 }
 0x370   :  { %4846 = vmatprep.subr.bf16.mxu1 %v5876_v56  ;;  %v5915_v41 = vcombine.high %v1914_v59, %v1918_v57  ;;  %v5919_v63 = vrot.slane %v5878_v11, %v5332_v62  ;;  %v5921_v61 = vpack.c.bf16 %v1786_v13, %v1784_v32  ;;  %v1724_v9 = vadd.f32 %v5826_v60, %v1648_v43  ;;  %v5946_v56 = vld [vmem:[#allocation5 + $0x90] sm:$0xff] }
 0x371   :  { %3070 = vmatpush1.bf16.msra.mxu0 %v4685_v24  ;;  %7110 = vst [vmem:[#allocation15_spill] sm:$0xff] %v5909_v23  ;;  %v1910_v24 = vld [vmem:[#allocation5 + $0x138] sm:$0xff]  ;;  %v5930_v40 = vcombine.low %v1914_v59, %v1918_v57  ;;  %v4669_v37 = vcombine.low %v5892_v6, %v5894_v36  ;;  %v4662_v32 = vcombine.high %v5907_v42, %v5913_v22  ;;  %v5940_v43 = vpop.f32.mrf.mxu1 }
 0x372   :  { %3071 = vmatprep.subr.bf16.mxu0 %v4678_v35  ;;  %7111 = vst [vmem:[#allocation16_spill] sm:$0xff] %v5915_v41  ;;  %7112 = vst [vmem:[#allocation17_spill] sm:$0xff] %v5921_v61  ;;  %v1726_v35 = vadd.f32 %v5826_v60, %v1650_v33  ;;  %v5938_v13 = vcombine.high %v1906_v47, %v1910_v24  ;;  %v1783_v33 = vmax.f32 %v1719_v46, 0.0  ;;  %v1788_v6 = vmax.f32 %v1724_v9, 0.0 }
 0x373   :  { %4862 = vmatpush1.bf16.msra.mxu1 %v5885_v54  ;;  %7113 = vst [vmem:[#allocation18_spill] sm:$0xff] %v5930_v40  ;;  %v1785_v54 = vmax.f32 %v1721_v27, 0.0  ;;  %v1647_v59 = vadd.f32 %v5819_v50, %v5765_v45  ;;  %v1649_v57 = vadd.f32 %v5819_v50, %v5769_v26  ;;  %v1652_v52 = vadd.f32 %v5919_v63, %v5775_v58  ;;  %v1898_v45 = vld [vmem:[#allocation5 + $0xd8] sm:$0xff]  ;;  %v5960_v27 = vld [vmem:[#allocation5 + $0x50] sm:$0xff]  ;;  %v5965_v58 = vpop.f32.mrf.mxu1 }
 0x374   :  { %2724 = vmatmul.mubr.bf16.gmra.mxu0 %v5909_v23  ;;  %2917 = vmatmul.mubr.bf16.gmra.mxu1 %v5909_v23  ;;  %7114 = vst [vmem:[#allocation19_spill] sm:$0xff] %v5938_v13  ;;  %v1790_v36 = vmax.f32 %v1726_v35, 0.0  ;;  %v1654_v46 = vadd.f32 %v5919_v63, %v5779_v4  ;;  %v4661_v26 = vcombine.low %v5907_v42, %v5913_v22  ;;  %v5975_v22 = vld [vmem:[#allocation5 + $0x70] sm:$0xff] }
 0x375   :  { %2733 = vmatprep.mubr.bf16.mxu0 %v5921_v61  ;;  %2926 = vmatprep.mubr.bf16.mxu1 %v5921_v61  ;;  %v5948_v61 = vld [vmem:[#allocation5 + $0xb0] sm:$0xff]  ;;  %v5969_v4 = vrot.slane %v5878_v11, %v5339_v2  ;;  %v5971_v9 = vpack.c.bf16 %v1785_v54, %v1783_v33  ;;  %v1723_v35 = vadd.f32 %v5829_v53, %v1647_v59  ;;  %v5997_v59 = vpop.f32.mrf.mxu1 }
 0x376   :  { %3072 = vmatpush1.bf16.msra.mxu0 %v4677_v20  ;;  %4847 = vmatprep.subr.bf16.mxu1 %v5915_v41  ;;  %v1902_v20 = vld [vmem:[#allocation5 + $0xf8] sm:$0xff]  ;;  %v4654_v50 = vcombine.high %v5946_v56, %v5948_v61  ;;  %v1725_v42 = vadd.f32 %v5829_v53, %v1649_v57  ;;  %v1730_v41 = vadd.f32 %v5826_v60, %v1654_v46 }
 0x377   :  { %3073 = vmatprep.subr.bf16.mxu0 %v4670_v55  ;;  %4863 = vmatpush1.bf16.msra.mxu1 %v5930_v40  ;;  %v5962_v55 = vcombine.low %v1906_v47, %v1910_v24  ;;  %7116 = vst [vmem:[#allocation21_spill] sm:$0xff] %v5971_v9  ;;  %v1890_v40 = vld [vmem:[#allocation5 + $0x98] sm:$0xff]  ;;  %v5977_v24 = vpack.c.bf16 %v1790_v36, %v1788_v6  ;;  %v1787_v57 = vmax.f32 %v1723_v35, 0.0  ;;  %v6004_v36 = vld [vmem:[#allocation5 + $0x30] sm:$0xff] }
 0x378   :  { %4848 = vmatprep.subr.bf16.mxu1 %v5938_v13  ;;  %v1894_v47 = vld [vmem:[#allocation5 + $0xb8] sm:$0xff]  ;;  %v1728_v13 = vadd.f32 %v5826_v60, %v1652_v52  ;;  %v5981_v23 = vcombine.high %v1898_v45, %v1902_v20  ;;  %v4653_v54 = vcombine.low %v5946_v56, %v5948_v61  ;;  %v5991_v52 = vld [vmem:[#allocation5 + $0x10] sm:$0xff]  ;;  %v5993_v33 = vcombine.low %v1898_v45, %v1902_v20 }
 0x379   :  { %7115 = vst [vmem:[#allocation20_spill] sm:$0xff] %v5962_v55  ;;  %7117 = vst [vmem:[#allocation22_spill] sm:$0xff] %v5977_v24  ;;  %v1789_v6 = vmax.f32 %v1725_v42, 0.0  ;;  %v1651_v56 = vadd.f32 %v5969_v4, %v5773_v14  ;;  %v1653_v61 = vadd.f32 %v5969_v4, %v5777_v7  ;;  %v1882_v46 = vld [vmem:[#allocation5 + $0x58] sm:$0xff]  ;;  %v1658_v35 = vadd.f32 %v5919_v63, %v5787_v0 }
 0x37a   :  { %3074 = vmatpush1.bf16.msra.mxu0 %v4669_v37  ;;  %7118 = vst [vmem:[#allocation23_spill] sm:$0xff] %v5981_v23  ;;  %v4646_v37 = vcombine.high %v5960_v27, %v5975_v22  ;;  %7119 = vst [vmem:[#allocation24_spill] sm:$0xff] %v5993_v33  ;;  %v1886_v45 = vld [vmem:[#allocation5 + $0x78] sm:$0xff]  ;;  %v1792_v20 = vmax.f32 %v1728_v13, 0.0  ;;  %v4645_v14 = vcombine.low %v5960_v27, %v5975_v22  ;;  %v6021_v13 = vpop.f32.mrf.mxu1  ;;  %v6028_v27 = vld [vmem:[#allocation5 + $0x3f0] sm:$0xff] }
 0x37b   :  { %3075 = vmatprep.subr.bf16.mxu0 %v4662_v32  ;;  %v5995_v32 = vcombine.high %v1890_v40, %v1894_v47  ;;  %4864 = vmatpush1.bf16.msra.mxu1 %v5962_v55  ;;  %v4638_v7 = vcombine.high %v5991_v52, %v6004_v36  ;;  %v6017_v42 = vcombine.low %v1890_v40, %v1894_v47  ;;  %v1874_v22 = vld [vmem:[#allocation5 + $0x18] sm:$0xff] }
 0x37c   :  { %2734 = vmatmul.mubr.bf16.gmra.mxu0 %v5971_v9  ;;  %2927 = vmatmul.mubr.bf16.gmra.mxu1 %v5971_v9  ;;  %v1656_v9 = vadd.f32 %v5919_v63, %v5783_v5  ;;  %v6023_v5 = vpack.c.bf16 %v1789_v6, %v1787_v57  ;;  %v1727_v0 = vadd.f32 %v5829_v53, %v1651_v56  ;;  %v6049_v6 = vpop.f32.mrf.mxu1 }
 0x37d   :  { %2743 = vmatprep.mubr.bf16.mxu0 %v5977_v24  ;;  %2936 = vmatprep.mubr.bf16.mxu1 %v5977_v24  ;;  %7120 = vst [vmem:[#allocation25_spill] sm:$0xff] %v5995_v32  ;;  %v1794_v24 = vmax.f32 %v1730_v41, 0.0  ;;  %7121 = vst [vmem:[#allocation26_spill] sm:$0xff] %v6017_v42  ;;  %v6019_v41 = vcombine.high %v1882_v46, %v1886_v45  ;;  %v1734_v47 = vadd.f32 %v5826_v60, %v1658_v35  ;;  %v1994_v35 = vld [vmem:[#allocation5 + $0x3d8] sm:$0xff] }
 0x37e   :  { %3076 = vmatpush1.bf16.msra.mxu0 %v4661_v26  ;;  %4849 = vmatprep.subr.bf16.mxu1 %v5981_v23  ;;  %v6015_v26 = vld [vmem:[#allocation5 + $0x3d0] sm:$0xff]  ;;  %v1878_v23 = vld [vmem:[#allocation5 + $0x38] sm:$0xff]  ;;  %v1732_v40 = vadd.f32 %v5826_v60, %v1656_v9  ;;  %v6045_v57 = vcombine.low %v1882_v46, %v1886_v45  ;;  %v1791_v56 = vmax.f32 %v1727_v0, 0.0  ;;  %v1662_v0 = vadd.f32 %v5919_v63, %v5795_v29 }
 0x37f   :  { %3077 = vmatprep.subr.bf16.mxu0 %v4654_v50  ;;  %7122 = vst [vmem:[#allocation27_spill] sm:$0xff] %v6019_v41  ;;  %v1729_v50 = vadd.f32 %v5829_v53, %v1653_v61  ;;  %4865 = vmatpush1.bf16.msra.mxu1 %v5993_v33  ;;  %v6030_v55 = vpack.c.bf16 %v1794_v24, %v1792_v20  ;;  %v6043_v9 = vld [vmem:[#allocation5 + $0x390] sm:$0xff]  ;;  %v1998_v46 = vld [vmem:[#allocation5 + $0x3f8] sm:$0xff] }
 0x380   :  { %4850 = vmatprep.subr.bf16.mxu1 %v5995_v32  ;;  %v4758_v24 = vcombine.high %v6015_v26, %v6028_v27  ;;  %7123 = vst [vmem:[#allocation28_spill] sm:$0xff] %v6045_v57  ;;  %v6056_v20 = vld [vmem:[#allocation5 + $0x3b0] sm:$0xff]  ;;  %v1796_v45 = vmax.f32 %v1732_v40, 0.0  ;;  %v1798_v32 = vmax.f32 %v1734_v47, 0.0  ;;  %v1660_v33 = vadd.f32 %v5919_v63, %v5791_v25  ;;  %v6075_v25 = vpop.f32.mrf.mxu1 }
 0x381   :  { %v1793_v61 = vmax.f32 %v1729_v50, 0.0  ;;  %v6069_v50 = vld [vmem:[#allocation5 + $0x370] sm:$0xff]  ;;  %v6071_v40 = vcombine.low %v1874_v22, %v1878_v23  ;;  %v6073_v47 = vcombine.high %v1994_v35, %v1998_v46 }
 0x382   :  { %3078 = vmatpush1.bf16.msra.mxu0 %v4653_v54  ;;  %v4637_v54 = vcombine.low %v5991_v52, %v6004_v36  ;;  %v1655_v52 = vadd.f32 %v5969_v4, %v5781_v15  ;;  %v1657_v36 = vadd.f32 %v5969_v4, %v5785_v49  ;;  %v4757_v15 = vcombine.low %v6015_v26, %v6028_v27  ;;  %v1986_v26 = vld [vmem:[#allocation5 + $0x398] sm:$0xff] }
 0x383   :  { %3079 = vmatprep.subr.bf16.mxu0 %v4646_v37  ;;  %v6047_v37 = vcombine.high %v1874_v22, %v1878_v23  ;;  %4866 = vmatpush1.bf16.msra.mxu1 %v6017_v42  ;;  %v4750_v49 = vcombine.high %v6043_v9, %v6056_v20  ;;  %7125 = vst [vmem:[#allocation30_spill] sm:$0xff] %v6071_v40  ;;  %7126 = vst [vmem:[#allocation31_spill] sm:$0xff] %v6073_v47  ;;  %v1990_v27 = vld [vmem:[#allocation5 + $0x3b8] sm:$0xff] }
 0x384   :  { %2744 = vmatmul.mubr.bf16.gmra.mxu0 %v6023_v5  ;;  %2937 = vmatmul.mubr.bf16.gmra.mxu1 %v6023_v5  ;;  %v6077_v29 = vpack.c.bf16 %v1793_v61, %v1791_v56  ;;  %v6082_v42 = vpack.c.bf16 %v1798_v32, %v1796_v45  ;;  %v1736_v23 = vadd.f32 %v5826_v60, %v1660_v33  ;;  %v6099_v33 = vld [vmem:[#allocation5 + $0x310] sm:$0xff] }
 0x385   :  { %2753 = vmatprep.mubr.bf16.mxu0 %v6030_v55  ;;  %2946 = vmatprep.mubr.bf16.mxu1 %v6030_v55  ;;  %7124 = vst [vmem:[#allocation29_spill] sm:$0xff] %v6047_v37  ;;  %v1738_v22 = vadd.f32 %v5826_v60, %v1662_v0  ;;  %v6095_v32 = vcombine.high %v5810_v44, %v5810_v44  ;;  %v6112_v45 = vld [vmem:[#allocation5 + $0x330] sm:$0xff]  ;;  %v1978_v0 = vld [vmem:[#allocation5 + $0x358] sm:$0xff] }
 0x386   :  { %3080 = vmatpush1.bf16.msra.mxu0 %v4645_v14  ;;  %4851 = vmatprep.subr.bf16.mxu1 %v6019_v41  ;;  %v6067_v14 = vld [vmem:[#allocation5 + $0x350] sm:$0xff]  ;;  %v1733_v41 = vadd.f32 %v5829_v53, %v1657_v36  ;;  %v6103_v61 = vcombine.high %v1986_v26, %v1990_v27  ;;  %v1661_v44 = vadd.f32 %v5969_v4, %v5793_v28 }
 0x387   :  { %3081 = vmatprep.subr.bf16.mxu0 %v4638_v7  ;;  %v1731_v7 = vadd.f32 %v5829_v53, %v1655_v52  ;;  %4867 = vmatpush1.bf16.msra.mxu1 %v6045_v57  ;;  %v4742_v56 = vcombine.high %v6067_v14, %v6069_v50  ;;  %v6105_v52 = vpop.f32.mrf.mxu1  ;;  %v1664_v57 = vadd.f32 %v5919_v63, %v5799_v17 }
 0x388   :  { %4852 = vmatprep.subr.bf16.mxu1 %v6047_v37  ;;  %7128 = vst [vmem:[#allocation33_spill] sm:$0xff] %v6103_v61  ;;  %v1797_v36 = vmax.f32 %v1733_v41, 0.0  ;;  %v1802_v37 = vmax.f32 %v1738_v22, 0.0  ;;  %v1666_v41 = vadd.f32 %v5919_v63, %v5803_v51  ;;  %v6123_v28 = vrot.slane %v6095_v32, %v5332_v62  ;;  %v1970_v22 = vld [vmem:[#allocation5 + $0x318] sm:$0xff] }
 0x389   :  { %v6133_v51 = vpop.f32.mrf.mxu1 }
 0x38a   :  { %3082 = vmatpush1.bf16.msra.mxu0 %v4637_v54  ;;  %v4749_v54 = vcombine.low %v6043_v9, %v6056_v20  ;;  %v1795_v9 = vmax.f32 %v1731_v7, 0.0  ;;  %v1659_v20 = vadd.f32 %v5969_v4, %v5789_v48  ;;  %v4741_v48 = vcombine.low %v6067_v14, %v6069_v50  ;;  %v6127_v7 = vld [vmem:[#allocation5 + $0x2d0] sm:$0xff] }
 0x38b   :  { %3083 = vmatprep.subr.bf16.mxu0 %v4758_v24  ;;  %v6101_v24 = vcombine.low %v1994_v35, %v1998_v46  ;;  %4868 = vmatpush1.bf16.msra.mxu1 %v6071_v40  ;;  %v1982_v35 = vld [vmem:[#allocation5 + $0x378] sm:$0xff]  ;;  %v1800_v46 = vmax.f32 %v1736_v23, 0.0  ;;  %v6129_v23 = vcombine.low %v1986_v26, %v1990_v27  ;;  %v1737_v14 = vadd.f32 %v5829_v53, %v1661_v44  ;;  %v6140_v50 = vld [vmem:[#allocation5 + $0x2f0] sm:$0xff] }
 0x38c   :  { %2754 = vmatmul.mubr.bf16.gmra.mxu0 %v6077_v29  ;;  %2947 = vmatmul.mubr.bf16.gmra.mxu1 %v6077_v29  ;;  %v6131_v17 = vcombine.high %v1978_v0, %v1982_v35  ;;  %v6135_v63 = vpack.c.bf16 %v1797_v36, %v1795_v9  ;;  %v1740_v26 = vadd.f32 %v5826_v60, %v1664_v57  ;;  %v6147_v9 = vpop.f32.mrf.mxu1 }
 0x38d   :  { %2763 = vmatprep.mubr.bf16.mxu0 %v6082_v42  ;;  %2956 = vmatprep.mubr.bf16.mxu1 %v6082_v42  ;;  %7127 = vst [vmem:[#allocation32_spill] sm:$0xff] %v6101_v24  ;;  %v6142_v40 = vpack.c.bf16 %v1802_v37, %v1800_v46  ;;  %v1742_v27 = vadd.f32 %v5826_v60, %v1666_v41  ;;  %v6157_v37 = vld [vmem:[#allocation5 + $0x290] sm:$0xff]  ;;  %v1801_v44 = vmax.f32 %v1737_v14, 0.0  ;;  %v1962_v41 = vld [vmem:[#allocation5 + $0x2d8] sm:$0xff] }
 0x38e   :  { %3084 = vmatpush2.bf16.msra.mxu0 %v4757_v15  ;;  %4853 = vmatprep.subr.bf16.mxu1 %v6073_v47  ;;  %v4734_v15 = vcombine.high %v6099_v33, %v6112_v45  ;;  %v1974_v47 = vld [vmem:[#allocation5 + $0x338] sm:$0xff]  ;;  %v4726_v57 = vcombine.high %v6127_v7, %v6140_v50  ;;  %v1663_v46 = vadd.f32 %v5969_v4, %v5797_v8  ;;  %v6173_v8 = vpop.f32.mrf.mxu1 }
 0x38f   :  { %3085 = vmatprep.subr.bf16.mxu0 %v4750_v49  ;;  %v1735_v49 = vadd.f32 %v5829_v53, %v1659_v20  ;;  %4869 = vmatpush2.bf16.msra.mxu1 %v6101_v24  ;;  %7129 = vst [vmem:[#allocation34_spill] sm:$0xff] %v6142_v40  ;;  %v6161_v36 = vcombine.high %v1970_v22, %v1974_v47  ;;  %v1804_v24 = vmax.f32 %v1740_v26, 0.0 }
 0x390   :  { %4854 = vmatprep.subr.bf16.mxu1 %v6103_v61  ;;  %v1966_v61 = vld [vmem:[#allocation5 + $0x2f8] sm:$0xff] }
 0x391   :  { %7130 = vst [vmem:[#allocation35_spill] sm:$0xff] %v6161_v36  ;;  %v1799_v20 = vmax.f32 %v1735_v49, 0.0  ;;  %v6182_v49 = vcombine.low %v1970_v22, %v1974_v47  ;;  %v6196_v22 = vpop.f32.mrf.mxu1 }
 0x392   :  { %3086 = vmatpush2.bf16.msra.mxu0 %v4749_v54  ;;  %v4733_v54 = vcombine.low %v6099_v33, %v6112_v45  ;;  %v1665_v33 = vadd.f32 %v5969_v4, %v5801_v39  ;;  %v1957_v45 = vld [vmem:[#allocation5 + $0x2b0] sm:$0xff]  ;;  %v4725_v39 = vcombine.low %v6127_v7, %v6140_v50  ;;  %v6179_v4 = vrot.slane %v6095_v32, %v5339_v2 }
 0x393   :  { %3087 = vmatprep.subr.bf16.mxu0 %v4742_v56  ;;  %v6159_v56 = vcombine.low %v1978_v0, %v1982_v35  ;;  %4870 = vmatpush2.bf16.msra.mxu1 %v6129_v23  ;;  %v1668_v0 = vadd.f32 %v6123_v28, %v5808_v38  ;;  %v1670_v35 = vadd.f32 %v6123_v28, %v5836_v30  ;;  %v1945_v7 = vld [vmem:[#allocation5 + $0x250] sm:$0xff] }
 0x394   :  { %2764 = vmatmul.mubr.bf16.gmra.mxu0 %v6135_v63  ;;  %2957 = vmatmul.mubr.bf16.gmra.mxu1 %v6135_v63  ;;  %7131 = vst [vmem:[#allocation36_spill] sm:$0xff] %v6182_v49  ;;  %v6184_v38 = vcombine.high %v1962_v41, %v1966_v61  ;;  %v6186_v14 = vpack.c.bf16 %v1801_v44, %v1799_v20  ;;  %v1949_v50 = vld [vmem:[#allocation5 + $0x270] sm:$0xff]  ;;  %v1958_v20 = vld [vmem:[#allocation5 + $0x2b8] sm:$0xff] }
 0x395   :  { %2773 = vmatprep.mubr.bf16.mxu0 %v6142_v40  ;;  %2966 = vmatprep.mubr.bf16.mxu1 %v6142_v40  ;;  %v1806_v40 = vmax.f32 %v1742_v27, 0.0  ;;  %v1739_v30 = vadd.f32 %v5829_v53, %v1663_v46  ;;  %v1744_v32 = vadd.f32 %v5826_v60, %v1668_v0  ;;  %v1746_v47 = vadd.f32 %v5826_v60, %v1670_v35  ;;  %v1941_v0 = vld [vmem:[#allocation5 + $0x230] sm:$0xff] }
 0x396   :  { %3088 = vmatpush2.bf16.msra.mxu0 %v4741_v48  ;;  %4855 = vmatprep.subr.bf16.mxu1 %v6131_v17  ;;  %v4718_v48 = vcombine.high %v6157_v37, %v1957_v45  ;;  %7132 = vst [vmem:[#allocation37_spill] sm:$0xff] %v6184_v38  ;;  %v4717_v27 = vcombine.low %v6157_v37, %v1957_v45  ;;  %v1937_v45 = vld [vmem:[#allocation5 + $0x210] sm:$0xff] }
 0x397   :  { %3089 = vmatprep.subr.bf16.mxu0 %v4734_v15  ;;  %v1741_v15 = vadd.f32 %v5829_v53, %v1665_v33  ;;  %4871 = vmatpush2.bf16.msra.mxu1 %v6159_v56  ;;  %v6191_v26 = vpack.c.bf16 %v1806_v40, %v1804_v24  ;;  %v1667_v40 = vadd.f32 %v6179_v4, %v5805_v31  ;;  %v1803_v44 = vmax.f32 %v1739_v30, 0.0  ;;  %v1950_v30 = vld [vmem:[#allocation5 + $0x278] sm:$0xff] }
 0x398   :  { %4856 = vmatprep.subr.bf16.mxu1 %v6161_v36  ;;  %v4710_v24 = vcombine.high %v1945_v7, %v1949_v50  ;;  %v1669_v33 = vadd.f32 %v6179_v4, %v5815_v1  ;;  %v1672_v37 = vadd.f32 %v6123_v28, %v5872_v3  ;;  %v1808_v35 = vmax.f32 %v1744_v32, 0.0  ;;  %v1946_v1 = vld [vmem:[#allocation5 + $0x258] sm:$0xff] }
 0x399   :  { %v1805_v46 = vmax.f32 %v1741_v15, 0.0  ;;  %v1810_v36 = vmax.f32 %v1746_v47, 0.0  ;;  %v1674_v31 = vadd.f32 %v6123_v28, %v5926_v12  ;;  %v1743_v3 = vadd.f32 %v5829_v53, %v1667_v40 }
 0x39a   :  { %3090 = vmatpush2.bf16.msra.mxu0 %v4733_v54  ;;  %v1954_v54 = vld [vmem:[#allocation5 + $0x298] sm:$0xff]  ;;  %v1745_v47 = vadd.f32 %v5829_v53, %v1669_v33  ;;  %v1748_v12 = vadd.f32 %v5826_v60, %v1672_v37  ;;  %v4701_v40 = vcombine.low %v1937_v45, %v1941_v0  ;;  %v6246_v33 = vcombine.low %v1946_v1, %v1950_v30 }
 0x39b   :  { %3091 = vmatprep.subr.bf16.mxu0 %v4726_v57  ;;  %v6205_v57 = vcombine.low %v1962_v41, %v1966_v61  ;;  %4872 = vmatpush2.bf16.msra.mxu1 %v6182_v49  ;;  %v6215_v61 = vcombine.high %v1954_v54, %v1958_v20  ;;  %v6217_v41 = vpop.f32.mrf.mxu1  ;;  %v6220_v15 = vcombine.low %v1954_v54, %v1958_v20  ;;  %v1938_v54 = vld [vmem:[#allocation5 + $0x218] sm:$0xff] }
 0x39c   :  { %2774 = vmatmul.mubr.bf16.gmra.mxu0 %v6186_v14  ;;  %2967 = vmatmul.mubr.bf16.gmra.mxu1 %v6186_v14  ;;  %v4702_v49 = vcombine.high %v1937_v45, %v1941_v0  ;;  %v6222_v32 = vpack.c.bf16 %v1805_v46, %v1803_v44  ;;  %v1942_v20 = vld [vmem:[#allocation5 + $0x238] sm:$0xff]  ;;  %v1673_v44 = vadd.f32 %v6179_v4, %v5901_v18  ;;  %v1812_v37 = vmax.f32 %v1748_v12, 0.0 }
 0x39d   :  { %2783 = vmatprep.mubr.bf16.mxu0 %v6191_v26  ;;  %2976 = vmatprep.mubr.bf16.mxu1 %v6191_v26  ;;  %v1676_v46 = vadd.f32 %v6123_v28, %v5965_v58  ;;  %v1675_v12 = vadd.f32 %v6179_v4, %v5940_v43 }
 0x39e   :  { %3092 = vmatpush2.bf16.msra.mxu0 %v4725_v39  ;;  %4857 = vmatprep.subr.bf16.mxu1 %v6184_v38  ;;  %v4709_v39 = vcombine.low %v1945_v7, %v1949_v50  ;;  %v1750_v38 = vadd.f32 %v5826_v60, %v1674_v31  ;;  %v6231_v7 = vcombine.high %v1946_v1, %v1950_v30  ;;  %v6233_v50 = vpop.f32.mrf.mxu1 }
 0x39f   :  { %3093 = vmatprep.subr.bf16.mxu0 %v4718_v48  ;;  %4873 = vmatpush2.bf16.msra.mxu1 %v6205_v57  ;;  %v6227_v48 = vpack.c.bf16 %v1810_v36, %v1808_v35  ;;  %v1807_v36 = vmax.f32 %v1743_v3, 0.0  ;;  %v1678_v31 = vadd.f32 %v6123_v28, %v6021_v13  ;;  %v1749_v0 = vadd.f32 %v5829_v53, %v1673_v44 }
 0x3a0   :  { %4858 = vmatprep.subr.bf16.mxu1 %v6215_v61  ;;  %v1814_v35 = vmax.f32 %v1750_v38, 0.0  ;;  %v6253_v45 = vpop.f32.mrf.mxu1  ;;  %v6260_v38 = vcombine.low %v1938_v54, %v1942_v20  ;;  %v1752_v13 = vadd.f32 %v5826_v60, %v1676_v46  ;;  %v1594_v3 = vcombine.high %v5878_v11, %v5878_v11 }
 0x3a1   :  { %v1682_v11 = vadd.f32 %v6123_v28, %v6133_v51  ;;  %v1751_v43 = vadd.f32 %v5829_v53, %v1675_v12 }
 0x3a2   :  { %3094 = vmatpush2.bf16.msra.mxu0 %v4717_v27  ;;  %v1671_v27 = vadd.f32 %v6179_v4, %v5852_v19  ;;  %v6251_v19 = vcombine.high %v1938_v54, %v1942_v20  ;;  %v6262_v1 = vpack.c.bf16 %v1814_v35, %v1812_v37  ;;  %v6268_v30 = vpop.f32.mrf.mxu1  ;;  %v1816_v54 = vmax.f32 %v1752_v13, 0.0 }
 0x3a3   :  { %3095 = vmatprep.subr.bf16.mxu0 %v4710_v24  ;;  %v1809_v24 = vmax.f32 %v1745_v47, 0.0  ;;  %4874 = vmatpush2.bf16.msra.mxu1 %v6220_v15  ;;  %v1813_v47 = vmax.f32 %v1749_v0, 0.0  ;;  %v1815_v51 = vmax.f32 %v1751_v43, 0.0  ;;  %v6311_v12 = vrot.slane %v1594_v3, %v5339_v2 }
 0x3a4   :  { %2784 = vmatmul.mubr.bf16.gmra.mxu0 %v6222_v32  ;;  %2977 = vmatmul.mubr.bf16.gmra.mxu1 %v6222_v32  ;;  %v1747_v18 = vadd.f32 %v5829_v53, %v1671_v27  ;;  %v1388_v27 = vpop.f32.mrf.mxu1 }
 0x3a5   :  { %2793 = vmatprep.mubr.bf16.mxu0 %v6227_v48  ;;  %2986 = vmatprep.mubr.bf16.mxu1 %v6227_v48  ;;  %v6256_v58 = vpack.c.bf16 %v1809_v24, %v1807_v36  ;;  %v1680_v36 = vadd.f32 %v6123_v28, %v6075_v25  ;;  %v1758_v25 = vadd.f32 %v5826_v60, %v1682_v11 }
 0x3a6   :  { %3096 = vmatpush2.bf16.msra.mxu0 %v4709_v39  ;;  %4859 = vmatprep.subr.bf16.mxu1 %v6231_v7  ;;  %v1811_v39 = vmax.f32 %v1747_v18, 0.0  ;;  %v1681_v18 = vadd.f32 %v6179_v4, %v6105_v52  ;;  %v1685_v11 = vadd.f32 %v6311_v12, %v6196_v22 }
 0x3a7   :  { %3097 = vmatprep.subr.bf16.mxu0 %v4702_v49  ;;  %4875 = vmatpush2.bf16.msra.mxu1 %v6246_v33  ;;  %v1754_v49 = vadd.f32 %v5826_v60, %v1678_v31  ;;  %v1756_v37 = vadd.f32 %v5826_v60, %v1680_v36  ;;  %v1679_v31 = vadd.f32 %v6179_v4, %v6049_v6  ;;  %v1822_v13 = vmax.f32 %v1758_v25, 0.0 }
 0x3a8   :  { %4860 = vmatprep.subr.bf16.mxu1 %v6251_v19  ;;  %v6287_v24 = vpack.c.bf16 %v1813_v47, %v1811_v39  ;;  %v1757_v6 = vadd.f32 %v5829_v53, %v1681_v18  ;;  %v1683_v36 = vadd.f32 %v6311_v12, %v6147_v9  ;;  %v1761_v18 = vadd.f32 %v5829_v53, %v1685_v11 }
 0x3a9   :  { %v1818_v20 = vmax.f32 %v1754_v49, 0.0  ;;  %v1820_v0 = vmax.f32 %v1756_v37, 0.0 }
 0x3aa   :  { %3098 = vmatpush2.bf16.msra.mxu0 %v4701_v40  ;;  %v6285_v40 = vpop.f32.mrf.mxu1 }
 0x3ab   :  { %3260 = vmatprep.subr.bf16.mxu0 %v5760_v21  ;;  %v1677_v21 = vadd.f32 %v6179_v4, %v5997_v59  ;;  %4876 = vmatpush2.bf16.msra.mxu1 %v6260_v38  ;;  %v6292_v59 = vrot.slane %v1594_v3, %v5332_v62  ;;  %v6294_v46 = vpack.c.bf16 %v1818_v20, %v1816_v54  ;;  %v1821_v3 = vmax.f32 %v1757_v6, 0.0 }
 0x3ac   :  { %2794 = vmatmul.mubr.bf16.gmra.mxu0 %v6256_v58  ;;  %2987 = vmatmul.mubr.bf16.gmra.mxu1 %v6256_v58  ;;  %v1394_v28 = vpop.f32.mrf.mxu1  ;;  %v1755_v54 = vadd.f32 %v5829_v53, %v1679_v31  ;;  %v6317_v20 = vpack.c.bf16 %v1822_v13, %v1820_v0  ;;  %v1759_v31 = vadd.f32 %v5829_v53, %v1683_v36  ;;  %v1825_v13 = vmax.f32 %v1761_v18, 0.0 }
 0x3ad   :  { %2803 = vmatprep.mubr.bf16.mxu0 %v6262_v1  ;;  %2996 = vmatprep.mubr.bf16.mxu1 %v6262_v1  ;;  %v1753_v44 = vadd.f32 %v5829_v53, %v1677_v21  ;;  %v1684_v49 = vadd.f32 %v6292_v59, %v6173_v8  ;;  %v1686_v39 = vadd.f32 %v6292_v59, %v6217_v41 }
 0x3ae   :  { %v1396_v47 = vpop.f32.mrf.mxu1  ;;  %v1819_v41 = vmax.f32 %v1755_v54, 0.0  ;;  %v1688_v37 = vadd.f32 %v6292_v59, %v6253_v45  ;;  %v1690_v25 = vadd.f32 %v6292_v59, %v1388_v27  ;;  %v1823_v27 = vmax.f32 %v1759_v31, 0.0 }
 0x3af   :  { %v1817_v35 = vmax.f32 %v1753_v44, 0.0  ;;  %v1760_v52 = vadd.f32 %v5826_v60, %v1684_v49  ;;  %v1762_v4 = vadd.f32 %v5826_v60, %v1686_v39  ;;  %v1687_v49 = vadd.f32 %v6311_v12, %v6233_v50 }
 0x3b0   :  { %v1398_v8 = vpop.f32.mrf.mxu1  ;;  %v1764_v9 = vadd.f32 %v5826_v60, %v1688_v37  ;;  %v1766_v22 = vadd.f32 %v5826_v60, %v1690_v25  ;;  %v1689_v39 = vadd.f32 %v6311_v12, %v6268_v30  ;;  %v1691_v37 = vadd.f32 %v6311_v12, %v6285_v40 }
 0x3b1   :  { %v6313_v21 = vpack.c.bf16 %v1817_v35, %v1815_v51  ;;  %v1824_v43 = vmax.f32 %v1760_v52, 0.0  ;;  %v1826_v44 = vmax.f32 %v1762_v4, 0.0  ;;  %v6332_v35 = vpack.c.bf16 %v1821_v3, %v1819_v41 }
 0x3b2   :  { %v1402_v51 = vpop.f32.mrf.mxu1  ;;  %v1828_v54 = vmax.f32 %v1764_v9, 0.0  ;;  %v1830_v6 = vmax.f32 %v1766_v22, 0.0  ;;  %v1692_v52 = vadd.f32 %v6292_v59, %v1394_v28  ;;  %v1694_v4 = vadd.f32 %v6292_v59, %v1398_v8 }
 0x3b3   :  { %v6336_v0 = vpack.c.bf16 %v1826_v44, %v1824_v43  ;;  %v6350_v3 = vpack.c.bf16 %v1825_v13, %v1823_v27  ;;  %v1763_v36 = vadd.f32 %v5829_v53, %v1687_v49  ;;  %v1765_v11 = vadd.f32 %v5829_v53, %v1689_v39 }
 0x3b4   :  { %2804 = vmatmul.mubr.bf16.gmra.mxu0 %v6287_v24  ;;  %2997 = vmatmul.mubr.bf16.gmra.mxu1 %v6287_v24  ;;  %v1404_v45 = vpop.f32.mrf.mxu1  ;;  %v6354_v43 = vpack.c.bf16 %v1830_v6, %v1828_v54  ;;  %v1768_v50 = vadd.f32 %v5826_v60, %v1692_v52  ;;  %v1770_v44 = vadd.f32 %v5826_v60, %v1694_v4 }
 0x3b5   :  { %2813 = vmatprep.mubr.bf16.mxu0 %v6294_v46  ;;  %3006 = vmatprep.mubr.bf16.mxu1 %v6294_v46  ;;  %v1827_v28 = vmax.f32 %v1763_v36, 0.0  ;;  %v1829_v8 = vmax.f32 %v1765_v11, 0.0  ;;  %v1693_v25 = vadd.f32 %v6311_v12, %v1396_v47  ;;  %v1696_v9 = vadd.f32 %v6292_v59, %v1404_v45 }
 0x3b6   :  { %v1406_v41 = vpop.f32.mrf.mxu1  ;;  %v1832_v31 = vmax.f32 %v1768_v50, 0.0  ;;  %v1834_v18 = vmax.f32 %v1770_v44, 0.0  ;;  %v1767_v13 = vadd.f32 %v5829_v53, %v1691_v37  ;;  %v1695_v45 = vadd.f32 %v6311_v12, %v1402_v51  ;;  %v7134_v44 = vld [vmem:[#allocation12_spill] sm:$0xff] }
 0x3b7   :  { %v6367_v27 = vpack.c.bf16 %v1829_v8, %v1827_v28  ;;  %v1769_v49 = vadd.f32 %v5829_v53, %v1693_v25  ;;  %v1772_v54 = vadd.f32 %v5826_v60, %v1696_v9  ;;  %v1697_v6 = vadd.f32 %v6311_v12, %v1406_v41  ;;  %v7136_v28 = vld [vmem:[#allocation13_spill] sm:$0xff]  ;;  %v7137_v8 = vld [vmem:[#allocation14_spill] sm:$0xff]  ;;  %v7138_v37 = vld [vmem:[#allocation16_spill] sm:$0xff] }
 0x3b8   :  { %v1408_v30 = vpop.f32.mrf.mxu1  ;;  %v6371_v39 = vpack.c.bf16 %v1834_v18, %v1832_v31  ;;  %v7139_v25 = vld [vmem:[#allocation21_spill] sm:$0xff]  ;;  %v7140_v31 = vld [vmem:[#allocation22_spill] sm:$0xff]  ;;  %v7142_v9 = vld [vmem:[#allocation19_spill] sm:$0xff] }
 0x3b9   :  { %v1698_v22 = vadd.f32 %v6292_v59, %v1408_v30  ;;  %v1831_v59 = vmax.f32 %v1767_v13, 0.0  ;;  %v1833_v47 = vmax.f32 %v1769_v49, 0.0  ;;  %v1836_v52 = vmax.f32 %v1772_v54, 0.0  ;;  %v7135_v30 = vld [vmem:[#allocation17_spill] sm:$0xff]  ;;  %v7141_v18 = vld [vmem:[#allocation18_spill] sm:$0xff]  ;;  %v7145_v13 = vld [vmem:[#allocation24_spill] sm:$0xff] }
 0x3ba   :  { %v1773_v11 = vadd.f32 %v5829_v53, %v1697_v6  ;;  %v7146_v49 = vld [vmem:[#allocation25_spill] sm:$0xff]  ;;  %v7147_v54 = vld [vmem:[#allocation26_spill] sm:$0xff]  ;;  %v7152_v6 = vld [vmem:[#allocation31_spill] sm:$0xff] }
 0x3bb   :  { %v1774_v40 = vadd.f32 %v5826_v60, %v1698_v22  ;;  %v6381_v36 = vpack.c.bf16 %v1833_v47, %v1831_v59  ;;  %v1771_v60 = vadd.f32 %v5829_v53, %v1695_v45  ;;  %v7133_v53 = vld [vmem:[#allocation15_spill] sm:$0xff]  ;;  %v7149_v59 = vld [vmem:[#allocation28_spill] sm:$0xff]  ;;  %v7150_v47 = vld [vmem:[#allocation29_spill] sm:$0xff] }
 0x3bc   :  { %2814 = vmatmul.mubr.bf16.gmra.mxu0 %v6313_v21  ;;  %3007 = vmatmul.mubr.bf16.gmra.mxu1 %v6313_v21  ;;  %v1837_v12 = vmax.f32 %v1773_v11, 0.0  ;;  %v7144_v22 = vld [vmem:[#allocation23_spill] sm:$0xff]  ;;  %v7151_v45 = vld [vmem:[#allocation30_spill] sm:$0xff] }
 0x3bd   :  { %2823 = vmatprep.mubr.bf16.mxu0 %v6317_v20  ;;  %3016 = vmatprep.mubr.bf16.mxu1 %v6317_v20  ;;  %v1838_v4 = vmax.f32 %v1774_v40, 0.0  ;;  %v1835_v51 = vmax.f32 %v1771_v60, 0.0  ;;  %v7148_v40 = vld [vmem:[#allocation27_spill] sm:$0xff] }
 0x3bf   :  { %v6385_v50 = vpack.c.bf16 %v1838_v4, %v1836_v52  ;;  %v6391_v41 = vpack.c.bf16 %v1837_v12, %v1835_v51  ;;  %v7154_v52 = vld [vmem:[#allocation32_spill] sm:$0xff]  ;;  %v7158_v4 = vld [vmem:[#allocation37_spill] sm:$0xff] }
 0x3c4   :  { %2824 = vmatmul.mubr.bf16.gmra.mxu0 %v6332_v35  ;;  %3017 = vmatmul.mubr.bf16.gmra.mxu1 %v6332_v35 }
 0x3c5   :  { %2833 = vmatprep.mubr.bf16.mxu0 %v6336_v0  ;;  %3026 = vmatprep.mubr.bf16.mxu1 %v6336_v0 }
 0x3cc   :  { %2834 = vmatmul.mubr.bf16.gmra.mxu0 %v6350_v3  ;;  %3027 = vmatmul.mubr.bf16.gmra.mxu1 %v6350_v3 }
 0x3cd   :  { %2843 = vmatprep.mubr.bf16.mxu0 %v6354_v43  ;;  %3036 = vmatprep.mubr.bf16.mxu1 %v6354_v43 }
 0x3d4   :  { %2844 = vmatmul.mubr.bf16.gmra.mxu0 %v6367_v27  ;;  %3037 = vmatmul.mubr.bf16.gmra.mxu1 %v6367_v27 }
 0x3d5   :  { %2853 = vmatprep.mubr.bf16.mxu0 %v6371_v39  ;;  %3046 = vmatprep.mubr.bf16.mxu1 %v6371_v39 }
 0x3dc   :  { %2854 = vmatmul.mubr.bf16.gmra.mxu0 %v6381_v36  ;;  %3047 = vmatmul.mubr.bf16.gmra.mxu1 %v6381_v36 }
 0x3dd   :  { %2863 = vmatprep.mubr.bf16.mxu0 %v6385_v50  ;;  %3056 = vmatprep.mubr.bf16.mxu1 %v6385_v50 }
 0x3e4   :  { %2864 = vmatmul.mubr.bf16.gmra.mxu0 %v6391_v41  ;;  %3057 = vmatmul.mubr.bf16.gmra.mxu1 %v6391_v41 }
 0x3e5   :  { %3099 = vmatprep.mubr.bf16.mxu0 %v5854_v10  ;;  %3302 = vmatprep.mubr.bf16.mxu1 %v5868_v16 }
 0x3ec   :  { %3100 = vmatmul.mubr.bf16.vlgmr.msra.gmra.mxu0 %v5860_v34  ;;  %3303 = vmatmul.mubr.bf16.vlgmr.msra.gmra.mxu1 %v7133_v53 }
 0x3ed   :  { %3261 = vmatpush1.bf16.msra.mxu0 %v7134_v44  ;;  %3109 = vmatprep.mubr.bf16.mxu0 %v5868_v16  ;;  %v7143_v16 = vld [vmem:[#allocation20_spill] sm:$0xff] }
 0x3ee   :  { %3312 = vmatprep.mubr.bf16.mxu1 %v7135_v30  ;;  %3262 = vmatprep.subr.bf16.mxu0 %v7136_v28 }
 0x3f1   :  { %3263 = vmatpush1.bf16.msra.mxu0 %v7137_v8 }
 0x3f2   :  { %3264 = vmatprep.subr.bf16.mxu0 %v7138_v37 }
 0x3f4   :  { %3110 = vmatmul.mubr.bf16.gmra.mxu0 %v7133_v53  ;;  %3313 = vmatmul.mubr.bf16.gmra.mxu1 %v7139_v25 }
 0x3f5   :  { %3119 = vmatprep.mubr.bf16.mxu0 %v7135_v30  ;;  %3322 = vmatprep.mubr.bf16.mxu1 %v7140_v31 }
 0x3f6   :  { %3265 = vmatpush1.bf16.msra.mxu0 %v7141_v18 }
 0x3f7   :  { %3266 = vmatprep.subr.bf16.mxu0 %v7142_v9 }
 0x3fa   :  { %3267 = vmatpush1.bf16.msra.mxu0 %v7143_v16 }
 0x3fb   :  { %3268 = vmatprep.subr.bf16.mxu0 %v7144_v22 }
 0x3fc   :  { %3120 = vmatmul.mubr.bf16.gmra.mxu0 %v7139_v25  ;;  %3323 = vmatmul.mubr.bf16.gmra.mxu1 %v6023_v5 }
 0x3fd   :  { %3129 = vmatprep.mubr.bf16.mxu0 %v7140_v31  ;;  %3332 = vmatprep.mubr.bf16.mxu1 %v6030_v55 }
 0x3fe   :  { %3269 = vmatpush1.bf16.msra.mxu0 %v7145_v13 }
 0x3ff   :  { %3270 = vmatprep.subr.bf16.mxu0 %v7146_v49 }
 0x402   :  { %3271 = vmatpush1.bf16.msra.mxu0 %v7147_v54 }
 0x403   :  { %3272 = vmatprep.subr.bf16.mxu0 %v7148_v40 }
 0x404   :  { %3130 = vmatmul.mubr.bf16.gmra.mxu0 %v6023_v5  ;;  %3333 = vmatmul.mubr.bf16.gmra.mxu1 %v6077_v29  ;;  %v7153_v5 = vld [vmem:[#allocation34_spill] sm:$0xff] }
 0x405   :  { %3139 = vmatprep.mubr.bf16.mxu0 %v6030_v55  ;;  %3342 = vmatprep.mubr.bf16.mxu1 %v6082_v42  ;;  %v7155_v55 = vld [vmem:[#allocation33_spill] sm:$0xff] }
 0x406   :  { %3273 = vmatpush1.bf16.msra.mxu0 %v7149_v59 }
 0x407   :  { %3274 = vmatprep.subr.bf16.mxu0 %v7150_v47 }
 0x40a   :  { %3275 = vmatpush1.bf16.msra.mxu0 %v7151_v45 }
 0x40b   :  { %3276 = vmatprep.subr.bf16.mxu0 %v7152_v6 }
 0x40c   :  { %3140 = vmatmul.mubr.bf16.gmra.mxu0 %v6077_v29  ;;  %3343 = vmatmul.mubr.bf16.gmra.mxu1 %v6135_v63  ;;  %v7157_v29 = vld [vmem:[#allocation36_spill] sm:$0xff] }
 0x40d   :  { %3149 = vmatprep.mubr.bf16.mxu0 %v6082_v42  ;;  %3352 = vmatprep.mubr.bf16.mxu1 %v7153_v5  ;;  %v7156_v42 = vld [vmem:[#allocation35_spill] sm:$0xff] }
 0x40e   :  { %3277 = vmatpush2.bf16.msra.mxu0 %v7154_v52 }
 0x40f   :  { %3278 = vmatprep.subr.bf16.mxu0 %v7155_v55 }
 0x412   :  { %3279 = vmatpush2.bf16.msra.mxu0 %v6129_v23  ;;  %v1999_v23 = vld [vmem:[%s7067_s9] sm:$0xff] }
 0x413   :  { %3280 = vmatprep.subr.bf16.mxu0 %v6131_v17  ;;  %v7159_v17 = vld [vmem:[#allocation11_spill] sm:$0xff] }
 0x414   :  { %3150 = vmatmul.mubr.bf16.gmra.mxu0 %v6135_v63  ;;  %3353 = vmatmul.mubr.bf16.gmra.mxu1 %v6186_v14  ;;  %v2015_v63 = vsub.s32 3, %v7159_v17 }
 0x415   :  { %3159 = vmatprep.mubr.bf16.mxu0 %v7153_v5  ;;  %3362 = vmatprep.mubr.bf16.mxu1 %v6191_v26 }
 0x416   :  { %3281 = vmatpush2.bf16.msra.mxu0 %v6159_v56  ;;  %v6464_v56 = vrot.slane %v1999_v23, %v5339_v2 }
 0x417   :  { %3282 = vmatprep.subr.bf16.mxu0 %v7156_v42 }
 0x41a   :  { %3283 = vmatpush2.bf16.msra.mxu0 %v7157_v29 }
 0x41b   :  { %3284 = vmatprep.subr.bf16.mxu0 %v7158_v4 }
 0x41c   :  { %3160 = vmatmul.mubr.bf16.gmra.mxu0 %v6186_v14  ;;  %3363 = vmatmul.mubr.bf16.gmra.mxu1 %v6222_v32  ;;  %v7160_v14 = vsub.s32 2, %v7159_v17 }
 0x41d   :  { %3169 = vmatprep.mubr.bf16.mxu0 %v6191_v26  ;;  %3372 = vmatprep.mubr.bf16.mxu1 %v6227_v48 }
 0x41e   :  { %3285 = vmatpush2.bf16.msra.mxu0 %v6205_v57  ;;  %v6468_v26 = vrot.slane %v1999_v23, %v7160_v14 }
 0x41f   :  { %3286 = vmatprep.subr.bf16.mxu0 %v6215_v61 }
 0x422   :  { %3287 = vmatpush2.bf16.msra.mxu0 %v6220_v15  ;;  %v6474_v15 = vrot.slane %v1999_v23, %v5332_v62 }
 0x423   :  { %3288 = vmatprep.subr.bf16.mxu0 %v6231_v7 }
 0x424   :  { %3170 = vmatmul.mubr.bf16.gmra.mxu0 %v6222_v32  ;;  %3373 = vmatmul.mubr.bf16.gmra.mxu1 %v6256_v58  ;;  %v6476_v32 = vrot.slane %v1999_v23, %v2015_v63 }
 0x425   :  { %3179 = vmatprep.mubr.bf16.mxu0 %v6227_v48  ;;  %3382 = vmatprep.mubr.bf16.mxu1 %v6262_v1 }
 0x426   :  { %3289 = vmatpush2.bf16.msra.mxu0 %v6246_v33 }
 0x427   :  { %3290 = vmatprep.subr.bf16.mxu0 %v6251_v19 }
 0x42a   :  { %3291 = vmatpush2.bf16.msra.mxu0 %v6260_v38 }
 0x42c   :  { %v2715_v57 = vpop.f32.mrf.mxu0  ;;  %v2908_v61 = vpop.f32.mrf.mxu1  ;;  %3180 = vmatmul.mubr.bf16.gmra.mxu0 %v6256_v58  ;;  %3383 = vmatmul.mubr.bf16.gmra.mxu1 %v6287_v24 }
 0x42d   :  { %3189 = vmatprep.mubr.bf16.mxu0 %v6262_v1  ;;  %3392 = vmatprep.mubr.bf16.mxu1 %v6294_v46  ;;  %v2716_v2 = vadd.f32 %v2715_v57, %v6464_v56  ;;  %v2909_v48 = vadd.f32 %v2908_v61, %v6468_v26 }
 0x42e   :  { %v2717_v7 = vpop.f32.mrf.mxu0  ;;  %v2910_v33 = vpop.f32.mrf.mxu1 }
 0x42f   :  { %v2718_v19 = vadd.f32 %v2717_v7, %v6474_v15  ;;  %v2911_v58 = vadd.f32 %v2910_v33, %v6476_v32  ;;  %v3453_v51 = vmax.f32 %v2716_v2, 0.0  ;;  %v3455_v1 = vmax.f32 %v2909_v48, 0.0 }
 0x430   :  { %v2719_v38 = vpop.f32.mrf.mxu0  ;;  %v2912_v60 = vpop.f32.mrf.mxu1 }
 0x431   :  { %v2720_v62 = vadd.f32 %v2719_v38, %v6464_v56  ;;  %v2913_v11 = vadd.f32 %v2912_v60, %v6468_v26  ;;  %v3454_v37 = vmax.f32 %v2718_v19, 0.0  ;;  %v3456_v25 = vmax.f32 %v2911_v58, 0.0 }
 0x432   :  { %v2721_v12 = vpop.f32.mrf.mxu0  ;;  %v2914_v53 = vpop.f32.mrf.mxu1 }
 0x433   :  { %v3461_v44 = vmax.f32 %v2720_v62, 0.0  ;;  %v3463_v30 = vmax.f32 %v2913_v11, 0.0  ;;  %v2722_v28 = vadd.f32 %v2721_v12, %v6474_v15  ;;  %v2915_v8 = vadd.f32 %v2914_v53, %v6476_v32 }
 0x434   :  { %v2725_v31 = vpop.f32.mrf.mxu0  ;;  %v2918_v18 = vpop.f32.mrf.mxu1  ;;  %3190 = vmatmul.mubr.bf16.gmra.mxu0 %v6287_v24  ;;  %3393 = vmatmul.mubr.bf16.gmra.mxu1 %v6313_v21 }
 0x435   :  { %v3709_v9 = vmax.f32 %v3453_v51, %v3461_v44  ;;  %v3735_v16 = vmax.f32 %v3455_v1, %v3463_v30  ;;  %v3462_v22 = vmax.f32 %v2722_v28, 0.0  ;;  %v3464_v13 = vmax.f32 %v2915_v8, 0.0  ;;  %3199 = vmatprep.mubr.bf16.mxu0 %v6294_v46  ;;  %3402 = vmatprep.mubr.bf16.mxu1 %v6317_v20 }
 0x436   :  { %v2726_v49 = vadd.f32 %v2725_v31, %v6464_v56  ;;  %v2919_v54 = vadd.f32 %v2918_v18, %v6468_v26  ;;  %v2727_v40 = vpop.f32.mrf.mxu0  ;;  %v2920_v59 = vpop.f32.mrf.mxu1 }
 0x437   :  { %v3722_v47 = vmax.f32 %v3454_v37, %v3462_v22  ;;  %v3748_v45 = vmax.f32 %v3456_v25, %v3464_v13  ;;  %v2728_v24 = vadd.f32 %v2727_v40, %v6474_v15  ;;  %v2921_v6 = vadd.f32 %v2920_v59, %v6476_v32 }
 0x438   :  { %v3469_v5 = vmax.f32 %v2726_v49, 0.0  ;;  %v3471_v52 = vmax.f32 %v2919_v54, 0.0  ;;  %v2729_v55 = vpop.f32.mrf.mxu0  ;;  %v2922_v42 = vpop.f32.mrf.mxu1 }
 0x439   :  { %v3470_v29 = vmax.f32 %v2728_v24, 0.0  ;;  %v3472_v46 = vmax.f32 %v2921_v6, 0.0  ;;  %v2730_v4 = vadd.f32 %v2729_v55, %v6464_v56  ;;  %v2923_v23 = vadd.f32 %v2922_v42, %v6468_v26 }
 0x43a   :  { %v3710_v63 = vmax.f32 %v3709_v9, %v3469_v5  ;;  %v3736_v14 = vmax.f32 %v3735_v16, %v3471_v52  ;;  %v2731_v57 = vpop.f32.mrf.mxu0  ;;  %v2924_v61 = vpop.f32.mrf.mxu1 }
 0x43b   :  { %v3723_v2 = vmax.f32 %v3722_v47, %v3470_v29  ;;  %v3749_v48 = vmax.f32 %v3748_v45, %v3472_v46  ;;  %v3477_v7 = vmax.f32 %v2730_v4, 0.0  ;;  %v3479_v33 = vmax.f32 %v2923_v23, 0.0 }
 0x43c   :  { %v2732_v19 = vadd.f32 %v2731_v57, %v6474_v15  ;;  %v2925_v58 = vadd.f32 %v2924_v61, %v6476_v32  ;;  %v2735_v38 = vpop.f32.mrf.mxu0  ;;  %v2928_v60 = vpop.f32.mrf.mxu1  ;;  %3200 = vmatmul.mubr.bf16.gmra.mxu0 %v6313_v21  ;;  %3403 = vmatmul.mubr.bf16.gmra.mxu1 %v6332_v35 }
 0x43d   :  { %v3711_v62 = vmax.f32 %v3710_v63, %v3477_v7  ;;  %v3737_v11 = vmax.f32 %v3736_v14, %v3479_v33  ;;  %v2736_v51 = vadd.f32 %v2735_v38, %v6464_v56  ;;  %v2929_v1 = vadd.f32 %v2928_v60, %v6468_v26  ;;  %3209 = vmatprep.mubr.bf16.mxu0 %v6317_v20 }
 0x43e   :  { %v3478_v12 = vmax.f32 %v2732_v19, 0.0  ;;  %v3480_v53 = vmax.f32 %v2925_v58, 0.0  ;;  %3412 = vmatprep.mubr.bf16.mxu1 %v6336_v0  ;;  %v2737_v44 = vpop.f32.mrf.mxu0  ;;  %v2930_v30 = vpop.f32.mrf.mxu1  ;;  %v5062_v63 = vmov 1983009808  }
 0x43f   :  { %v3485_v28 = vmax.f32 %v2736_v51, 0.0  ;;  %v3487_v8 = vmax.f32 %v2929_v1, 0.0  ;;  %v2738_v21 = vadd.f32 %v2737_v44, %v6474_v15  ;;  %v2931_v37 = vadd.f32 %v2930_v30, %v6476_v32 }
 0x440   :  { %v3724_v25 = vmax.f32 %v3723_v2, %v3478_v12  ;;  %v3750_v31 = vmax.f32 %v3749_v48, %v3480_v53  ;;  %v2739_v18 = vpop.f32.mrf.mxu0  ;;  %v2932_v9 = vpop.f32.mrf.mxu1  ;;  %v4192_v14 = vunpack.c.l.s4 %v5062_v63 }
 0x441   :  { %v3712_v16 = vmax.f32 %v3711_v62, %v3485_v28  ;;  %v3738_v22 = vmax.f32 %v3737_v11, %v3487_v8  ;;  %v3486_v13 = vmax.f32 %v2738_v21, 0.0  ;;  %v3488_v20 = vmax.f32 %v2931_v37, 0.0 }
 0x442   :  { %v2740_v49 = vadd.f32 %v2739_v18, %v6464_v56  ;;  %v2933_v54 = vadd.f32 %v2932_v9, %v6468_v26  ;;  %v2741_v40 = vpop.f32.mrf.mxu0  ;;  %v2934_v59 = vpop.f32.mrf.mxu1  ;;  %v4193_v12 = vunpack.c.0.s8 %v4192_v14 }
 0x443   :  { %v3725_v47 = vmax.f32 %v3724_v25, %v3486_v13  ;;  %v3751_v45 = vmax.f32 %v3750_v31, %v3488_v20  ;;  %v2742_v24 = vadd.f32 %v2741_v40, %v6474_v15  ;;  %v2935_v6 = vadd.f32 %v2934_v59, %v6476_v32 }
 0x444   :  { %v3493_v5 = vmax.f32 %v2740_v49, 0.0  ;;  %v3495_v52 = vmax.f32 %v2933_v54, 0.0  ;;  %v2745_v55 = vpop.f32.mrf.mxu0  ;;  %v2938_v42 = vpop.f32.mrf.mxu1  ;;  %3210 = vmatmul.mubr.bf16.gmra.mxu0 %v6332_v35  ;;  %3413 = vmatmul.mubr.bf16.gmra.mxu1 %v6350_v3  ;;  %v6529_v54 = vsub.s32 %v4193_v12, %v7159_v17 }
 0x445   :  { %v3494_v29 = vmax.f32 %v2742_v24, 0.0  ;;  %v3496_v46 = vmax.f32 %v2935_v6, 0.0  ;;  %v2746_v4 = vadd.f32 %v2745_v55, %v6464_v56  ;;  %v2939_v23 = vadd.f32 %v2938_v42, %v6468_v26  ;;  %3219 = vmatprep.mubr.bf16.mxu0 %v6336_v0  ;;  %3422 = vmatprep.mubr.bf16.mxu1 %v6354_v43 }
 0x446   :  { %v3713_v57 = vmax.f32 %v3712_v16, %v3493_v5  ;;  %v3739_v61 = vmax.f32 %v3738_v22, %v3495_v52  ;;  %v2747_v2 = vpop.f32.mrf.mxu0  ;;  %v2940_v48 = vpop.f32.mrf.mxu1 }
 0x447   :  { %v3726_v7 = vmax.f32 %v3725_v47, %v3494_v29  ;;  %v3752_v35 = vmax.f32 %v3751_v45, %v3496_v46  ;;  %v3501_v33 = vmax.f32 %v2746_v4, 0.0  ;;  %v3503_v19 = vmax.f32 %v2939_v23, 0.0 }
 0x448   :  { %v2748_v58 = vadd.f32 %v2747_v2, %v6474_v15  ;;  %v2941_v38 = vadd.f32 %v2940_v48, %v6476_v32  ;;  %v2749_v60 = vpop.f32.mrf.mxu0  ;;  %v2942_v62 = vpop.f32.mrf.mxu1 }
 0x449   :  { %v3714_v11 = vmax.f32 %v3713_v57, %v3501_v33  ;;  %v3740_v0 = vmax.f32 %v3739_v61, %v3503_v19  ;;  %v2750_v51 = vadd.f32 %v2749_v60, %v6464_v56  ;;  %v2943_v1 = vadd.f32 %v2942_v62, %v6468_v26 }
 0x44a   :  { %v3502_v53 = vmax.f32 %v2748_v58, 0.0  ;;  %v3504_v44 = vmax.f32 %v2941_v38, 0.0  ;;  %v2751_v30 = vpop.f32.mrf.mxu0  ;;  %v2944_v28 = vpop.f32.mrf.mxu1 }
 0x44b   :  { %v3509_v8 = vmax.f32 %v2750_v51, 0.0  ;;  %v3511_v21 = vmax.f32 %v2943_v1, 0.0  ;;  %v2752_v37 = vadd.f32 %v2751_v30, %v6474_v15  ;;  %v2945_v25 = vadd.f32 %v2944_v28, %v6476_v32 }
 0x44c   :  { %v3727_v31 = vmax.f32 %v3726_v7, %v3502_v53  ;;  %v3753_v18 = vmax.f32 %v3752_v35, %v3504_v44  ;;  %v2755_v9 = vpop.f32.mrf.mxu0  ;;  %v2948_v16 = vpop.f32.mrf.mxu1  ;;  %3220 = vmatmul.mubr.bf16.gmra.mxu0 %v6350_v3  ;;  %3423 = vmatmul.mubr.bf16.gmra.mxu1 %v6367_v27 }
 0x44d   :  { %v3715_v22 = vmax.f32 %v3714_v11, %v3509_v8  ;;  %v3741_v13 = vmax.f32 %v3740_v0, %v3511_v21  ;;  %v3510_v20 = vmax.f32 %v2752_v37, 0.0  ;;  %v3512_v49 = vmax.f32 %v2945_v25, 0.0  ;;  %3229 = vmatprep.mubr.bf16.mxu0 %v6354_v43  ;;  %3432 = vmatprep.mubr.bf16.mxu1 %v6371_v39 }
 0x44e   :  { %v2756_v40 = vadd.f32 %v2755_v9, %v6464_v56  ;;  %v2949_v59 = vadd.f32 %v2948_v16, %v6468_v26  ;;  %v2757_v47 = vpop.f32.mrf.mxu0  ;;  %v2950_v45 = vpop.f32.mrf.mxu1 }
 0x44f   :  { %v3716_v3 = vrot.slane %v3715_v22, 4  ;;  %v3742_v24 = vrot.slane %v3741_v13, 4  ;;  %v3728_v6 = vmax.f32 %v3727_v31, %v3510_v20  ;;  %v3754_v5 = vmax.f32 %v3753_v18, %v3512_v49 }
 0x450   :  { %v3517_v52 = vmax.f32 %v2756_v40, 0.0  ;;  %v3519_v55 = vmax.f32 %v2949_v59, 0.0  ;;  %v2758_v42 = vadd.f32 %v2757_v47, %v6474_v15  ;;  %v2951_v43 = vadd.f32 %v2950_v45, %v6476_v32  ;;  %v2759_v29 = vpop.f32.mrf.mxu0  ;;  %v2952_v46 = vpop.f32.mrf.mxu1 }
 0x451   :  { %v3717_v4 = vmax.f32 %v3715_v22, %v3716_v3  ;;  %v3743_v23 = vmax.f32 %v3741_v13, %v3742_v24  ;;  %v3729_v63 = vrot.slane %v3728_v6, 4  ;;  %v3755_v14 = vrot.slane %v3754_v5, 4 }
 0x452   :  { %v3518_v57 = vmax.f32 %v2758_v42, 0.0  ;;  %v3520_v61 = vmax.f32 %v2951_v43, 0.0  ;;  %v2760_v2 = vadd.f32 %v2759_v29, %v6464_v56  ;;  %v2953_v48 = vadd.f32 %v2952_v46, %v6468_v26  ;;  %v2761_v7 = vpop.f32.mrf.mxu0  ;;  %v2954_v35 = vpop.f32.mrf.mxu1 }
 0x453   :  { %v3718_v33 = vrot.slane %v3717_v4, 2  ;;  %v3744_v19 = vrot.slane %v3743_v23, 2  ;;  %v3730_v58 = vmax.f32 %v3728_v6, %v3729_v63  ;;  %v3756_v38 = vmax.f32 %v3754_v5, %v3755_v14 }
 0x454   :  { %v3525_v60 = vmax.f32 %v2760_v2, 0.0  ;;  %v3527_v62 = vmax.f32 %v2953_v48, 0.0  ;;  %v2762_v11 = vadd.f32 %v2761_v7, %v6474_v15  ;;  %v2955_v0 = vadd.f32 %v2954_v35, %v6476_v32  ;;  %v2765_v51 = vpop.f32.mrf.mxu0  ;;  %v2958_v1 = vpop.f32.mrf.mxu1  ;;  %3230 = vmatmul.mubr.bf16.gmra.mxu0 %v6367_v27  ;;  %3433 = vmatmul.mubr.bf16.gmra.mxu1 %v6381_v36 }
 0x455   :  { %v3719_v12 = vmax.f32 %v3717_v4, %v3718_v33  ;;  %v3745_v53 = vmax.f32 %v3743_v23, %v3744_v19  ;;  %v3731_v44 = vrot.slane %v3730_v58, 2  ;;  %v3757_v30 = vrot.slane %v3756_v38, 2  ;;  %3239 = vmatprep.mubr.bf16.mxu0 %v6371_v39  ;;  %3442 = vmatprep.mubr.bf16.mxu1 %v6385_v50 }
 0x456   :  { %v3813_v28 = vmax.f32 %v3517_v52, %v3525_v60  ;;  %v3839_v8 = vmax.f32 %v3519_v55, %v3527_v62  ;;  %v3526_v21 = vmax.f32 %v2762_v11, 0.0  ;;  %v3528_v37 = vmax.f32 %v2955_v0, 0.0  ;;  %v2767_v25 = vpop.f32.mrf.mxu0  ;;  %v2960_v31 = vpop.f32.mrf.mxu1 }
 0x457   :  { %v3720_v18 = vrot.slane %v3719_v12, 1  ;;  %v3746_v9 = vrot.slane %v3745_v53, 1  ;;  %v3732_v16 = vmax.f32 %v3730_v58, %v3731_v44  ;;  %v3758_v27 = vmax.f32 %v3756_v38, %v3757_v30 }
 0x458   :  { %v3826_v22 = vmax.f32 %v3518_v57, %v3526_v21  ;;  %v3852_v13 = vmax.f32 %v3520_v61, %v3528_v37  ;;  %v2766_v20 = vadd.f32 %v2765_v51, %v6464_v56  ;;  %v2959_v49 = vadd.f32 %v2958_v1, %v6468_v26  ;;  %v2769_v40 = vpop.f32.mrf.mxu0  ;;  %v2962_v39 = vpop.f32.mrf.mxu1 }
 0x459   :  { %v3721_v59 = vmax.f32 %v3719_v12, %v3720_v18  ;;  %v3747_v47 = vmax.f32 %v3745_v53, %v3746_v9  ;;  %v3733_v45 = vrot.slane %v3732_v16, 1  ;;  %v3759_v3 = vrot.slane %v3758_v27, 1 }
 0x45a   :  { %v3533_v24 = vmax.f32 %v2766_v20, 0.0  ;;  %v3535_v6 = vmax.f32 %v2959_v49, 0.0  ;;  %v2768_v5 = vadd.f32 %v2767_v25, %v6474_v15  ;;  %v2961_v52 = vadd.f32 %v2960_v31, %v6476_v32  ;;  %v2771_v55 = vpop.f32.mrf.mxu0  ;;  %v2964_v42 = vpop.f32.mrf.mxu1 }
 0x45b   :  { %v3734_v43 = vmax.f32 %v3732_v16, %v3733_v45  ;;  %v3760_v29 = vmax.f32 %v3758_v27, %v3759_v3  ;;  %v2770_v46 = vadd.f32 %v2769_v40, %v6464_v56  ;;  %v2963_v4 = vadd.f32 %v2962_v39, %v6468_v26 }
 0x45c   :  { %v3814_v23 = vmax.f32 %v3813_v28, %v3533_v24  ;;  %v3840_v63 = vmax.f32 %v3839_v8, %v3535_v6  ;;  %v3534_v14 = vmax.f32 %v2768_v5, 0.0  ;;  %v3536_v57 = vmax.f32 %v2961_v52, 0.0  ;;  %v2775_v61 = vpop.f32.mrf.mxu0  ;;  %v2968_v2 = vpop.f32.mrf.mxu1  ;;  %3240 = vmatmul.mubr.bf16.gmra.mxu0 %v6381_v36  ;;  %3443 = vmatmul.mubr.bf16.gmra.mxu1 %v6391_v41 }
 0x45d   :  { %v4761_v48 = vpack.c.bf16 %v3734_v43, %v3721_v59  ;;  %v4762_v7 = vpack.c.bf16 %v3760_v29, %v3747_v47  ;;  %v3541_v35 = vmax.f32 %v2770_v46, 0.0  ;;  %v3543_v33 = vmax.f32 %v2963_v4, 0.0  ;;  %3249 = vmatprep.mubr.bf16.mxu0 %v6385_v50 }
 0x45e   :  { %v3827_v19 = vmax.f32 %v3826_v22, %v3534_v14  ;;  %v3853_v58 = vmax.f32 %v3852_v13, %v3536_v57  ;;  %v2772_v38 = vadd.f32 %v2771_v55, %v6474_v15  ;;  %v2965_v60 = vadd.f32 %v2964_v42, %v6476_v32  ;;  %v2777_v62 = vpop.f32.mrf.mxu0  ;;  %v2970_v11 = vpop.f32.mrf.mxu1 }
 0x45f   :  { %v6555_v0 = vrot.slane %v4761_v48, %v6529_v54  ;;  %v6558_v36 = vrot.slane %v4762_v7, %v6529_v54  ;;  %v3815_v51 = vmax.f32 %v3814_v23, %v3541_v35  ;;  %v3841_v1 = vmax.f32 %v3840_v63, %v3543_v33 }
 0x460   :  { %v3542_v12 = vmax.f32 %v2772_v38, 0.0  ;;  %v3544_v53 = vmax.f32 %v2965_v60, 0.0  ;;  %v2776_v50 = vadd.f32 %v2775_v61, %v6464_v56  ;;  %v2969_v44 = vadd.f32 %v2968_v2, %v6468_v26  ;;  %v2779_v30 = vpop.f32.mrf.mxu0  ;;  %v2972_v28 = vpop.f32.mrf.mxu1 }
 0x461   :  { %v4205_v8 = vcombine.low %v6555_v0, %v6558_v36  ;;  %v2778_v21 = vadd.f32 %v2777_v62, %v6474_v15  ;;  %v2971_v37 = vadd.f32 %v2970_v11, %v6476_v32  ;;  %v2780_v40 = vadd.f32 %v2779_v30, %v6464_v56 }
 0x462   :  { %v3828_v25 = vmax.f32 %v3827_v19, %v3542_v12  ;;  %v3854_v31 = vmax.f32 %v3853_v58, %v3544_v53  ;;  %v3549_v18 = vmax.f32 %v2776_v50, 0.0  ;;  %v3551_v9 = vmax.f32 %v2969_v44, 0.0  ;;  %v2781_v16 = vpop.f32.mrf.mxu0  ;;  %v2974_v27 = vpop.f32.mrf.mxu1 }
 0x463   :  { %v3550_v22 = vmax.f32 %v2778_v21, 0.0  ;;  %v3552_v13 = vmax.f32 %v2971_v37, 0.0  ;;  %v2973_v39 = vadd.f32 %v2972_v28, %v6468_v26  ;;  %v3557_v24 = vmax.f32 %v2780_v40, 0.0 }
 0x464   :  { %v3816_v20 = vmax.f32 %v3815_v51, %v3549_v18  ;;  %v3842_v49 = vmax.f32 %v3841_v1, %v3551_v9  ;;  %v2785_v59 = vpop.f32.mrf.mxu0  ;;  %v2978_v47 = vpop.f32.mrf.mxu1  ;;  %3250 = vmatmul.mubr.bf16.gmra.mxu0 %v6391_v41  ;;  %v2782_v55 = vadd.f32 %v2781_v16, %v6474_v15  ;;  %v2975_v42 = vadd.f32 %v2974_v27, %v6476_v32 }
 0x465   :  { %3292 = vmatprep.mubr.bf16.mxu0 %v5854_v10  ;;  %v3829_v45 = vmax.f32 %v3828_v25, %v3550_v22  ;;  %v3855_v3 = vmax.f32 %v3854_v31, %v3552_v13  ;;  %v3559_v6 = vmax.f32 %v2973_v39, 0.0  ;;  %v2786_v43 = vadd.f32 %v2785_v59, %v6464_v56 }
 0x466   :  { %v2787_v5 = vpop.f32.mrf.mxu0  ;;  %v2980_v52 = vpop.f32.mrf.mxu1  ;;  %v2979_v29 = vadd.f32 %v2978_v47, %v6468_v26  ;;  %v3817_v46 = vmax.f32 %v3816_v20, %v3557_v24  ;;  %v3558_v14 = vmax.f32 %v2782_v55, 0.0  ;;  %v3560_v57 = vmax.f32 %v2975_v42, 0.0 }
 0x467   :  { %v3843_v4 = vmax.f32 %v3842_v49, %v3559_v6  ;;  %v2788_v41 = vadd.f32 %v2787_v5, %v6474_v15  ;;  %v2981_v10 = vadd.f32 %v2980_v52, %v6476_v32  ;;  %v3565_v61 = vmax.f32 %v2786_v43, 0.0 }
 0x468   :  { %v2789_v23 = vpop.f32.mrf.mxu0  ;;  %v2982_v63 = vpop.f32.mrf.mxu1  ;;  %v3567_v2 = vmax.f32 %v2979_v29, 0.0  ;;  %v3830_v38 = vmax.f32 %v3829_v45, %v3558_v14  ;;  %v3856_v60 = vmax.f32 %v3855_v3, %v3560_v57 }
 0x469   :  { %v3566_v48 = vmax.f32 %v2788_v41, 0.0  ;;  %v3568_v7 = vmax.f32 %v2981_v10, 0.0  ;;  %v2790_v35 = vadd.f32 %v2789_v23, %v6464_v56  ;;  %v2983_v33 = vadd.f32 %v2982_v63, %v6468_v26 }
 0x46a   :  { %v2791_v19 = vpop.f32.mrf.mxu0  ;;  %v2984_v58 = vpop.f32.mrf.mxu1  ;;  %v3818_v62 = vmax.f32 %v3817_v46, %v3565_v61  ;;  %v3844_v11 = vmax.f32 %v3843_v4, %v3567_v2 }
 0x46b   :  { %v3573_v51 = vmax.f32 %v2790_v35, 0.0  ;;  %v3575_v1 = vmax.f32 %v2983_v33, 0.0  ;;  %v2792_v12 = vadd.f32 %v2791_v19, %v6474_v15  ;;  %v2985_v53 = vadd.f32 %v2984_v58, %v6476_v32 }
 0x46c   :  { %v2795_v50 = vpop.f32.mrf.mxu0  ;;  %v2988_v44 = vpop.f32.mrf.mxu1  ;;  %3293 = vmatmul.mubr.bf16.vlgmr.msra.gmra.mxu0 %v5860_v34  ;;  %v3831_v30 = vmax.f32 %v3830_v38, %v3566_v48  ;;  %v3857_v28 = vmax.f32 %v3856_v60, %v3568_v7 }
 0x46d   :  { %v2796_v21 = vadd.f32 %v2795_v50, %v6464_v56  ;;  %v2989_v37 = vadd.f32 %v2988_v44, %v6468_v26  ;;  %v3819_v25 = vmax.f32 %v3818_v62, %v3573_v51  ;;  %v3845_v31 = vmax.f32 %v3844_v11, %v3575_v1 }
 0x46e   :  { %v3574_v18 = vmax.f32 %v2792_v12, 0.0  ;;  %v3576_v9 = vmax.f32 %v2985_v53, 0.0  ;;  %v2797_v16 = vpop.f32.mrf.mxu0  ;;  %v2990_v27 = vpop.f32.mrf.mxu1 }
 0x46f   :  { %v3581_v22 = vmax.f32 %v2796_v21, 0.0  ;;  %v3583_v13 = vmax.f32 %v2989_v37, 0.0  ;;  %v2798_v20 = vadd.f32 %v2797_v16, %v6474_v15  ;;  %v2991_v49 = vadd.f32 %v2990_v27, %v6476_v32 }
 0x470   :  { %v3820_v40 = vrot.slane %v3819_v25, 4  ;;  %v3846_v34 = vrot.slane %v3845_v31, 4  ;;  %v3832_v39 = vmax.f32 %v3831_v30, %v3574_v18  ;;  %v3858_v59 = vmax.f32 %v3857_v28, %v3576_v9  ;;  %v2799_v47 = vpop.f32.mrf.mxu0  ;;  %v2992_v45 = vpop.f32.mrf.mxu1 }
 0x471   :  { %v3582_v3 = vmax.f32 %v2798_v20, 0.0  ;;  %v3584_v24 = vmax.f32 %v2991_v49, 0.0  ;;  %v2800_v6 = vadd.f32 %v2799_v47, %v6464_v56  ;;  %v2993_v5 = vadd.f32 %v2992_v45, %v6468_v26 }
 0x472   :  { %v3821_v52 = vmax.f32 %v3819_v25, %v3820_v40  ;;  %v3847_v55 = vmax.f32 %v3845_v31, %v3846_v34  ;;  %v3833_v42 = vrot.slane %v3832_v39, 4  ;;  %v3859_v43 = vrot.slane %v3858_v59, 4  ;;  %v2801_v29 = vpop.f32.mrf.mxu0  ;;  %v2994_v46 = vpop.f32.mrf.mxu1 }
 0x473   :  { %v3589_v4 = vmax.f32 %v2800_v6, 0.0  ;;  %v3591_v41 = vmax.f32 %v2993_v5, 0.0  ;;  %v2802_v10 = vadd.f32 %v2801_v29, %v6474_v15  ;;  %v2995_v23 = vadd.f32 %v2994_v46, %v6476_v32 }
 0x474   :  { %v3822_v63 = vrot.slane %v3821_v52, 2  ;;  %v3848_v14 = vrot.slane %v3847_v55, 2  ;;  %v3834_v57 = vmax.f32 %v3832_v39, %v3833_v42  ;;  %v3860_v61 = vmax.f32 %v3858_v59, %v3859_v43  ;;  %v2805_v2 = vpop.f32.mrf.mxu0  ;;  %v2998_v48 = vpop.f32.mrf.mxu1 }
 0x475   :  { %v3917_v7 = vmax.f32 %v3581_v22, %v3589_v4  ;;  %v3943_v35 = vmax.f32 %v3583_v13, %v3591_v41  ;;  %v3590_v33 = vmax.f32 %v2802_v10, 0.0  ;;  %v3592_v19 = vmax.f32 %v2995_v23, 0.0 }
 0x476   :  { %v3823_v58 = vmax.f32 %v3821_v52, %v3822_v63  ;;  %v3849_v38 = vmax.f32 %v3847_v55, %v3848_v14  ;;  %v3835_v60 = vrot.slane %v3834_v57, 2  ;;  %v3861_v62 = vrot.slane %v3860_v61, 2  ;;  %v2807_v11 = vpop.f32.mrf.mxu0  ;;  %v3000_v51 = vpop.f32.mrf.mxu1 }
 0x477   :  { %v3930_v1 = vmax.f32 %v3582_v3, %v3590_v33  ;;  %v3956_v12 = vmax.f32 %v3584_v24, %v3592_v19  ;;  %v2806_v53 = vadd.f32 %v2805_v2, %v6464_v56  ;;  %v2999_v50 = vadd.f32 %v2998_v48, %v6468_v26 }
 0x478   :  { %v3824_v44 = vrot.slane %v3823_v58, 1  ;;  %v3850_v30 = vrot.slane %v3849_v38, 1  ;;  %v3836_v28 = vmax.f32 %v3834_v57, %v3835_v60  ;;  %v3862_v21 = vmax.f32 %v3860_v61, %v3861_v62  ;;  %v2809_v37 = vpop.f32.mrf.mxu0  ;;  %v3002_v25 = vpop.f32.mrf.mxu1 }
 0x479   :  { %v3597_v31 = vmax.f32 %v2806_v53, 0.0  ;;  %v3599_v18 = vmax.f32 %v2999_v50, 0.0  ;;  %v2808_v9 = vadd.f32 %v2807_v11, %v6474_v15  ;;  %v3001_v16 = vadd.f32 %v3000_v51, %v6476_v32 }
 0x47a   :  { %v3825_v27 = vmax.f32 %v3823_v58, %v3824_v44  ;;  %v3851_v22 = vmax.f32 %v3849_v38, %v3850_v30  ;;  %v3837_v13 = vrot.slane %v3836_v28, 1  ;;  %v3863_v20 = vrot.slane %v3862_v21, 1  ;;  %v2811_v49 = vpop.f32.mrf.mxu0  ;;  %v3004_v40 = vpop.f32.mrf.mxu1 }
 0x47b   :  { %v3918_v34 = vmax.f32 %v3917_v7, %v3597_v31  ;;  %v3944_v39 = vmax.f32 %v3943_v35, %v3599_v18  ;;  %v3598_v59 = vmax.f32 %v2808_v9, 0.0  ;;  %v3600_v47 = vmax.f32 %v3001_v16, 0.0 }
 0x47c   :  { %v3838_v45 = vmax.f32 %v3836_v28, %v3837_v13  ;;  %v3864_v3 = vmax.f32 %v3862_v21, %v3863_v20  ;;  %v2810_v24 = vadd.f32 %v2809_v37, %v6464_v56  ;;  %v3003_v6 = vadd.f32 %v3002_v25, %v6468_v26  ;;  %v2815_v5 = vpop.f32.mrf.mxu0  ;;  %v3008_v52 = vpop.f32.mrf.mxu1 }
 0x47d   :  { %v3931_v55 = vmax.f32 %v3930_v1, %v3598_v59  ;;  %v3957_v42 = vmax.f32 %v3956_v12, %v3600_v47  ;;  %v2812_v43 = vadd.f32 %v2811_v49, %v6474_v15  ;;  %v3005_v29 = vadd.f32 %v3004_v40, %v6476_v32 }
 0x47e   :  { %v4765_v46 = vpack.c.bf16 %v3838_v45, %v3825_v27  ;;  %v4766_v4 = vpack.c.bf16 %v3864_v3, %v3851_v22  ;;  %v3605_v41 = vmax.f32 %v2810_v24, 0.0  ;;  %v3607_v10 = vmax.f32 %v3003_v6, 0.0  ;;  %v2817_v23 = vpop.f32.mrf.mxu0  ;;  %v3010_v63 = vpop.f32.mrf.mxu1 }
 0x47f   :  { %v3606_v14 = vmax.f32 %v2812_v43, 0.0  ;;  %v3608_v57 = vmax.f32 %v3005_v29, 0.0  ;;  %v2816_v61 = vadd.f32 %v2815_v5, %v6464_v56  ;;  %v3009_v2 = vadd.f32 %v3008_v52, %v6468_v26 }
 0x480   :  { %v6600_v48 = vrot.slane %v4765_v46, %v6529_v54  ;;  %v6603_v7 = vrot.slane %v4766_v4, %v6529_v54  ;;  %v3919_v35 = vmax.f32 %v3918_v34, %v3605_v41  ;;  %v3945_v33 = vmax.f32 %v3944_v39, %v3607_v10  ;;  %v2819_v19 = vpop.f32.mrf.mxu0  ;;  %v3012_v58 = vpop.f32.mrf.mxu1 }
 0x481   :  { %v3932_v38 = vmax.f32 %v3931_v55, %v3606_v14  ;;  %v3958_v60 = vmax.f32 %v3957_v42, %v3608_v57  ;;  %v3613_v62 = vmax.f32 %v2816_v61, 0.0  ;;  %v3615_v11 = vmax.f32 %v3009_v2, 0.0 }
 0x482   :  { %v4239_v51 = vcombine.low %v6600_v48, %v6603_v7  ;;  %v2818_v1 = vadd.f32 %v2817_v23, %v6474_v15  ;;  %v3011_v12 = vadd.f32 %v3010_v63, %v6476_v32  ;;  %v2821_v53 = vpop.f32.mrf.mxu0  ;;  %v3014_v50 = vpop.f32.mrf.mxu1  ;;  %v2820_v28 = vadd.f32 %v2819_v19, %v6464_v56 }
 0x483   :  { %v3920_v44 = vmax.f32 %v3919_v35, %v3613_v62  ;;  %v3946_v30 = vmax.f32 %v3945_v33, %v3615_v11  ;;  %v3013_v21 = vadd.f32 %v3012_v58, %v6468_v26  ;;  %v2822_v27 = vadd.f32 %v2821_v53, %v6474_v15 }
 0x484   :  { %v3614_v37 = vmax.f32 %v2818_v1, 0.0  ;;  %v3616_v25 = vmax.f32 %v3011_v12, 0.0  ;;  %v2825_v31 = vpop.f32.mrf.mxu0  ;;  %v3018_v18 = vpop.f32.mrf.mxu1  ;;  %v3621_v9 = vmax.f32 %v2820_v28, 0.0  ;;  %v3015_v22 = vadd.f32 %v3014_v50, %v6476_v32 }
 0x485   :  { %v3623_v16 = vmax.f32 %v3013_v21, 0.0  ;;  %v3622_v59 = vmax.f32 %v2822_v27, 0.0  ;;  %v2826_v45 = vadd.f32 %v2825_v31, %v6464_v56  ;;  %v3019_v3 = vadd.f32 %v3018_v18, %v6468_v26 }
 0x486   :  { %v2827_v13 = vpop.f32.mrf.mxu0  ;;  %v3020_v20 = vpop.f32.mrf.mxu1  ;;  %v3933_v49 = vmax.f32 %v3932_v38, %v3614_v37  ;;  %v3959_v40 = vmax.f32 %v3958_v60, %v3616_v25  ;;  %v3921_v34 = vmax.f32 %v3920_v44, %v3621_v9  ;;  %v3624_v47 = vmax.f32 %v3015_v22, 0.0 }
 0x487   :  { %v3947_v39 = vmax.f32 %v3946_v30, %v3623_v16  ;;  %v2828_v5 = vadd.f32 %v2827_v13, %v6474_v15  ;;  %v3021_v52 = vadd.f32 %v3020_v20, %v6476_v32  ;;  %v3629_v46 = vmax.f32 %v2826_v45, 0.0 }
 0x488   :  { %v2829_v24 = vpop.f32.mrf.mxu0  ;;  %v3022_v6 = vpop.f32.mrf.mxu1  ;;  %v3934_v43 = vmax.f32 %v3933_v49, %v3622_v59  ;;  %v3960_v29 = vmax.f32 %v3959_v40, %v3624_v47  ;;  %v3631_v4 = vmax.f32 %v3019_v3, 0.0 }
 0x489   :  { %v2830_v55 = vadd.f32 %v2829_v24, %v6464_v56  ;;  %v3023_v42 = vadd.f32 %v3022_v6, %v6468_v26  ;;  %v3630_v23 = vmax.f32 %v2828_v5, 0.0  ;;  %v3632_v63 = vmax.f32 %v3021_v52, 0.0 }
 0x48a   :  { %v2831_v41 = vpop.f32.mrf.mxu0  ;;  %v3024_v10 = vpop.f32.mrf.mxu1  ;;  %v3922_v61 = vmax.f32 %v3921_v34, %v3629_v46  ;;  %v3948_v2 = vmax.f32 %v3947_v39, %v3631_v4 }
 0x48b   :  { %v3637_v14 = vmax.f32 %v2830_v55, 0.0  ;;  %v3639_v57 = vmax.f32 %v3023_v42, 0.0  ;;  %v2832_v35 = vadd.f32 %v2831_v41, %v6474_v15  ;;  %v3025_v33 = vadd.f32 %v3024_v10, %v6476_v32 }
 0x48c   :  { %v2835_v19 = vpop.f32.mrf.mxu0  ;;  %v3028_v58 = vpop.f32.mrf.mxu1  ;;  %v3935_v38 = vmax.f32 %v3934_v43, %v3630_v23  ;;  %v3961_v60 = vmax.f32 %v3960_v29, %v3632_v63 }
 0x48d   :  { %v2836_v62 = vadd.f32 %v2835_v19, %v6464_v56  ;;  %v3029_v11 = vadd.f32 %v3028_v58, %v6468_v26  ;;  %v3923_v1 = vmax.f32 %v3922_v61, %v3637_v14  ;;  %v3949_v12 = vmax.f32 %v3948_v2, %v3639_v57 }
 0x48e   :  { %v3638_v53 = vmax.f32 %v2832_v35, 0.0  ;;  %v3640_v50 = vmax.f32 %v3025_v33, 0.0  ;;  %v2837_v44 = vpop.f32.mrf.mxu0  ;;  %v3030_v30 = vpop.f32.mrf.mxu1 }
 0x48f   :  { %v3645_v28 = vmax.f32 %v2836_v62, 0.0  ;;  %v3647_v21 = vmax.f32 %v3029_v11, 0.0  ;;  %v2838_v37 = vadd.f32 %v2837_v44, %v6474_v15  ;;  %v3031_v25 = vadd.f32 %v3030_v30, %v6476_v32 }
 0x490   :  { %v3924_v31 = vrot.slane %v3923_v1, 4  ;;  %v3950_v18 = vrot.slane %v3949_v12, 4  ;;  %v3936_v9 = vmax.f32 %v3935_v38, %v3638_v53  ;;  %v3962_v16 = vmax.f32 %v3961_v60, %v3640_v50  ;;  %v2839_v27 = vpop.f32.mrf.mxu0  ;;  %v3032_v22 = vpop.f32.mrf.mxu1 }
 0x491   :  { %v3646_v13 = vmax.f32 %v2838_v37, 0.0  ;;  %v3648_v20 = vmax.f32 %v3031_v25, 0.0  ;;  %v2840_v49 = vadd.f32 %v2839_v27, %v6464_v56  ;;  %v3033_v40 = vadd.f32 %v3032_v22, %v6468_v26 }
 0x492   :  { %v3925_v34 = vmax.f32 %v3923_v1, %v3924_v31  ;;  %v3951_v39 = vmax.f32 %v3949_v12, %v3950_v18  ;;  %v3937_v59 = vrot.slane %v3936_v9, 4  ;;  %v3963_v47 = vrot.slane %v3962_v16, 4  ;;  %v2841_v45 = vpop.f32.mrf.mxu0  ;;  %v3034_v3 = vpop.f32.mrf.mxu1 }
 0x493   :  { %v3653_v24 = vmax.f32 %v2840_v49, 0.0  ;;  %v3655_v6 = vmax.f32 %v3033_v40, 0.0  ;;  %v2842_v5 = vadd.f32 %v2841_v45, %v6474_v15  ;;  %v3035_v52 = vadd.f32 %v3034_v3, %v6476_v32 }
 0x494   :  { %v3926_v55 = vrot.slane %v3925_v34, 2  ;;  %v3952_v42 = vrot.slane %v3951_v39, 2  ;;  %v3938_v43 = vmax.f32 %v3936_v9, %v3937_v59  ;;  %v3964_v29 = vmax.f32 %v3962_v16, %v3963_v47  ;;  %v2845_v46 = vpop.f32.mrf.mxu0  ;;  %v3038_v4 = vpop.f32.mrf.mxu1 }
 0x495   :  { %v4021_v41 = vmax.f32 %v3645_v28, %v3653_v24  ;;  %v4047_v10 = vmax.f32 %v3647_v21, %v3655_v6  ;;  %v3654_v23 = vmax.f32 %v2842_v5, 0.0  ;;  %v3656_v63 = vmax.f32 %v3035_v52, 0.0 }
 0x496   :  { %v3927_v14 = vmax.f32 %v3925_v34, %v3926_v55  ;;  %v3953_v57 = vmax.f32 %v3951_v39, %v3952_v42  ;;  %v3939_v61 = vrot.slane %v3938_v43, 2  ;;  %v3965_v2 = vrot.slane %v3964_v29, 2  ;;  %v2847_v35 = vpop.f32.mrf.mxu0  ;;  %v3040_v33 = vpop.f32.mrf.mxu1 }
 0x497   :  { %v4034_v19 = vmax.f32 %v3646_v13, %v3654_v23  ;;  %v4060_v58 = vmax.f32 %v3648_v20, %v3656_v63  ;;  %v2846_v38 = vadd.f32 %v2845_v46, %v6464_v56  ;;  %v3039_v60 = vadd.f32 %v3038_v4, %v6468_v26 }
 0x498   :  { %v3928_v62 = vrot.slane %v3927_v14, 1  ;;  %v3954_v11 = vrot.slane %v3953_v57, 1  ;;  %v3940_v1 = vmax.f32 %v3938_v43, %v3939_v61  ;;  %v3966_v12 = vmax.f32 %v3964_v29, %v3965_v2  ;;  %v2849_v53 = vpop.f32.mrf.mxu0  ;;  %v3042_v50 = vpop.f32.mrf.mxu1 }
 0x499   :  { %v3661_v44 = vmax.f32 %v2846_v38, 0.0  ;;  %v3663_v30 = vmax.f32 %v3039_v60, 0.0  ;;  %v2848_v28 = vadd.f32 %v2847_v35, %v6474_v15  ;;  %v3041_v21 = vadd.f32 %v3040_v33, %v6476_v32 }
 0x49a   :  { %v3929_v37 = vmax.f32 %v3927_v14, %v3928_v62  ;;  %v3955_v25 = vmax.f32 %v3953_v57, %v3954_v11  ;;  %v3941_v31 = vrot.slane %v3940_v1, 1  ;;  %v3967_v18 = vrot.slane %v3966_v12, 1  ;;  %v2851_v9 = vpop.f32.mrf.mxu0  ;;  %v3044_v16 = vpop.f32.mrf.mxu1 }
 0x49b   :  { %v4022_v27 = vmax.f32 %v4021_v41, %v3661_v44  ;;  %v4048_v22 = vmax.f32 %v4047_v10, %v3663_v30  ;;  %v3662_v13 = vmax.f32 %v2848_v28, 0.0  ;;  %v3664_v20 = vmax.f32 %v3041_v21, 0.0 }
 0x49c   :  { %v3942_v49 = vmax.f32 %v3940_v1, %v3941_v31  ;;  %v3968_v40 = vmax.f32 %v3966_v12, %v3967_v18  ;;  %v2850_v34 = vadd.f32 %v2849_v53, %v6464_v56  ;;  %v3043_v39 = vadd.f32 %v3042_v50, %v6468_v26  ;;  %v2855_v59 = vpop.f32.mrf.mxu0  ;;  %v3048_v47 = vpop.f32.mrf.mxu1 }
 0x49d   :  { %v4035_v45 = vmax.f32 %v4034_v19, %v3662_v13  ;;  %v4061_v3 = vmax.f32 %v4060_v58, %v3664_v20  ;;  %v2852_v24 = vadd.f32 %v2851_v9, %v6474_v15  ;;  %v3045_v6 = vadd.f32 %v3044_v16, %v6476_v32 }
 0x49e   :  { %v4769_v5 = vpack.c.bf16 %v3942_v49, %v3929_v37  ;;  %v4770_v52 = vpack.c.bf16 %v3968_v40, %v3955_v25  ;;  %v3669_v55 = vmax.f32 %v2850_v34, 0.0  ;;  %v3671_v42 = vmax.f32 %v3043_v39, 0.0  ;;  %v2857_v43 = vpop.f32.mrf.mxu0  ;;  %v3050_v29 = vpop.f32.mrf.mxu1 }
 0x49f   :  { %v3670_v46 = vmax.f32 %v2852_v24, 0.0  ;;  %v3672_v4 = vmax.f32 %v3045_v6, 0.0  ;;  %v2856_v41 = vadd.f32 %v2855_v59, %v6464_v56  ;;  %v3049_v10 = vadd.f32 %v3048_v47, %v6468_v26 }
 0x4a0   :  { %v6640_v23 = vrot.slane %v4769_v5, %v6529_v54  ;;  %v6643_v63 = vrot.slane %v4770_v52, %v6529_v54  ;;  %v4023_v14 = vmax.f32 %v4022_v27, %v3669_v55  ;;  %v4049_v57 = vmax.f32 %v4048_v22, %v3671_v42  ;;  %v2859_v61 = vpop.f32.mrf.mxu0  ;;  %v3052_v2 = vpop.f32.mrf.mxu1 }
 0x4a1   :  { %v4036_v35 = vmax.f32 %v4035_v45, %v3670_v46  ;;  %v4062_v33 = vmax.f32 %v4061_v3, %v3672_v4  ;;  %v3677_v19 = vmax.f32 %v2856_v41, 0.0  ;;  %v3679_v58 = vmax.f32 %v3049_v10, 0.0 }
 0x4a2   :  { %v4273_v38 = vcombine.low %v6640_v23, %v6643_v63  ;;  %v2858_v60 = vadd.f32 %v2857_v43, %v6474_v15  ;;  %v3051_v62 = vadd.f32 %v3050_v29, %v6476_v32  ;;  %v2861_v11 = vpop.f32.mrf.mxu0  ;;  %v3054_v1 = vpop.f32.mrf.mxu1  ;;  %v2860_v50 = vadd.f32 %v2859_v61, %v6464_v56 }
 0x4a3   :  { %v4024_v12 = vmax.f32 %v4023_v14, %v3677_v19  ;;  %v4050_v53 = vmax.f32 %v4049_v57, %v3679_v58  ;;  %v3053_v44 = vadd.f32 %v3052_v2, %v6468_v26  ;;  %v2019_v25 = vsub.s32 4, %v7159_v17 }
 0x4a4   :  { %v3678_v30 = vmax.f32 %v2858_v60, 0.0  ;;  %v3680_v28 = vmax.f32 %v3051_v62, 0.0  ;;  %v2865_v21 = vpop.f32.mrf.mxu0  ;;  %v3058_v37 = vpop.f32.mrf.mxu1  ;;  %v2023_v31 = vsub.s32 5, %v7159_v17  ;;  %v3685_v18 = vmax.f32 %v2860_v50, 0.0 }
 0x4a5   :  { %v3687_v9 = vmax.f32 %v3053_v44, 0.0  ;;  %v2862_v16 = vadd.f32 %v2861_v11, %v6474_v15  ;;  %v3055_v27 = vadd.f32 %v3054_v1, %v6476_v32  ;;  %v2866_v20 = vadd.f32 %v2865_v21, %v6464_v56 }
 0x4a6   :  { %v4037_v22 = vmax.f32 %v4036_v35, %v3678_v30  ;;  %v4063_v13 = vmax.f32 %v4062_v33, %v3680_v28  ;;  %v3059_v49 = vadd.f32 %v3058_v37, %v6468_v26  ;;  %v2867_v40 = vpop.f32.mrf.mxu0  ;;  %v3060_v34 = vpop.f32.mrf.mxu1  ;;  %v4025_v39 = vmax.f32 %v4024_v12, %v3685_v18 }
 0x4a7   :  { %v4051_v59 = vmax.f32 %v4050_v53, %v3687_v9  ;;  %v3686_v47 = vmax.f32 %v2862_v16, 0.0  ;;  %v3688_v45 = vmax.f32 %v3055_v27, 0.0  ;;  %v3693_v3 = vmax.f32 %v2866_v20, 0.0 }
 0x4a8   :  { %v3695_v24 = vmax.f32 %v3059_v49, 0.0  ;;  %v2868_v6 = vadd.f32 %v2867_v40, %v6474_v15  ;;  %v3061_v5 = vadd.f32 %v3060_v34, %v6476_v32  ;;  %v2869_v52 = vpop.f32.mrf.mxu0  ;;  %v3062_v55 = vpop.f32.mrf.mxu1  ;;  %v2027_v11 = vsub.s32 6, %v7159_v17 }
 0x4a9   :  { %v4038_v42 = vmax.f32 %v4037_v22, %v3686_v47  ;;  %v4064_v43 = vmax.f32 %v4063_v13, %v3688_v45  ;;  %v2870_v29 = vadd.f32 %v2869_v52, %v6464_v56  ;;  %v3063_v46 = vadd.f32 %v3062_v55, %v6468_v26  ;;  %v4985_v56 = vld [vmem:[%s7067_s9] sm:$0xff]  ;;  %s5063_s9 = smov [#allocation7]  }
 0x4aa   :  { %v4026_v4 = vmax.f32 %v4025_v39, %v3693_v3  ;;  %v4052_v41 = vmax.f32 %v4051_v59, %v3695_v24  ;;  %v3694_v10 = vmax.f32 %v2868_v6, 0.0  ;;  %v3696_v14 = vmax.f32 %v3061_v5, 0.0  ;;  %v2871_v57 = vpop.f32.mrf.mxu0  ;;  %v3064_v61 = vpop.f32.mrf.mxu1  ;;  %s4569_s20 = sshll.u32 %s5063_s9, 4  ;;  %s4570_s20 = int_to_ptr.vmem [resolvable:$true] %s4569_s20 }
 0x4ab   :  { %v3701_v2 = vmax.f32 %v2870_v29, 0.0  ;;  %v3703_v35 = vmax.f32 %v3063_v46, 0.0  ;;  %v2872_v33 = vadd.f32 %v2871_v57, %v6474_v15  ;;  %v3065_v19 = vadd.f32 %v3064_v61, %v6476_v32  ;;  %s5026_s21 = scalar_lea.vmem %s4570_s20, 256  ;;  %p5031_p11 = scmp.lt.s32.totalorder %s4570_s20, %s4570_s20 }
 0x4ac   :  { %v4039_v58 = vmax.f32 %v4038_v42, %v3694_v10  ;;  %v4065_v60 = vmax.f32 %v4064_v43, %v3696_v14  ;;  %v6666_v62 = vrot.slane %v4985_v56, %v2019_v25  ;;  %v3101_v26 = vpop.f32.mrf.mxu0  ;;  %v6669_v1 = vpop.f32.mrf.mxu1  ;;  %v4777_v15 = vcombine.low %v6558_v36, %v6558_v36  ;;  %p5027_p10 = scmp.ne.s32.totalorder %s4570_s20, %s5026_s21  ;;  %p5032_p12 = scmp.lt.s32.totalorder %s5026_s21, %s5026_s21 }
 0x4ad   :  { %v4027_v12 = vmax.f32 %v4026_v4, %v3701_v2  ;;  %v4053_v53 = vmax.f32 %v4052_v41, %v3703_v35  ;;  %v3702_v50 = vmax.f32 %v2872_v33, 0.0  ;;  %v3704_v44 = vmax.f32 %v3065_v19, 0.0 }
 0x4ae   :  { %v6673_v32 = vrot.slane %v4985_v56, %v2023_v31  ;;  %v3103_v30 = vpop.f32.mrf.mxu0  ;;  %v2031_v28 = vsub.s32 7, %v7159_v17  ;;  %v6676_v21 = vpop.f32.mrf.mxu1  ;;  %v6682_v16 = vrot.slane %v4205_v8, %v6529_v54  ;;  %v3102_v27 = vadd.f32 %v3101_v26, %v6666_v62  ;;  %p5033_p13 = por %p5032_p12, %p5031_p11 }
 0x4af   :  { %v4028_v37 = vrot.slane %v4027_v12, 4  ;;  %v4054_v25 = vrot.slane %v4053_v53, 4  ;;  %v4040_v18 = vmax.f32 %v4039_v58, %v3702_v50  ;;  %v4066_v9 = vmax.f32 %v4065_v60, %v3704_v44 }
 0x4b0   :  { %v6685_v22 = vrot.slane %v4985_v56, %v2027_v11  ;;  %v3105_v31 = vpop.f32.mrf.mxu0  ;;  %v6687_v13 = vpop.f32.mrf.mxu1  ;;  %v6690_v34 = vrot.slane %v4777_v15, %v6529_v54  ;;  %v3104_v39 = vadd.f32 %v3103_v30, %v6673_v32  ;;  %v6693_v59 = vrot.slane %v4985_v56, %v2031_v28  ;;  %p5034_p0 = pnand %p5033_p13, %p5027_p10 }
 0x4b1   :  { %v4029_v17 = vmax.f32 %v4027_v12, %v4028_v37  ;;  %v4055_v20 = vmax.f32 %v4053_v53, %v4054_v25  ;;  %v4041_v49 = vrot.slane %v4040_v18, 4  ;;  %v4067_v40 = vrot.slane %v4066_v9, 4 }
 0x4b2   :  { %v3106_v0 = vadd.f32 %v3105_v31, %v6666_v62  ;;  %v3107_v36 = vpop.f32.mrf.mxu0  ;;  %v6696_v8 = vpop.f32.mrf.mxu1  ;;  %v4445_v6 = vunpack.c.l.b16 %v6682_v16  ;;  %v3457_v5 = vmax.f32 %v3102_v27, 0.0  ;;  %v3458_v10 = vmax.f32 %v3104_v39, 0.0 }
 0x4b3   :  { %v4030_v47 = vrot.slane %v4029_v17, 2  ;;  %v4056_v45 = vrot.slane %v4055_v20, 2  ;;  %v4042_v3 = vmax.f32 %v4040_v18, %v4041_v49  ;;  %v4068_v24 = vmax.f32 %v4066_v9, %v4067_v40 }
 0x4b4   :  { %v3465_v52 = vmax.f32 %v3106_v0, 0.0  ;;  %v3108_v55 = vadd.f32 %v3107_v36, %v6673_v32  ;;  %v3111_v42 = vpop.f32.mrf.mxu0  ;;  %v6700_v43 = vpop.f32.mrf.mxu1  ;;  %v4779_v56 = vcombine.low %v6603_v7, %v6603_v7  ;;  %v4446_v44 = vunpack.c.h.b16 %v6682_v16 }
 0x4b5   :  { %v4031_v29 = vmax.f32 %v4029_v17, %v4030_v47  ;;  %v4057_v46 = vmax.f32 %v4055_v20, %v4056_v45  ;;  %v4043_v4 = vrot.slane %v4042_v3, 2  ;;  %v4069_v41 = vrot.slane %v4068_v24, 2 }
 0x4b6   :  { %v3761_v14 = vmax.f32 %v3457_v5, %v3465_v52  ;;  %v3466_v57 = vmax.f32 %v3108_v55, 0.0  ;;  %v3112_v61 = vadd.f32 %v3111_v42, %v6666_v62  ;;  %v3113_v2 = vpop.f32.mrf.mxu0  ;;  %v6703_v35 = vpop.f32.mrf.mxu1  ;;  %v6715_v15 = vrot.slane %v4239_v51, %v6529_v54 }
 0x4b7   :  { %v4032_v33 = vrot.slane %v4031_v29, 1  ;;  %v4058_v19 = vrot.slane %v4057_v46, 1  ;;  %v4044_v58 = vmax.f32 %v4042_v3, %v4043_v4  ;;  %v4070_v60 = vmax.f32 %v4068_v24, %v4069_v41 }
 0x4b8   :  { %v3774_v26 = vmax.f32 %v3458_v10, %v3466_v57  ;;  %v3473_v11 = vmax.f32 %v3112_v61, 0.0  ;;  %v3114_v12 = vadd.f32 %v3113_v2, %v6673_v32  ;;  %v3115_v53 = vpop.f32.mrf.mxu0  ;;  %v6708_v50 = vpop.f32.mrf.mxu1  ;;  %v4447_v37 = vunpack.c.l.b16 %v6690_v34 }
 0x4b9   :  { %v4045_v30 = vrot.slane %v4044_v58, 1  ;;  %v4071_v28 = vrot.slane %v4070_v60, 1  ;;  %v4033_v25 = vmax.f32 %v4031_v29, %v4032_v33  ;;  %v4059_v17 = vmax.f32 %v4057_v46, %v4058_v19 }
 0x4ba   :  { %v3762_v18 = vmax.f32 %v3761_v14, %v3473_v11  ;;  %v3474_v9 = vmax.f32 %v3114_v12, 0.0  ;;  %v3117_v27 = vpop.f32.mrf.mxu0  ;;  %v6718_v31 = vpop.f32.mrf.mxu1  ;;  %v3116_v40 = vadd.f32 %v3115_v53, %v6666_v62  ;;  %v4448_v39 = vunpack.c.h.b16 %v6690_v34 }
 0x4bb   :  { %v4046_v20 = vmax.f32 %v4044_v58, %v4045_v30  ;;  %v4072_v49 = vmax.f32 %v4070_v60, %v4071_v28  ;;  %v6723_v48 = vrot.slane %v4779_v56, %v6529_v54  ;;  %v3118_v51 = vadd.f32 %v3117_v27, %v6673_v32 }
 0x4bc   :  { %v3775_v7 = vmax.f32 %v3774_v26, %v3474_v9  ;;  %v3121_v0 = vpop.f32.mrf.mxu0  ;;  %v6726_v36 = vpop.f32.mrf.mxu1  ;;  %v4453_v47 = vunpack.c.l.b16 %v6715_v15  ;;  %v3481_v24 = vmax.f32 %v3116_v40, 0.0  ;;  %v4454_v5 = vunpack.c.h.b16 %v6715_v15 }
 0x4bd   :  { %v4773_v45 = vpack.c.bf16 %v4046_v20, %v4033_v25  ;;  %v4774_v3 = vpack.c.bf16 %v4072_v49, %v4059_v17  ;;  %v4781_v52 = vcombine.low %v6643_v63, %v6643_v63  ;;  %v3482_v55 = vmax.f32 %v3118_v51, 0.0 }
 0x4be   :  { %v3122_v42 = vadd.f32 %v3121_v0, %v6666_v62  ;;  %v3123_v29 = vpop.f32.mrf.mxu0  ;;  %v6733_v46 = vpop.f32.mrf.mxu1  ;;  %v3763_v10 = vmax.f32 %v3762_v18, %v3481_v24  ;;  %v4455_v57 = vunpack.c.l.b16 %v6723_v48  ;;  %v4392_v61 = vrot.slane %v4273_v38, %v6529_v54 }
 0x4bf   :  { %v4299_v4 = vrot.slane %v4773_v45, %v6529_v54  ;;  %v4306_v41 = vrot.slane %v4774_v3, %v6529_v54  ;;  %v3124_v14 = vadd.f32 %v3123_v29, %v6673_v32  ;;  %v3776_v2 = vmax.f32 %v3775_v7, %v3482_v55 }
 0x4c0   :  { %v3489_v33 = vmax.f32 %v3122_v42, 0.0  ;;  %v3125_v19 = vpop.f32.mrf.mxu0  ;;  %v6743_v58 = vpop.f32.mrf.mxu1  ;;  %v4456_v12 = vunpack.c.h.b16 %v6723_v48  ;;  %v6748_v53 = vrot.slane %v4781_v52, %v6529_v54  ;;  %v4477_v23 = vrot.slane %v4453_v47, 7 }
 0x4c1   :  { %v4307_v60 = vcombine.low %v4299_v4, %v4306_v41  ;;  %v4783_v56 = vcombine.low %v4306_v41, %v4306_v41  ;;  %v3490_v26 = vmax.f32 %v3124_v14, 0.0  ;;  %v3126_v11 = vadd.f32 %v3125_v19, %v6666_v62 }
 0x4c2   :  { %v3764_v30 = vmax.f32 %v3763_v10, %v3489_v33  ;;  %v3127_v28 = vpop.f32.mrf.mxu0  ;;  %v6750_v25 = vpop.f32.mrf.mxu1  ;;  %v4461_v49 = vunpack.c.l.b16 %v4392_v61  ;;  %v4462_v40 = vunpack.c.h.b16 %v4392_v61  ;;  %v4478_v7 = vsel %vm1439_vm1, %v4477_v23, %v4445_v6 }
 0x4c3   :  { %v4422_v63 = vrot.slane %v4307_v60, %v6529_v54  ;;  %v6754_v38 = vrot.slane %v4783_v56, %v6529_v54  ;;  %v3777_v18 = vmax.f32 %v3776_v2, %v3490_v26  ;;  %v3497_v9 = vmax.f32 %v3126_v11, 0.0 }
 0x4c4   :  { %v3128_v27 = vadd.f32 %v3127_v28, %v6673_v32  ;;  %v3131_v17 = vpop.f32.mrf.mxu0  ;;  %v3334_v20 = vpop.f32.mrf.mxu1  ;;  %v4463_v55 = vunpack.c.l.b16 %v6748_v53  ;;  %v4464_v42 = vunpack.c.h.b16 %v6748_v53  ;;  %v4479_v19 = vrot.slane %v4461_v49, 6 }
 0x4c5   :  { %v3765_v51 = vmax.f32 %v3764_v30, %v3497_v9  ;;  %v3132_v0 = vadd.f32 %v3131_v17, %v6666_v62  ;;  %v3335_v47 = vadd.f32 %v3334_v20, %v6685_v22  ;;  %v4469_v45 = vunpack.c.l.b16 %v4422_v63 }
 0x4c6   :  { %v3498_v3 = vmax.f32 %v3128_v27, 0.0  ;;  %v3133_v24 = vpop.f32.mrf.mxu0  ;;  %v3336_v52 = vpop.f32.mrf.mxu1  ;;  %v4470_v29 = vunpack.c.h.b16 %v4422_v63  ;;  %v4471_v6 = vunpack.c.l.b16 %v6754_v38  ;;  %v4480_v9 = vsel %vm1441_vm2, %v4479_v19, %v4478_v7 }
 0x4c7   :  { %v3505_v4 = vmax.f32 %v3132_v0, 0.0  ;;  %v3134_v41 = vadd.f32 %v3133_v24, %v6673_v32  ;;  %v3337_v10 = vadd.f32 %v3336_v52, %v6693_v59  ;;  %v3523_v61 = vmax.f32 %v3335_v47, 0.0 }
 0x4c8   :  { %v3778_v14 = vmax.f32 %v3777_v18, %v3498_v3  ;;  %v3135_v2 = vpop.f32.mrf.mxu0  ;;  %v3338_v33 = vpop.f32.mrf.mxu1  ;;  %v4481_v60 = vrot.slane %v4469_v45, 5  ;;  %v4483_v27 = vrot.slane %v4454_v5, 7  ;;  %v4485_v18 = vrot.slane %v4462_v40, 6 }
 0x4c9   :  { %v3766_v56 = vmax.f32 %v3765_v51, %v3505_v4  ;;  %v3506_v26 = vmax.f32 %v3134_v41, 0.0  ;;  %v3524_v11 = vmax.f32 %v3337_v10, 0.0  ;;  %v3136_v30 = vadd.f32 %v3135_v2, %v6666_v62 }
 0x4ca   :  { %v3339_v28 = vadd.f32 %v3338_v33, %v6685_v22  ;;  %v3137_v23 = vpop.f32.mrf.mxu0  ;;  %v3340_v63 = vpop.f32.mrf.mxu1  ;;  %v6775_v3 = vsel %vm1443_vm3, %v4481_v60, %v4480_v9  ;;  %v4484_v7 = vsel %vm1439_vm1, %v4483_v27, %v4446_v44  ;;  %v4487_v24 = vrot.slane %v4470_v29, 5 }
 0x4cb   :  { %v3779_v17 = vmax.f32 %v3778_v14, %v3506_v26  ;;  %v3513_v20 = vmax.f32 %v3136_v30, 0.0  ;;  %v3138_v49 = vadd.f32 %v3137_v23, %v6673_v32  ;;  %v3341_v51 = vadd.f32 %v3340_v63, %v6693_v59 }
 0x4cc   :  { %v3531_v0 = vmax.f32 %v3339_v28, 0.0  ;;  %v3141_v47 = vpop.f32.mrf.mxu0  ;;  %v3344_v45 = vpop.f32.mrf.mxu1  ;;  %v4486_v2 = vsel %vm1441_vm2, %v4485_v18, %v4484_v7  ;;  %v4489_v33 = vrot.slane %v4455_v57, 7 }
 0x4cd   :  { %v3767_v15 = vmax.f32 %v3766_v56, %v3513_v20  ;;  %v3514_v5 = vmax.f32 %v3138_v49, 0.0  ;;  %v3532_v40 = vmax.f32 %v3341_v51, 0.0  ;;  %v3142_v52 = vadd.f32 %v3141_v47, %v6666_v62 }
 0x4ce   :  { %v3891_v4 = vmax.f32 %v3523_v61, %v3531_v0  ;;  %v3345_v41 = vadd.f32 %v3344_v45, %v6685_v22  ;;  %v3143_v10 = vpop.f32.mrf.mxu0  ;;  %v3346_v14 = vpop.f32.mrf.mxu1  ;;  %v6788_v28 = vsel %vm1443_vm3, %v4487_v24, %v4486_v2  ;;  %v4490_v49 = vsel %vm1439_vm1, %v4489_v33, %v4447_v37 }
 0x4cf   :  { %v3768_v19 = vrot.slane %v3767_v15, 4  ;;  %v3780_v16 = vmax.f32 %v3779_v17, %v3514_v5  ;;  %v3904_v60 = vmax.f32 %v3524_v11, %v3532_v40  ;;  %v3521_v44 = vmax.f32 %v3142_v52, 0.0 }
 0x4d0   :  { %v3539_v29 = vmax.f32 %v3345_v41, 0.0  ;;  %v3144_v56 = vadd.f32 %v3143_v10, %v6673_v32  ;;  %v3347_v26 = vadd.f32 %v3346_v14, %v6693_v59  ;;  %v3145_v30 = vpop.f32.mrf.mxu0  ;;  %v3348_v61 = vpop.f32.mrf.mxu1  ;;  %v4491_v52 = vrot.slane %v4463_v55, 6 }
 0x4d1   :  { %v3769_v23 = vmax.f32 %v3767_v15, %v3768_v19  ;;  %v3781_v63 = vrot.slane %v3780_v16, 4  ;;  %v3146_v9 = vadd.f32 %v3145_v30, %v6666_v62  ;;  %v3349_v57 = vadd.f32 %v3348_v61, %v6685_v22 }
 0x4d2   :  { %v3892_v27 = vmax.f32 %v3891_v4, %v3539_v29  ;;  %v3522_v18 = vmax.f32 %v3144_v56, 0.0  ;;  %v3540_v11 = vmax.f32 %v3347_v26, 0.0  ;;  %v3147_v17 = vpop.f32.mrf.mxu0  ;;  %v3350_v20 = vpop.f32.mrf.mxu1 }
 0x4d3   :  { %v3770_v51 = vrot.slane %v3769_v23, 2  ;;  %v3782_v0 = vmax.f32 %v3780_v16, %v3781_v63  ;;  %v3529_v47 = vmax.f32 %v3146_v9, 0.0  ;;  %v3547_v45 = vmax.f32 %v3349_v57, 0.0 }
 0x4d4   :  { %v3905_v7 = vmax.f32 %v3904_v60, %v3540_v11  ;;  %v3148_v24 = vadd.f32 %v3147_v17, %v6673_v32  ;;  %v3351_v15 = vadd.f32 %v3350_v20, %v6693_v59  ;;  %v3151_v5 = vpop.f32.mrf.mxu0  ;;  %v3354_v40 = vpop.f32.mrf.mxu1 }
 0x4d5   :  { %v3771_v4 = vmax.f32 %v3769_v23, %v3770_v51  ;;  %v3783_v41 = vrot.slane %v3782_v0, 2  ;;  %v3865_v10 = vmax.f32 %v3521_v44, %v3529_v47  ;;  %v3893_v14 = vmax.f32 %v3892_v27, %v3547_v45 }
 0x4d6   :  { %v3530_v2 = vmax.f32 %v3148_v24, 0.0  ;;  %v3548_v37 = vmax.f32 %v3351_v15, 0.0  ;;  %v3152_v33 = vadd.f32 %v3151_v5, %v6666_v62  ;;  %v3355_v19 = vadd.f32 %v3354_v40, %v6685_v22  ;;  %v3153_v16 = vpop.f32.mrf.mxu0  ;;  %v3356_v60 = vpop.f32.mrf.mxu1 }
 0x4d7   :  { %v3772_v29 = vrot.slane %v3771_v4, 1  ;;  %v3784_v56 = vmax.f32 %v3782_v0, %v3783_v41  ;;  %v3154_v26 = vadd.f32 %v3153_v16, %v6673_v32  ;;  %v3357_v30 = vadd.f32 %v3356_v60, %v6693_v59 }
 0x4d8   :  { %v3878_v61 = vmax.f32 %v3522_v18, %v3530_v2  ;;  %v3906_v55 = vmax.f32 %v3905_v7, %v3548_v37  ;;  %v3537_v23 = vmax.f32 %v3152_v33, 0.0  ;;  %v3555_v63 = vmax.f32 %v3355_v19, 0.0  ;;  %v3155_v44 = vpop.f32.mrf.mxu0  ;;  %v3358_v9 = vpop.f32.mrf.mxu1 }
 0x4d9   :  { %v6803_v57 = vmax.f32 %v3771_v4, %v3772_v29  ;;  %v3785_v27 = vrot.slane %v3784_v56, 1  ;;  %v3538_v11 = vmax.f32 %v3154_v26, 0.0  ;;  %v3556_v17 = vmax.f32 %v3357_v30, 0.0 }
 0x4da   :  { %v3866_v20 = vmax.f32 %v3865_v10, %v3537_v23  ;;  %v3894_v51 = vmax.f32 %v3893_v14, %v3555_v63  ;;  %v3156_v47 = vadd.f32 %v3155_v44, %v6666_v62  ;;  %v3359_v0 = vadd.f32 %v3358_v9, %v6685_v22  ;;  %v3157_v45 = vpop.f32.mrf.mxu0  ;;  %v3360_v24 = vpop.f32.mrf.mxu1 }
 0x4db   :  { %7161 = vst [vmem:[#allocation15_spill] sm:$0xff] %v6803_v57  ;;  %v6807_v15 = vmax.f32 %v3784_v56, %v3785_v27  ;;  %v3879_v18 = vmax.f32 %v3878_v61, %v3538_v11  ;;  %v3907_v7 = vmax.f32 %v3906_v55, %v3556_v17  ;;  %v3158_v5 = vadd.f32 %v3157_v45, %v6673_v32 }
 0x4dc   :  { %v3545_v40 = vmax.f32 %v3156_v47, 0.0  ;;  %v3563_v4 = vmax.f32 %v3359_v0, 0.0  ;;  %v3361_v41 = vadd.f32 %v3360_v24, %v6693_v59  ;;  %v3161_v2 = vpop.f32.mrf.mxu0  ;;  %v3364_v37 = vpop.f32.mrf.mxu1  ;;  %v4492_v10 = vsel %vm1441_vm2, %v4491_v52, %v4490_v49 }
 0x4dd   :  { %7162 = vst [vmem:[#allocation12_spill] sm:$0xff] %v6807_v15  ;;  %v3546_v33 = vmax.f32 %v3158_v5, 0.0  ;;  %v3162_v19 = vadd.f32 %v3161_v2, %v6666_v62  ;;  %v3365_v16 = vadd.f32 %v3364_v37, %v6685_v22  ;;  %v4493_v61 = vrot.slane %v4471_v6, 5 }
 0x4de   :  { %v3867_v60 = vmax.f32 %v3866_v20, %v3545_v40  ;;  %v3895_v29 = vmax.f32 %v3894_v51, %v3563_v4  ;;  %v3564_v56 = vmax.f32 %v3361_v41, 0.0  ;;  %v3163_v26 = vpop.f32.mrf.mxu0  ;;  %v3366_v30 = vpop.f32.mrf.mxu1  ;;  %v4472_v49 = vunpack.c.h.b16 %v6754_v38 }
 0x4df   :  { %v3880_v55 = vmax.f32 %v3879_v18, %v3546_v33  ;;  %v3553_v23 = vmax.f32 %v3162_v19, 0.0  ;;  %v3571_v63 = vmax.f32 %v3365_v16, 0.0  ;;  %v3164_v44 = vadd.f32 %v3163_v26, %v6673_v32 }
 0x4e0   :  { %v3908_v52 = vmax.f32 %v3907_v7, %v3564_v56  ;;  %v3367_v9 = vadd.f32 %v3366_v30, %v6693_v59  ;;  %v3165_v27 = vpop.f32.mrf.mxu0  ;;  %v3368_v11 = vpop.f32.mrf.mxu1  ;;  %v6822_v17 = vsel %vm1443_vm3, %v4493_v61, %v4492_v10  ;;  %v4495_v18 = vrot.slane %v4456_v12, 7 }
 0x4e1   :  { %v3868_v20 = vmax.f32 %v3867_v60, %v3553_v23  ;;  %v3896_v51 = vmax.f32 %v3895_v29, %v3571_v63  ;;  %v3166_v47 = vadd.f32 %v3165_v27, %v6666_v62  ;;  %v3369_v6 = vadd.f32 %v3368_v11, %v6685_v22 }
 0x4e2   :  { %v3554_v0 = vmax.f32 %v3164_v44, 0.0  ;;  %v3572_v45 = vmax.f32 %v3367_v9, 0.0  ;;  %v3167_v24 = vpop.f32.mrf.mxu0  ;;  %v3370_v38 = vpop.f32.mrf.mxu1  ;;  %v4497_v7 = vrot.slane %v4464_v42, 6  ;;  %v4496_v19 = vsel %vm1439_vm1, %v4495_v18, %v4448_v39 }
 0x4e3   :  { %v3561_v5 = vmax.f32 %v3166_v47, 0.0  ;;  %v3579_v40 = vmax.f32 %v3369_v6, 0.0  ;;  %v3168_v4 = vadd.f32 %v3167_v24, %v6673_v32  ;;  %v3371_v41 = vadd.f32 %v3370_v38, %v6693_v59 }
 0x4e4   :  { %v3881_v2 = vmax.f32 %v3880_v55, %v3554_v0  ;;  %v3909_v37 = vmax.f32 %v3908_v52, %v3572_v45  ;;  %v3171_v10 = vpop.f32.mrf.mxu0  ;;  %v6832_v33 = vpop.f32.mrf.mxu1  ;;  %v4499_v48 = vrot.slane %v4472_v49, 5  ;;  %v4498_v26 = vsel %vm1441_vm2, %v4497_v7, %v4496_v19 }
 0x4e5   :  { %v3869_v12 = vmax.f32 %v3868_v20, %v3561_v5  ;;  %v3897_v16 = vmax.f32 %v3896_v51, %v3579_v40  ;;  %v3562_v53 = vmax.f32 %v3168_v4, 0.0  ;;  %v3580_v42 = vmax.f32 %v3371_v41, 0.0 }
 0x4e6   :  { %v3172_v60 = vadd.f32 %v3171_v10, %v6666_v62  ;;  %v3173_v29 = vpop.f32.mrf.mxu0  ;;  %v6838_v56 = vpop.f32.mrf.mxu1  ;;  %v6845_v52 = vsel %vm1443_vm3, %v4499_v48, %v4498_v26 }
 0x4e7   :  { %v3898_v61 = vrot.slane %v3897_v16, 4  ;;  %v3882_v55 = vmax.f32 %v3881_v2, %v3562_v53  ;;  %v3910_v34 = vmax.f32 %v3909_v37, %v3580_v42  ;;  %v3174_v39 = vadd.f32 %v3173_v29, %v6673_v32 }
 0x4e8   :  { %v3569_v23 = vmax.f32 %v3172_v60, 0.0  ;;  %v3175_v63 = vpop.f32.mrf.mxu0  ;;  %v3378_v49 = vpop.f32.mrf.mxu1 }
 0x4e9   :  { %v3899_v44 = vmax.f32 %v3897_v16, %v3898_v61  ;;  %v3911_v9 = vrot.slane %v3910_v34, 4  ;;  %v3570_v27 = vmax.f32 %v3174_v39, 0.0  ;;  %v3176_v11 = vadd.f32 %v3175_v63, %v6666_v62 }
 0x4ea   :  { %v3870_v20 = vmax.f32 %v3869_v12, %v3569_v23  ;;  %v3177_v51 = vpop.f32.mrf.mxu0  ;;  %v3380_v47 = vpop.f32.mrf.mxu1 }
 0x4eb   :  { %v3900_v0 = vrot.slane %v3899_v44, 2  ;;  %v3912_v45 = vmax.f32 %v3910_v34, %v3911_v9  ;;  %v3883_v24 = vmax.f32 %v3882_v55, %v3570_v27  ;;  %v3577_v38 = vmax.f32 %v3176_v11, 0.0 }
 0x4ec   :  { %v3178_v18 = vadd.f32 %v3177_v51, %v6673_v32  ;;  %v3181_v7 = vpop.f32.mrf.mxu0  ;;  %v3384_v5 = vpop.f32.mrf.mxu1 }
 0x4ed   :  { %v3901_v40 = vmax.f32 %v3899_v44, %v3900_v0  ;;  %v3913_v4 = vrot.slane %v3912_v45, 2  ;;  %v3871_v41 = vmax.f32 %v3870_v20, %v3577_v38  ;;  %v3182_v53 = vadd.f32 %v3181_v7, %v6666_v62 }
 0x4ee   :  { %v3578_v2 = vmax.f32 %v3178_v18, 0.0  ;;  %v3183_v37 = vpop.f32.mrf.mxu0  ;;  %v3386_v10 = vpop.f32.mrf.mxu1 }
 0x4ef   :  { %v3902_v19 = vrot.slane %v3901_v40, 1  ;;  %v3914_v48 = vmax.f32 %v3912_v45, %v3913_v4  ;;  %v3872_v12 = vrot.slane %v3871_v41, 4  ;;  %v3585_v27 = vmax.f32 %v3182_v53, 0.0 }
 0x4f0   :  { %v3884_v16 = vmax.f32 %v3883_v24, %v3578_v2  ;;  %v3185_v42 = vpop.f32.mrf.mxu0  ;;  %v6852_v60 = vpop.f32.mrf.mxu1 }
 0x4f1   :  { %v3915_v29 = vrot.slane %v3914_v48, 1  ;;  %v3873_v26 = vmax.f32 %v3871_v41, %v3872_v12  ;;  %v3186_v55 = vadd.f32 %v3185_v42, %v6666_v62  ;;  %v3903_v23 = vmax.f32 %v3901_v40, %v3902_v19 }
 0x4f2   :  { %v3885_v61 = vrot.slane %v3884_v16, 4  ;;  %v3187_v34 = vpop.f32.mrf.mxu0  ;;  %v6855_v39 = vpop.f32.mrf.mxu1  ;;  %v3375_v40 = vadd.f32 %v6832_v33, %v6685_v22  ;;  %v3379_v19 = vadd.f32 %v3378_v49, %v6685_v22 }
 0x4f3   :  { %v3916_v63 = vmax.f32 %v3914_v48, %v3915_v29  ;;  %v3874_v44 = vrot.slane %v3873_v26, 2  ;;  %v3593_v11 = vmax.f32 %v3186_v55, 0.0  ;;  %v3377_v48 = vadd.f32 %v6838_v56, %v6693_v59 }
 0x4f4   :  { %v3886_v9 = vmax.f32 %v3884_v16, %v3885_v61  ;;  %v3191_v20 = vpop.f32.mrf.mxu0  ;;  %v6857_v51 = vpop.f32.mrf.mxu1  ;;  %v3381_v29 = vadd.f32 %v3380_v47, %v6693_v59  ;;  %v3587_v33 = vmax.f32 %v3375_v40, 0.0  ;;  %v3595_v49 = vmax.f32 %v3379_v19, 0.0 }
 0x4f5   :  { %v4768_v0 = vpack.c.bf16 %v3916_v63, %v3903_v23  ;;  %v3875_v45 = vmax.f32 %v3873_v26, %v3874_v44  ;;  %v3969_v38 = vmax.f32 %v3585_v27, %v3593_v11  ;;  %v3188_v26 = vadd.f32 %v3187_v34, %v6673_v32 }
 0x4f6   :  { %v3887_v24 = vrot.slane %v3886_v9, 2  ;;  %v3193_v18 = vpop.f32.mrf.mxu0  ;;  %v6859_v7 = vpop.f32.mrf.mxu1  ;;  %v3192_v23 = vadd.f32 %v3191_v20, %v6666_v62  ;;  %v3588_v27 = vmax.f32 %v3377_v48, 0.0  ;;  %v3387_v20 = vadd.f32 %v3386_v10, %v6693_v59 }
 0x4f7   :  { %v3876_v4 = vrot.slane %v3875_v45, 1  ;;  %v3194_v56 = vadd.f32 %v3193_v18, %v6673_v32  ;;  %v6884_v19 = vrot.slane %v4768_v0, %v6529_v54 }
 0x4f8   :  { %v3888_v41 = vmax.f32 %v3886_v9, %v3887_v24  ;;  %v3195_v2 = vpop.f32.mrf.mxu0  ;;  %v6861_v12 = vpop.f32.mrf.mxu1  ;;  %v3184_v9 = vadd.f32 %v3183_v37, %v6673_v32  ;;  %v3385_v24 = vadd.f32 %v3384_v5, %v6685_v22  ;;  %v3601_v18 = vmax.f32 %v3192_v23, 0.0 }
 0x4f9   :  { %v3877_v61 = vmax.f32 %v3875_v45, %v3876_v4  ;;  %v3196_v47 = vadd.f32 %v3195_v2, %v6666_v62  ;;  %v3596_v4 = vmax.f32 %v3381_v29, 0.0  ;;  %v3602_v29 = vmax.f32 %v3194_v56, 0.0 }
 0x4fa   :  { %v3889_v16 = vrot.slane %v3888_v41, 1  ;;  %v3197_v53 = vpop.f32.mrf.mxu0  ;;  %v6868_v42 = vpop.f32.mrf.mxu1 }
 0x4fb   :  { %v3198_v40 = vadd.f32 %v3197_v53, %v6673_v32  ;;  %v3609_v0 = vmax.f32 %v3196_v47, 0.0  ;;  %v4008_v23 = vmax.f32 %v3588_v27, %v3596_v4  ;;  %v3395_v4 = vadd.f32 %v6857_v51, %v6685_v22 }
 0x4fc   :  { %v3890_v55 = vmax.f32 %v3888_v41, %v3889_v16  ;;  %v3201_v63 = vpop.f32.mrf.mxu0  ;;  %v6873_v44 = vpop.f32.mrf.mxu1  ;;  %v3594_v41 = vmax.f32 %v3188_v26, 0.0  ;;  %v3995_v16 = vmax.f32 %v3587_v33, %v3595_v49  ;;  %v3603_v26 = vmax.f32 %v3385_v24, 0.0 }
 0x4fd   :  { %v3202_v5 = vadd.f32 %v3201_v63, %v6666_v62  ;;  %v3604_v63 = vmax.f32 %v3387_v20, 0.0  ;;  %v3610_v30 = vmax.f32 %v3198_v40, 0.0  ;;  %v3389_v33 = vadd.f32 %v6852_v60, %v6685_v22 }
 0x4fe   :  { %v4767_v11 = vpack.c.bf16 %v3890_v55, %v3877_v61  ;;  %v3203_v34 = vpop.f32.mrf.mxu0  ;;  %v6879_v45 = vpop.f32.mrf.mxu1  ;;  %v3586_v61 = vmax.f32 %v3184_v9, 0.0  ;;  %v3970_v49 = vmax.f32 %v3969_v38, %v3601_v18  ;;  %v3391_v24 = vadd.f32 %v6855_v39, %v6693_v59 }
 0x4ff   :  { %v3204_v10 = vadd.f32 %v3203_v34, %v6673_v32  ;;  %v3617_v9 = vmax.f32 %v3202_v5, 0.0  ;;  %v3996_v27 = vmax.f32 %v3995_v16, %v3603_v26  ;;  %v3397_v40 = vadd.f32 %v6859_v7, %v6693_v59 }
 0x500   :  { %v6887_v37 = vrot.slane %v4767_v11, %v6529_v54  ;;  %v3205_v48 = vpop.f32.mrf.mxu0  ;;  %v6890_v2 = vpop.f32.mrf.mxu1  ;;  %v3982_v6 = vmax.f32 %v3586_v61, %v3594_v41  ;;  %v3971_v20 = vmax.f32 %v3970_v49, %v3609_v0  ;;  %v4009_v39 = vmax.f32 %v4008_v23, %v3604_v63 }
 0x501   :  { %v3206_v55 = vadd.f32 %v3205_v48, %v6666_v62  ;;  %v3618_v48 = vmax.f32 %v3204_v10, 0.0  ;;  %v3612_v26 = vmax.f32 %v3391_v24, 0.0  ;;  %v3399_v51 = vadd.f32 %v6861_v12, %v6685_v22 }
 0x502   :  { %v3207_v11 = vpop.f32.mrf.mxu0  ;;  %v6896_v14 = vpop.f32.mrf.mxu1  ;;  %v3983_v47 = vmax.f32 %v3982_v6, %v3602_v29  ;;  %v3611_v6 = vmax.f32 %v3389_v33, 0.0  ;;  %v3972_v29 = vmax.f32 %v3971_v20, %v3617_v9  ;;  %v3619_v49 = vmax.f32 %v3395_v4, 0.0 }
 0x503   :  { %v3208_v56 = vadd.f32 %v3207_v11, %v6673_v32  ;;  %v3625_v41 = vmax.f32 %v3206_v55, 0.0  ;;  %v3401_v7 = vadd.f32 %v6868_v42, %v6693_v59  ;;  %v3620_v63 = vmax.f32 %v3397_v40, 0.0 }
 0x504   :  { %v3211_v34 = vpop.f32.mrf.mxu0  ;;  %v3414_v53 = vpop.f32.mrf.mxu1  ;;  %v3984_v18 = vmax.f32 %v3983_v47, %v3610_v30  ;;  %v3997_v24 = vmax.f32 %v3996_v27, %v3611_v6  ;;  %v3407_v12 = vadd.f32 %v6879_v45, %v6693_v59  ;;  %v4010_v20 = vmax.f32 %v4009_v39, %v3612_v26 }
 0x505   :  { %v3212_v57 = vadd.f32 %v3211_v34, %v6666_v62  ;;  %v3626_v5 = vmax.f32 %v3208_v56, 0.0  ;;  %v3973_v30 = vmax.f32 %v3972_v29, %v3625_v41  ;;  %v3627_v41 = vmax.f32 %v3399_v51, 0.0 }
 0x506   :  { %v3213_v60 = vpop.f32.mrf.mxu0  ;;  %v3416_v38 = vpop.f32.mrf.mxu1  ;;  %v3985_v0 = vmax.f32 %v3984_v18, %v3618_v48  ;;  %v3628_v40 = vmax.f32 %v3401_v7, 0.0  ;;  %v6922_v45 = vadd.f32 %v6890_v2, %v6685_v22  ;;  %v7163_v2 = vpack.c.b16 %v6788_v28, %v6775_v3 }
 0x507   :  { %v3214_v61 = vadd.f32 %v3213_v60, %v6673_v32  ;;  %v3633_v10 = vmax.f32 %v3212_v57, 0.0  ;;  %v3405_v57 = vadd.f32 %v6873_v44, %v6685_v22  ;;  %v3417_v7 = vadd.f32 %v3416_v38, %v6693_v59 }
 0x508   :  { %v3215_v11 = vpop.f32.mrf.mxu0  ;;  %v3418_v16 = vpop.f32.mrf.mxu1  ;;  %v3986_v33 = vmax.f32 %v3985_v0, %v3626_v5  ;;  %v4011_v5 = vmax.f32 %v4010_v20, %v3620_v63 }
 0x509   :  { %v3634_v55 = vmax.f32 %v3214_v61, 0.0  ;;  %v3216_v56 = vadd.f32 %v3215_v11, %v6666_v62  ;;  %v3974_v47 = vmax.f32 %v3973_v30, %v3633_v10  ;;  %v3998_v61 = vmax.f32 %v3997_v24, %v3619_v49 }
 0x50a   :  { %v3217_v34 = vpop.f32.mrf.mxu0  ;;  %v3420_v23 = vpop.f32.mrf.mxu1  ;;  %v3635_v0 = vmax.f32 %v3405_v57, 0.0  ;;  %v3419_v27 = vadd.f32 %v3418_v16, %v6685_v22  ;;  %v3415_v49 = vadd.f32 %v3414_v53, %v6685_v22  ;;  %v3652_v3 = vmax.f32 %v3417_v7, 0.0 }
 0x50b   :  { %v3218_v9 = vadd.f32 %v3217_v34, %v6673_v32  ;;  %v3641_v48 = vmax.f32 %v3216_v56, 0.0  ;;  %v3987_v60 = vmax.f32 %v3986_v33, %v3634_v55  ;;  %v3636_v34 = vmax.f32 %v3407_v12, 0.0 }
 0x50c   :  { %v3221_v4 = vpop.f32.mrf.mxu0  ;;  %v3424_v42 = vpop.f32.mrf.mxu1  ;;  %v3421_v39 = vadd.f32 %v3420_v23, %v6693_v59  ;;  %v3999_v55 = vmax.f32 %v3998_v61, %v3627_v41  ;;  %v4012_v56 = vmax.f32 %v4011_v5, %v3628_v40  ;;  %v6931_v33 = vrot.slane %v7163_v2, %v6529_v54 }
 0x50d   :  { %v3642_v18 = vmax.f32 %v3218_v9, 0.0  ;;  %v3975_v29 = vmax.f32 %v3974_v47, %v3641_v48  ;;  %v6937_v23 = vadd.f32 %v6896_v14, %v6693_v59  ;;  %v3659_v53 = vmax.f32 %v3419_v27, 0.0 }
 0x50e   :  { %v3223_v11 = vpop.f32.mrf.mxu0  ;;  %v3426_v44 = vpop.f32.mrf.mxu1  ;;  %v6933_v9 = vmax.f32 %v3999_v55, %v3635_v0  ;;  %v6939_v38 = vmax.f32 %v4012_v56, %v3636_v34  ;;  %v3660_v48 = vmax.f32 %v3421_v39, 0.0  ;;  %v3425_v40 = vadd.f32 %v3424_v42, %v6685_v22 }
 0x50f   :  { %v3988_v6 = vmax.f32 %v3987_v60, %v3642_v18  ;;  %v3976_v10 = vrot.slane %v3975_v29, 4  ;;  %v3651_v60 = vmax.f32 %v3415_v49, 0.0  ;;  %v3222_v18 = vadd.f32 %v3221_v4, %v6666_v62 }
 0x510   :  { %v3225_v26 = vpop.f32.mrf.mxu0  ;;  %v3428_v51 = vpop.f32.mrf.mxu1  ;;  %v3427_v14 = vadd.f32 %v3426_v44, %v6693_v59  ;;  %v4112_v55 = vmax.f32 %v3652_v3, %v3660_v48  ;;  %v3224_v49 = vadd.f32 %v3223_v11, %v6673_v32 }
 0x511   :  { %v3989_v30 = vrot.slane %v3988_v6, 4  ;;  %v3977_v63 = vmax.f32 %v3975_v29, %v3976_v10  ;;  %v3226_v29 = vadd.f32 %v3225_v26, %v6666_v62  ;;  %v3429_v4 = vadd.f32 %v3428_v51, %v6685_v22 }
 0x512   :  { %v3227_v16 = vpop.f32.mrf.mxu0  ;;  %v3430_v57 = vpop.f32.mrf.mxu1  ;;  %v3649_v44 = vmax.f32 %v3222_v18, 0.0  ;;  %v3668_v2 = vmax.f32 %v3427_v14, 0.0  ;;  %v3650_v3 = vmax.f32 %v3224_v49, 0.0 }
 0x513   :  { %v3990_v24 = vmax.f32 %v3988_v6, %v3989_v30  ;;  %v3978_v47 = vrot.slane %v3977_v63, 2  ;;  %v4099_v6 = vmax.f32 %v3651_v60, %v3659_v53  ;;  %v3228_v10 = vadd.f32 %v3227_v16, %v6673_v32 }
 0x514   :  { %v3231_v20 = vpop.f32.mrf.mxu0  ;;  %v3434_v41 = vpop.f32.mrf.mxu1  ;;  %v3431_v26 = vadd.f32 %v3430_v57, %v6693_v59  ;;  %v3657_v53 = vmax.f32 %v3226_v29, 0.0 }
 0x515   :  { %v3991_v28 = vrot.slane %v3990_v24, 2  ;;  %v3979_v61 = vmax.f32 %v3977_v63, %v3978_v47  ;;  %v3232_v56 = vadd.f32 %v3231_v20, %v6666_v62  ;;  %v3667_v63 = vmax.f32 %v3425_v40, 0.0 }
 0x516   :  { %v3233_v5 = vpop.f32.mrf.mxu0  ;;  %v3436_v0 = vpop.f32.mrf.mxu1  ;;  %v3658_v51 = vmax.f32 %v3228_v10, 0.0  ;;  %v3435_v57 = vadd.f32 %v3434_v41, %v6685_v22  ;;  %v3676_v29 = vmax.f32 %v3431_v26, 0.0 }
 0x517   :  { %v3992_v34 = vmax.f32 %v3990_v24, %v3991_v28  ;;  %v3980_v39 = vrot.slane %v3979_v61, 1  ;;  %v3234_v24 = vadd.f32 %v3233_v5, %v6673_v32  ;;  %v3437_v60 = vadd.f32 %v3436_v0, %v6693_v59 }
 0x518   :  { %v3235_v7 = vpop.f32.mrf.mxu0  ;;  %v3438_v42 = vpop.f32.mrf.mxu1  ;;  %v3675_v28 = vmax.f32 %v3429_v4, 0.0  ;;  %v3665_v5 = vmax.f32 %v3232_v56, 0.0  ;;  %v4086_v4 = vmax.f32 %v3650_v3, %v3658_v51 }
 0x519   :  { %v3993_v30 = vrot.slane %v3992_v34, 1  ;;  %v6953_v48 = vmax.f32 %v3979_v61, %v3980_v39  ;;  %v3236_v20 = vadd.f32 %v3235_v7, %v6666_v62  ;;  %v3666_v61 = vmax.f32 %v3234_v24, 0.0 }
 0x51a   :  { %v3237_v16 = vpop.f32.mrf.mxu0  ;;  %v3440_v47 = vpop.f32.mrf.mxu1  ;;  %v4100_v39 = vmax.f32 %v4099_v6, %v3667_v63  ;;  %v3684_v12 = vmax.f32 %v3437_v60, 0.0  ;;  %v3439_v14 = vadd.f32 %v3438_v42, %v6685_v22  ;;  %v3683_v63 = vmax.f32 %v3435_v57, 0.0 }
 0x51b   :  { %v6955_v11 = vmax.f32 %v3992_v34, %v3993_v30  ;;  %v4113_v34 = vmax.f32 %v4112_v55, %v3668_v2  ;;  %v4073_v30 = vmax.f32 %v3649_v44, %v3657_v53  ;;  %v3238_v10 = vadd.f32 %v3237_v16, %v6673_v32 }
 0x51c   :  { %v3241_v18 = vpop.f32.mrf.mxu0  ;;  %v3444_v40 = vpop.f32.mrf.mxu1  ;;  %v3441_v41 = vadd.f32 %v3440_v47, %v6693_v59  ;;  %v4101_v27 = vmax.f32 %v4100_v39, %v3675_v28  ;;  %v3673_v15 = vmax.f32 %v3236_v20, 0.0  ;;  %v4087_v2 = vmax.f32 %v4086_v4, %v3666_v61 }
 0x51d   :  { %v3242_v7 = vadd.f32 %v3241_v18, %v6666_v62  ;;  %v4114_v55 = vmax.f32 %v4113_v34, %v3676_v29  ;;  %v4074_v44 = vmax.f32 %v4073_v30, %v3665_v5  ;;  %v3674_v53 = vmax.f32 %v3238_v10, 0.0 }
 0x51e   :  { %v3243_v0 = vpop.f32.mrf.mxu0  ;;  %v3446_v49 = vpop.f32.mrf.mxu1  ;;  %v3445_v24 = vadd.f32 %v3444_v40, %v6685_v22  ;;  %v3692_v28 = vmax.f32 %v3441_v41, 0.0  ;;  %v3691_v39 = vmax.f32 %v3439_v14, 0.0  ;;  %v4102_v10 = vmax.f32 %v4101_v27, %v3683_v63 }
 0x51f   :  { %v3244_v26 = vadd.f32 %v3243_v0, %v6673_v32  ;;  %v3447_v16 = vadd.f32 %v3446_v49, %v6693_v59  ;;  %v4115_v3 = vmax.f32 %v4114_v55, %v3684_v12  ;;  %v3681_v42 = vmax.f32 %v3242_v7, 0.0 }
 0x520   :  { %v3245_v56 = vpop.f32.mrf.mxu0  ;;  %v3448_v6 = vpop.f32.mrf.mxu1  ;;  %v4075_v18 = vmax.f32 %v4074_v44, %v3673_v15  ;;  %v4088_v0 = vmax.f32 %v4087_v2, %v3674_v53  ;;  %v3699_v49 = vmax.f32 %v3445_v24, 0.0  ;;  %v7164_v14 = vmax.f32 %v6937_v23, 0.0 }
 0x521   :  { %v3246_v47 = vadd.f32 %v3245_v56, %v6666_v62  ;;  %v3682_v29 = vmax.f32 %v3244_v26, 0.0  ;;  %v3449_v57 = vadd.f32 %v3448_v6, %v6685_v22  ;;  %v3700_v61 = vmax.f32 %v3447_v16, 0.0 }
 0x522   :  { %v3247_v51 = vpop.f32.mrf.mxu0  ;;  %v3450_v60 = vpop.f32.mrf.mxu1  ;;  %v4116_v41 = vmax.f32 %v4115_v3, %v3692_v28  ;;  %v4076_v7 = vmax.f32 %v4075_v18, %v3681_v42  ;;  %v4014_v26 = vmax.f32 %v6939_v38, %v7164_v14  ;;  %v4103_v6 = vmax.f32 %v4102_v10, %v3691_v39 }
 0x523   :  { %v3248_v20 = vadd.f32 %v3247_v51, %v6673_v32  ;;  %v3689_v34 = vmax.f32 %v3246_v47, 0.0  ;;  %v3451_v40 = vadd.f32 %v3450_v60, %v6693_v59  ;;  %v4089_v55 = vmax.f32 %v4088_v0, %v3682_v29 }
 0x524   :  { %v3251_v5 = vpop.f32.mrf.mxu0  ;;  %v4117_v47 = vmax.f32 %v4116_v41, %v3700_v61  ;;  %v3707_v27 = vmax.f32 %v3449_v57, 0.0  ;;  %v7165_v2 = vmax.f32 %v6922_v45, 0.0  ;;  %v4104_v24 = vmax.f32 %v4103_v6, %v3699_v49 }
 0x525   :  { %v3252_v30 = vadd.f32 %v3251_v5, %v6666_v62  ;;  %v3690_v12 = vmax.f32 %v3248_v20, 0.0  ;;  %v3708_v56 = vmax.f32 %v3451_v40, 0.0  ;;  %v4077_v51 = vmax.f32 %v4076_v7, %v3689_v34 }
 0x526   :  { %v3253_v4 = vpop.f32.mrf.mxu0  ;;  %v4001_v53 = vmax.f32 %v6933_v9, %v7165_v2  ;;  %v4015_v18 = vrot.slane %v4014_v26, 4  ;;  %v7166_v29 = vpack.c.b16 %v6845_v52, %v6822_v17  ;;  %v4105_v57 = vmax.f32 %v4104_v24, %v3707_v27 }
 0x527   :  { %v3697_v15 = vmax.f32 %v3252_v30, 0.0  ;;  %v3254_v44 = vadd.f32 %v3253_v4, %v6673_v32  ;;  %v4090_v60 = vmax.f32 %v4089_v55, %v3690_v12  ;;  %v4118_v28 = vmax.f32 %v4117_v47, %v3708_v56 }
 0x528   :  { %v3255_v16 = vpop.f32.mrf.mxu0  ;;  %v3305_v61 = vadd.f32 %v6669_v1, %v6685_v22  ;;  %v3307_v34 = vadd.f32 %v6676_v21, %v6693_v59  ;;  %v4002_v30 = vrot.slane %v4001_v53, 4  ;;  %v3309_v17 = vadd.f32 %v6687_v13, %v6685_v22 }
 0x529   :  { %v3256_v63 = vadd.f32 %v3255_v16, %v6666_v62  ;;  %v3698_v3 = vmax.f32 %v3254_v44, 0.0  ;;  %v4078_v38 = vmax.f32 %v4077_v51, %v3697_v15  ;;  %v4542_v62 = vrot.slane %v7166_v29, %v6529_v54 }
 0x52a   :  { %v3257_v23 = vpop.f32.mrf.mxu0  ;;  %v4119_v10 = vrot.slane %v4118_v28, 4  ;;  %v4016_v12 = vmax.f32 %v4014_v26, %v4015_v18  ;;  %v4106_v4 = vrot.slane %v4105_v57, 4  ;;  %v3475_v7 = vmax.f32 %v3305_v61, 0.0 }
 0x52b   :  { %v3705_v42 = vmax.f32 %v3256_v63, 0.0  ;;  %v3258_v20 = vadd.f32 %v3257_v23, %v6673_v32  ;;  %v4091_v45 = vmax.f32 %v4090_v60, %v3698_v3  ;;  %v4543_v32 = vcombine.low %v6931_v33, %v4542_v62 }
 0x52c   :  { %v3294_v39 = vpop.f32.mrf.mxu0  ;;  %v3476_v56 = vmax.f32 %v3307_v34, 0.0  ;;  %v3311_v14 = vadd.f32 %v6696_v8, %v6693_v59  ;;  %v4003_v6 = vmax.f32 %v4001_v53, %v4002_v30  ;;  %v4120_v13 = vmax.f32 %v4118_v28, %v4119_v10 }
 0x52d   :  { %v4079_v5 = vmax.f32 %v4078_v38, %v3705_v42  ;;  %v3706_v9 = vmax.f32 %v3258_v20, 0.0  ;;  %v3295_v52 = vadd.f32 %v3294_v39, %v6685_v22  ;;  %4561 = vst [vmem:[#allocation7] sm:$0xff] %v4543_v32  ;;  %v3315_v44 = vadd.f32 %v6700_v43, %v6685_v22 }
 0x52e   :  { %v3296_v40 = vpop.f32.mrf.mxu0  ;;  %v3483_v51 = vmax.f32 %v3309_v17, 0.0  ;;  %v4017_v27 = vrot.slane %v4016_v12, 2  ;;  %v4107_v63 = vmax.f32 %v4105_v57, %v4106_v4  ;;  %v3317_v24 = vadd.f32 %v6703_v35, %v6693_v59 }
 0x52f   :  { %v4092_v0 = vmax.f32 %v4091_v45, %v3706_v9  ;;  %v4080_v41 = vrot.slane %v4079_v5, 4  ;;  %v3297_v21 = vadd.f32 %v3296_v40, %v6693_v59  ;;  %v3459_v26 = vmax.f32 %v3295_v52, 0.0 }
 0x530   :  { %v3298_v49 = vpop.f32.mrf.mxu0  ;;  %v3319_v53 = vadd.f32 %v6708_v50, %v6685_v22  ;;  %v4004_v23 = vrot.slane %v4003_v6, 2  ;;  %v4121_v28 = vrot.slane %v4120_v13, 2  ;;  %v3484_v38 = vmax.f32 %v3311_v14, 0.0 }
 0x531   :  { %v4093_v1 = vrot.slane %v4092_v0, 4  ;;  %v3299_v33 = vadd.f32 %v3298_v49, %v6685_v22  ;;  %v4081_v2 = vmax.f32 %v4079_v5, %v4080_v41  ;;  %v3460_v60 = vmax.f32 %v3297_v21, 0.0 }
 0x532   :  { %v3300_v15 = vpop.f32.mrf.mxu0  ;;  %v3491_v42 = vmax.f32 %v3315_v44, 0.0  ;;  %v3321_v39 = vadd.f32 %v6718_v31, %v6693_v59  ;;  %v4018_v29 = vmax.f32 %v4016_v12, %v4017_v27  ;;  %v4108_v62 = vrot.slane %v4107_v63, 2 }
 0x533   :  { %v4094_v55 = vmax.f32 %v4092_v0, %v4093_v1  ;;  %v3467_v16 = vmax.f32 %v3299_v33, 0.0  ;;  %v3301_v47 = vadd.f32 %v3300_v15, %v6693_v59  ;;  %v4082_v57 = vrot.slane %v4081_v2, 2 }
 0x534   :  { %v3492_v35 = vmax.f32 %v3317_v24, 0.0  ;;  %v3325_v45 = vadd.f32 %v6726_v36, %v6685_v22  ;;  %v3499_v50 = vmax.f32 %v3319_v53, 0.0  ;;  %v4005_v61 = vmax.f32 %v4003_v6, %v4004_v23 }
 0x535   :  { %v3787_v3 = vmax.f32 %v3459_v26, %v3467_v16  ;;  %v3468_v8 = vmax.f32 %v3301_v47, 0.0  ;;  %v4095_v43 = vrot.slane %v4094_v55, 2  ;;  %v4122_v34 = vmax.f32 %v4120_v13, %v4121_v28 }
 0x536   :  { %v3327_v32 = vadd.f32 %v6733_v46, %v6693_v59  ;;  %v3329_v30 = vadd.f32 %v6743_v58, %v6685_v22  ;;  %v3500_v0 = vmax.f32 %v3321_v39, 0.0  ;;  %v4019_v17 = vrot.slane %v4018_v29, 1 }
 0x537   :  { %v3788_v20 = vmax.f32 %v3787_v3, %v3475_v7  ;;  %v3800_v18 = vmax.f32 %v3460_v60, %v3468_v8  ;;  %v4096_v40 = vmax.f32 %v4094_v55, %v4095_v43  ;;  %v4109_v52 = vmax.f32 %v4107_v63, %v4108_v62 }
 0x538   :  { %v4083_v49 = vmax.f32 %v4081_v2, %v4082_v57  ;;  %v3507_v12 = vmax.f32 %v3325_v45, 0.0  ;;  %v3331_v36 = vadd.f32 %v6750_v25, %v6693_v59  ;;  %v4006_v1 = vrot.slane %v4005_v61, 1 }
 0x539   :  { %v3789_v5 = vmax.f32 %v3788_v20, %v3483_v51  ;;  %v3801_v9 = vmax.f32 %v3800_v18, %v3476_v56  ;;  %v4123_v7 = vrot.slane %v4122_v34, 1  ;;  %v4097_v56 = vrot.slane %v4096_v40, 1 }
 0x53a   :  { %v3508_v21 = vmax.f32 %v3327_v32, 0.0  ;;  %v3515_v46 = vmax.f32 %v3329_v30, 0.0  ;;  %v4020_v22 = vmax.f32 %v4018_v29, %v4019_v17  ;;  %v4110_v58 = vrot.slane %v4109_v52, 1 }
 0x53b   :  { %v3790_v31 = vmax.f32 %v3789_v5, %v3491_v42  ;;  %v3802_v10 = vmax.f32 %v3801_v9, %v3484_v38  ;;  %v4084_v14 = vrot.slane %v4083_v49, 1  ;;  %v3516_v6 = vmax.f32 %v3331_v36, 0.0 }
 0x53c   :  { %v4007_v44 = vmax.f32 %v4005_v61, %v4006_v1  ;;  %v4124_v26 = vmax.f32 %v4122_v34, %v4123_v7  ;;  %v4098_v16 = vmax.f32 %v4096_v40, %v4097_v56  ;;  %v4111_v51 = vmax.f32 %v4109_v52, %v4110_v58 }
 0x53d   :  { %v3791_v4 = vmax.f32 %v3790_v31, %v3499_v50  ;;  %v3803_v41 = vmax.f32 %v3802_v10, %v3492_v35  ;;  %v4085_v27 = vmax.f32 %v4083_v49, %v4084_v14  ;;  %v7167_v3 = vpack.c.bf16 %v6955_v11, %v6953_v48 }
 0x53e   :  { %v4772_v25 = vpack.c.bf16 %v4020_v22, %v4007_v44  ;;  %v4776_v24 = vpack.c.bf16 %v4124_v26, %v4111_v51  ;;  %v4780_v62 = vcombine.low %v6884_v19, %v6884_v19  ;;  %v7168_v48 = vcombine.low %v6887_v37, %v6884_v19  ;;  %v7169_v19 = vld [vmem:[#allocation12_spill] sm:$0xff]  ;;  %v7170_v37 = vld [vmem:[#allocation15_spill] sm:$0xff] }
 0x53f   :  { %v3792_v33 = vmax.f32 %v3791_v4, %v3507_v12  ;;  %v3804_v15 = vmax.f32 %v3803_v41, %v3500_v0  ;;  %v4775_v60 = vpack.c.bf16 %v4098_v16, %v4085_v27  ;;  %v4282_v8 = vrot.slane %v7167_v3, %v6529_v54 }
 0x540   :  { %v4289_v28 = vrot.slane %v4772_v25, %v6529_v54  ;;  %v4323_v42 = vrot.slane %v4776_v24, %v6529_v54  ;;  %v4377_v11 = vrot.slane %v7168_v48, %v6529_v54  ;;  %v4384_v34 = vrot.slane %v4780_v62, %v6529_v54 }
 0x541   :  { %v3793_v13 = vmax.f32 %v3792_v33, %v3515_v46  ;;  %v3805_v55 = vmax.f32 %v3804_v15, %v3508_v21  ;;  %v4316_v20 = vrot.slane %v4775_v60, %v6529_v54  ;;  %v7171_v17 = vpack.c.bf16 %v7169_v19, %v7170_v37 }
 0x542   :  { %v4290_v18 = vcombine.low %v4282_v8, %v4289_v28  ;;  %v4782_v57 = vcombine.low %v4289_v28, %v4289_v28  ;;  %v4784_v45 = vcombine.low %v4323_v42, %v4323_v42  ;;  %v4457_v32 = vunpack.c.l.b16 %v4377_v11 }
 0x543   :  { %v3794_v47 = vrot.slane %v3793_v13, 4  ;;  %v3806_v59 = vmax.f32 %v3805_v55, %v3516_v6  ;;  %v4324_v5 = vcombine.low %v4316_v20, %v4323_v42  ;;  %v4458_v30 = vunpack.c.h.b16 %v4377_v11 }
 0x544   :  { %v4407_v9 = vrot.slane %v4290_v18, %v6529_v54  ;;  %v4414_v40 = vrot.slane %v4782_v57, %v6529_v54  ;;  %v4444_v10 = vrot.slane %v4784_v45, %v6529_v54  ;;  %v4214_v52 = vrot.slane %v7171_v17, %v6529_v54 }
 0x545   :  { %v3795_v63 = vmax.f32 %v3793_v13, %v3794_v47  ;;  %v3807_v2 = vrot.slane %v3806_v59, 4  ;;  %v4437_v0 = vrot.slane %v4324_v5, %v6529_v54  ;;  %v4459_v4 = vunpack.c.l.b16 %v4384_v34 }
 0x546   :  { %v4465_v12 = vunpack.c.l.b16 %v4407_v9  ;;  %v4466_v36 = vunpack.c.h.b16 %v4407_v9  ;;  %v4460_v41 = vunpack.c.h.b16 %v4384_v34  ;;  %v4467_v1 = vunpack.c.l.b16 %v4414_v40 }
 0x547   :  { %v3796_v53 = vrot.slane %v3795_v63, 2  ;;  %v3808_v23 = vmax.f32 %v3806_v59, %v3807_v2  ;;  %v4468_v7 = vunpack.c.h.b16 %v4414_v40  ;;  %v4501_v46 = vrot.slane %v4457_v32, 7 }
 0x548   :  { %v4507_v33 = vrot.slane %v4458_v30, 7  ;;  %v4473_v15 = vunpack.c.l.b16 %v4437_v0  ;;  %v4474_v22 = vunpack.c.h.b16 %v4437_v0  ;;  %v4475_v58 = vunpack.c.l.b16 %v4444_v10 }
 0x549   :  { %v3797_v43 = vmax.f32 %v3795_v63, %v3796_v53  ;;  %v3809_v38 = vrot.slane %v3808_v23, 2  ;;  %v4476_v14 = vunpack.c.h.b16 %v4444_v10  ;;  %v4503_v55 = vrot.slane %v4465_v12, 6 }
 0x54a   :  { %v4509_v44 = vrot.slane %v4466_v36, 6  ;;  %v4513_v26 = vrot.slane %v4459_v4, 7  ;;  %v4515_v16 = vrot.slane %v4467_v1, 6  ;;  %v4519_v47 = vrot.slane %v4460_v41, 7 }
 0x54b   :  { %v3798_v39 = vrot.slane %v3797_v43, 1  ;;  %v3810_v29 = vmax.f32 %v3808_v23, %v3809_v38  ;;  %v4521_v59 = vrot.slane %v4468_v7, 6  ;;  %v4505_v2 = vrot.slane %v4473_v15, 5 }
 0x54c   :  { %v4511_v24 = vrot.slane %v4474_v22, 5  ;;  %v4517_v60 = vrot.slane %v4475_v58, 5  ;;  %v4523_v3 = vrot.slane %v4476_v14, 5 }
 0x54d   :  { %v3811_v35 = vrot.slane %v3810_v29, 1  ;;  %v3799_v50 = vmax.f32 %v3797_v43, %v3798_v39 }
 0x54f   :  { %v3812_v61 = vmax.f32 %v3810_v29, %v3811_v35 }
 0x551   :  { %v4764_v31 = vpack.c.bf16 %v3812_v61, %v3799_v50 }
 0x553   :  { %v4221_v49 = vrot.slane %v4764_v31, %v6529_v54 }
 0x555   :  { %v4222_v56 = vcombine.low %v4214_v52, %v4221_v49  ;;  %v4778_v21 = vcombine.low %v4221_v49, %v4221_v49 }
 0x557   :  { %v4347_v6 = vrot.slane %v4222_v56, %v6529_v54  ;;  %v4354_v13 = vrot.slane %v4778_v21, %v6529_v54 }
 0x559   :  { %v4449_v25 = vunpack.c.l.b16 %v4347_v6  ;;  %v4450_v51 = vunpack.c.h.b16 %v4347_v6  ;;  %v4451_v27 = vunpack.c.l.b16 %v4354_v13  ;;  %v4452_v63 = vunpack.c.h.b16 %v4354_v13 }
 0x55b   :  { %v4502_v8 = vsel %vm1439_vm1, %v4501_v46, %v4449_v25  ;;  %v4508_v53 = vsel %vm1439_vm1, %v4507_v33, %v4450_v51  ;;  %v4514_v23 = vsel %vm1439_vm1, %v4513_v26, %v4451_v27  ;;  %v4520_v28 = vsel %vm1439_vm1, %v4519_v47, %v4452_v63 }
 0x55c   :  { %v4504_v43 = vsel %vm1441_vm2, %v4503_v55, %v4502_v8  ;;  %v4510_v38 = vsel %vm1441_vm2, %v4509_v44, %v4508_v53  ;;  %v4516_v42 = vsel %vm1441_vm2, %v4515_v16, %v4514_v23  ;;  %v4522_v20 = vsel %vm1441_vm2, %v4521_v59, %v4520_v28 }
 0x55d   :  { %v4506_v18 = vsel %vm1443_vm3, %v4505_v2, %v4504_v43  ;;  %v4512_v39 = vsel %vm1443_vm3, %v4511_v24, %v4510_v38  ;;  %v4518_v29 = vsel %vm1443_vm3, %v4517_v60, %v4516_v42  ;;  %v4524_v62 = vsel %vm1443_vm3, %v4523_v3, %v4522_v20 }
 0x55e   :  { %v4527_v57 = vpack.c.b16 %v4512_v39, %v4506_v18  ;;  %v4528_v48 = vpack.c.b16 %v4524_v62, %v4518_v29 }
 0x560   :  { %v4550_v11 = vrot.slane %v4527_v57, %v6529_v54  ;;  %v4557_v35 = vrot.slane %v4528_v48, %v6529_v54 }
 0x562   :  { %v4558_v45 = vcombine.low %v4550_v11, %v4557_v35 }
 0x564   :  { %4562 = vst [vmem:[#allocation7 + $0x8] sm:$0xff] %v4558_v45 }
 0x565   :  { %5037 = shalt.err (!%p5034_p0)
}
 0x566   :  { %4572 = dma.vmem_to_hbm [thread:$0]  %s4570_s20, 256, %s7068_s10, [#allocation4]  }
 0x567   :  { %5050 = dma.done.wait [#allocation4], 256  }
 0x568   :  { %5051 = vsyncadd [#allocation4], 4294967040 }
 0x569   :  { %4576 = vsyncpa [#allocation3], 1 }
 0x56a   :  { %4577 = vsyncpa [#allocation6], 1 }
 0x56b   :  { %4578 = vsyncpa [#allocation4], 1 }

</bundles_post_ra>
